<compile_context>
chip_gen: v7x
topology: tpu7x:2x2x1
jax: 0.10.0
libtpu: 0.0.40
codegen_flags: <defaults>
</compile_context>

<pallas_src>
import functools

import jax
import jax.numpy as jnp
from jax import lax
from jax.experimental import pallas as pl
from jax.experimental.pallas import tpu as pltpu


def _round_up(x, m):
    return (x + m - 1) // m * m


# ----------------------------- Pallas kernel --------------------------------


def _conv3d_tap_kernel(p0_ref, p1_ref, p2_ref, w_ref, b_ref, o_ref, *, Wp, Rb):
    """27-tap 3x3x3 conv + folded BN bias + ReLU on one flattened row band.

    p{0,1,2}_ref: (1, 1, 1, BF, Cin) bf16 — depth-shifted flattened input slabs
    w_ref:        (27, Cin, Cpad)    bf16 — BN-scale-folded weights (Cout padded)
    b_ref:        (1, Cpad)          f32  — folded BN bias
    o_ref:        (1, 1, 1, Rb, Cpad) bf16
    """
    planes = (p0_ref, p1_ref, p2_ref)
    acc = None
    for kd in range(3):
        # Aligned full-block load; the (odd-offset) tap slicing is done on the
        # f32 copy and each slice is cast back to bf16 right before the MXU.
        full = planes[kd][0, 0, 0].astype(jnp.float32)            # (BF, Cin)
        for kh in range(3):
            for kw in range(3):
                off = kh * Wp + kw                                 # static
                a = full[off:off + Rb, :].astype(jnp.bfloat16)     # (Rb, Cin)
                wt = w_ref[kd * 9 + kh * 3 + kw]                   # (Cin, Cpad)
                contrib = jnp.dot(a, wt, preferred_element_type=jnp.float32)
                acc = contrib if acc is None else acc + contrib
    y = acc + b_ref[...]
    o_ref[0, 0, 0] = jnp.maximum(y, 0.0).astype(o_ref.dtype)


# --------------------------- conv + BN + ReLU --------------------------------


def _conv3d_bn_relu(x, w, gamma, beta, mean, var, *, stride=1, eps=1e-5,
                    row_block_rows=2048, out_dtype=jnp.bfloat16):
    """x: (N, D, H, W, Cin), w: (Cout, Cin, 3, 3, 3) f32 -> (N, Do, Ho, Wo, Cout)."""
    N, D, H, W, Cin = x.shape
    Cout = w.shape[0]
    assert w.shape[1:] == (Cin, 3, 3, 3), "kernel only supports 3x3x3, pad=1"

    Wp, Hp, Dp = W + 2, H + 2, D + 2
    TH = max(1, min(H, row_block_rows // Wp))     # output H-rows per band
    NRB = -(-H // TH)                             # number of bands
    Rb = _round_up(TH * Wp, 8)                    # output rows per grid step
    BF = _round_up(max((TH + 2) * Wp, Rb + 2 * Wp + 2), 8)   # flattened band rows
    Cpad = _round_up(Cout, 128)                   # lane-dense output channels

    # ---- fold BN (eval mode) scale into weights; bias kept separate ----
    scale = gamma / jnp.sqrt(var + eps)
    bias = beta - mean * scale
    Wt = jnp.transpose(w, (2, 3, 4, 1, 0)).reshape(27, Cin, Cout) * scale[None, None, :]
    Wt = jnp.pad(Wt, ((0, 0), (0, 0), (0, Cpad - Cout))).astype(jnp.bfloat16)
    b2 = jnp.pad(bias, (0, Cpad - Cout)).reshape(1, Cpad).astype(jnp.float32)

    # ---- conv-pad, band the H axis (2-row overlap), flatten (h, w) per band ----
    xb = x.astype(jnp.bfloat16)
    Hband = NRB * TH + 2
    xp = jnp.pad(xb, ((0, 0), (1, 1), (1, Hband - H - 1), (1, 1), (0, 0)))
    # (N, Dp, Hband, Wp, Cin) -> (N, Dp, NRB, TH+2, Wp, Cin)
    bands = jnp.stack([xp[:, :, rb * TH: rb * TH + TH + 2, :, :] for rb in range(NRB)],
                      axis=2)
    bands = bands.reshape(N, Dp, NRB, (TH + 2) * Wp, Cin)
    bands = jnp.pad(bands, ((0, 0),) * 3 + ((0, BF - (TH + 2) * Wp), (0, 0)))

    kernel = functools.partial(_conv3d_tap_kernel, Wp=Wp, Rb=Rb)

    def plane_spec(kd):
        return pl.BlockSpec((1, 1, 1, BF, Cin),
                            lambda n, d, rb, kd=kd: (n, d + kd, rb, 0, 0))

    out = pl.pallas_call(
        kernel,
        out_shape=jax.ShapeDtypeStruct((N, D, NRB, Rb, Cpad), out_dtype),
        grid=(N, D, NRB),
        in_specs=[
            plane_spec(0), plane_spec(1), plane_spec(2),
            pl.BlockSpec((27, Cin, Cpad), lambda n, d, rb: (0, 0, 0)),
            pl.BlockSpec((1, Cpad), lambda n, d, rb: (0, 0)),
        ],
        out_specs=pl.BlockSpec((1, 1, 1, Rb, Cpad), lambda n, d, rb: (n, d, rb, 0, 0)),
        compiler_params=pltpu.CompilerParams(
            dimension_semantics=("parallel", "parallel", "parallel"),
            vmem_limit_bytes=32 * 1024 * 1024),
    )(bands, bands, bands, Wt, b2)

    # ---- crop padded rows / channels, restore (N, D, H, W, Cout) ----
    y = out[:, :, :, :TH * Wp, :Cout].reshape(N, D, NRB, TH, Wp, Cout)
    y = y[:, :, :, :, :W, :].reshape(N, D, NRB * TH, W, Cout)[:, :, :H, :, :]

    if stride != 1:
        # TODO(synk): stride>1 computes the stride-1 conv and subsamples (correct
        # but does s^3 redundant work); a strided fast path would tile the
        # strided output grid directly.
        y = y[:, ::stride, ::stride, ::stride, :]
    return y


# --------------------------- Module equivalent -------------------------------


def init_conv3d_block_kendall(key, in_planes, planes, kernel_size=3):
    """Deterministic synthetic parameters (shapes match the PyTorch module)."""
    ks = jax.random.split(key, 15)

    def conv_w(k, cout, cin):
        fan_in = cin * kernel_size ** 3
        return (jax.random.normal(k, (cout, cin, kernel_size, kernel_size, kernel_size),
                                  dtype=jnp.float32) / jnp.sqrt(fan_in))

    def bn(k0, k1, k2, k3, c):
        return dict(
            gamma=1.0 + 0.1 * jax.random.normal(k0, (c,), dtype=jnp.float32),
            beta=0.1 * jax.random.normal(k1, (c,), dtype=jnp.float32),
            mean=0.05 * jax.random.normal(k2, (c,), dtype=jnp.float32),
            var=jnp.abs(1.0 + 0.1 * jax.random.normal(k3, (c,), dtype=jnp.float32)),
        )

    return dict(
        w1=conv_w(ks[0], planes, in_planes), bn1=bn(ks[1], ks[2], ks[3], ks[4], planes),
        w2=conv_w(ks[5], planes, planes),    bn2=bn(ks[6], ks[7], ks[8], ks[9], planes),
        w3=conv_w(ks[10], planes, planes),   bn3=bn(ks[11], ks[12], ks[13], ks[14], planes),
    )


def conv3d_block_kendall_forward(params, x_ncdhw, *, stride=1, row_block_rows=2048):
    """x_ncdhw: (N, Cin, D, H, W)  ->  (out, out2), both NCDHW f32 like PyTorch."""
    x = jnp.transpose(x_ncdhw, (0, 2, 3, 4, 1))  # -> NDHWC

    def block(h, w, bn, s):
        return _conv3d_bn_relu(h, w, bn["gamma"], bn["beta"], bn["mean"], bn["var"],
                               stride=s, row_block_rows=row_block_rows)

    out2 = block(x, params["w1"], params["bn1"], stride)      # relu(convbn_3d_1(x))
    out = block(out2, params["w2"], params["bn2"], 1)         # relu(convbn_3d_2(out))
    out = block(out, params["w3"], params["bn3"], 1)          # relu(convbn_3d_3(out))

    def to_ncdhw_f32(t):
        return jnp.transpose(t.astype(jnp.float32), (0, 4, 1, 2, 3))

    return to_ncdhw_f32(out), to_ncdhw_f32(out2)


# ------------------------------ Reference ------------------------------------


def _ref_conv_bn_relu(x_ncdhw, w, bn, stride, eps=1e-5):
    y = lax.conv_general_dilated(
        x_ncdhw, w, window_strides=(stride, stride, stride),
        padding=((1, 1), (1, 1), (1, 1)),
        dimension_numbers=("NCDHW", "OIDHW", "NCDHW"))
    g = bn["gamma"][None, :, None, None, None]
    b = bn["beta"][None, :, None, None, None]
    m = bn["mean"][None, :, None, None, None]
    v = bn["var"][None, :, None, None, None]
    return jnp.maximum((y - m) / jnp.sqrt(v + eps) * g + b, 0.0)


def _ref_forward(params, x, stride=1):
    out2 = _ref_conv_bn_relu(x, params["w1"], params["bn1"], stride)
    out = _ref_conv_bn_relu(out2, params["w2"], params["bn2"], 1)
    out = _ref_conv_bn_relu(out, params["w3"], params["bn3"], 1)
    return out, out2


# -------------------------------- Main ----------------------------------------


if __name__ == "__main__":
    N, in_planes, planes = 2, 4, 8
    D = H = W = 8
    stride = 1

    key = jax.random.PRNGKey(0)
    kx, kp = jax.random.split(key)
    x = jax.random.normal(kx, (N, in_planes, D, H, W), dtype=jnp.float32)
    params = init_conv3d_block_kendall(kp, in_planes, planes)

    fwd = jax.jit(functools.partial(conv3d_block_kendall_forward, stride=stride))
    out, out2 = fwd(params, x)
    jax.block_until_ready(out)
    jax.block_until_ready(out2)

    # f32 reference; kernel uses bf16 matmul operands / bf16 activations with f32
    # accumulation, so use a tolerance consistent with bf16 rounding over 3 layers.
    ref_out, ref_out2 = _ref_forward(params, x, stride)
    assert out.shape == ref_out.shape and out2.shape == ref_out2.shape
    assert jnp.allclose(out, ref_out, rtol=3e-2, atol=3e-2)
    assert jnp.allclose(out2, ref_out2, rtol=3e-2, atol=3e-2)

    # Extra check: exercise the multi-band row-tiling path (NRB > 1).
    x_ndhwc = jnp.transpose(x, (0, 2, 3, 4, 1))
    banded = _conv3d_bn_relu(x_ndhwc, params["w1"], **params["bn1"],
                             stride=stride, row_block_rows=32)
    banded = jnp.transpose(banded.astype(jnp.float32), (0, 4, 1, 2, 3))
    assert jnp.allclose(banded, ref_out2, rtol=3e-2, atol=3e-2)

    print("KERNEL_OK")
</pallas_src>

<mosaic_0001>
module attributes {stable_mosaic.version = 11 : i64} {
  func.func @_conv3d_tap_kernel(%arg0: i32, %arg1: i32, %arg2: i32, %arg3: memref<1x1x1x104x4xbf16, #tpu.memory_space<vmem>>, %arg4: memref<1x1x1x104x4xbf16, #tpu.memory_space<vmem>>, %arg5: memref<1x1x1x104x4xbf16, #tpu.memory_space<vmem>>, %arg6: memref<27x4x128xbf16, #tpu.memory_space<vmem>>, %arg7: memref<1x128xf32, #tpu.memory_space<vmem>>, %arg8: memref<1x1x1x80x128xbf16, #tpu.memory_space<vmem>>) attributes {dimension_semantics = [#tpu.dimension_semantics<parallel>, #tpu.dimension_semantics<parallel>, #tpu.dimension_semantics<parallel>], iteration_bounds = array<i64: 2, 8, 1>, scalar_prefetch = 0 : i64, scratch_operands = 0 : i64, tpu.core_type = #tpu.core_type<tc>, window_params = [{transform_indices = @transform_0, window_bounds = array<i64: 1, 1, 1, 104, 4>}, {transform_indices = @transform_1, window_bounds = array<i64: 1, 1, 1, 104, 4>}, {transform_indices = @transform_2, window_bounds = array<i64: 1, 1, 1, 104, 4>}, {pipeline_mode = #tpu.pipeline_mode<synchronous>, transform_indices = @transform_3, window_bounds = array<i64: 27, 4, 128>}, {pipeline_mode = #tpu.pipeline_mode<synchronous>, transform_indices = @transform_4, window_bounds = array<i64: 1, 128>}, {transform_indices = @transform_5, window_bounds = array<i64: 1, 1, 1, 80, 128>}]} {
    %c0 = arith.constant 0 : index
    %c0_0 = arith.constant 0 : index
    %c0_1 = arith.constant 0 : index
    %c0_2 = arith.constant 0 : index
    %c0_3 = arith.constant 0 : index
    %0 = vector.load %arg3[%c0, %c0_0, %c0_1, %c0_2, %c0_3] : memref<1x1x1x104x4xbf16, #tpu.memory_space<vmem>>, vector<1x1x1x104x4xbf16>
    %1 = vector.shape_cast %0 : vector<1x1x1x104x4xbf16> to vector<104x4xbf16>
    %2 = arith.extf %1 : vector<104x4xbf16> to vector<104x4xf32>
    %3 = vector.extract_strided_slice %2 {offsets = [0, 0], sizes = [80, 4], strides = [1, 1]} : vector<104x4xf32> to vector<80x4xf32>
    %4 = arith.truncf %3 : vector<80x4xf32> to vector<80x4xbf16>
    %c0_4 = arith.constant 0 : index
    %c0_5 = arith.constant 0 : index
    %c0_6 = arith.constant 0 : index
    %5 = vector.load %arg6[%c0_4, %c0_5, %c0_6] : memref<27x4x128xbf16, #tpu.memory_space<vmem>>, vector<1x4x128xbf16>
    %6 = vector.shape_cast %5 : vector<1x4x128xbf16> to vector<4x128xbf16>
    %cst = arith.constant dense<0.000000e+00> : vector<80x128xf32>
    %7 = tpu.matmul %4, %6, %cst {dimension_numbers = #tpu.dot_dimension_numbers<[1], [0], [0], [1], [0, 0, 1, 1], [], []>} : vector<80x4xbf16>, vector<4x128xbf16>, vector<80x128xf32> -> vector<80x128xf32>
    %8 = vector.extract_strided_slice %2 {offsets = [1, 0], sizes = [80, 4], strides = [1, 1]} : vector<104x4xf32> to vector<80x4xf32>
    %9 = arith.truncf %8 : vector<80x4xf32> to vector<80x4xbf16>
    %c1 = arith.constant 1 : index
    %c0_7 = arith.constant 0 : index
    %c0_8 = arith.constant 0 : index
    %10 = vector.load %arg6[%c1, %c0_7, %c0_8] : memref<27x4x128xbf16, #tpu.memory_space<vmem>>, vector<1x4x128xbf16>
    %11 = vector.shape_cast %10 : vector<1x4x128xbf16> to vector<4x128xbf16>
    %cst_9 = arith.constant dense<0.000000e+00> : vector<80x128xf32>
    %12 = tpu.matmul %9, %11, %cst_9 {dimension_numbers = #tpu.dot_dimension_numbers<[1], [0], [0], [1], [0, 0, 1, 1], [], []>} : vector<80x4xbf16>, vector<4x128xbf16>, vector<80x128xf32> -> vector<80x128xf32>
    %13 = arith.addf %7, %12 : vector<80x128xf32>
    %14 = vector.extract_strided_slice %2 {offsets = [2, 0], sizes = [80, 4], strides = [1, 1]} : vector<104x4xf32> to vector<80x4xf32>
    %15 = arith.truncf %14 : vector<80x4xf32> to vector<80x4xbf16>
    %c2 = arith.constant 2 : index
    %c0_10 = arith.constant 0 : index
    %c0_11 = arith.constant 0 : index
    %16 = vector.load %arg6[%c2, %c0_10, %c0_11] : memref<27x4x128xbf16, #tpu.memory_space<vmem>>, vector<1x4x128xbf16>
    %17 = vector.shape_cast %16 : vector<1x4x128xbf16> to vector<4x128xbf16>
    %cst_12 = arith.constant dense<0.000000e+00> : vector<80x128xf32>
    %18 = tpu.matmul %15, %17, %cst_12 {dimension_numbers = #tpu.dot_dimension_numbers<[1], [0], [0], [1], [0, 0, 1, 1], [], []>} : vector<80x4xbf16>, vector<4x128xbf16>, vector<80x128xf32> -> vector<80x128xf32>
    %19 = arith.addf %13, %18 : vector<80x128xf32>
    %20 = vector.extract_strided_slice %2 {offsets = [10, 0], sizes = [80, 4], strides = [1, 1]} : vector<104x4xf32> to vector<80x4xf32>
    %21 = arith.truncf %20 : vector<80x4xf32> to vector<80x4xbf16>
    %c3 = arith.constant 3 : index
    %c0_13 = arith.constant 0 : index
    %c0_14 = arith.constant 0 : index
    %22 = vector.load %arg6[%c3, %c0_13, %c0_14] : memref<27x4x128xbf16, #tpu.memory_space<vmem>>, vector<1x4x128xbf16>
    %23 = vector.shape_cast %22 : vector<1x4x128xbf16> to vector<4x128xbf16>
    %cst_15 = arith.constant dense<0.000000e+00> : vector<80x128xf32>
    %24 = tpu.matmul %21, %23, %cst_15 {dimension_numbers = #tpu.dot_dimension_numbers<[1], [0], [0], [1], [0, 0, 1, 1], [], []>} : vector<80x4xbf16>, vector<4x128xbf16>, vector<80x128xf32> -> vector<80x128xf32>
    %25 = arith.addf %19, %24 : vector<80x128xf32>
    %26 = vector.extract_strided_slice %2 {offsets = [11, 0], sizes = [80, 4], strides = [1, 1]} : vector<104x4xf32> to vector<80x4xf32>
    %27 = arith.truncf %26 : vector<80x4xf32> to vector<80x4xbf16>
    %c4 = arith.constant 4 : index
    %c0_16 = arith.constant 0 : index
    %c0_17 = arith.constant 0 : index
    %28 = vector.load %arg6[%c4, %c0_16, %c0_17] : memref<27x4x128xbf16, #tpu.memory_space<vmem>>, vector<1x4x128xbf16>
    %29 = vector.shape_cast %28 : vector<1x4x128xbf16> to vector<4x128xbf16>
    %cst_18 = arith.constant dense<0.000000e+00> : vector<80x128xf32>
    %30 = tpu.matmul %27, %29, %cst_18 {dimension_numbers = #tpu.dot_dimension_numbers<[1], [0], [0], [1], [0, 0, 1, 1], [], []>} : vector<80x4xbf16>, vector<4x128xbf16>, vector<80x128xf32> -> vector<80x128xf32>
    %31 = arith.addf %25, %30 : vector<80x128xf32>
    %32 = vector.extract_strided_slice %2 {offsets = [12, 0], sizes = [80, 4], strides = [1, 1]} : vector<104x4xf32> to vector<80x4xf32>
    %33 = arith.truncf %32 : vector<80x4xf32> to vector<80x4xbf16>
    %c5 = arith.constant 5 : index
    %c0_19 = arith.constant 0 : index
    %c0_20 = arith.constant 0 : index
    %34 = vector.load %arg6[%c5, %c0_19, %c0_20] : memref<27x4x128xbf16, #tpu.memory_space<vmem>>, vector<1x4x128xbf16>
    %35 = vector.shape_cast %34 : vector<1x4x128xbf16> to vector<4x128xbf16>
    %cst_21 = arith.constant dense<0.000000e+00> : vector<80x128xf32>
    %36 = tpu.matmul %33, %35, %cst_21 {dimension_numbers = #tpu.dot_dimension_numbers<[1], [0], [0], [1], [0, 0, 1, 1], [], []>} : vector<80x4xbf16>, vector<4x128xbf16>, vector<80x128xf32> -> vector<80x128xf32>
    %37 = arith.addf %31, %36 : vector<80x128xf32>
    %38 = vector.extract_strided_slice %2 {offsets = [20, 0], sizes = [80, 4], strides = [1, 1]} : vector<104x4xf32> to vector<80x4xf32>
    %39 = arith.truncf %38 : vector<80x4xf32> to vector<80x4xbf16>
    %c6 = arith.constant 6 : index
    %c0_22 = arith.constant 0 : index
    %c0_23 = arith.constant 0 : index
    %40 = vector.load %arg6[%c6, %c0_22, %c0_23] : memref<27x4x128xbf16, #tpu.memory_space<vmem>>, vector<1x4x128xbf16>
    %41 = vector.shape_cast %40 : vector<1x4x128xbf16> to vector<4x128xbf16>
    %cst_24 = arith.constant dense<0.000000e+00> : vector<80x128xf32>
    %42 = tpu.matmul %39, %41, %cst_24 {dimension_numbers = #tpu.dot_dimension_numbers<[1], [0], [0], [1], [0, 0, 1, 1], [], []>} : vector<80x4xbf16>, vector<4x128xbf16>, vector<80x128xf32> -> vector<80x128xf32>
    %43 = arith.addf %37, %42 : vector<80x128xf32>
    %44 = vector.extract_strided_slice %2 {offsets = [21, 0], sizes = [80, 4], strides = [1, 1]} : vector<104x4xf32> to vector<80x4xf32>
    %45 = arith.truncf %44 : vector<80x4xf32> to vector<80x4xbf16>
    %c7 = arith.constant 7 : index
    %c0_25 = arith.constant 0 : index
    %c0_26 = arith.constant 0 : index
    %46 = vector.load %arg6[%c7, %c0_25, %c0_26] : memref<27x4x128xbf16, #tpu.memory_space<vmem>>, vector<1x4x128xbf16>
    %47 = vector.shape_cast %46 : vector<1x4x128xbf16> to vector<4x128xbf16>
    %cst_27 = arith.constant dense<0.000000e+00> : vector<80x128xf32>
    %48 = tpu.matmul %45, %47, %cst_27 {dimension_numbers = #tpu.dot_dimension_numbers<[1], [0], [0], [1], [0, 0, 1, 1], [], []>} : vector<80x4xbf16>, vector<4x128xbf16>, vector<80x128xf32> -> vector<80x128xf32>
    %49 = arith.addf %43, %48 : vector<80x128xf32>
    %50 = vector.extract_strided_slice %2 {offsets = [22, 0], sizes = [80, 4], strides = [1, 1]} : vector<104x4xf32> to vector<80x4xf32>
    %51 = arith.truncf %50 : vector<80x4xf32> to vector<80x4xbf16>
    %c8 = arith.constant 8 : index
    %c0_28 = arith.constant 0 : index
    %c0_29 = arith.constant 0 : index
    %52 = vector.load %arg6[%c8, %c0_28, %c0_29] : memref<27x4x128xbf16, #tpu.memory_space<vmem>>, vector<1x4x128xbf16>
    %53 = vector.shape_cast %52 : vector<1x4x128xbf16> to vector<4x128xbf16>
    %cst_30 = arith.constant dense<0.000000e+00> : vector<80x128xf32>
    %54 = tpu.matmul %51, %53, %cst_30 {dimension_numbers = #tpu.dot_dimension_numbers<[1], [0], [0], [1], [0, 0, 1, 1], [], []>} : vector<80x4xbf16>, vector<4x128xbf16>, vector<80x128xf32> -> vector<80x128xf32>
    %55 = arith.addf %49, %54 : vector<80x128xf32>
    %c0_31 = arith.constant 0 : index
    %c0_32 = arith.constant 0 : index
    %c0_33 = arith.constant 0 : index
    %c0_34 = arith.constant 0 : index
    %c0_35 = arith.constant 0 : index
    %56 = vector.load %arg4[%c0_31, %c0_32, %c0_33, %c0_34, %c0_35] : memref<1x1x1x104x4xbf16, #tpu.memory_space<vmem>>, vector<1x1x1x104x4xbf16>
    %57 = vector.shape_cast %56 : vector<1x1x1x104x4xbf16> to vector<104x4xbf16>
    %58 = arith.extf %57 : vector<104x4xbf16> to vector<104x4xf32>
    %59 = vector.extract_strided_slice %58 {offsets = [0, 0], sizes = [80, 4], strides = [1, 1]} : vector<104x4xf32> to vector<80x4xf32>
    %60 = arith.truncf %59 : vector<80x4xf32> to vector<80x4xbf16>
    %c9 = arith.constant 9 : index
    %c0_36 = arith.constant 0 : index
    %c0_37 = arith.constant 0 : index
    %61 = vector.load %arg6[%c9, %c0_36, %c0_37] : memref<27x4x128xbf16, #tpu.memory_space<vmem>>, vector<1x4x128xbf16>
    %62 = vector.shape_cast %61 : vector<1x4x128xbf16> to vector<4x128xbf16>
    %cst_38 = arith.constant dense<0.000000e+00> : vector<80x128xf32>
    %63 = tpu.matmul %60, %62, %cst_38 {dimension_numbers = #tpu.dot_dimension_numbers<[1], [0], [0], [1], [0, 0, 1, 1], [], []>} : vector<80x4xbf16>, vector<4x128xbf16>, vector<80x128xf32> -> vector<80x128xf32>
    %64 = arith.addf %55, %63 : vector<80x128xf32>
    %65 = vector.extract_strided_slice %58 {offsets = [1, 0], sizes = [80, 4], strides = [1, 1]} : vector<104x4xf32> to vector<80x4xf32>
    %66 = arith.truncf %65 : vector<80x4xf32> to vector<80x4xbf16>
    %c10 = arith.constant 10 : index
    %c0_39 = arith.constant 0 : index
    %c0_40 = arith.constant 0 : index
    %67 = vector.load %arg6[%c10, %c0_39, %c0_40] : memref<27x4x128xbf16, #tpu.memory_space<vmem>>, vector<1x4x128xbf16>
    %68 = vector.shape_cast %67 : vector<1x4x128xbf16> to vector<4x128xbf16>
    %cst_41 = arith.constant dense<0.000000e+00> : vector<80x128xf32>
    %69 = tpu.matmul %66, %68, %cst_41 {dimension_numbers = #tpu.dot_dimension_numbers<[1], [0], [0], [1], [0, 0, 1, 1], [], []>} : vector<80x4xbf16>, vector<4x128xbf16>, vector<80x128xf32> -> vector<80x128xf32>
    %70 = arith.addf %64, %69 : vector<80x128xf32>
    %71 = vector.extract_strided_slice %58 {offsets = [2, 0], sizes = [80, 4], strides = [1, 1]} : vector<104x4xf32> to vector<80x4xf32>
    %72 = arith.truncf %71 : vector<80x4xf32> to vector<80x4xbf16>
    %c11 = arith.constant 11 : index
    %c0_42 = arith.constant 0 : index
    %c0_43 = arith.constant 0 : index
    %73 = vector.load %arg6[%c11, %c0_42, %c0_43] : memref<27x4x128xbf16, #tpu.memory_space<vmem>>, vector<1x4x128xbf16>
    %74 = vector.shape_cast %73 : vector<1x4x128xbf16> to vector<4x128xbf16>
    %cst_44 = arith.constant dense<0.000000e+00> : vector<80x128xf32>
    %75 = tpu.matmul %72, %74, %cst_44 {dimension_numbers = #tpu.dot_dimension_numbers<[1], [0], [0], [1], [0, 0, 1, 1], [], []>} : vector<80x4xbf16>, vector<4x128xbf16>, vector<80x128xf32> -> vector<80x128xf32>
    %76 = arith.addf %70, %75 : vector<80x128xf32>
    %77 = vector.extract_strided_slice %58 {offsets = [10, 0], sizes = [80, 4], strides = [1, 1]} : vector<104x4xf32> to vector<80x4xf32>
    %78 = arith.truncf %77 : vector<80x4xf32> to vector<80x4xbf16>
    %c12 = arith.constant 12 : index
    %c0_45 = arith.constant 0 : index
    %c0_46 = arith.constant 0 : index
    %79 = vector.load %arg6[%c12, %c0_45, %c0_46] : memref<27x4x128xbf16, #tpu.memory_space<vmem>>, vector<1x4x128xbf16>
    %80 = vector.shape_cast %79 : vector<1x4x128xbf16> to vector<4x128xbf16>
    %cst_47 = arith.constant dense<0.000000e+00> : vector<80x128xf32>
    %81 = tpu.matmul %78, %80, %cst_47 {dimension_numbers = #tpu.dot_dimension_numbers<[1], [0], [0], [1], [0, 0, 1, 1], [], []>} : vector<80x4xbf16>, vector<4x128xbf16>, vector<80x128xf32> -> vector<80x128xf32>
    %82 = arith.addf %76, %81 : vector<80x128xf32>
    %83 = vector.extract_strided_slice %58 {offsets = [11, 0], sizes = [80, 4], strides = [1, 1]} : vector<104x4xf32> to vector<80x4xf32>
    %84 = arith.truncf %83 : vector<80x4xf32> to vector<80x4xbf16>
    %c13 = arith.constant 13 : index
    %c0_48 = arith.constant 0 : index
    %c0_49 = arith.constant 0 : index
    %85 = vector.load %arg6[%c13, %c0_48, %c0_49] : memref<27x4x128xbf16, #tpu.memory_space<vmem>>, vector<1x4x128xbf16>
    %86 = vector.shape_cast %85 : vector<1x4x128xbf16> to vector<4x128xbf16>
    %cst_50 = arith.constant dense<0.000000e+00> : vector<80x128xf32>
    %87 = tpu.matmul %84, %86, %cst_50 {dimension_numbers = #tpu.dot_dimension_numbers<[1], [0], [0], [1], [0, 0, 1, 1], [], []>} : vector<80x4xbf16>, vector<4x128xbf16>, vector<80x128xf32> -> vector<80x128xf32>
    %88 = arith.addf %82, %87 : vector<80x128xf32>
    %89 = vector.extract_strided_slice %58 {offsets = [12, 0], sizes = [80, 4], strides = [1, 1]} : vector<104x4xf32> to vector<80x4xf32>
    %90 = arith.truncf %89 : vector<80x4xf32> to vector<80x4xbf16>
    %c14 = arith.constant 14 : index
    %c0_51 = arith.constant 0 : index
    %c0_52 = arith.constant 0 : index
    %91 = vector.load %arg6[%c14, %c0_51, %c0_52] : memref<27x4x128xbf16, #tpu.memory_space<vmem>>, vector<1x4x128xbf16>
    %92 = vector.shape_cast %91 : vector<1x4x128xbf16> to vector<4x128xbf16>
    %cst_53 = arith.constant dense<0.000000e+00> : vector<80x128xf32>
    %93 = tpu.matmul %90, %92, %cst_53 {dimension_numbers = #tpu.dot_dimension_numbers<[1], [0], [0], [1], [0, 0, 1, 1], [], []>} : vector<80x4xbf16>, vector<4x128xbf16>, vector<80x128xf32> -> vector<80x128xf32>
    %94 = arith.addf %88, %93 : vector<80x128xf32>
    %95 = vector.extract_strided_slice %58 {offsets = [20, 0], sizes = [80, 4], strides = [1, 1]} : vector<104x4xf32> to vector<80x4xf32>
    %96 = arith.truncf %95 : vector<80x4xf32> to vector<80x4xbf16>
    %c15 = arith.constant 15 : index
    %c0_54 = arith.constant 0 : index
    %c0_55 = arith.constant 0 : index
    %97 = vector.load %arg6[%c15, %c0_54, %c0_55] : memref<27x4x128xbf16, #tpu.memory_space<vmem>>, vector<1x4x128xbf16>
    %98 = vector.shape_cast %97 : vector<1x4x128xbf16> to vector<4x128xbf16>
    %cst_56 = arith.constant dense<0.000000e+00> : vector<80x128xf32>
    %99 = tpu.matmul %96, %98, %cst_56 {dimension_numbers = #tpu.dot_dimension_numbers<[1], [0], [0], [1], [0, 0, 1, 1], [], []>} : vector<80x4xbf16>, vector<4x128xbf16>, vector<80x128xf32> -> vector<80x128xf32>
    %100 = arith.addf %94, %99 : vector<80x128xf32>
    %101 = vector.extract_strided_slice %58 {offsets = [21, 0], sizes = [80, 4], strides = [1, 1]} : vector<104x4xf32> to vector<80x4xf32>
    %102 = arith.truncf %101 : vector<80x4xf32> to vector<80x4xbf16>
    %c16 = arith.constant 16 : index
    %c0_57 = arith.constant 0 : index
    %c0_58 = arith.constant 0 : index
    %103 = vector.load %arg6[%c16, %c0_57, %c0_58] : memref<27x4x128xbf16, #tpu.memory_space<vmem>>, vector<1x4x128xbf16>
    %104 = vector.shape_cast %103 : vector<1x4x128xbf16> to vector<4x128xbf16>
    %cst_59 = arith.constant dense<0.000000e+00> : vector<80x128xf32>
    %105 = tpu.matmul %102, %104, %cst_59 {dimension_numbers = #tpu.dot_dimension_numbers<[1], [0], [0], [1], [0, 0, 1, 1], [], []>} : vector<80x4xbf16>, vector<4x128xbf16>, vector<80x128xf32> -> vector<80x128xf32>
    %106 = arith.addf %100, %105 : vector<80x128xf32>
    %107 = vector.extract_strided_slice %58 {offsets = [22, 0], sizes = [80, 4], strides = [1, 1]} : vector<104x4xf32> to vector<80x4xf32>
    %108 = arith.truncf %107 : vector<80x4xf32> to vector<80x4xbf16>
    %c17 = arith.constant 17 : index
    %c0_60 = arith.constant 0 : index
    %c0_61 = arith.constant 0 : index
    %109 = vector.load %arg6[%c17, %c0_60, %c0_61] : memref<27x4x128xbf16, #tpu.memory_space<vmem>>, vector<1x4x128xbf16>
    %110 = vector.shape_cast %109 : vector<1x4x128xbf16> to vector<4x128xbf16>
    %cst_62 = arith.constant dense<0.000000e+00> : vector<80x128xf32>
    %111 = tpu.matmul %108, %110, %cst_62 {dimension_numbers = #tpu.dot_dimension_numbers<[1], [0], [0], [1], [0, 0, 1, 1], [], []>} : vector<80x4xbf16>, vector<4x128xbf16>, vector<80x128xf32> -> vector<80x128xf32>
    %112 = arith.addf %106, %111 : vector<80x128xf32>
    %c0_63 = arith.constant 0 : index
    %c0_64 = arith.constant 0 : index
    %c0_65 = arith.constant 0 : index
    %c0_66 = arith.constant 0 : index
    %c0_67 = arith.constant 0 : index
    %113 = vector.load %arg5[%c0_63, %c0_64, %c0_65, %c0_66, %c0_67] : memref<1x1x1x104x4xbf16, #tpu.memory_space<vmem>>, vector<1x1x1x104x4xbf16>
    %114 = vector.shape_cast %113 : vector<1x1x1x104x4xbf16> to vector<104x4xbf16>
    %115 = arith.extf %114 : vector<104x4xbf16> to vector<104x4xf32>
    %116 = vector.extract_strided_slice %115 {offsets = [0, 0], sizes = [80, 4], strides = [1, 1]} : vector<104x4xf32> to vector<80x4xf32>
    %117 = arith.truncf %116 : vector<80x4xf32> to vector<80x4xbf16>
    %c18 = arith.constant 18 : index
    %c0_68 = arith.constant 0 : index
    %c0_69 = arith.constant 0 : index
    %118 = vector.load %arg6[%c18, %c0_68, %c0_69] : memref<27x4x128xbf16, #tpu.memory_space<vmem>>, vector<1x4x128xbf16>
    %119 = vector.shape_cast %118 : vector<1x4x128xbf16> to vector<4x128xbf16>
    %cst_70 = arith.constant dense<0.000000e+00> : vector<80x128xf32>
    %120 = tpu.matmul %117, %119, %cst_70 {dimension_numbers = #tpu.dot_dimension_numbers<[1], [0], [0], [1], [0, 0, 1, 1], [], []>} : vector<80x4xbf16>, vector<4x128xbf16>, vector<80x128xf32> -> vector<80x128xf32>
    %121 = arith.addf %112, %120 : vector<80x128xf32>
    %122 = vector.extract_strided_slice %115 {offsets = [1, 0], sizes = [80, 4], strides = [1, 1]} : vector<104x4xf32> to vector<80x4xf32>
    %123 = arith.truncf %122 : vector<80x4xf32> to vector<80x4xbf16>
    %c19 = arith.constant 19 : index
    %c0_71 = arith.constant 0 : index
    %c0_72 = arith.constant 0 : index
    %124 = vector.load %arg6[%c19, %c0_71, %c0_72] : memref<27x4x128xbf16, #tpu.memory_space<vmem>>, vector<1x4x128xbf16>
    %125 = vector.shape_cast %124 : vector<1x4x128xbf16> to vector<4x128xbf16>
    %cst_73 = arith.constant dense<0.000000e+00> : vector<80x128xf32>
    %126 = tpu.matmul %123, %125, %cst_73 {dimension_numbers = #tpu.dot_dimension_numbers<[1], [0], [0], [1], [0, 0, 1, 1], [], []>} : vector<80x4xbf16>, vector<4x128xbf16>, vector<80x128xf32> -> vector<80x128xf32>
    %127 = arith.addf %121, %126 : vector<80x128xf32>
    %128 = vector.extract_strided_slice %115 {offsets = [2, 0], sizes = [80, 4], strides = [1, 1]} : vector<104x4xf32> to vector<80x4xf32>
    %129 = arith.truncf %128 : vector<80x4xf32> to vector<80x4xbf16>
    %c20 = arith.constant 20 : index
    %c0_74 = arith.constant 0 : index
    %c0_75 = arith.constant 0 : index
    %130 = vector.load %arg6[%c20, %c0_74, %c0_75] : memref<27x4x128xbf16, #tpu.memory_space<vmem>>, vector<1x4x128xbf16>
    %131 = vector.shape_cast %130 : vector<1x4x128xbf16> to vector<4x128xbf16>
    %cst_76 = arith.constant dense<0.000000e+00> : vector<80x128xf32>
    %132 = tpu.matmul %129, %131, %cst_76 {dimension_numbers = #tpu.dot_dimension_numbers<[1], [0], [0], [1], [0, 0, 1, 1], [], []>} : vector<80x4xbf16>, vector<4x128xbf16>, vector<80x128xf32> -> vector<80x128xf32>
    %133 = arith.addf %127, %132 : vector<80x128xf32>
    %134 = vector.extract_strided_slice %115 {offsets = [10, 0], sizes = [80, 4], strides = [1, 1]} : vector<104x4xf32> to vector<80x4xf32>
    %135 = arith.truncf %134 : vector<80x4xf32> to vector<80x4xbf16>
    %c21 = arith.constant 21 : index
    %c0_77 = arith.constant 0 : index
    %c0_78 = arith.constant 0 : index
    %136 = vector.load %arg6[%c21, %c0_77, %c0_78] : memref<27x4x128xbf16, #tpu.memory_space<vmem>>, vector<1x4x128xbf16>
    %137 = vector.shape_cast %136 : vector<1x4x128xbf16> to vector<4x128xbf16>
    %cst_79 = arith.constant dense<0.000000e+00> : vector<80x128xf32>
    %138 = tpu.matmul %135, %137, %cst_79 {dimension_numbers = #tpu.dot_dimension_numbers<[1], [0], [0], [1], [0, 0, 1, 1], [], []>} : vector<80x4xbf16>, vector<4x128xbf16>, vector<80x128xf32> -> vector<80x128xf32>
    %139 = arith.addf %133, %138 : vector<80x128xf32>
    %140 = vector.extract_strided_slice %115 {offsets = [11, 0], sizes = [80, 4], strides = [1, 1]} : vector<104x4xf32> to vector<80x4xf32>
    %141 = arith.truncf %140 : vector<80x4xf32> to vector<80x4xbf16>
    %c22 = arith.constant 22 : index
    %c0_80 = arith.constant 0 : index
    %c0_81 = arith.constant 0 : index
    %142 = vector.load %arg6[%c22, %c0_80, %c0_81] : memref<27x4x128xbf16, #tpu.memory_space<vmem>>, vector<1x4x128xbf16>
    %143 = vector.shape_cast %142 : vector<1x4x128xbf16> to vector<4x128xbf16>
    %cst_82 = arith.constant dense<0.000000e+00> : vector<80x128xf32>
    %144 = tpu.matmul %141, %143, %cst_82 {dimension_numbers = #tpu.dot_dimension_numbers<[1], [0], [0], [1], [0, 0, 1, 1], [], []>} : vector<80x4xbf16>, vector<4x128xbf16>, vector<80x128xf32> -> vector<80x128xf32>
    %145 = arith.addf %139, %144 : vector<80x128xf32>
    %146 = vector.extract_strided_slice %115 {offsets = [12, 0], sizes = [80, 4], strides = [1, 1]} : vector<104x4xf32> to vector<80x4xf32>
    %147 = arith.truncf %146 : vector<80x4xf32> to vector<80x4xbf16>
    %c23 = arith.constant 23 : index
    %c0_83 = arith.constant 0 : index
    %c0_84 = arith.constant 0 : index
    %148 = vector.load %arg6[%c23, %c0_83, %c0_84] : memref<27x4x128xbf16, #tpu.memory_space<vmem>>, vector<1x4x128xbf16>
    %149 = vector.shape_cast %148 : vector<1x4x128xbf16> to vector<4x128xbf16>
    %cst_85 = arith.constant dense<0.000000e+00> : vector<80x128xf32>
    %150 = tpu.matmul %147, %149, %cst_85 {dimension_numbers = #tpu.dot_dimension_numbers<[1], [0], [0], [1], [0, 0, 1, 1], [], []>} : vector<80x4xbf16>, vector<4x128xbf16>, vector<80x128xf32> -> vector<80x128xf32>
    %151 = arith.addf %145, %150 : vector<80x128xf32>
    %152 = vector.extract_strided_slice %115 {offsets = [20, 0], sizes = [80, 4], strides = [1, 1]} : vector<104x4xf32> to vector<80x4xf32>
    %153 = arith.truncf %152 : vector<80x4xf32> to vector<80x4xbf16>
    %c24 = arith.constant 24 : index
    %c0_86 = arith.constant 0 : index
    %c0_87 = arith.constant 0 : index
    %154 = vector.load %arg6[%c24, %c0_86, %c0_87] : memref<27x4x128xbf16, #tpu.memory_space<vmem>>, vector<1x4x128xbf16>
    %155 = vector.shape_cast %154 : vector<1x4x128xbf16> to vector<4x128xbf16>
    %cst_88 = arith.constant dense<0.000000e+00> : vector<80x128xf32>
    %156 = tpu.matmul %153, %155, %cst_88 {dimension_numbers = #tpu.dot_dimension_numbers<[1], [0], [0], [1], [0, 0, 1, 1], [], []>} : vector<80x4xbf16>, vector<4x128xbf16>, vector<80x128xf32> -> vector<80x128xf32>
    %157 = arith.addf %151, %156 : vector<80x128xf32>
    %158 = vector.extract_strided_slice %115 {offsets = [21, 0], sizes = [80, 4], strides = [1, 1]} : vector<104x4xf32> to vector<80x4xf32>
    %159 = arith.truncf %158 : vector<80x4xf32> to vector<80x4xbf16>
    %c25 = arith.constant 25 : index
    %c0_89 = arith.constant 0 : index
    %c0_90 = arith.constant 0 : index
    %160 = vector.load %arg6[%c25, %c0_89, %c0_90] : memref<27x4x128xbf16, #tpu.memory_space<vmem>>, vector<1x4x128xbf16>
    %161 = vector.shape_cast %160 : vector<1x4x128xbf16> to vector<4x128xbf16>
    %cst_91 = arith.constant dense<0.000000e+00> : vector<80x128xf32>
    %162 = tpu.matmul %159, %161, %cst_91 {dimension_numbers = #tpu.dot_dimension_numbers<[1], [0], [0], [1], [0, 0, 1, 1], [], []>} : vector<80x4xbf16>, vector<4x128xbf16>, vector<80x128xf32> -> vector<80x128xf32>
    %163 = arith.addf %157, %162 : vector<80x128xf32>
    %164 = vector.extract_strided_slice %115 {offsets = [22, 0], sizes = [80, 4], strides = [1, 1]} : vector<104x4xf32> to vector<80x4xf32>
    %165 = arith.truncf %164 : vector<80x4xf32> to vector<80x4xbf16>
    %c26 = arith.constant 26 : index
    %c0_92 = arith.constant 0 : index
    %c0_93 = arith.constant 0 : index
    %166 = vector.load %arg6[%c26, %c0_92, %c0_93] : memref<27x4x128xbf16, #tpu.memory_space<vmem>>, vector<1x4x128xbf16>
    %167 = vector.shape_cast %166 : vector<1x4x128xbf16> to vector<4x128xbf16>
    %cst_94 = arith.constant dense<0.000000e+00> : vector<80x128xf32>
    %168 = tpu.matmul %165, %167, %cst_94 {dimension_numbers = #tpu.dot_dimension_numbers<[1], [0], [0], [1], [0, 0, 1, 1], [], []>} : vector<80x4xbf16>, vector<4x128xbf16>, vector<80x128xf32> -> vector<80x128xf32>
    %169 = arith.addf %163, %168 : vector<80x128xf32>
    %c0_95 = arith.constant 0 : index
    %c0_96 = arith.constant 0 : index
    %170 = vector.load %arg7[%c0_95, %c0_96] : memref<1x128xf32, #tpu.memory_space<vmem>>, vector<1x128xf32>
    %171 = vector.broadcast %170 : vector<1x128xf32> to vector<80x128xf32>
    %172 = arith.addf %169, %171 : vector<80x128xf32>
    %cst_97 = arith.constant 0.000000e+00 : f32
    %173 = vector.broadcast %cst_97 : f32 to vector<80x128xf32>
    %174 = arith.maximumf %172, %173 : vector<80x128xf32>
    %175 = arith.truncf %174 : vector<80x128xf32> to vector<80x128xbf16>
    %c0_98 = arith.constant 0 : index
    %c0_99 = arith.constant 0 : index
    %c0_100 = arith.constant 0 : index
    %c0_101 = arith.constant 0 : index
    %c0_102 = arith.constant 0 : index
    %176 = vector.load %arg8[%c0_98, %c0_99, %c0_100, %c0_101, %c0_102] : memref<1x1x1x80x128xbf16, #tpu.memory_space<vmem>>, vector<1x1x1x80x128xbf16>
    %177 = vector.shape_cast %176 : vector<1x1x1x80x128xbf16> to vector<80x128xbf16>
    %178 = vector.shape_cast %175 : vector<80x128xbf16> to vector<1x1x1x80x128xbf16>
    tpu.vector_store %arg8[%c0_98, %c0_99, %c0_100, %c0_101, %c0_102], %178 {strides = array<i32>} : memref<1x1x1x80x128xbf16, #tpu.memory_space<vmem>>, vector<1x1x1x80x128xbf16>,
    return
  }
  func.func @transform_0(%arg0: i32, %arg1: i32, %arg2: i32) -> (i32, i32, i32, i32, i32) {
    %c0_i32 = arith.constant 0 : i32
    %0 = arith.addi %arg1, %c0_i32 : i32
    %c0_i32_0 = arith.constant 0 : i32
    %c0_i32_1 = arith.constant 0 : i32
    %c0_i32_2 = arith.constant 0 : i32
    return %arg0, %0, %arg2, %c0_i32_0, %c0_i32_1 : i32, i32, i32, i32, i32
  }
  func.func @transform_1(%arg0: i32, %arg1: i32, %arg2: i32) -> (i32, i32, i32, i32, i32) {
    %c1_i32 = arith.constant 1 : i32
    %0 = arith.addi %arg1, %c1_i32 : i32
    %c0_i32 = arith.constant 0 : i32
    %c0_i32_0 = arith.constant 0 : i32
    %c0_i32_1 = arith.constant 0 : i32
    return %arg0, %0, %arg2, %c0_i32, %c0_i32_0 : i32, i32, i32, i32, i32
  }
  func.func @transform_2(%arg0: i32, %arg1: i32, %arg2: i32) -> (i32, i32, i32, i32, i32) {
    %c2_i32 = arith.constant 2 : i32
    %0 = arith.addi %arg1, %c2_i32 : i32
    %c0_i32 = arith.constant 0 : i32
    %c0_i32_0 = arith.constant 0 : i32
    %c0_i32_1 = arith.constant 0 : i32
    return %arg0, %0, %arg2, %c0_i32, %c0_i32_0 : i32, i32, i32, i32, i32
  }
  func.func @transform_3(%arg0: i32, %arg1: i32, %arg2: i32) -> (i32, i32, i32) {
    %c0_i32 = arith.constant 0 : i32
    %c0_i32_0 = arith.constant 0 : i32
    %c0_i32_1 = arith.constant 0 : i32
    %c0_i32_2 = arith.constant 0 : i32
    return %c0_i32, %c0_i32_0, %c0_i32_1 : i32, i32, i32
  }
  func.func @transform_4(%arg0: i32, %arg1: i32, %arg2: i32) -> (i32, i32) {
    %c0_i32 = arith.constant 0 : i32
    %c0_i32_0 = arith.constant 0 : i32
    %c0_i32_1 = arith.constant 0 : i32
    return %c0_i32, %c0_i32_0 : i32, i32
  }
  func.func @transform_5(%arg0: i32, %arg1: i32, %arg2: i32) -> (i32, i32, i32, i32, i32) {
    %c0_i32 = arith.constant 0 : i32
    %c0_i32_0 = arith.constant 0 : i32
    %c0_i32_1 = arith.constant 0 : i32
    return %arg0, %arg1, %arg2, %c0_i32, %c0_i32_0 : i32, i32, i32, i32, i32
  }
}

module attributes {stable_mosaic.version = 11 : i64} {
  func.func @_conv3d_tap_kernel(%arg0: i32, %arg1: i32, %arg2: i32, %arg3: memref<1x1x1x104x8xbf16, #tpu.memory_space<vmem>>, %arg4: memref<1x1x1x104x8xbf16, #tpu.memory_space<vmem>>, %arg5: memref<1x1x1x104x8xbf16, #tpu.memory_space<vmem>>, %arg6: memref<27x8x128xbf16, #tpu.memory_space<vmem>>, %arg7: memref<1x128xf32, #tpu.memory_space<vmem>>, %arg8: memref<1x1x1x80x128xbf16, #tpu.memory_space<vmem>>) attributes {dimension_semantics = [#tpu.dimension_semantics<parallel>, #tpu.dimension_semantics<parallel>, #tpu.dimension_semantics<parallel>], iteration_bounds = array<i64: 2, 8, 1>, scalar_prefetch = 0 : i64, scratch_operands = 0 : i64, tpu.core_type = #tpu.core_type<tc>, window_params = [{transform_indices = @transform_0, window_bounds = array<i64: 1, 1, 1, 104, 8>}, {transform_indices = @transform_1, window_bounds = array<i64: 1, 1, 1, 104, 8>}, {transform_indices = @transform_2, window_bounds = array<i64: 1, 1, 1, 104, 8>}, {pipeline_mode = #tpu.pipeline_mode<synchronous>, transform_indices = @transform_3, window_bounds = array<i64: 27, 8, 128>}, {pipeline_mode = #tpu.pipeline_mode<synchronous>, transform_indices = @transform_4, window_bounds = array<i64: 1, 128>}, {transform_indices = @transform_5, window_bounds = array<i64: 1, 1, 1, 80, 128>}]} {
    %c0 = arith.constant 0 : index
    %c0_0 = arith.constant 0 : index
    %c0_1 = arith.constant 0 : index
    %c0_2 = arith.constant 0 : index
    %c0_3 = arith.constant 0 : index
    %0 = vector.load %arg3[%c0, %c0_0, %c0_1, %c0_2, %c0_3] : memref<1x1x1x104x8xbf16, #tpu.memory_space<vmem>>, vector<1x1x1x104x8xbf16>
    %1 = vector.shape_cast %0 : vector<1x1x1x104x8xbf16> to vector<104x8xbf16>
    %2 = arith.extf %1 : vector<104x8xbf16> to vector<104x8xf32>
    %3 = vector.extract_strided_slice %2 {offsets = [0, 0], sizes = [80, 8], strides = [1, 1]} : vector<104x8xf32> to vector<80x8xf32>
    %4 = arith.truncf %3 : vector<80x8xf32> to vector<80x8xbf16>
    %c0_4 = arith.constant 0 : index
    %c0_5 = arith.constant 0 : index
    %c0_6 = arith.constant 0 : index
    %5 = vector.load %arg6[%c0_4, %c0_5, %c0_6] : memref<27x8x128xbf16, #tpu.memory_space<vmem>>, vector<1x8x128xbf16>
    %6 = vector.shape_cast %5 : vector<1x8x128xbf16> to vector<8x128xbf16>
    %cst = arith.constant dense<0.000000e+00> : vector<80x128xf32>
    %7 = tpu.matmul %4, %6, %cst {dimension_numbers = #tpu.dot_dimension_numbers<[1], [0], [0], [1], [0, 0, 1, 1], [], []>} : vector<80x8xbf16>, vector<8x128xbf16>, vector<80x128xf32> -> vector<80x128xf32>
    %8 = vector.extract_strided_slice %2 {offsets = [1, 0], sizes = [80, 8], strides = [1, 1]} : vector<104x8xf32> to vector<80x8xf32>
    %9 = arith.truncf %8 : vector<80x8xf32> to vector<80x8xbf16>
    %c1 = arith.constant 1 : index
    %c0_7 = arith.constant 0 : index
    %c0_8 = arith.constant 0 : index
    %10 = vector.load %arg6[%c1, %c0_7, %c0_8] : memref<27x8x128xbf16, #tpu.memory_space<vmem>>, vector<1x8x128xbf16>
    %11 = vector.shape_cast %10 : vector<1x8x128xbf16> to vector<8x128xbf16>
    %cst_9 = arith.constant dense<0.000000e+00> : vector<80x128xf32>
    %12 = tpu.matmul %9, %11, %cst_9 {dimension_numbers = #tpu.dot_dimension_numbers<[1], [0], [0], [1], [0, 0, 1, 1], [], []>} : vector<80x8xbf16>, vector<8x128xbf16>, vector<80x128xf32> -> vector<80x128xf32>
    %13 = arith.addf %7, %12 : vector<80x128xf32>
    %14 = vector.extract_strided_slice %2 {offsets = [2, 0], sizes = [80, 8], strides = [1, 1]} : vector<104x8xf32> to vector<80x8xf32>
    %15 = arith.truncf %14 : vector<80x8xf32> to vector<80x8xbf16>
    %c2 = arith.constant 2 : index
    %c0_10 = arith.constant 0 : index
    %c0_11 = arith.constant 0 : index
    %16 = vector.load %arg6[%c2, %c0_10, %c0_11] : memref<27x8x128xbf16, #tpu.memory_space<vmem>>, vector<1x8x128xbf16>
    %17 = vector.shape_cast %16 : vector<1x8x128xbf16> to vector<8x128xbf16>
    %cst_12 = arith.constant dense<0.000000e+00> : vector<80x128xf32>
    %18 = tpu.matmul %15, %17, %cst_12 {dimension_numbers = #tpu.dot_dimension_numbers<[1], [0], [0], [1], [0, 0, 1, 1], [], []>} : vector<80x8xbf16>, vector<8x128xbf16>, vector<80x128xf32> -> vector<80x128xf32>
    %19 = arith.addf %13, %18 : vector<80x128xf32>
    %20 = vector.extract_strided_slice %2 {offsets = [10, 0], sizes = [80, 8], strides = [1, 1]} : vector<104x8xf32> to vector<80x8xf32>
    %21 = arith.truncf %20 : vector<80x8xf32> to vector<80x8xbf16>
    %c3 = arith.constant 3 : index
    %c0_13 = arith.constant 0 : index
    %c0_14 = arith.constant 0 : index
    %22 = vector.load %arg6[%c3, %c0_13, %c0_14] : memref<27x8x128xbf16, #tpu.memory_space<vmem>>, vector<1x8x128xbf16>
    %23 = vector.shape_cast %22 : vector<1x8x128xbf16> to vector<8x128xbf16>
    %cst_15 = arith.constant dense<0.000000e+00> : vector<80x128xf32>
    %24 = tpu.matmul %21, %23, %cst_15 {dimension_numbers = #tpu.dot_dimension_numbers<[1], [0], [0], [1], [0, 0, 1, 1], [], []>} : vector<80x8xbf16>, vector<8x128xbf16>, vector<80x128xf32> -> vector<80x128xf32>
    %25 = arith.addf %19, %24 : vector<80x128xf32>
    %26 = vector.extract_strided_slice %2 {offsets = [11, 0], sizes = [80, 8], strides = [1, 1]} : vector<104x8xf32> to vector<80x8xf32>
    %27 = arith.truncf %26 : vector<80x8xf32> to vector<80x8xbf16>
    %c4 = arith.constant 4 : index
    %c0_16 = arith.constant 0 : index
    %c0_17 = arith.constant 0 : index
    %28 = vector.load %arg6[%c4, %c0_16, %c0_17] : memref<27x8x128xbf16, #tpu.memory_space<vmem>>, vector<1x8x128xbf16>
    %29 = vector.shape_cast %28 : vector<1x8x128xbf16> to vector<8x128xbf16>
    %cst_18 = arith.constant dense<0.000000e+00> : vector<80x128xf32>
    %30 = tpu.matmul %27, %29, %cst_18 {dimension_numbers = #tpu.dot_dimension_numbers<[1], [0], [0], [1], [0, 0, 1, 1], [], []>} : vector<80x8xbf16>, vector<8x128xbf16>, vector<80x128xf32> -> vector<80x128xf32>
    %31 = arith.addf %25, %30 : vector<80x128xf32>
    %32 = vector.extract_strided_slice %2 {offsets = [12, 0], sizes = [80, 8], strides = [1, 1]} : vector<104x8xf32> to vector<80x8xf32>
    %33 = arith.truncf %32 : vector<80x8xf32> to vector<80x8xbf16>
    %c5 = arith.constant 5 : index
    %c0_19 = arith.constant 0 : index
    %c0_20 = arith.constant 0 : index
    %34 = vector.load %arg6[%c5, %c0_19, %c0_20] : memref<27x8x128xbf16, #tpu.memory_space<vmem>>, vector<1x8x128xbf16>
    %35 = vector.shape_cast %34 : vector<1x8x128xbf16> to vector<8x128xbf16>
    %cst_21 = arith.constant dense<0.000000e+00> : vector<80x128xf32>
    %36 = tpu.matmul %33, %35, %cst_21 {dimension_numbers = #tpu.dot_dimension_numbers<[1], [0], [0], [1], [0, 0, 1, 1], [], []>} : vector<80x8xbf16>, vector<8x128xbf16>, vector<80x128xf32> -> vector<80x128xf32>
    %37 = arith.addf %31, %36 : vector<80x128xf32>
    %38 = vector.extract_strided_slice %2 {offsets = [20, 0], sizes = [80, 8], strides = [1, 1]} : vector<104x8xf32> to vector<80x8xf32>
    %39 = arith.truncf %38 : vector<80x8xf32> to vector<80x8xbf16>
    %c6 = arith.constant 6 : index
    %c0_22 = arith.constant 0 : index
    %c0_23 = arith.constant 0 : index
    %40 = vector.load %arg6[%c6, %c0_22, %c0_23] : memref<27x8x128xbf16, #tpu.memory_space<vmem>>, vector<1x8x128xbf16>
    %41 = vector.shape_cast %40 : vector<1x8x128xbf16> to vector<8x128xbf16>
    %cst_24 = arith.constant dense<0.000000e+00> : vector<80x128xf32>
    %42 = tpu.matmul %39, %41, %cst_24 {dimension_numbers = #tpu.dot_dimension_numbers<[1], [0], [0], [1], [0, 0, 1, 1], [], []>} : vector<80x8xbf16>, vector<8x128xbf16>, vector<80x128xf32> -> vector<80x128xf32>
    %43 = arith.addf %37, %42 : vector<80x128xf32>
    %44 = vector.extract_strided_slice %2 {offsets = [21, 0], sizes = [80, 8], strides = [1, 1]} : vector<104x8xf32> to vector<80x8xf32>
    %45 = arith.truncf %44 : vector<80x8xf32> to vector<80x8xbf16>
    %c7 = arith.constant 7 : index
    %c0_25 = arith.constant 0 : index
    %c0_26 = arith.constant 0 : index
    %46 = vector.load %arg6[%c7, %c0_25, %c0_26] : memref<27x8x128xbf16, #tpu.memory_space<vmem>>, vector<1x8x128xbf16>
    %47 = vector.shape_cast %46 : vector<1x8x128xbf16> to vector<8x128xbf16>
    %cst_27 = arith.constant dense<0.000000e+00> : vector<80x128xf32>
    %48 = tpu.matmul %45, %47, %cst_27 {dimension_numbers = #tpu.dot_dimension_numbers<[1], [0], [0], [1], [0, 0, 1, 1], [], []>} : vector<80x8xbf16>, vector<8x128xbf16>, vector<80x128xf32> -> vector<80x128xf32>
    %49 = arith.addf %43, %48 : vector<80x128xf32>
    %50 = vector.extract_strided_slice %2 {offsets = [22, 0], sizes = [80, 8], strides = [1, 1]} : vector<104x8xf32> to vector<80x8xf32>
    %51 = arith.truncf %50 : vector<80x8xf32> to vector<80x8xbf16>
    %c8 = arith.constant 8 : index
    %c0_28 = arith.constant 0 : index
    %c0_29 = arith.constant 0 : index
    %52 = vector.load %arg6[%c8, %c0_28, %c0_29] : memref<27x8x128xbf16, #tpu.memory_space<vmem>>, vector<1x8x128xbf16>
    %53 = vector.shape_cast %52 : vector<1x8x128xbf16> to vector<8x128xbf16>
    %cst_30 = arith.constant dense<0.000000e+00> : vector<80x128xf32>
    %54 = tpu.matmul %51, %53, %cst_30 {dimension_numbers = #tpu.dot_dimension_numbers<[1], [0], [0], [1], [0, 0, 1, 1], [], []>} : vector<80x8xbf16>, vector<8x128xbf16>, vector<80x128xf32> -> vector<80x128xf32>
    %55 = arith.addf %49, %54 : vector<80x128xf32>
    %c0_31 = arith.constant 0 : index
    %c0_32 = arith.constant 0 : index
    %c0_33 = arith.constant 0 : index
    %c0_34 = arith.constant 0 : index
    %c0_35 = arith.constant 0 : index
    %56 = vector.load %arg4[%c0_31, %c0_32, %c0_33, %c0_34, %c0_35] : memref<1x1x1x104x8xbf16, #tpu.memory_space<vmem>>, vector<1x1x1x104x8xbf16>
    %57 = vector.shape_cast %56 : vector<1x1x1x104x8xbf16> to vector<104x8xbf16>
    %58 = arith.extf %57 : vector<104x8xbf16> to vector<104x8xf32>
    %59 = vector.extract_strided_slice %58 {offsets = [0, 0], sizes = [80, 8], strides = [1, 1]} : vector<104x8xf32> to vector<80x8xf32>
    %60 = arith.truncf %59 : vector<80x8xf32> to vector<80x8xbf16>
    %c9 = arith.constant 9 : index
    %c0_36 = arith.constant 0 : index
    %c0_37 = arith.constant 0 : index
    %61 = vector.load %arg6[%c9, %c0_36, %c0_37] : memref<27x8x128xbf16, #tpu.memory_space<vmem>>, vector<1x8x128xbf16>
    %62 = vector.shape_cast %61 : vector<1x8x128xbf16> to vector<8x128xbf16>
    %cst_38 = arith.constant dense<0.000000e+00> : vector<80x128xf32>
    %63 = tpu.matmul %60, %62, %cst_38 {dimension_numbers = #tpu.dot_dimension_numbers<[1], [0], [0], [1], [0, 0, 1, 1], [], []>} : vector<80x8xbf16>, vector<8x128xbf16>, vector<80x128xf32> -> vector<80x128xf32>
    %64 = arith.addf %55, %63 : vector<80x128xf32>
    %65 = vector.extract_strided_slice %58 {offsets = [1, 0], sizes = [80, 8], strides = [1, 1]} : vector<104x8xf32> to vector<80x8xf32>
    %66 = arith.truncf %65 : vector<80x8xf32> to vector<80x8xbf16>
    %c10 = arith.constant 10 : index
    %c0_39 = arith.constant 0 : index
    %c0_40 = arith.constant 0 : index
    %67 = vector.load %arg6[%c10, %c0_39, %c0_40] : memref<27x8x128xbf16, #tpu.memory_space<vmem>>, vector<1x8x128xbf16>
    %68 = vector.shape_cast %67 : vector<1x8x128xbf16> to vector<8x128xbf16>
    %cst_41 = arith.constant dense<0.000000e+00> : vector<80x128xf32>
    %69 = tpu.matmul %66, %68, %cst_41 {dimension_numbers = #tpu.dot_dimension_numbers<[1], [0], [0], [1], [0, 0, 1, 1], [], []>} : vector<80x8xbf16>, vector<8x128xbf16>, vector<80x128xf32> -> vector<80x128xf32>
    %70 = arith.addf %64, %69 : vector<80x128xf32>
    %71 = vector.extract_strided_slice %58 {offsets = [2, 0], sizes = [80, 8], strides = [1, 1]} : vector<104x8xf32> to vector<80x8xf32>
    %72 = arith.truncf %71 : vector<80x8xf32> to vector<80x8xbf16>
    %c11 = arith.constant 11 : index
    %c0_42 = arith.constant 0 : index
    %c0_43 = arith.constant 0 : index
    %73 = vector.load %arg6[%c11, %c0_42, %c0_43] : memref<27x8x128xbf16, #tpu.memory_space<vmem>>, vector<1x8x128xbf16>
    %74 = vector.shape_cast %73 : vector<1x8x128xbf16> to vector<8x128xbf16>
    %cst_44 = arith.constant dense<0.000000e+00> : vector<80x128xf32>
    %75 = tpu.matmul %72, %74, %cst_44 {dimension_numbers = #tpu.dot_dimension_numbers<[1], [0], [0], [1], [0, 0, 1, 1], [], []>} : vector<80x8xbf16>, vector<8x128xbf16>, vector<80x128xf32> -> vector<80x128xf32>
    %76 = arith.addf %70, %75 : vector<80x128xf32>
    %77 = vector.extract_strided_slice %58 {offsets = [10, 0], sizes = [80, 8], strides = [1, 1]} : vector<104x8xf32> to vector<80x8xf32>
    %78 = arith.truncf %77 : vector<80x8xf32> to vector<80x8xbf16>
    %c12 = arith.constant 12 : index
    %c0_45 = arith.constant 0 : index
    %c0_46 = arith.constant 0 : index
    %79 = vector.load %arg6[%c12, %c0_45, %c0_46] : memref<27x8x128xbf16, #tpu.memory_space<vmem>>, vector<1x8x128xbf16>
    %80 = vector.shape_cast %79 : vector<1x8x128xbf16> to vector<8x128xbf16>
    %cst_47 = arith.constant dense<0.000000e+00> : vector<80x128xf32>
    %81 = tpu.matmul %78, %80, %cst_47 {dimension_numbers = #tpu.dot_dimension_numbers<[1], [0], [0], [1], [0, 0, 1, 1], [], []>} : vector<80x8xbf16>, vector<8x128xbf16>, vector<80x128xf32> -> vector<80x128xf32>
    %82 = arith.addf %76, %81 : vector<80x128xf32>
    %83 = vector.extract_strided_slice %58 {offsets = [11, 0], sizes = [80, 8], strides = [1, 1]} : vector<104x8xf32> to vector<80x8xf32>
    %84 = arith.truncf %83 : vector<80x8xf32> to vector<80x8xbf16>
    %c13 = arith.constant 13 : index
    %c0_48 = arith.constant 0 : index
    %c0_49 = arith.constant 0 : index
    %85 = vector.load %arg6[%c13, %c0_48, %c0_49] : memref<27x8x128xbf16, #tpu.memory_space<vmem>>, vector<1x8x128xbf16>
    %86 = vector.shape_cast %85 : vector<1x8x128xbf16> to vector<8x128xbf16>
    %cst_50 = arith.constant dense<0.000000e+00> : vector<80x128xf32>
    %87 = tpu.matmul %84, %86, %cst_50 {dimension_numbers = #tpu.dot_dimension_numbers<[1], [0], [0], [1], [0, 0, 1, 1], [], []>} : vector<80x8xbf16>, vector<8x128xbf16>, vector<80x128xf32> -> vector<80x128xf32>
    %88 = arith.addf %82, %87 : vector<80x128xf32>
    %89 = vector.extract_strided_slice %58 {offsets = [12, 0], sizes = [80, 8], strides = [1, 1]} : vector<104x8xf32> to vector<80x8xf32>
    %90 = arith.truncf %89 : vector<80x8xf32> to vector<80x8xbf16>
    %c14 = arith.constant 14 : index
    %c0_51 = arith.constant 0 : index
    %c0_52 = arith.constant 0 : index
    %91 = vector.load %arg6[%c14, %c0_51, %c0_52] : memref<27x8x128xbf16, #tpu.memory_space<vmem>>, vector<1x8x128xbf16>
    %92 = vector.shape_cast %91 : vector<1x8x128xbf16> to vector<8x128xbf16>
    %cst_53 = arith.constant dense<0.000000e+00> : vector<80x128xf32>
    %93 = tpu.matmul %90, %92, %cst_53 {dimension_numbers = #tpu.dot_dimension_numbers<[1], [0], [0], [1], [0, 0, 1, 1], [], []>} : vector<80x8xbf16>, vector<8x128xbf16>, vector<80x128xf32> -> vector<80x128xf32>
    %94 = arith.addf %88, %93 : vector<80x128xf32>
    %95 = vector.extract_strided_slice %58 {offsets = [20, 0], sizes = [80, 8], strides = [1, 1]} : vector<104x8xf32> to vector<80x8xf32>
    %96 = arith.truncf %95 : vector<80x8xf32> to vector<80x8xbf16>
    %c15 = arith.constant 15 : index
    %c0_54 = arith.constant 0 : index
    %c0_55 = arith.constant 0 : index
    %97 = vector.load %arg6[%c15, %c0_54, %c0_55] : memref<27x8x128xbf16, #tpu.memory_space<vmem>>, vector<1x8x128xbf16>
    %98 = vector.shape_cast %97 : vector<1x8x128xbf16> to vector<8x128xbf16>
    %cst_56 = arith.constant dense<0.000000e+00> : vector<80x128xf32>
    %99 = tpu.matmul %96, %98, %cst_56 {dimension_numbers = #tpu.dot_dimension_numbers<[1], [0], [0], [1], [0, 0, 1, 1], [], []>} : vector<80x8xbf16>, vector<8x128xbf16>, vector<80x128xf32> -> vector<80x128xf32>
    %100 = arith.addf %94, %99 : vector<80x128xf32>
    %101 = vector.extract_strided_slice %58 {offsets = [21, 0], sizes = [80, 8], strides = [1, 1]} : vector<104x8xf32> to vector<80x8xf32>
    %102 = arith.truncf %101 : vector<80x8xf32> to vector<80x8xbf16>
    %c16 = arith.constant 16 : index
    %c0_57 = arith.constant 0 : index
    %c0_58 = arith.constant 0 : index
    %103 = vector.load %arg6[%c16, %c0_57, %c0_58] : memref<27x8x128xbf16, #tpu.memory_space<vmem>>, vector<1x8x128xbf16>
    %104 = vector.shape_cast %103 : vector<1x8x128xbf16> to vector<8x128xbf16>
    %cst_59 = arith.constant dense<0.000000e+00> : vector<80x128xf32>
    %105 = tpu.matmul %102, %104, %cst_59 {dimension_numbers = #tpu.dot_dimension_numbers<[1], [0], [0], [1], [0, 0, 1, 1], [], []>} : vector<80x8xbf16>, vector<8x128xbf16>, vector<80x128xf32> -> vector<80x128xf32>
    %106 = arith.addf %100, %105 : vector<80x128xf32>
    %107 = vector.extract_strided_slice %58 {offsets = [22, 0], sizes = [80, 8], strides = [1, 1]} : vector<104x8xf32> to vector<80x8xf32>
    %108 = arith.truncf %107 : vector<80x8xf32> to vector<80x8xbf16>
    %c17 = arith.constant 17 : index
    %c0_60 = arith.constant 0 : index
    %c0_61 = arith.constant 0 : index
    %109 = vector.load %arg6[%c17, %c0_60, %c0_61] : memref<27x8x128xbf16, #tpu.memory_space<vmem>>, vector<1x8x128xbf16>
    %110 = vector.shape_cast %109 : vector<1x8x128xbf16> to vector<8x128xbf16>
    %cst_62 = arith.constant dense<0.000000e+00> : vector<80x128xf32>
    %111 = tpu.matmul %108, %110, %cst_62 {dimension_numbers = #tpu.dot_dimension_numbers<[1], [0], [0], [1], [0, 0, 1, 1], [], []>} : vector<80x8xbf16>, vector<8x128xbf16>, vector<80x128xf32> -> vector<80x128xf32>
    %112 = arith.addf %106, %111 : vector<80x128xf32>
    %c0_63 = arith.constant 0 : index
    %c0_64 = arith.constant 0 : index
    %c0_65 = arith.constant 0 : index
    %c0_66 = arith.constant 0 : index
    %c0_67 = arith.constant 0 : index
    %113 = vector.load %arg5[%c0_63, %c0_64, %c0_65, %c0_66, %c0_67] : memref<1x1x1x104x8xbf16, #tpu.memory_space<vmem>>, vector<1x1x1x104x8xbf16>
    %114 = vector.shape_cast %113 : vector<1x1x1x104x8xbf16> to vector<104x8xbf16>
    %115 = arith.extf %114 : vector<104x8xbf16> to vector<104x8xf32>
    %116 = vector.extract_strided_slice %115 {offsets = [0, 0], sizes = [80, 8], strides = [1, 1]} : vector<104x8xf32> to vector<80x8xf32>
    %117 = arith.truncf %116 : vector<80x8xf32> to vector<80x8xbf16>
    %c18 = arith.constant 18 : index
    %c0_68 = arith.constant 0 : index
    %c0_69 = arith.constant 0 : index
    %118 = vector.load %arg6[%c18, %c0_68, %c0_69] : memref<27x8x128xbf16, #tpu.memory_space<vmem>>, vector<1x8x128xbf16>
    %119 = vector.shape_cast %118 : vector<1x8x128xbf16> to vector<8x128xbf16>
    %cst_70 = arith.constant dense<0.000000e+00> : vector<80x128xf32>
    %120 = tpu.matmul %117, %119, %cst_70 {dimension_numbers = #tpu.dot_dimension_numbers<[1], [0], [0], [1], [0, 0, 1, 1], [], []>} : vector<80x8xbf16>, vector<8x128xbf16>, vector<80x128xf32> -> vector<80x128xf32>
    %121 = arith.addf %112, %120 : vector<80x128xf32>
    %122 = vector.extract_strided_slice %115 {offsets = [1, 0], sizes = [80, 8], strides = [1, 1]} : vector<104x8xf32> to vector<80x8xf32>
    %123 = arith.truncf %122 : vector<80x8xf32> to vector<80x8xbf16>
    %c19 = arith.constant 19 : index
    %c0_71 = arith.constant 0 : index
    %c0_72 = arith.constant 0 : index
    %124 = vector.load %arg6[%c19, %c0_71, %c0_72] : memref<27x8x128xbf16, #tpu.memory_space<vmem>>, vector<1x8x128xbf16>
    %125 = vector.shape_cast %124 : vector<1x8x128xbf16> to vector<8x128xbf16>
    %cst_73 = arith.constant dense<0.000000e+00> : vector<80x128xf32>
    %126 = tpu.matmul %123, %125, %cst_73 {dimension_numbers = #tpu.dot_dimension_numbers<[1], [0], [0], [1], [0, 0, 1, 1], [], []>} : vector<80x8xbf16>, vector<8x128xbf16>, vector<80x128xf32> -> vector<80x128xf32>
    %127 = arith.addf %121, %126 : vector<80x128xf32>
    %128 = vector.extract_strided_slice %115 {offsets = [2, 0], sizes = [80, 8], strides = [1, 1]} : vector<104x8xf32> to vector<80x8xf32>
    %129 = arith.truncf %128 : vector<80x8xf32> to vector<80x8xbf16>
    %c20 = arith.constant 20 : index
    %c0_74 = arith.constant 0 : index
    %c0_75 = arith.constant 0 : index
    %130 = vector.load %arg6[%c20, %c0_74, %c0_75] : memref<27x8x128xbf16, #tpu.memory_space<vmem>>, vector<1x8x128xbf16>
    %131 = vector.shape_cast %130 : vector<1x8x128xbf16> to vector<8x128xbf16>
    %cst_76 = arith.constant dense<0.000000e+00> : vector<80x128xf32>
    %132 = tpu.matmul %129, %131, %cst_76 {dimension_numbers = #tpu.dot_dimension_numbers<[1], [0], [0], [1], [0, 0, 1, 1], [], []>} : vector<80x8xbf16>, vector<8x128xbf16>, vector<80x128xf32> -> vector<80x128xf32>
    %133 = arith.addf %127, %132 : vector<80x128xf32>
    %134 = vector.extract_strided_slice %115 {offsets = [10, 0], sizes = [80, 8], strides = [1, 1]} : vector<104x8xf32> to vector<80x8xf32>
    %135 = arith.truncf %134 : vector<80x8xf32> to vector<80x8xbf16>
    %c21 = arith.constant 21 : index
    %c0_77 = arith.constant 0 : index
    %c0_78 = arith.constant 0 : index
    %136 = vector.load %arg6[%c21, %c0_77, %c0_78] : memref<27x8x128xbf16, #tpu.memory_space<vmem>>, vector<1x8x128xbf16>
    %137 = vector.shape_cast %136 : vector<1x8x128xbf16> to vector<8x128xbf16>
    %cst_79 = arith.constant dense<0.000000e+00> : vector<80x128xf32>
    %138 = tpu.matmul %135, %137, %cst_79 {dimension_numbers = #tpu.dot_dimension_numbers<[1], [0], [0], [1], [0, 0, 1, 1], [], []>} : vector<80x8xbf16>, vector<8x128xbf16>, vector<80x128xf32> -> vector<80x128xf32>
    %139 = arith.addf %133, %138 : vector<80x128xf32>
    %140 = vector.extract_strided_slice %115 {offsets = [11, 0], sizes = [80, 8], strides = [1, 1]} : vector<104x8xf32> to vector<80x8xf32>
    %141 = arith.truncf %140 : vector<80x8xf32> to vector<80x8xbf16>
    %c22 = arith.constant 22 : index
    %c0_80 = arith.constant 0 : index
    %c0_81 = arith.constant 0 : index
    %142 = vector.load %arg6[%c22, %c0_80, %c0_81] : memref<27x8x128xbf16, #tpu.memory_space<vmem>>, vector<1x8x128xbf16>
    %143 = vector.shape_cast %142 : vector<1x8x128xbf16> to vector<8x128xbf16>
    %cst_82 = arith.constant dense<0.000000e+00> : vector<80x128xf32>
    %144 = tpu.matmul %141, %143, %cst_82 {dimension_numbers = #tpu.dot_dimension_numbers<[1], [0], [0], [1], [0, 0, 1, 1], [], []>} : vector<80x8xbf16>, vector<8x128xbf16>, vector<80x128xf32> -> vector<80x128xf32>
    %145 = arith.addf %139, %144 : vector<80x128xf32>
    %146 = vector.extract_strided_slice %115 {offsets = [12, 0], sizes = [80, 8], strides = [1, 1]} : vector<104x8xf32> to vector<80x8xf32>
    %147 = arith.truncf %146 : vector<80x8xf32> to vector<80x8xbf16>
    %c23 = arith.constant 23 : index
    %c0_83 = arith.constant 0 : index
    %c0_84 = arith.constant 0 : index
    %148 = vector.load %arg6[%c23, %c0_83, %c0_84] : memref<27x8x128xbf16, #tpu.memory_space<vmem>>, vector<1x8x128xbf16>
    %149 = vector.shape_cast %148 : vector<1x8x128xbf16> to vector<8x128xbf16>
    %cst_85 = arith.constant dense<0.000000e+00> : vector<80x128xf32>
    %150 = tpu.matmul %147, %149, %cst_85 {dimension_numbers = #tpu.dot_dimension_numbers<[1], [0], [0], [1], [0, 0, 1, 1], [], []>} : vector<80x8xbf16>, vector<8x128xbf16>, vector<80x128xf32> -> vector<80x128xf32>
    %151 = arith.addf %145, %150 : vector<80x128xf32>
    %152 = vector.extract_strided_slice %115 {offsets = [20, 0], sizes = [80, 8], strides = [1, 1]} : vector<104x8xf32> to vector<80x8xf32>
    %153 = arith.truncf %152 : vector<80x8xf32> to vector<80x8xbf16>
    %c24 = arith.constant 24 : index
    %c0_86 = arith.constant 0 : index
    %c0_87 = arith.constant 0 : index
    %154 = vector.load %arg6[%c24, %c0_86, %c0_87] : memref<27x8x128xbf16, #tpu.memory_space<vmem>>, vector<1x8x128xbf16>
    %155 = vector.shape_cast %154 : vector<1x8x128xbf16> to vector<8x128xbf16>
    %cst_88 = arith.constant dense<0.000000e+00> : vector<80x128xf32>
    %156 = tpu.matmul %153, %155, %cst_88 {dimension_numbers = #tpu.dot_dimension_numbers<[1], [0], [0], [1], [0, 0, 1, 1], [], []>} : vector<80x8xbf16>, vector<8x128xbf16>, vector<80x128xf32> -> vector<80x128xf32>
    %157 = arith.addf %151, %156 : vector<80x128xf32>
    %158 = vector.extract_strided_slice %115 {offsets = [21, 0], sizes = [80, 8], strides = [1, 1]} : vector<104x8xf32> to vector<80x8xf32>
    %159 = arith.truncf %158 : vector<80x8xf32> to vector<80x8xbf16>
    %c25 = arith.constant 25 : index
    %c0_89 = arith.constant 0 : index
    %c0_90 = arith.constant 0 : index
    %160 = vector.load %arg6[%c25, %c0_89, %c0_90] : memref<27x8x128xbf16, #tpu.memory_space<vmem>>, vector<1x8x128xbf16>
    %161 = vector.shape_cast %160 : vector<1x8x128xbf16> to vector<8x128xbf16>
    %cst_91 = arith.constant dense<0.000000e+00> : vector<80x128xf32>
    %162 = tpu.matmul %159, %161, %cst_91 {dimension_numbers = #tpu.dot_dimension_numbers<[1], [0], [0], [1], [0, 0, 1, 1], [], []>} : vector<80x8xbf16>, vector<8x128xbf16>, vector<80x128xf32> -> vector<80x128xf32>
    %163 = arith.addf %157, %162 : vector<80x128xf32>
    %164 = vector.extract_strided_slice %115 {offsets = [22, 0], sizes = [80, 8], strides = [1, 1]} : vector<104x8xf32> to vector<80x8xf32>
    %165 = arith.truncf %164 : vector<80x8xf32> to vector<80x8xbf16>
    %c26 = arith.constant 26 : index
    %c0_92 = arith.constant 0 : index
    %c0_93 = arith.constant 0 : index
    %166 = vector.load %arg6[%c26, %c0_92, %c0_93] : memref<27x8x128xbf16, #tpu.memory_space<vmem>>, vector<1x8x128xbf16>
    %167 = vector.shape_cast %166 : vector<1x8x128xbf16> to vector<8x128xbf16>
    %cst_94 = arith.constant dense<0.000000e+00> : vector<80x128xf32>
    %168 = tpu.matmul %165, %167, %cst_94 {dimension_numbers = #tpu.dot_dimension_numbers<[1], [0], [0], [1], [0, 0, 1, 1], [], []>} : vector<80x8xbf16>, vector<8x128xbf16>, vector<80x128xf32> -> vector<80x128xf32>
    %169 = arith.addf %163, %168 : vector<80x128xf32>
    %c0_95 = arith.constant 0 : index
    %c0_96 = arith.constant 0 : index
    %170 = vector.load %arg7[%c0_95, %c0_96] : memref<1x128xf32, #tpu.memory_space<vmem>>, vector<1x128xf32>
    %171 = vector.broadcast %170 : vector<1x128xf32> to vector<80x128xf32>
    %172 = arith.addf %169, %171 : vector<80x128xf32>
    %cst_97 = arith.constant 0.000000e+00 : f32
    %173 = vector.broadcast %cst_97 : f32 to vector<80x128xf32>
    %174 = arith.maximumf %172, %173 : vector<80x128xf32>
    %175 = arith.truncf %174 : vector<80x128xf32> to vector<80x128xbf16>
    %c0_98 = arith.constant 0 : index
    %c0_99 = arith.constant 0 : index
    %c0_100 = arith.constant 0 : index
    %c0_101 = arith.constant 0 : index
    %c0_102 = arith.constant 0 : index
    %176 = vector.load %arg8[%c0_98, %c0_99, %c0_100, %c0_101, %c0_102] : memref<1x1x1x80x128xbf16, #tpu.memory_space<vmem>>, vector<1x1x1x80x128xbf16>
    %177 = vector.shape_cast %176 : vector<1x1x1x80x128xbf16> to vector<80x128xbf16>
    %178 = vector.shape_cast %175 : vector<80x128xbf16> to vector<1x1x1x80x128xbf16>
    tpu.vector_store %arg8[%c0_98, %c0_99, %c0_100, %c0_101, %c0_102], %178 {strides = array<i32>} : memref<1x1x1x80x128xbf16, #tpu.memory_space<vmem>>, vector<1x1x1x80x128xbf16>,
    return
  }
  func.func @transform_0(%arg0: i32, %arg1: i32, %arg2: i32) -> (i32, i32, i32, i32, i32) {
    %c0_i32 = arith.constant 0 : i32
    %0 = arith.addi %arg1, %c0_i32 : i32
    %c0_i32_0 = arith.constant 0 : i32
    %c0_i32_1 = arith.constant 0 : i32
    %c0_i32_2 = arith.constant 0 : i32
    return %arg0, %0, %arg2, %c0_i32_0, %c0_i32_1 : i32, i32, i32, i32, i32
  }
  func.func @transform_1(%arg0: i32, %arg1: i32, %arg2: i32) -> (i32, i32, i32, i32, i32) {
    %c1_i32 = arith.constant 1 : i32
    %0 = arith.addi %arg1, %c1_i32 : i32
    %c0_i32 = arith.constant 0 : i32
    %c0_i32_0 = arith.constant 0 : i32
    %c0_i32_1 = arith.constant 0 : i32
    return %arg0, %0, %arg2, %c0_i32, %c0_i32_0 : i32, i32, i32, i32, i32
  }
  func.func @transform_2(%arg0: i32, %arg1: i32, %arg2: i32) -> (i32, i32, i32, i32, i32) {
    %c2_i32 = arith.constant 2 : i32
    %0 = arith.addi %arg1, %c2_i32 : i32
    %c0_i32 = arith.constant 0 : i32
    %c0_i32_0 = arith.constant 0 : i32
    %c0_i32_1 = arith.constant 0 : i32
    return %arg0, %0, %arg2, %c0_i32, %c0_i32_0 : i32, i32, i32, i32, i32
  }
  func.func @transform_3(%arg0: i32, %arg1: i32, %arg2: i32) -> (i32, i32, i32) {
    %c0_i32 = arith.constant 0 : i32
    %c0_i32_0 = arith.constant 0 : i32
    %c0_i32_1 = arith.constant 0 : i32
    %c0_i32_2 = arith.constant 0 : i32
    return %c0_i32, %c0_i32_0, %c0_i32_1 : i32, i32, i32
  }
  func.func @transform_4(%arg0: i32, %arg1: i32, %arg2: i32) -> (i32, i32) {
    %c0_i32 = arith.constant 0 : i32
    %c0_i32_0 = arith.constant 0 : i32
    %c0_i32_1 = arith.constant 0 : i32
    return %c0_i32, %c0_i32_0 : i32, i32
  }
  func.func @transform_5(%arg0: i32, %arg1: i32, %arg2: i32) -> (i32, i32, i32, i32, i32) {
    %c0_i32 = arith.constant 0 : i32
    %c0_i32_0 = arith.constant 0 : i32
    %c0_i32_1 = arith.constant 0 : i32
    return %arg0, %arg1, %arg2, %c0_i32, %c0_i32_0 : i32, i32, i32, i32, i32
  }
}

</mosaic_0001>

<bundles_post_ra>
// kernel: conv3d_block_kendall_forward.3
= control target key start
LH: loop header
LB: loop body
LE: loop exit
PB: predicated region body
PF: predicated region fallthrough
CT: control target
= control target key end

     0   :  { %s5308_s18 = smov 0   ;;  %s5310_s19 = smov 0   ;;  %s6902_s0 = inlined_call_operand.vmem [shape: bf16[2,10,1,104,4], index: 0, kind: input, shape index: {}, may-alias: {0,1,2}]   ;;  %s6903_s1 = inlined_call_operand.vmem [shape: bf16[2,10,1,104,4], index: 1, kind: input, shape index: {}, may-alias: {0,1,2}]   ;;  %s6904_s2 = inlined_call_operand.vmem [shape: bf16[2,10,1,104,4], index: 2, kind: input, shape index: {}, may-alias: {0,1,2}]   ;;  %s6905_s3 = inlined_call_operand.vmem [shape: bf16[27,4,128], index: 3, kind: input, shape index: {}]   ;;  %s6906_s4 = inlined_call_operand.vmem [shape: f32[1,128], index: 4, kind: input, shape index: {}]   ;;  %s6907_s5 = inlined_call_operand.vmem [shape: bf16[2,8,1,80,128], index: 5, kind: output, shape index: {}]  }
   0x1   :  { %s5312_s20 = smov 0   ;;  %s5314_s21 = smov 0  }
   0x2   :  { %s5316_s22 = smov 0  }
   0x3 LB: > { %s30_s23 = sadd.s32 1, %s5266_s20  ;;  %s34_s24 = sadd.s32 1, %s5270_s21  ;;  %s5274_s22 = sphi %s5316_s22, %s15_s22   ;;  %s5270_s21 = sphi %s5314_s21, %s6911_s21   ;;  %s5266_s20 = sphi %s5312_s20, %s6910_s20   ;;  %s5262_s19 = sphi %s5310_s19, %s6909_s19   ;;  %s5258_s18 = sphi %s5308_s18, %s6908_s18  }
   0x4   : > { %p32_p0 = scmp.ge.s32.totalorder %s30_s23, 8  ;;  %p4128_p1 = scmp.ge.s32.totalorder %s5274_s22, 1 }
   0x5   : > { %p274_p2 = scmp.lt.s32.totalorder %s5274_s22, 17 }
   0x6   : > { %s6913_s23 = smov (%p32_p0, %s30_s23), 0  ;;  %s6915_s24 = smov (!%p32_p0, %s34_s24), %s5270_s21 }
   0x7   : > { %p275_p3 = pnand %p4128_p1, %p274_p2  ;;  %p36_p4 = scmp.ge.s32.totalorder %s6915_s24, 2 }
   0x8   : > { %v4139_v0 = vld [vmem:[%s6905_s3 + $0x2] sm:$0x3] (!%p275_p3)  ;;  %vm499_vm0 = vcmask (!%p275_p3), 1041408   ;;  %p346_p5 = scmp.lt.s32.totalorder (!%p275_p3), %s5262_s19, 1  ;;  %v5276_v1 = vmov (!%p275_p3), 0.0   ;;  %p348_p6 = scmp.lt.s32.totalorder (!%p275_p3), %s5258_s18, 9 }
   0x9   : > { %s6917_s24 = smov (%p36_p4, %s6915_s24), 0  ;;  %278 = sbr.rel (%p275_p3) target bundleno = 793 (0x319), region = 40 }
   0xa   : > { %4550 = vmatprep.subr.bf16.mxu0 (!%p275_p3), %v5276_v1  ;;  %5144 = vmatprep.subr.bf16.mxu1 (!%p275_p3), %v5276_v1  ;;  %v501_v2 = vsel (!%p275_p3), %vm499_vm0, %v4139_v0, 0  ;;  %vm5277_vm1 = vmmov (!%p275_p3), 0   ;;  %vm438_vm2 = vsmask.f32 (!%p275_p3), 7424  ;;  %v4150_v26 = vld [vmem:[%s6905_s3 + $0x4] sm:$0x3] (!%p275_p3) }
   0xb   : > { %4551 = vmatpush3.bf16.msra.mxu0 (!%p275_p3), %v501_v2  ;;  %5145 = vmatpush3.bf16.msra.mxu1 (!%p275_p3), %v501_v2  ;;  %vm483_vm3 = vcmask (!%p275_p3), 31744   ;;  %v434_v30 = vld [vmem:[%s6905_s3] sm:$0x3] (!%p275_p3)  ;;  %v698_v36 = vsel (!%p275_p3), %vm499_vm0, %v4150_v26, 0  ;;  %v4162_v49 = vld [vmem:[%s6905_s3 + $0x6] sm:$0x3] (!%p275_p3) }
   0xc   : > { %4552 = vmatprep.mubr.msk.bf16.mxu0 (!%p275_p3), %vm5277_vm1, %v5276_v1  ;;  %4564 = vmatprep.mubr.msk.bf16.mxu1 (!%p275_p3), %vm5277_vm1, %v5276_v1  ;;  %v587_v39 = vsel (!%p275_p3), %vm499_vm0, %v434_v30, 0  ;;  %v4168_v52 = vld [vmem:[%s6905_s3 + $0x8] sm:$0x3] (!%p275_p3)  ;;  %v824_v56 = vsel (!%p275_p3), %vm499_vm0, %v4162_v49, 0  ;;  %vm670_vm4 = vcmask (!%p275_p3), 1046528   ;;  %vm1068_vm6 = vcmask (!%p275_p3), 1045504  }
   0xd   : > { %4594 = vmatprep.subr.bf16.mxu0 (!%p275_p3), %v5276_v1  ;;  %4572 = vmatprep.subr.bf16.mxu1 (!%p275_p3), %v5276_v1  ;;  %v5463_v58 = vsel (!%p275_p3), %vm499_vm0, %v4168_v52, 0  ;;  %vm911_vm5 = vsmask.f32 (!%p275_p3), 6400  ;;  %vm1301_vm7 = vsmask.f32 (!%p275_p3), 5376  ;;  %vm1438_vm8 = vcmask (!%p275_p3), 1044480  }
   0xe   : > { %s359_s25 = sadd.s32 (!%p275_p3), 1, %s5258_s18  ;;  %s374_s8 = sadd.s32 (!%p275_p3), 2, %s5258_s18 }
   0xf   : > { %p362_p7 = scmp.lt.s32.totalorder (!%p275_p3), %s359_s25, 9  ;;  %p377_p8 = scmp.lt.s32.totalorder (!%p275_p3), %s374_s8, 9 }
  0x10   : > { %s6919_s19 = smov (!%p346_p5, %s5262_s19), 1  ;;  %p391_p9 = scmp.lt.s32.totalorder %s5258_s18, 7 }
  0x11   : > { %s349_s27 = scalar_select %p348_p6, %s5258_s18, 9 }
  0x12   : > { %s5356_s28 = smul.u32 130, %s6919_s19  ;;  %s6921_s25 = smov (!%p362_p7, %s359_s25), 9 }
  0x13   : > { %s5146_s29 = smul.u32 13, %s349_s27  ;;  %s6923_s8 = smov (!%p377_p8, %s374_s8), 9 }
  0x14   : > { %s5148_s26 = smul.u32 13, %s6921_s25  ;;  %s6925_s18 = smov (!%p391_p9, %s5258_s18), 7 }
  0x15   : > { %s356_s30 = sadd.s32 %s5356_s28, %s5146_s29 }
  0x16   : > { %s4129_s6 = sshll.u32 %s356_s30, 2  ;;  %s370_s27 = sadd.s32 %s5148_s26, %s5356_s28 }
  0x17   : > { %s5363_s9 = scalar_lea.vmem %s6902_s0, %s4129_s6  ;;  %s4130_s29 = sshll.u32 %s370_s27, 2 }
  0x18   : > { %v403_v3 = vld [vmem:[%s5363_s9] sm:$0xf]  ;;  %v5367_v4 = vld [vmem:[%s5363_s9 + $0x4] sm:$0xf]  ;;  %v5370_v5 = vld [vmem:[%s5363_s9 + $0x8] sm:$0xf]  ;;  %s5646_s7 = scalar_lea.vmem %s6903_s1, %s4130_s29 }
  0x19   : > { %v5373_v6 = vld [vmem:[%s5363_s9 + $0xc] sm:$0xf]  ;;  %v5376_v7 = vcombine.low %v403_v3, %v5367_v4  ;;  %v409_v8 = vld [vmem:[%s5363_s9 + $0x18] sm:$0xf]  ;;  %v410_v9 = vld [vmem:[%s5363_s9 + $0x1c] sm:$0xf] }
  0x1a   : > { %v5382_v10 = vcombine.low %v5370_v5, %v5373_v6  ;;  %v411_v11 = vld [vmem:[%s5363_s9 + $0x20] sm:$0xf]  ;;  %v412_v12 = vld [vmem:[%s5363_s9 + $0x24] sm:$0xf]  ;;  %v5386_v13 = vcombine.low %v409_v8, %v410_v9  ;;  %v5389_v14 = vld [vmem:[%s5363_s9 + $0x10] sm:$0xf] }
  0x1b   : > { %v440_v15 = vshrl.u32 %v5376_v7, 16  ;;  %v442_v16 = vshll.u32 %v5376_v7, 16  ;;  %v5393_v17 = vcombine.low %v411_v11, %v412_v12  ;;  %v408_v18 = vld [vmem:[%s5363_s9 + $0x14] sm:$0xf]  ;;  %v413_v19 = vld [vmem:[%s5363_s9 + $0x28] sm:$0xf]  ;;  %v5457_v55 = vcombine.low %v410_v9, %v411_v11 }
  0x1c   : > { %v447_v20 = vshll.u32 %v5382_v10, 16  ;;  %v463_v21 = vshll.u32 %v5386_v13, 16  ;;  %v467_v22 = vshrl.u32 %v5386_v13, 16  ;;  %v5401_v23 = vcombine.low %v5389_v14, %v408_v18  ;;  %v414_v40 = vld [vmem:[%s5363_s9 + $0x2c] sm:$0xf] }
  0x1d   : > { %v444_v24 = vrot.slane %v442_v16, 1  ;;  %v471_v25 = vshll.u32 %v5393_v17, 16  ;;  %v5407_v27 = vcombine.low %v413_v19, %v413_v19  ;;  %v451_v33 = vshrl.u32 %v5382_v10, 16 }
  0x1e   : > { %v449_v28 = vrot.slane %v447_v20, 1  ;;  %v5411_v29 = vrot.slane %v463_v21, 1  ;;  %v455_v34 = vshll.u32 %v5401_v23, 16  ;;  %v475_v37 = vshrl.u32 %v5393_v17, 16 }
  0x1f   : > { %v445_v31 = vor.u32 %v444_v24, %v440_v15  ;;  %v473_v32 = vrot.slane %v471_v25, 1  ;;  %v479_v41 = vshll.u32 %v5407_v27, 16  ;;  %v5429_v42 = vcombine.low %v412_v12, %v413_v19 }
  0x20   : > { %v469_v35 = vor.u32 %v467_v22, %v5411_v29  ;;  %v5433_v44 = vcombine.low %v413_v19, %v414_v40  ;;  %v453_v45 = vor.u32 %v451_v33, %v449_v28  ;;  %v457_v46 = vrot.slane %v455_v34, 1 }
  0x21   : > { %v450_v38 = vsel %vm438_vm2, %v445_v31, %v449_v28  ;;  %v477_v47 = vor.u32 %v475_v37, %v473_v32  ;;  %v481_v48 = vrot.slane %v479_v41, 1  ;;  %v459_v51 = vshrl.u32 %v5401_v23, 16 }
  0x22   : > { %4553 = vmatmul.mubr.msk.bf16.vlgmr.msra.gmra.mrb[0].mxu0 %vm483_vm3, %v450_v38  ;;  %v474_v43 = vsel %vm438_vm2, %v469_v35, %v473_v32  ;;  %v458_v50 = vsel %vm438_vm2, %v453_v45, %v457_v46  ;;  %v5454_v53 = vcombine.low %v408_v18, %v409_v8  ;;  %v802_v60 = vrot.slane %v5457_v55, 1 }
  0x23   : > { %4565 = vmatmul.mubr.msk.bf16.vlgmr.msra.gmra.mrb[0].mxu1 %vm483_vm3, %v474_v43  ;;  %4595 = vmatpush3.bf16.msra.mxu0 %v698_v36  ;;  %v482_v54 = vsel %vm438_vm2, %v477_v47, %v481_v48  ;;  %v5467_v61 = vrot.slane %v447_v20, 3  ;;  %v461_v62 = vor.u32 %v459_v51, %v457_v46  ;;  %v804_v0 = vrot.slane %v5429_v42, 1 }
  0x24   : > { %4573 = vmatpush3.bf16.msra.mxu1 %v587_v39  ;;  %4556 = vmatprep.mubr.msk.bf16.mxu0 %vm5277_vm1, %v5276_v1  ;;  %v930_v57 = vshrl.u32 %v5454_v53, 16  ;;  %v800_v59 = vrot.slane %v5454_v53, 1  ;;  %v933_v63 = vshll.u32 %v5454_v53, 16  ;;  %v5474_v2 = vrot.slane %v451_v33, 2 }
  0x25   : > { %4568 = vmatprep.mubr.msk.bf16.mxu1 %vm5277_vm1, %v5276_v1  ;;  %4616 = vmatprep.subr.bf16.mxu1 %v5276_v1  ;;  %v939_v9 = vshrl.u32 %v5457_v55, 16  ;;  %v5485_v12 = vsel %vm670_vm4, %v802_v60, %v804_v0  ;;  %v942_v15 = vshll.u32 %v5457_v55, 16  ;;  %v4161_v16 = vcombine.low %v414_v40, %v414_v40 }
  0x26   : > { %4638 = vmatprep.subr.bf16.mxu0 %v5276_v1  ;;  %v5481_v3 = vsel %vm670_vm4, %v800_v59, %v802_v60  ;;  %v932_v8 = vrot.slane %v930_v57, 1  ;;  %v935_v11 = vrot.slane %v933_v63, 2  ;;  %v671_v18 = vrot.slane %v5376_v7, 1 }
  0x27   : > { %v941_v19 = vrot.slane %v939_v9, 1  ;;  %v948_v20 = vshrl.u32 %v5429_v42, 16  ;;  %v951_v24 = vshll.u32 %v5429_v42, 16  ;;  %v466_v26 = vsel %vm438_vm2, %v461_v62, %v5411_v29 }
  0x28   : > { %v944_v28 = vrot.slane %v942_v15, 2  ;;  %v806_v30 = vrot.slane %v4161_v16, 1  ;;  %v957_v31 = vshrl.u32 %v4161_v16, 16  ;;  %v672_v32 = vrot.slane %v5382_v10, 1 }
  0x29   : > { %v950_v33 = vrot.slane %v948_v20, 1  ;;  %v953_v35 = vrot.slane %v951_v24, 2  ;;  %v960_v36 = vshll.u32 %v4161_v16, 16  ;;  %v5494_v38 = vor.u32 %v935_v11, %v932_v8 }
  0x2a   : > { %4557 = vmatmul.mubr.msk.bf16.gmra.mrb[4].mxu0 %vm483_vm3, %v458_v50  ;;  %v945_v39 = vor.u32 %v944_v28, %v941_v19  ;;  %v5497_v40 = vsel %vm670_vm4, %v804_v0, %v806_v30  ;;  %v959_v41 = vrot.slane %v957_v31, 1  ;;  %v1306_v43 = vrot.slane %v455_v34, 3  ;;  %v5515_v50 = vld [vmem:[%s5363_s9 + $0x30] ss:$0 sps:$4 sm:$0xff]   ;;  %s5149_s9 = smul.u32 13, %s6923_s8 }
  0x2b   : > { %4569 = vmatmul.mubr.msk.bf16.gmra.mrb[4].mxu1 %vm483_vm3, %v482_v54  ;;  %4560 = vmatprep.mubr.msk.bf16.mxu0 %vm5277_vm1, %v5276_v1  ;;  %v954_v29 = vor.u32 %v953_v35, %v950_v33  ;;  %v962_v45 = vrot.slane %v960_v36, 2  ;;  %v1072_v46 = vrot.slane %v5454_v53, 2  ;;  %v1187_v48 = vrot.slane %v5382_v10, 2  ;;  %v4205_v53 = vld [vmem:[%s6905_s3 + $0x12] sm:$0x3] }
  0x2c   : > { %4574 = vmatprep.mubr.msk.bf16.mxu1 %vm5277_vm1, %v5276_v1  ;;  %v5509_v47 = vsel %vm911_vm5, %v5494_v38, %v945_v39  ;;  %v1188_v34 = vrot.slane %v5401_v23, 2  ;;  %v1074_v49 = vrot.slane %v5457_v55, 2  ;;  %v1305_v52 = vrot.slane %v459_v51, 2  ;;  %s385_s10 = sadd.s32 %s5149_s9, %s5356_s28  ;;  %s5150_s9 = smul.u32 10, %s6925_s18 }
  0x2d   : > { %v963_v54 = vor.u32 %v962_v45, %v959_v41  ;;  %v1190_v57 = vrot.slane %v5386_v13, 2  ;;  %v673_v60 = vsel %vm670_vm4, %v671_v18, %v672_v32  ;;  %v1192_v0 = vrot.slane %v5393_v17, 2  ;;  %s4131_s13 = sshll.u32 %s385_s10, 2 }
  0x2e   : > { %v5528_v55 = vsel %vm1068_vm6, %v1187_v48, %v1188_v34  ;;  %v5533_v51 = vsel %vm1068_vm6, %v1072_v46, %v1074_v49  ;;  %v1078_v8 = vrot.slane %v4161_v16, 2  ;;  %v1194_v11 = vrot.slane %v5433_v44, 2  ;;  %s5982_s15 = scalar_lea.vmem %s6904_s2, %s4131_s13 }
  0x2f   : > { %v5537_v62 = vsel %vm911_vm5, %v954_v29, %v963_v54  ;;  %v5540_v63 = vsel %vm1068_vm6, %v1188_v34, %v1190_v57  ;;  %v1196_v15 = vrot.slane %v5515_v50, 2  ;;  %v5549_v18 = vsel %vm1068_vm6, %v1190_v57, %v1192_v0 }
  0x30   : > { %v1304_v19 = vor.u32 %v5467_v61, %v5474_v2  ;;  %v1307_v20 = vor.u32 %v1306_v43, %v1305_v52  ;;  %v5557_v16 = vsel %vm1068_vm6, %v1192_v0, %v1194_v11  ;;  %v1310_v30 = vrot.slane %v463_v21, 3 }
  0x31   : > { %v5560_v24 = vsel %vm1068_vm6, %v1194_v11, %v1196_v15  ;;  %v1439_v61 = vrot.slane %v5382_v10, 3  ;;  %v674_v2 = vrot.slane %v5401_v23, 1  ;;  %v1313_v31 = vrot.slane %v475_v37, 2 }
  0x32   : > { %4561 = vmatmul.mubr.msk.bf16.gmra.mrb[8].mxu0 %vm483_vm3, %v466_v26  ;;  %v1309_v26 = vrot.slane %v467_v22, 2  ;;  %v5566_v28 = vsel %vm1301_vm7, %v1304_v19, %v1307_v20  ;;  %v1440_v22 = vrot.slane %v5401_v23, 3  ;;  %v1314_v33 = vrot.slane %v471_v25, 3 }
  0x33   : > { %4575 = vmatmul.mubr.msk.bf16.vlgmr.msra.gmra.mrb[8].mxu1 %vm483_vm3, %v5376_v7  ;;  %4596 = vmatprep.mubr.msk.bf16.mxu0 %vm5277_vm1, %v5276_v1  ;;  %v5520_v7 = vsel %vm911_vm5, %v945_v39, %v954_v29  ;;  %v1442_v35 = vrot.slane %v5386_v13, 3  ;;  %v1321_v36 = vshll.u32 %v5433_v44, 16  ;;  %v675_v45 = vsel %vm670_vm4, %v672_v32, %v674_v2 }
  0x34   : > { %4617 = vmatpush3.bf16.msra.mxu1 %v824_v56  ;;  %4578 = vmatprep.mubr.msk.bf16.mxu1 %vm5277_vm1, %v5276_v1  ;;  %v1076_v56 = vrot.slane %v5429_v42, 2  ;;  %v1311_v21 = vor.u32 %v1310_v30, %v1309_v26  ;;  %v5589_v37 = vsel %vm1438_vm8, %v1439_v61, %v1440_v22  ;;  %v1315_v39 = vor.u32 %v1314_v33, %v1313_v31 }
  0x35   : > { %4660 = vmatprep.subr.bf16.mxu1 %v5276_v1  ;;  %v5595_v41 = vsel %vm1438_vm8, %v1440_v22, %v1442_v35  ;;  %v1323_v29 = vrot.slane %v1321_v36, 3  ;;  %v1327_v32 = vshrl.u32 %v5515_v50, 16  ;;  %v1330_v57 = vshll.u32 %v5515_v50, 16 }
  0x36   : > { %v5544_v9 = vsel %vm1068_vm6, %v1074_v49, %v1076_v56  ;;  %v5552_v42 = vsel %vm1068_vm6, %v1076_v56, %v1078_v8  ;;  %v5592_v25 = vsel %vm1301_vm7, %v1307_v20, %v1311_v21  ;;  %v5601_v48 = vsel %vm1301_vm7, %v1311_v21, %v1315_v39 }
  0x37   : > { %v1444_v49 = vrot.slane %v5393_v17, 3  ;;  %v1332_v56 = vrot.slane %v1330_v57, 3  ;;  %v1446_v8 = vrot.slane %v5433_v44, 3  ;;  %v678_v19 = vrot.slane %v5393_v17, 1 }
  0x38   : > { %v5652_v30 = vcombine.low %v5373_v6, %v5389_v14 }
  0x39   : > { %v5609_v54 = vsel %vm1438_vm8, %v1442_v35, %v1444_v49  ;;  %v5628_v15 = vsel %vm1438_vm8, %v1444_v49, %v1446_v8 }
  0x3a   : > { %4597 = vmatmul.mubr.msk.bf16.vlgmr.msra.gmra.mrb[12].mxu0 %vm483_vm3, %v673_v60  ;;  %v1329_v60 = vrot.slane %v1327_v32, 2  ;;  %v921_v22 = vshrl.u32 %v5652_v30, 16  ;;  %v798_v6 = vrot.slane %v5652_v30, 1 }
  0x3b   : > { %4579 = vmatmul.mubr.msk.bf16.gmra.mrb[12].mxu1 %vm483_vm3, %v5382_v10  ;;  %4639 = vmatpush3.bf16.msra.mxu0 %v5463_v58  ;;  %v1318_v58 = vshrl.u32 %v5433_v44, 16  ;;  %v676_v10 = vrot.slane %v5386_v13, 1  ;;  %v1448_v44 = vrot.slane %v5515_v50, 3  ;;  %v680_v50 = vrot.slane %v5407_v27, 1 }
  0x3c   : > { %4582 = vmatprep.mubr.msk.bf16.mxu1 %vm5277_vm1, %v5276_v1  ;;  %4600 = vmatprep.mubr.msk.bf16.mxu0 %vm5277_vm1, %v5276_v1  ;;  %v923_v33 = vrot.slane %v921_v22, 1 }
  0x3d   : > { %4682 = vmatprep.subr.bf16.mxu0 %v5276_v1  ;;  %v1320_v43 = vrot.slane %v1318_v58, 2  ;;  %v677_v0 = vsel %vm670_vm4, %v674_v2, %v676_v10  ;;  %v5640_v20 = vsel %vm1438_vm8, %v1446_v8, %v1448_v44  ;;  %v679_v26 = vsel %vm670_vm4, %v676_v10, %v678_v19  ;;  %v4218_v8 = vld [vmem:[%s6905_s3 + $0x16] sm:$0x3] }
  0x3e   : > { %v681_v14 = vsel %vm670_vm4, %v678_v19, %v680_v50 }
  0x3f   : > { %v1324_v34 = vor.u32 %v1323_v29, %v1320_v43  ;;  %v4182_v43 = vld [vmem:[%s6905_s3 + $0xc] sm:$0x3] }
  0x41   : > { %v5606_v52 = vsel %vm1301_vm7, %v1315_v39, %v1324_v34 }
  0x42   : > { %4601 = vmatmul.mubr.msk.bf16.gmra.mrb[16].mxu0 %vm483_vm3, %v675_v45  ;;  %v801_v45 = vsel %vm670_vm4, %v798_v6, %v800_v59 }
  0x43   : > { %4583 = vmatmul.mubr.msk.bf16.gmra.mrb[16].mxu1 %vm483_vm3, %v5401_v23  ;;  %4604 = vmatprep.mubr.msk.bf16.mxu0 %vm5277_vm1, %v5276_v1  ;;  %v1333_v23 = vor.u32 %v1332_v56, %v1329_v60 }
  0x44   : > { %4586 = vmatprep.mubr.msk.bf16.mxu1 %vm5277_vm1, %v5276_v1 }
  0x45   : > { %v5625_v11 = vsel %vm1301_vm7, %v1324_v34, %v1333_v23  ;;  %v1214_v34 = vsel %vm499_vm0, %v4182_v43, 0 }
  0x4a   : > { %4605 = vmatmul.mubr.msk.bf16.gmra.mrb[20].mxu0 %vm483_vm3, %v677_v0 }
  0x4b   : > { %4587 = vmatmul.mubr.msk.bf16.gmra.mrb[20].mxu1 %vm483_vm3, %v5386_v13  ;;  %4608 = vmatprep.mubr.msk.bf16.mxu0 %vm5277_vm1, %v5276_v1  ;;  %v4156_v13 = vcombine.low %v5367_v4, %v5370_v5  ;;  %v924_v4 = vshll.u32 %v5652_v30, 16 }
  0x4c   : > { %4590 = vmatprep.mubr.msk.bf16.mxu1 %vm5277_vm1, %v5276_v1 }
  0x4d   : > { %v913_v61 = vshrl.u32 %v4156_v13, 16  ;;  %v916_v2 = vshll.u32 %v4156_v13, 16  ;;  %v797_v5 = vrot.slane %v4156_v13, 1  ;;  %v926_v21 = vrot.slane %v924_v4, 2  ;;  %v5889_v4 = vld [vmem:[%s5646_s7 + $0x18] sm:$0xf] }
  0x4f   : > { %v915_v27 = vrot.slane %v913_v61, 1  ;;  %v918_v31 = vrot.slane %v916_v2, 2  ;;  %v799_v35 = vsel %vm670_vm4, %v797_v5, %v798_v6  ;;  %v927_v39 = vor.u32 %v926_v21, %v923_v33  ;;  %v5892_v5 = vld [vmem:[%s5646_s7 + $0x1c] sm:$0xf]  ;;  %v5909_v33 = vld [vmem:[%s5646_s7 + $0x20] sm:$0xf] }
  0x50   : > { %v5912_v21 = vld [vmem:[%s5646_s7 + $0x24] sm:$0xf] }
  0x51   : > { %v919_v36 = vor.u32 %v918_v31, %v915_v27  ;;  %v937_v59 = vsel %vm911_vm5, %v927_v39, %v5494_v38  ;;  %v5711_v38 = vld [vmem:[%s5646_s7 + $0x28] sm:$0xf] }
  0x52   : > { %4609 = vmatmul.mubr.msk.bf16.gmra.mrb[24].mxu0 %vm483_vm3, %v679_v26 }
  0x53   : > { %4591 = vmatmul.mubr.msk.bf16.gmra.mrb[24].mxu1 %vm483_vm3, %v5393_v17  ;;  %4612 = vmatprep.mubr.msk.bf16.mxu0 %vm5277_vm1, %v5276_v1  ;;  %v4174_v17 = vld [vmem:[%s6905_s3 + $0xa] sm:$0x3]  ;;  %v928_v29 = vsel %vm911_vm5, %v919_v36, %v927_v39  ;;  %v5923_v36 = vcombine.low %v5909_v33, %v5912_v21 }
  0x54   : > { %4618 = vmatprep.mubr.msk.bf16.mxu1 %vm5277_vm1, %v5276_v1  ;;  %v1096_v58 = vsel %vm499_vm0, %v4174_v17, 0  ;;  %v5899_v17 = vcombine.low %v5889_v4, %v5892_v5 }
  0x56   : > { %v1708_v31 = vshll.u32 %v5899_v17, 16  ;;  %v1712_v43 = vshrl.u32 %v5899_v17, 16 }
  0x5a   : > { %4613 = vmatmul.mubr.msk.bf16.gmra.mrb[28].mxu0 %vm483_vm3, %v681_v14 }
  0x5b   : > { %4619 = vmatmul.mubr.msk.bf16.vlgmr.msra.gmra.mrb[28].mxu1 %vm483_vm3, %v799_v35  ;;  %4640 = vmatprep.mubr.msk.bf16.mxu0 %vm5277_vm1, %v5276_v1 }
  0x5c   : > { %4661 = vmatpush3.bf16.msra.mxu1 %v1096_v58  ;;  %4622 = vmatprep.mubr.msk.bf16.mxu1 %vm5277_vm1, %v5276_v1  ;;  %v1710_v58 = vrot.slane %v1708_v31, 1 }
  0x5d   : > { %4704 = vmatprep.subr.bf16.mxu1 %v5276_v1 }
  0x62   : > { %4641 = vmatmul.mubr.msk.bf16.vlgmr.msra.gmra.mrb[32].mxu0 %vm483_vm3, %v928_v29  ;;  %v1715_v29 = vshll.u32 %v5923_v36, 16 }
  0x63   : > { %4623 = vmatmul.mubr.msk.bf16.gmra.mrb[32].mxu1 %vm483_vm3, %v801_v45  ;;  %4683 = vmatpush3.bf16.msra.mxu0 %v1214_v34  ;;  %v1714_v45 = vor.u32 %v1712_v43, %v1710_v58 }
  0x64   : > { %4626 = vmatprep.mubr.msk.bf16.mxu1 %vm5277_vm1, %v5276_v1  ;;  %4644 = vmatprep.mubr.msk.bf16.mxu0 %vm5277_vm1, %v5276_v1  ;;  %v1717_v34 = vrot.slane %v1715_v29, 1 }
  0x65   : > { %4726 = vmatprep.subr.bf16.mxu0 %v5276_v1 }
  0x6a   : > { %4645 = vmatmul.mubr.msk.bf16.gmra.mrb[36].mxu0 %vm483_vm3, %v937_v59  ;;  %v5941_v59 = vcombine.low %v5711_v38, %v5711_v38 }
  0x6b   : > { %4627 = vmatmul.mubr.msk.bf16.gmra.mrb[36].mxu1 %vm483_vm3, %v5481_v3  ;;  %4648 = vmatprep.mubr.msk.bf16.mxu0 %vm5277_vm1, %v5276_v1  ;;  %v5714_v3 = vld [vmem:[%s5646_s7 + $0x2c] sm:$0xf] }
  0x6c   : > { %4630 = vmatprep.mubr.msk.bf16.mxu1 %vm5277_vm1, %v5276_v1  ;;  %v5720_v49 = vcombine.low %v5711_v38, %v5714_v3 }
  0x72   : > { %4649 = vmatmul.mubr.msk.bf16.gmra.mrb[40].mxu0 %vm483_vm3, %v5509_v47  ;;  %v1070_v47 = vrot.slane %v5652_v30, 2 }
  0x73   : > { %4631 = vmatmul.mubr.msk.bf16.gmra.mrb[40].mxu1 %vm483_vm3, %v5485_v12  ;;  %4652 = vmatprep.mubr.msk.bf16.mxu0 %vm5277_vm1, %v5276_v1  ;;  %v1069_v12 = vrot.slane %v4156_v13, 2  ;;  %v1863_v13 = vsel %vm499_vm0, %v4218_v8, 0 }
  0x74   : > { %4634 = vmatprep.mubr.msk.bf16.mxu1 %vm5277_vm1, %v5276_v1  ;;  %v1073_v57 = vsel %vm1068_vm6, %v1070_v47, %v1072_v46  ;;  %v1600_v46 = vsel %vm499_vm0, %v4205_v53, 0 }
  0x75   : > { %v1071_v10 = vsel %vm1068_vm6, %v1069_v12, %v1070_v47  ;;  %v1718_v12 = vsel %vm438_vm2, %v1714_v45, %v1717_v34  ;;  %v1719_v47 = vshrl.u32 %v5923_v36, 16 }
  0x7a   : > { %4653 = vmatmul.mubr.msk.bf16.gmra.mrb[44].mxu0 %vm483_vm3, %v5520_v7  ;;  %v4188_v7 = vld [vmem:[%s6905_s3 + $0xe] sm:$0x3] }
  0x7b   : > { %4635 = vmatmul.mubr.msk.bf16.gmra.mrb[44].mxu1 %vm483_vm3, %v5497_v40  ;;  %4656 = vmatprep.mubr.msk.bf16.mxu0 %vm5277_vm1, %v5276_v1  ;;  %v1351_v32 = vsel %vm499_vm0, %v4188_v7, 0  ;;  %v4194_v40 = vld [vmem:[%s6905_s3 + $0x10] sm:$0x3]  ;;  %v1723_v7 = vshll.u32 %v5941_v59, 16 }
  0x7c   : > { %4662 = vmatprep.mubr.msk.bf16.mxu1 %vm5277_vm1, %v5276_v1 }
  0x82   : > { %4657 = vmatmul.mubr.msk.bf16.gmra.mrb[48].mxu0 %vm483_vm3, %v5537_v62  ;;  %v1466_v62 = vsel %vm499_vm0, %v4194_v40, 0 }
  0x83   : > { %4663 = vmatmul.mubr.msk.bf16.vlgmr.msra.gmra.mrb[48].mxu1 %vm483_vm3, %v1071_v10  ;;  %4684 = vmatprep.mubr.msk.bf16.mxu0 %vm5277_vm1, %v5276_v1  ;;  %v1721_v10 = vor.u32 %v1719_v47, %v1717_v34  ;;  %v6020_v34 = vcombine.low %v5892_v5, %v5909_v33  ;;  %v1843_v5 = vrot.slane %v5923_v36, 1 }
  0x84   : > { %4705 = vmatpush3.bf16.msra.mxu1 %v1351_v32  ;;  %4666 = vmatprep.mubr.msk.bf16.mxu1 %vm5277_vm1, %v5276_v1  ;;  %v1725_v32 = vrot.slane %v1723_v7, 1 }
  0x85   : > { %4748 = vmatprep.subr.bf16.mxu1 %v5276_v1 }
  0x8a   : > { %4685 = vmatmul.mubr.msk.bf16.vlgmr.msra.gmra.mrb[52].mxu0 %vm483_vm3, %v5528_v55  ;;  %v4212_v55 = vld [vmem:[%s6905_s3 + $0x14] sm:$0x3] }
  0x8b   : > { %4667 = vmatmul.mubr.msk.bf16.gmra.mrb[52].mxu1 %vm483_vm3, %v1073_v57  ;;  %4727 = vmatpush3.bf16.msra.mxu0 %v1466_v62 }
  0x8c   : > { %4670 = vmatprep.mubr.msk.bf16.mxu1 %vm5277_vm1, %v5276_v1  ;;  %4688 = vmatprep.mubr.msk.bf16.mxu0 %vm5277_vm1, %v5276_v1 }
  0x8d   : > { %4770 = vmatprep.subr.bf16.mxu0 %v5276_v1 }
  0x92   : > { %4689 = vmatmul.mubr.msk.bf16.gmra.mrb[56].mxu0 %vm483_vm3, %v5540_v63  ;;  %v5822_v63 = vld [vmem:[%s5646_s7 + $0x10] sm:$0xf] }
  0x93   : > { %4671 = vmatmul.mubr.msk.bf16.gmra.mrb[56].mxu1 %vm483_vm3, %v5533_v51  ;;  %4692 = vmatprep.mubr.msk.bf16.mxu0 %vm5277_vm1, %v5276_v1  ;;  %v1743_v51 = vsel %vm499_vm0, %v4212_v55, 0  ;;  %v4236_v55 = vld [vmem:[%s6905_s3 + $0x1a] sm:$0x3] }
  0x94   : > { %4674 = vmatprep.mubr.msk.bf16.mxu1 %vm5277_vm1, %v5276_v1 }
  0x9a   : > { %4693 = vmatmul.mubr.msk.bf16.gmra.mrb[60].mxu0 %vm483_vm3, %v5549_v18  ;;  %v1551_v18 = vld [vmem:[%s5646_s7] sm:$0xf] }
  0x9b   : > { %4675 = vmatmul.mubr.msk.bf16.gmra.mrb[60].mxu1 %vm483_vm3, %v5544_v9  ;;  %4696 = vmatprep.mubr.msk.bf16.mxu0 %vm5277_vm1, %v5276_v1  ;;  %v5825_v9 = vld [vmem:[%s5646_s7 + $0x14] sm:$0xf] }
  0x9c   : > { %4678 = vmatprep.mubr.msk.bf16.mxu1 %vm5277_vm1, %v5276_v1 }
  0xa2   : > { %4697 = vmatmul.mubr.msk.bf16.gmra.mrb[64].mxu0 %vm483_vm3, %v5557_v16  ;;  %v5834_v16 = vld [vmem:[%s5646_s7 + $0x8] sm:$0xf] }
  0xa3   : > { %4679 = vmatmul.mubr.msk.bf16.gmra.mrb[64].mxu1 %vm483_vm3, %v5552_v42  ;;  %4700 = vmatprep.mubr.msk.bf16.mxu0 %vm5277_vm1, %v5276_v1  ;;  %v5831_v42 = vld [vmem:[%s5646_s7 + $0x4] sm:$0xf] }
  0xa4   : > { %4706 = vmatprep.mubr.msk.bf16.mxu1 %vm5277_vm1, %v5276_v1 }
  0xaa   : > { %4701 = vmatmul.mubr.msk.bf16.gmra.mrb[68].mxu0 %vm483_vm3, %v5560_v24  ;;  %v5837_v24 = vld [vmem:[%s5646_s7 + $0xc] sm:$0xf] }
  0xab   : > { %4707 = vmatmul.mubr.msk.bf16.vlgmr.msra.gmra.mrb[68].mxu1 %vm483_vm3, %v5566_v28  ;;  %4728 = vmatprep.mubr.msk.bf16.mxu0 %vm5277_vm1, %v5276_v1  ;;  %v5841_v28 = vcombine.low %v5822_v63, %v5825_v9 }
  0xac   : > { %4749 = vmatpush3.bf16.msra.mxu1 %v1600_v46  ;;  %4710 = vmatprep.mubr.msk.bf16.mxu1 %vm5277_vm1, %v5276_v1 }
  0xad   : > { %4792 = vmatprep.subr.bf16.mxu1 %v5276_v1 }
  0xb2   : > { %4729 = vmatmul.mubr.msk.bf16.vlgmr.msra.gmra.mrb[72].mxu0 %vm483_vm3, %v5589_v37  ;;  %v5844_v37 = vcombine.low %v1551_v18, %v5831_v42  ;;  %v5972_v18 = vcombine.low %v5837_v24, %v5822_v63 }
  0xb3   : > { %4711 = vmatmul.mubr.msk.bf16.gmra.mrb[72].mxu1 %vm483_vm3, %v5592_v25  ;;  %4771 = vmatpush3.bf16.msra.mxu0 %v1743_v51  ;;  %v5848_v25 = vcombine.low %v5834_v16, %v5837_v24  ;;  %v5968_v51 = vcombine.low %v5831_v42, %v5834_v16  ;;  %v1839_v16 = vrot.slane %v5841_v28, 1 }
  0xb4   : > { %4714 = vmatprep.mubr.msk.bf16.mxu1 %vm5277_vm1, %v5276_v1  ;;  %4732 = vmatprep.mubr.msk.bf16.mxu0 %vm5277_vm1, %v5276_v1  ;;  %v1836_v40 = vrot.slane %v5844_v37, 1  ;;  %v1963_v42 = vrot.slane %v5972_v18, 1 }
  0xb5   : > { %4814 = vmatprep.subr.bf16.mxu0 %v5276_v1  ;;  %v1694_v60 = vshll.u32 %v5848_v25, 16  ;;  %v1837_v57 = vrot.slane %v5848_v25, 1  ;;  %v1962_v63 = vrot.slane %v5968_v51, 1 }
  0xb7   : > { %v1696_v61 = vrot.slane %v1694_v60, 1 }
  0xba   : > { %4733 = vmatmul.mubr.msk.bf16.gmra.mrb[76].mxu0 %vm483_vm3, %v5595_v41  ;;  %v1698_v41 = vshrl.u32 %v5848_v25, 16 }
  0xbb   : > { %4715 = vmatmul.mubr.msk.bf16.gmra.mrb[76].mxu1 %vm483_vm3, %v5601_v48  ;;  %4736 = vmatprep.mubr.msk.bf16.mxu0 %vm5277_vm1, %v5276_v1  ;;  %v1701_v48 = vshll.u32 %v5841_v28, 16 }
  0xbc   : > { %4718 = vmatprep.mubr.msk.bf16.mxu1 %vm5277_vm1, %v5276_v1  ;;  %v2464_v56 = vrot.slane %v1698_v41, 2  ;;  %v1700_v6 = vor.u32 %v1698_v41, %v1696_v61 }
  0xbd   : > { %v2468_v0 = vrot.slane %v1701_v48, 3  ;;  %v1703_v14 = vrot.slane %v1701_v48, 1  ;;  %v1726_v48 = vsel %vm438_vm2, %v1721_v10, %v1725_v32 }
  0xbf   : > { %v1704_v27 = vsel %vm438_vm2, %v1700_v6, %v1703_v14 }
  0xc2   : > { %4737 = vmatmul.mubr.msk.bf16.gmra.mrb[80].mxu0 %vm483_vm3, %v5609_v54  ;;  %v1690_v54 = vshll.u32 %v5844_v37, 16 }
  0xc3   : > { %4719 = vmatmul.mubr.msk.bf16.gmra.mrb[80].mxu1 %vm483_vm3, %v5606_v52  ;;  %4740 = vmatprep.mubr.msk.bf16.mxu0 %vm5277_vm1, %v5276_v1  ;;  %v1705_v52 = vshrl.u32 %v5841_v28, 16 }
  0xc4   : > { %4722 = vmatprep.mubr.msk.bf16.mxu1 %vm5277_vm1, %v5276_v1  ;;  %v1692_v19 = vrot.slane %v1690_v54, 1 }
  0xc5   : > { %v2467_v23 = vrot.slane %v1705_v52, 2  ;;  %v1707_v35 = vor.u32 %v1705_v52, %v1703_v14 }
  0xc7   : > { %v5867_v26 = vor.u32 %v2468_v0, %v2467_v23  ;;  %v1711_v39 = vsel %vm438_vm2, %v1707_v35, %v1710_v58  ;;  %v2145_v0 = vsel %vm499_vm0, %v4236_v55, 0  ;;  %v4242_v23 = vld [vmem:[%s6905_s3 + $0x1c] sm:$0x3] }
  0xca   : > { %4741 = vmatmul.mubr.msk.bf16.gmra.mrb[84].mxu0 %vm483_vm3, %v5628_v15  ;;  %v2465_v15 = vrot.slane %v1694_v60, 3  ;;  %v1838_v60 = vsel %vm670_vm4, %v1836_v40, %v1837_v57 }
  0xcb   : > { %4723 = vmatmul.mubr.msk.bf16.gmra.mrb[84].mxu1 %vm483_vm3, %v5625_v11  ;;  %4744 = vmatprep.mubr.msk.bf16.mxu0 %vm5277_vm1, %v5276_v1  ;;  %v1688_v11 = vshrl.u32 %v5844_v37, 16 }
  0xcc   : > { %4750 = vmatprep.mubr.msk.bf16.mxu1 %vm5277_vm1, %v5276_v1  ;;  %v2466_v44 = vor.u32 %v2465_v15, %v2464_v56 }
  0xcd   : > { %v1693_v50 = vor.u32 %v1692_v19, %v1688_v11 }
  0xce   : > { %v5874_v30 = vsel %vm1301_vm7, %v2466_v44, %v5867_v26  ;;  %v1964_v44 = vsel %vm670_vm4, %v1962_v63, %v1963_v42 }
  0xcf   : > { %v1697_v2 = vsel %vm438_vm2, %v1693_v50, %v1696_v61 }
  0xd2   : > { %4745 = vmatmul.mubr.msk.bf16.gmra.mrb[88].mxu0 %vm483_vm3, %v5640_v20  ;;  %v4230_v20 = vld [vmem:[%s6905_s3 + $0x18] sm:$0x3] }
  0xd3   : > { %4751 = vmatmul.mubr.msk.bf16.vlgmr.msra.gmra.mrb[88].mxu1 %vm483_vm3, %v5844_v37  ;;  %4772 = vmatprep.mubr.msk.bf16.mxu0 %vm5277_vm1, %v5276_v1  ;;  %v1989_v22 = vsel %vm499_vm0, %v4230_v20, 0  ;;  %v1840_v20 = vsel %vm670_vm4, %v1837_v57, %v1839_v16  ;;  %v1967_v57 = vrot.slane %v6020_v34, 1 }
  0xd4   : > { %4793 = vmatpush3.bf16.msra.mxu1 %v1863_v13  ;;  %4754 = vmatprep.mubr.msk.bf16.mxu1 %vm5277_vm1, %v5276_v1  ;;  %v6002_v13 = vcombine.low %v5825_v9, %v5889_v4  ;;  %v1841_v9 = vrot.slane %v5899_v17, 1 }
  0xd5   : > { %4836 = vmatprep.subr.bf16.mxu1 %v5276_v1 }
  0xd6   : > { %v1965_v6 = vrot.slane %v6002_v13, 1  ;;  %v1842_v10 = vsel %vm670_vm4, %v1839_v16, %v1841_v9  ;;  %v1844_v63 = vsel %vm670_vm4, %v1841_v9, %v1843_v5 }
  0xd8   : > { %v1966_v45 = vsel %vm670_vm4, %v1963_v42, %v1965_v6 }
  0xda   : > { %4773 = vmatmul.mubr.msk.bf16.vlgmr.msra.gmra.mrb[92].mxu0 %vm483_vm3, %v1697_v2  ;;  %v2259_v2 = vsel %vm499_vm0, %v4242_v23, 0 }
  0xdb   : > { %4755 = vmatmul.mubr.msk.bf16.gmra.mrb[92].mxu1 %vm483_vm3, %v5848_v25  ;;  %4815 = vmatpush3.bf16.msra.mxu0 %v1989_v22 }
  0xdc   : > { %4758 = vmatprep.mubr.msk.bf16.mxu1 %vm5277_vm1, %v5276_v1  ;;  %4776 = vmatprep.mubr.msk.bf16.mxu0 %vm5277_vm1, %v5276_v1 }
  0xdd   : > { %4858 = vmatprep.subr.bf16.mxu0 %v5276_v1 }
  0xe2   : > { %4777 = vmatmul.mubr.msk.bf16.gmra.mrb[96].mxu0 %vm483_vm3, %v1704_v27 }
  0xe3   : > { %4759 = vmatmul.mubr.msk.bf16.gmra.mrb[96].mxu1 %vm483_vm3, %v5841_v28  ;;  %4780 = vmatprep.mubr.msk.bf16.mxu0 %vm5277_vm1, %v5276_v1 }
  0xe4   : > { %4762 = vmatprep.mubr.msk.bf16.mxu1 %vm5277_vm1, %v5276_v1 }
  0xea   : > { %4781 = vmatmul.mubr.msk.bf16.gmra.mrb[100].mxu0 %vm483_vm3, %v1711_v39 }
  0xeb   : > { %4763 = vmatmul.mubr.msk.bf16.gmra.mrb[100].mxu1 %vm483_vm3, %v5899_v17  ;;  %4784 = vmatprep.mubr.msk.bf16.mxu0 %vm5277_vm1, %v5276_v1 }
  0xec   : > { %4766 = vmatprep.mubr.msk.bf16.mxu1 %vm5277_vm1, %v5276_v1 }
  0xf2   : > { %4785 = vmatmul.mubr.msk.bf16.gmra.mrb[104].mxu0 %vm483_vm3, %v1718_v12 }
  0xf3   : > { %4767 = vmatmul.mubr.msk.bf16.gmra.mrb[104].mxu1 %vm483_vm3, %v5923_v36  ;;  %4788 = vmatprep.mubr.msk.bf16.mxu0 %vm5277_vm1, %v5276_v1 }
  0xf4   : > { %4794 = vmatprep.mubr.msk.bf16.mxu1 %vm5277_vm1, %v5276_v1 }
  0xf5   : > { %v537_v62 = vpop.f32.mrb[0].mxu0 }
  0xf6   : > { %v4554_v53 = vpop.f32.mrb[1].mxu0  ;;  %v5961_v46 = vpop.f32.mrb[0].mxu1 }
  0xf7   : > { %v540_v37 = vpop.f32.mrb[2].mxu0  ;;  %v4566_v41 = vpop.f32.mrb[1].mxu1 }
  0xf8   : > { %v4555_v52 = vpop.f32.mrb[3].mxu0  ;;  %v5975_v54 = vpop.f32.mrb[2].mxu1 }
  0xf9   : > { %v4567_v56 = vpop.f32.mrb[3].mxu1 }
  0xfa   : > { %4789 = vmatmul.mubr.msk.bf16.gmra.mrb[108].mxu0 %vm483_vm3, %v1726_v48 }
  0xfb   : > { %4795 = vmatmul.mubr.msk.bf16.vlgmr.msra.gmra.mrb[108].mxu1 %vm483_vm3, %v1838_v60  ;;  %4816 = vmatprep.mubr.msk.bf16.mxu0 %vm5277_vm1, %v5276_v1  ;;  %v1968_v60 = vsel %vm670_vm4, %v1965_v6, %v1967_v57 }
  0xfc   : > { %4837 = vmatpush3.bf16.msra.mxu1 %v2145_v0  ;;  %4798 = vmatprep.mubr.msk.bf16.mxu1 %vm5277_vm1, %v5276_v1 }
  0xfd   : > { %v545_v24 = vpop.f32.mrb[4].mxu0  ;;  %4880 = vmatprep.subr.bf16.mxu1 %v5276_v1 }
  0xfe   : > { %v4558_v8 = vpop.f32.mrb[5].mxu0  ;;  %v5997_v15 = vpop.f32.mrb[4].mxu1 }
  0xff   : > { %v548_v11 = vpop.f32.mrb[6].mxu0  ;;  %v4570_v19 = vpop.f32.mrb[5].mxu1  ;;  %v1845_v8 = vrot.slane %v5941_v59, 1 }
 0x100   : > { %v4559_v50 = vpop.f32.mrb[7].mxu0  ;;  %v6004_v61 = vpop.f32.mrb[6].mxu1  ;;  %v2088_v19 = vshll.u32 %v5972_v18, 16 }
 0x101   : > { %v4571_v22 = vpop.f32.mrb[7].mxu1 }
 0x102   : > { %4817 = vmatmul.mubr.msk.bf16.vlgmr.msra.gmra.mrb[112].mxu0 %vm483_vm3, %v1964_v44 }
 0x103   : > { %4799 = vmatmul.mubr.msk.bf16.gmra.mrb[112].mxu1 %vm483_vm3, %v1840_v20  ;;  %4859 = vmatpush3.bf16.msra.mxu0 %v2259_v2  ;;  %v1846_v2 = vsel %vm670_vm4, %v1843_v5, %v1845_v8 }
 0x104   : > { %4802 = vmatprep.mubr.msk.bf16.mxu1 %vm5277_vm1, %v5276_v1  ;;  %4820 = vmatprep.mubr.msk.bf16.mxu0 %vm5277_vm1, %v5276_v1 }
 0x105   : > { %v553_v4 = vpop.f32.mrb[8].mxu0  ;;  %4902 = vmatprep.subr.bf16.mxu0 %v5276_v1 }
 0x106   : > { %v623_v14 = vpop.f32.mrb[8].mxu1  ;;  %v4562_v27 = vpop.f32.mrb[9].mxu0 }
 0x107   : > { %v624_v35 = vadd.f32 %v623_v14, %v537_v62  ;;  %v4576_v58 = vpop.f32.mrb[9].mxu1  ;;  %v556_v39 = vpop.f32.mrb[10].mxu0  ;;  %v6059_v27 = vcombine.low %v5714_v3, %v5714_v3 }
 0x108   : > { %v626_v12 = vpop.f32.mrb[10].mxu1  ;;  %v4563_v7 = vpop.f32.mrb[11].mxu0 }
 0x109   : > { %v627_v32 = vadd.f32 %v626_v12, %v540_v37  ;;  %v4577_v40 = vpop.f32.mrb[11].mxu1  ;;  %v6035_v37 = vcombine.low %v5912_v21, %v5711_v38  ;;  %v2077_v21 = vshrl.u32 %v5968_v51, 16  ;;  %v1971_v3 = vrot.slane %v6059_v27, 1 }
 0x10a   : > { %4821 = vmatmul.mubr.msk.bf16.gmra.mrb[116].mxu0 %vm483_vm3, %v1966_v45 }
 0x10b   : > { %4803 = vmatmul.mubr.msk.bf16.gmra.mrb[116].mxu1 %vm483_vm3, %v1842_v10  ;;  %4824 = vmatprep.mubr.msk.bf16.mxu0 %vm5277_vm1, %v5276_v1  ;;  %v1969_v38 = vrot.slane %v6035_v37, 1 }
 0x10c   : > { %4806 = vmatprep.mubr.msk.bf16.mxu1 %vm5277_vm1, %v5276_v1 }
 0x10d   : > { %v734_v33 = vpop.f32.mrb[12].mxu0  ;;  %v1970_v14 = vsel %vm670_vm4, %v1967_v57, %v1969_v38  ;;  %v2097_v57 = vshll.u32 %v6002_v13, 16 }
 0x10e   : > { %v631_v62 = vpop.f32.mrb[12].mxu1  ;;  %v4598_v53 = vpop.f32.mrb[13].mxu0  ;;  %v6031_v55 = vadd.f32 %v734_v33, %v624_v35  ;;  %v2079_v35 = vrot.slane %v2077_v21, 1 }
 0x10f   : > { %v632_v41 = vadd.f32 %v631_v62, %v545_v24  ;;  %v4580_v48 = vpop.f32.mrb[13].mxu1  ;;  %v737_v52 = vpop.f32.mrb[14].mxu0  ;;  %v2080_v24 = vshll.u32 %v5968_v51, 16 }
 0x110   : > { %v634_v56 = vpop.f32.mrb[14].mxu1  ;;  %v4599_v0 = vpop.f32.mrb[15].mxu0  ;;  %v6039_v42 = vadd.f32 %v737_v52, %v627_v32  ;;  %v2090_v32 = vrot.slane %v2088_v19, 2  ;;  %v4250_v52 = vld [vmem:[%s6905_s3 + $0x1e] sm:$0x3] }
 0x111   : > { %v635_v16 = vadd.f32 %v634_v56, %v548_v11  ;;  %v4581_v23 = vpop.f32.mrb[15].mxu1  ;;  %v2085_v11 = vshrl.u32 %v5972_v18, 16  ;;  %v2082_v7 = vrot.slane %v2080_v24, 2 }
 0x112   : > { %4825 = vmatmul.mubr.msk.bf16.gmra.mrb[120].mxu0 %vm483_vm3, %v1968_v60  ;;  %v2099_v23 = vrot.slane %v2097_v57, 2 }
 0x113   : > { %4807 = vmatmul.mubr.msk.bf16.gmra.mrb[120].mxu1 %vm483_vm3, %v1844_v63  ;;  %4828 = vmatprep.mubr.msk.bf16.mxu0 %vm5277_vm1, %v5276_v1  ;;  %v2087_v10 = vrot.slane %v2085_v11, 1  ;;  %v2083_v5 = vor.u32 %v2082_v7, %v2079_v35  ;;  %v1972_v63 = vsel %vm670_vm4, %v1969_v38, %v1971_v3  ;;  %v2232_v38 = vrot.slane %v5968_v51, 2 }
 0x114   : > { %4810 = vmatprep.mubr.msk.bf16.mxu1 %vm5277_vm1, %v5276_v1 }
 0x115   : > { %v742_v44 = vpop.f32.mrb[16].mxu0  ;;  %v2091_v62 = vor.u32 %v2090_v32, %v2087_v10 }
 0x116   : > { %v639_v59 = vpop.f32.mrb[16].mxu1  ;;  %v6053_v50 = vadd.f32 %v742_v44, %v632_v41  ;;  %v4602_v20 = vpop.f32.mrb[17].mxu0 }
 0x117   : > { %v640_v22 = vadd.f32 %v639_v59, %v553_v4  ;;  %v4584_v6 = vpop.f32.mrb[17].mxu1  ;;  %v745_v9 = vpop.f32.mrb[18].mxu0  ;;  %v2094_v4 = vshrl.u32 %v6002_v13, 16  ;;  %v2092_v11 = vsel %vm911_vm5, %v2083_v5, %v2091_v62  ;;  %v2377_v59 = vsel %vm499_vm0, %v4250_v52, 0 }
 0x118   : > { %v642_v58 = vpop.f32.mrb[18].mxu1  ;;  %v6061_v45 = vadd.f32 %v745_v9, %v635_v16  ;;  %v4603_v12 = vpop.f32.mrb[19].mxu0  ;;  %v2233_v20 = vrot.slane %v5972_v18, 2  ;;  %v4256_v6 = vld [vmem:[%s6905_s3 + $0x20] sm:$0x3] }
 0x119   : > { %v643_v40 = vadd.f32 %v642_v58, %v556_v39  ;;  %v4585_v33 = vpop.f32.mrb[19].mxu1  ;;  %v2096_v16 = vrot.slane %v2094_v4, 1 }
 0x11a   : > { %4829 = vmatmul.mubr.msk.bf16.gmra.mrb[124].mxu0 %vm483_vm3, %v1970_v14  ;;  %v2234_v7 = vsel %vm1068_vm6, %v2232_v38, %v2233_v20  ;;  %v2513_v33 = vsel %vm499_vm0, %v4256_v6, 0  ;;  %v6127_v38 = vld [vmem:[%s5982_s15 + $0x20] sm:$0xf] }
 0x11b   : > { %4811 = vmatmul.mubr.msk.bf16.gmra.mrb[124].mxu1 %vm483_vm3, %v1846_v2  ;;  %4832 = vmatprep.mubr.msk.bf16.mxu0 %vm5277_vm1, %v5276_v1  ;;  %v2106_v2 = vshll.u32 %v6020_v34, 16 }
 0x11c   : > { %4838 = vmatprep.mubr.msk.bf16.mxu1 %vm5277_vm1, %v5276_v1 }
 0x11d   : > { %v750_v39 = vpop.f32.mrb[20].mxu0  ;;  %v2108_v4 = vrot.slane %v2106_v2, 2 }
 0x11e   : > { %v647_v53 = vpop.f32.mrb[20].mxu1  ;;  %v6072_v41 = vadd.f32 %v750_v39, %v640_v22  ;;  %v4606_v48 = vpop.f32.mrb[21].mxu0  ;;  %v2112_v39 = vshrl.u32 %v6035_v37, 16 }
 0x11f   : > { %v648_v60 = vadd.f32 %v647_v53, %v5961_v46  ;;  %v4588_v56 = vpop.f32.mrb[21].mxu1  ;;  %v753_v0 = vpop.f32.mrb[22].mxu0  ;;  %v2100_v46 = vor.u32 %v2099_v23, %v2096_v16  ;;  %v2115_v53 = vshll.u32 %v6035_v37, 16 }
 0x120   : > { %v650_v8 = vpop.f32.mrb[22].mxu1  ;;  %v6079_v21 = vadd.f32 %v753_v0, %v643_v40  ;;  %v4607_v24 = vpop.f32.mrb[23].mxu0 }
 0x121   : > { %v651_v19 = vadd.f32 %v650_v8, %v5975_v54  ;;  %v4589_v44 = vpop.f32.mrb[23].mxu1  ;;  %v2103_v54 = vshrl.u32 %v6020_v34, 16  ;;  %v2101_v12 = vsel %vm911_vm5, %v2091_v62, %v2100_v46 }
 0x122   : > { %4833 = vmatmul.mubr.msk.bf16.gmra.mrb[128].mxu0 %vm483_vm3, %v1972_v63 }
 0x123   : > { %4839 = vmatmul.mubr.msk.bf16.vlgmr.msra.gmra.mrb[128].mxu1 %vm483_vm3, %v2092_v11  ;;  %4860 = vmatprep.mubr.msk.bf16.mxu0 %vm5277_vm1, %v5276_v1  ;;  %v2105_v3 = vrot.slane %v2103_v54, 1  ;;  %v2114_v11 = vrot.slane %v2112_v39, 1  ;;  %v2124_v54 = vshll.u32 %v6059_v27, 16 }
 0x124   : > { %4881 = vmatpush3.bf16.msra.mxu1 %v2377_v59  ;;  %4842 = vmatprep.mubr.msk.bf16.mxu1 %vm5277_vm1, %v5276_v1 }
 0x125   : > { %v758_v22 = vpop.f32.mrb[24].mxu0  ;;  %4924 = vmatprep.subr.bf16.mxu1 %v5276_v1  ;;  %v2109_v62 = vor.u32 %v2108_v4, %v2105_v3  ;;  %v2126_v4 = vrot.slane %v2124_v54, 2 }
 0x126   : > { %v655_v9 = vpop.f32.mrb[24].mxu1  ;;  %v6098_v14 = vadd.f32 %v758_v22, %v648_v60  ;;  %v4610_v51 = vpop.f32.mrb[25].mxu0 }
 0x127   : > { %v656_v18 = vadd.f32 %v655_v9, %v5997_v15  ;;  %v4592_v35 = vpop.f32.mrb[25].mxu1  ;;  %v761_v58 = vpop.f32.mrb[26].mxu0  ;;  %v2235_v15 = vrot.slane %v6002_v13, 2  ;;  %v2110_v24 = vsel %vm911_vm5, %v2100_v46, %v2109_v62 }
 0x128   : > { %v658_v10 = vpop.f32.mrb[26].mxu1  ;;  %v6103_v32 = vadd.f32 %v761_v58, %v651_v19  ;;  %v4611_v40 = vpop.f32.mrb[27].mxu0  ;;  %v2117_v19 = vrot.slane %v2115_v53, 2 }
 0x129   : > { %v659_v57 = vadd.f32 %v658_v10, %v6004_v61  ;;  %v4593_v5 = vpop.f32.mrb[27].mxu1  ;;  %v2236_v63 = vsel %vm1068_vm6, %v2233_v20, %v2235_v15  ;;  %v2237_v20 = vrot.slane %v6020_v34, 2 }
 0x12a   : > { %4861 = vmatmul.mubr.msk.bf16.vlgmr.msra.gmra.mrb[132].mxu0 %vm483_vm3, %v2234_v7  ;;  %v2118_v46 = vor.u32 %v2117_v19, %v2114_v11 }
 0x12b   : > { %4843 = vmatmul.mubr.msk.bf16.gmra.mrb[132].mxu1 %vm483_vm3, %v2101_v12  ;;  %4903 = vmatpush3.bf16.msra.mxu0 %v2513_v33  ;;  %v2238_v58 = vsel %vm1068_vm6, %v2235_v15, %v2237_v20  ;;  %v2239_v15 = vrot.slane %v6035_v37, 2 }
 0x12c   : > { %4846 = vmatprep.mubr.msk.bf16.mxu1 %vm5277_vm1, %v5276_v1  ;;  %4864 = vmatprep.mubr.msk.bf16.mxu0 %vm5277_vm1, %v5276_v1  ;;  %v2119_v33 = vsel %vm911_vm5, %v2109_v62, %v2118_v46 }
 0x12d   : > { %v766_v61 = vpop.f32.mrb[28].mxu0  ;;  %4946 = vmatprep.subr.bf16.mxu0 %v5276_v1  ;;  %v2240_v37 = vsel %vm1068_vm6, %v2237_v20, %v2239_v15  ;;  %v2351_v20 = vrot.slane %v5841_v28, 2 }
 0x12e   : > { %v6117_v48 = vadd.f32 %v766_v61, %v656_v18  ;;  %v860_v52 = vpop.f32.mrb[28].mxu1  ;;  %v4614_v13 = vpop.f32.mrb[29].mxu0 }
 0x12f   : > { %v899_v60 = vadd.f32 %v860_v52, %v6031_v55  ;;  %v4620_v56 = vpop.f32.mrb[29].mxu1  ;;  %v769_v0 = vpop.f32.mrb[30].mxu0  ;;  %v6130_v55 = vld [vmem:[%s5982_s15 + $0x24] sm:$0xf] }
 0x130   : > { %v6121_v16 = vadd.f32 %v769_v0, %v659_v57  ;;  %v863_v23 = vpop.f32.mrb[30].mxu1  ;;  %v4615_v8 = vpop.f32.mrb[31].mxu0  ;;  %v6142_v22 = vcombine.low %v6127_v38, %v6130_v55 }
 0x131   : > { %v900_v44 = vadd.f32 %v863_v23, %v6039_v42  ;;  %v4621_v59 = vpop.f32.mrb[31].mxu1  ;;  %v2121_v42 = vshrl.u32 %v6059_v27, 16 }
 0x132   : > { %4865 = vmatmul.mubr.msk.bf16.gmra.mrb[136].mxu0 %vm483_vm3, %v2236_v63  ;;  %v2876_v12 = vshll.u32 %v6142_v22, 16  ;;  %v2880_v39 = vshrl.u32 %v6142_v22, 16  ;;  %v2350_v59 = vrot.slane %v5848_v25, 2 }
 0x133   : > { %4847 = vmatmul.mubr.msk.bf16.gmra.mrb[136].mxu1 %vm483_vm3, %v2110_v24  ;;  %4868 = vmatprep.mubr.msk.bf16.mxu0 %vm5277_vm1, %v5276_v1  ;;  %v2123_v3 = vrot.slane %v2121_v42, 1 }
 0x134   : > { %4850 = vmatprep.mubr.msk.bf16.mxu1 %vm5277_vm1, %v5276_v1  ;;  %v3636_v62 = vrot.slane %v2880_v39, 2 }
 0x135   : > { %v1017_v2 = vpop.f32.mrb[32].mxu0 }
 0x136   : > { %v868_v6 = vpop.f32.mrb[32].mxu1  ;;  %v6144_v9 = vadd.f32 %v1017_v2, %v899_v60  ;;  %v4642_v51 = vpop.f32.mrb[33].mxu0  ;;  %v4262_v2 = vld [vmem:[%s6905_s3 + $0x22] sm:$0x3] }
 0x137   : > { %v901_v18 = vadd.f32 %v868_v6, %v6053_v50  ;;  %v4624_v34 = vpop.f32.mrb[33].mxu1  ;;  %v1020_v35 = vpop.f32.mrb[34].mxu0  ;;  %v3637_v50 = vrot.slane %v2876_v12, 3 }
 0x138   : > { %v871_v7 = vpop.f32.mrb[34].mxu1  ;;  %v6149_v10 = vadd.f32 %v1020_v35, %v900_v44  ;;  %v4643_v40 = vpop.f32.mrb[35].mxu0 }
 0x139   : > { %v902_v57 = vadd.f32 %v871_v7, %v6061_v45  ;;  %v4625_v5 = vpop.f32.mrb[35].mxu1  ;;  %v2127_v45 = vor.u32 %v2126_v4, %v2123_v3  ;;  %v6165_v61 = vor.u32 %v3637_v50, %v3636_v62  ;;  %v2352_v7 = vsel %vm1068_vm6, %v2350_v59, %v2351_v20 }
 0x13a   : > { %4869 = vmatmul.mubr.msk.bf16.gmra.mrb[140].mxu0 %vm483_vm3, %v2238_v58  ;;  %v2627_v3 = vsel %vm499_vm0, %v4262_v2, 0 }
 0x13b   : > { %4851 = vmatmul.mubr.msk.bf16.gmra.mrb[140].mxu1 %vm483_vm3, %v2119_v33  ;;  %4872 = vmatprep.mubr.msk.bf16.mxu0 %vm5277_vm1, %v5276_v1  ;;  %v2128_v11 = vsel %vm911_vm5, %v2118_v46, %v2127_v45 }
 0x13c   : > { %4854 = vmatprep.mubr.msk.bf16.mxu1 %vm5277_vm1, %v5276_v1 }
 0x13d   : > { %v1025_v53 = vpop.f32.mrb[36].mxu0 }
 0x13e   : > { %v876_v52 = vpop.f32.mrb[36].mxu1  ;;  %v6167_v13 = vadd.f32 %v1025_v53, %v901_v18  ;;  %v4646_v60 = vpop.f32.mrb[37].mxu0  ;;  %v2471_v53 = vrot.slane %v1712_v43, 2 }
 0x13f   : > { %v903_v56 = vadd.f32 %v876_v52, %v6072_v41  ;;  %v4628_v0 = vpop.f32.mrb[37].mxu1  ;;  %v1028_v63 = vpop.f32.mrb[38].mxu0  ;;  %v2241_v41 = vrot.slane %v6059_v27, 2  ;;  %v2472_v52 = vrot.slane %v1708_v31, 3  ;;  %v2355_v31 = vrot.slane %v5923_v36, 2 }
 0x140   : > { %v879_v23 = vpop.f32.mrb[38].mxu1  ;;  %v6171_v8 = vadd.f32 %v1028_v63, %v902_v57  ;;  %v4647_v24 = vpop.f32.mrb[39].mxu0 }
 0x141   : > { %v904_v19 = vadd.f32 %v879_v23, %v6079_v21  ;;  %v4629_v44 = vpop.f32.mrb[39].mxu1  ;;  %v2242_v18 = vsel %vm1068_vm6, %v2239_v15, %v2241_v41  ;;  %v2473_v43 = vor.u32 %v2472_v52, %v2471_v53 }
 0x142   : > { %4873 = vmatmul.mubr.msk.bf16.gmra.mrb[144].mxu0 %vm483_vm3, %v2240_v37 }
 0x143   : > { %4855 = vmatmul.mubr.msk.bf16.gmra.mrb[144].mxu1 %vm483_vm3, %v2128_v11  ;;  %4876 = vmatprep.mubr.msk.bf16.mxu0 %vm5277_vm1, %v5276_v1  ;;  %v2474_v59 = vsel %vm1301_vm7, %v5867_v26, %v2473_v43 }
 0x144   : > { %4882 = vmatprep.mubr.msk.bf16.mxu1 %vm5277_vm1, %v5276_v1 }
 0x145   : > { %v1033_v46 = vpop.f32.mrb[40].mxu0 }
 0x146   : > { %v884_v42 = vpop.f32.mrb[40].mxu1  ;;  %v6184_v21 = vadd.f32 %v1033_v46, %v903_v56  ;;  %v4650_v54 = vpop.f32.mrb[41].mxu0  ;;  %v2476_v46 = vrot.slane %v1715_v29, 3  ;;  %v2483_v29 = vshll.u32 %v5720_v49, 16 }
 0x147   : > { %v905_v6 = vadd.f32 %v884_v42, %v6098_v14  ;;  %v4632_v51 = vpop.f32.mrb[41].mxu1  ;;  %v1036_v27 = vpop.f32.mrb[42].mxu0  ;;  %v2353_v14 = vrot.slane %v5899_v17, 2 }
 0x148   : > { %v887_v34 = vpop.f32.mrb[42].mxu1  ;;  %v6191_v35 = vadd.f32 %v1036_v27, %v904_v19  ;;  %v4651_v58 = vpop.f32.mrb[43].mxu0  ;;  %v2357_v27 = vrot.slane %v5720_v49, 2 }
 0x149   : > { %v906_v40 = vadd.f32 %v887_v34, %v6103_v32  ;;  %v4633_v33 = vpop.f32.mrb[43].mxu1  ;;  %v4273_v32 = vld [vmem:[%s6905_s3 + $0x24] sm:$0x3]  ;;  %v2354_v63 = vsel %vm1068_vm6, %v2351_v20, %v2353_v14  ;;  %v2475_v20 = vrot.slane %v1719_v47, 2  ;;  %v2480_v47 = vshrl.u32 %v5720_v49, 16 }
 0x14a   : > { %4877 = vmatmul.mubr.msk.bf16.gmra.mrb[148].mxu0 %vm483_vm3, %v2242_v18  ;;  %v2761_v37 = vsel %vm499_vm0, %v4273_v32, 0 }
 0x14b   : > { %4883 = vmatmul.mubr.msk.bf16.vlgmr.msra.gmra.mrb[148].mxu1 %vm483_vm3, %v2352_v7  ;;  %4904 = vmatprep.mubr.msk.bf16.mxu0 %vm5277_vm1, %v5276_v1  ;;  %v2477_v26 = vor.u32 %v2476_v46, %v2475_v20 }
 0x14c   : > { %4925 = vmatpush3.bf16.msra.mxu1 %v2627_v3  ;;  %4886 = vmatprep.mubr.msk.bf16.mxu1 %vm5277_vm1, %v5276_v1 }
 0x14d   : > { %v1041_v4 = vpop.f32.mrb[44].mxu0  ;;  %4968 = vmatprep.subr.bf16.mxu1 %v5276_v1  ;;  %v2478_v3 = vsel %vm1301_vm7, %v2473_v43, %v2477_v26 }
 0x14e   : > { %v892_v57 = vpop.f32.mrb[44].mxu1  ;;  %v6207_v5 = vadd.f32 %v1041_v4, %v905_v6  ;;  %v4654_v50 = vpop.f32.mrb[45].mxu0  ;;  %v2356_v6 = vsel %vm1068_vm6, %v2353_v14, %v2355_v31  ;;  %v2482_v14 = vrot.slane %v2480_v47, 2  ;;  %v2485_v4 = vrot.slane %v2483_v29, 3 }
 0x14f   : > { %v907_v15 = vadd.f32 %v892_v57, %v6117_v48  ;;  %v4636_v62 = vpop.f32.mrb[45].mxu1  ;;  %v1044_v45 = vpop.f32.mrb[46].mxu0 }
 0x150   : > { %v895_v60 = vpop.f32.mrb[46].mxu1  ;;  %v6214_v56 = vadd.f32 %v1044_v45, %v906_v40  ;;  %v4655_v0 = vpop.f32.mrb[47].mxu0  ;;  %v6258_v62 = vld [vmem:[%s5646_s7 + $0x30] ss:$0 sps:$4 sm:$0xff]  }
 0x151   : > { %v908_v23 = vadd.f32 %v895_v60, %v6121_v16  ;;  %v4637_v24 = vpop.f32.mrb[47].mxu1  ;;  %v2489_v52 = vshrl.u32 %v6258_v62, 16  ;;  %v2492_v60 = vshll.u32 %v6258_v62, 16  ;;  %v2359_v0 = vrot.slane %v6258_v62, 2 }
 0x152   : > { %4905 = vmatmul.mubr.msk.bf16.vlgmr.msra.gmra.mrb[152].mxu0 %vm483_vm3, %v5874_v30 }
 0x153   : > { %4887 = vmatmul.mubr.msk.bf16.gmra.mrb[152].mxu1 %vm483_vm3, %v2354_v63  ;;  %4947 = vmatpush3.bf16.msra.mxu0 %v2761_v37 }
 0x154   : > { %4890 = vmatprep.mubr.msk.bf16.mxu1 %vm5277_vm1, %v5276_v1  ;;  %4908 = vmatprep.mubr.msk.bf16.mxu0 %vm5277_vm1, %v5276_v1 }
 0x155   : > { %v1049_v48 = vpop.f32.mrb[48].mxu0  ;;  %4990 = vmatprep.subr.bf16.mxu0 %v5276_v1 }
 0x156   : > { %v6228_v16 = vadd.f32 %v1049_v48, %v907_v15  ;;  %v1132_v11 = vpop.f32.mrb[48].mxu1  ;;  %v4658_v19 = vpop.f32.mrb[49].mxu0  ;;  %v2358_v15 = vsel %vm1068_vm6, %v2355_v31, %v2357_v27 }
 0x157   : > { %v1171_v30 = vadd.f32 %v1132_v11, %v6144_v9  ;;  %v4664_v44 = vpop.f32.mrb[49].mxu1  ;;  %v1052_v41 = vpop.f32.mrb[50].mxu0  ;;  %v2491_v11 = vrot.slane %v2489_v52, 2  ;;  %v2494_v19 = vrot.slane %v2492_v60, 3 }
 0x158   : > { %v6237_v42 = vadd.f32 %v1052_v41, %v908_v23  ;;  %v1135_v54 = vpop.f32.mrb[50].mxu1  ;;  %v4659_v2 = vpop.f32.mrb[51].mxu0 }
 0x159   : > { %v1172_v51 = vadd.f32 %v1135_v54, %v6149_v10  ;;  %v4665_v9 = vpop.f32.mrb[51].mxu1  ;;  %v2600_v54 = vrot.slane %v5848_v25, 3  ;;  %v2601_v2 = vrot.slane %v5841_v28, 3 }
 0x15a   : > { %4909 = vmatmul.mubr.msk.bf16.gmra.mrb[156].mxu0 %vm483_vm3, %v2474_v59  ;;  %v2360_v59 = vsel %vm1068_vm6, %v2357_v27, %v2359_v0 }
 0x15b   : > { %4891 = vmatmul.mubr.msk.bf16.gmra.mrb[156].mxu1 %vm483_vm3, %v2356_v6  ;;  %4912 = vmatprep.mubr.msk.bf16.mxu0 %vm5277_vm1, %v5276_v1 }
 0x15c   : > { %4894 = vmatprep.mubr.msk.bf16.mxu1 %vm5277_vm1, %v5276_v1 }
 0x15d   : > { %v1250_v10 = vpop.f32.mrb[52].mxu0 }
 0x15e   : > { %v1140_v18 = vpop.f32.mrb[52].mxu1  ;;  %v6250_v34 = vadd.f32 %v1250_v10, %v1171_v30  ;;  %v4686_v58 = vpop.f32.mrb[53].mxu0 }
 0x15f   : > { %v1173_v7 = vadd.f32 %v1140_v18, %v6167_v13  ;;  %v4668_v40 = vpop.f32.mrb[53].mxu1  ;;  %v1253_v33 = vpop.f32.mrb[54].mxu0  ;;  %v2486_v13 = vor.u32 %v2485_v4, %v2482_v14  ;;  %v2602_v58 = vsel %vm1438_vm8, %v2600_v54, %v2601_v2  ;;  %v2603_v14 = vrot.slane %v5899_v17, 3  ;;  %v4286_v4 = vld [vmem:[%s6905_s3 + $0x28] sm:$0x3] }
 0x160   : > { %v1143_v32 = vpop.f32.mrb[54].mxu1  ;;  %v6254_v57 = vadd.f32 %v1253_v33, %v1172_v51  ;;  %v4687_v50 = vpop.f32.mrb[55].mxu0 }
 0x161   : > { %v1174_v45 = vadd.f32 %v1143_v32, %v6171_v8  ;;  %v4669_v53 = vpop.f32.mrb[55].mxu1  ;;  %v2487_v48 = vsel %vm1301_vm7, %v2477_v26, %v2486_v13  ;;  %v4280_v26 = vld [vmem:[%s6905_s3 + $0x26] sm:$0x3] }
 0x162   : > { %4913 = vmatmul.mubr.msk.bf16.gmra.mrb[160].mxu0 %vm483_vm3, %v2478_v3  ;;  %v2904_v33 = vsel %vm499_vm0, %v4280_v26, 0  ;;  %v6304_v3 = vld [vmem:[%s5982_s15 + $0x4] sm:$0xf] }
 0x163   : > { %4895 = vmatmul.mubr.msk.bf16.gmra.mrb[160].mxu1 %vm483_vm3, %v2358_v15  ;;  %4916 = vmatprep.mubr.msk.bf16.mxu0 %vm5277_vm1, %v5276_v1 }
 0x164   : > { %4898 = vmatprep.mubr.msk.bf16.mxu1 %vm5277_vm1, %v5276_v1 }
 0x165   : > { %v1258_v63 = vpop.f32.mrb[56].mxu0 }
 0x166   : > { %v1148_v8 = vpop.f32.mrb[56].mxu1  ;;  %v6270_v37 = vadd.f32 %v1258_v63, %v1173_v7  ;;  %v4690_v23 = vpop.f32.mrb[57].mxu0  ;;  %v2604_v63 = vsel %vm1438_vm8, %v2601_v2, %v2603_v14 }
 0x167   : > { %v1175_v24 = vadd.f32 %v1148_v8, %v6184_v21  ;;  %v4672_v43 = vpop.f32.mrb[57].mxu1  ;;  %v1261_v31 = vpop.f32.mrb[58].mxu0  ;;  %v2495_v21 = vor.u32 %v2494_v19, %v2491_v11  ;;  %v3024_v8 = vsel %vm499_vm0, %v4286_v4, 0  ;;  %v2609_v4 = vrot.slane %v6258_v62, 3 }
 0x168   : > { %v1151_v30 = vpop.f32.mrb[58].mxu1  ;;  %v6274_v44 = vadd.f32 %v1261_v31, %v1174_v45  ;;  %v4691_v41 = vpop.f32.mrb[59].mxu0  ;;  %v6331_v43 = vld [vmem:[%s5982_s15 + $0xc] sm:$0xf]  ;;  %v2605_v31 = vrot.slane %v5923_v36, 3 }
 0x169   : > { %v1176_v20 = vadd.f32 %v1151_v30, %v6191_v35  ;;  %v4673_v46 = vpop.f32.mrb[59].mxu1  ;;  %v2496_v10 = vsel %vm1301_vm7, %v2486_v13, %v2495_v21 }
 0x16a   : > { %4917 = vmatmul.mubr.msk.bf16.gmra.mrb[164].mxu0 %vm483_vm3, %v2487_v48  ;;  %v2606_v54 = vsel %vm1438_vm8, %v2603_v14, %v2605_v31 }
 0x16b   : > { %4899 = vmatmul.mubr.msk.bf16.gmra.mrb[164].mxu1 %vm483_vm3, %v2360_v59  ;;  %4920 = vmatprep.mubr.msk.bf16.mxu0 %vm5277_vm1, %v5276_v1 }
 0x16c   : > { %4926 = vmatprep.mubr.msk.bf16.mxu1 %vm5277_vm1, %v5276_v1 }
 0x16d   : > { %v1266_v6 = vpop.f32.mrb[60].mxu0 }
 0x16e   : > { %v1156_v51 = vpop.f32.mrb[60].mxu1  ;;  %v6286_v9 = vadd.f32 %v1266_v6, %v1175_v24  ;;  %v4694_v35 = vpop.f32.mrb[61].mxu0 }
 0x16f   : > { %v1177_v47 = vadd.f32 %v1156_v51, %v6207_v5  ;;  %v4676_v29 = vpop.f32.mrb[61].mxu1  ;;  %v1269_v27 = vpop.f32.mrb[62].mxu0  ;;  %v2712_v5 = vld [vmem:[%s5982_s15] sm:$0xf]  ;;  %v6359_v51 = vld [vmem:[%s5982_s15 + $0x14] sm:$0xf] }
 0x170   : > { %v1159_v25 = vpop.f32.mrb[62].mxu1  ;;  %v6293_v18 = vadd.f32 %v1269_v27, %v1176_v20  ;;  %v4695_v28 = vpop.f32.mrb[63].mxu0  ;;  %v6316_v45 = vcombine.low %v2712_v5, %v6304_v3  ;;  %v2607_v35 = vrot.slane %v5720_v49, 3 }
 0x171   : > { %v1178_v7 = vadd.f32 %v1159_v25, %v6214_v56  ;;  %v4677_v40 = vpop.f32.mrb[63].mxu1 }
 0x172   : > { %4921 = vmatmul.mubr.msk.bf16.gmra.mrb[168].mxu0 %vm483_vm3, %v2496_v10  ;;  %v2608_v49 = vsel %vm1438_vm8, %v2605_v31, %v2607_v35 }
 0x173   : > { %4927 = vmatmul.mubr.msk.bf16.vlgmr.msra.gmra.mrb[168].mxu1 %vm483_vm3, %v2602_v58  ;;  %4948 = vmatprep.mubr.msk.bf16.mxu0 %vm5277_vm1, %v5276_v1 }
 0x174   : > { %4969 = vmatpush3.bf16.msra.mxu1 %v2904_v33  ;;  %4930 = vmatprep.mubr.msk.bf16.mxu1 %vm5277_vm1, %v5276_v1 }
 0x175   : > { %v1274_v56 = vpop.f32.mrb[64].mxu0  ;;  %5012 = vmatprep.subr.bf16.mxu1 %v5276_v1 }
 0x176   : > { %v1164_v32 = vpop.f32.mrb[64].mxu1  ;;  %v6313_v50 = vadd.f32 %v1274_v56, %v1177_v47  ;;  %v4698_v15 = vpop.f32.mrb[65].mxu0 }
 0x177   : > { %v1179_v53 = vadd.f32 %v1164_v32, %v6228_v16  ;;  %v4680_v13 = vpop.f32.mrb[65].mxu1  ;;  %v1277_v17 = vpop.f32.mrb[66].mxu0  ;;  %v6328_v16 = vld [vmem:[%s5982_s15 + $0x8] sm:$0xf]  ;;  %v6385_v32 = vld [vmem:[%s5982_s15 + $0x18] sm:$0xf] }
 0x178   : > { %v1167_v52 = vpop.f32.mrb[66].mxu1  ;;  %v6319_v60 = vadd.f32 %v1277_v17, %v1178_v7  ;;  %v4699_v0 = vpop.f32.mrb[67].mxu0  ;;  %v6343_v30 = vcombine.low %v6328_v16, %v6331_v43  ;;  %v2851_v15 = vshll.u32 %v6316_v45, 16 }
 0x179   : > { %v1180_v23 = vadd.f32 %v1167_v52, %v6237_v42  ;;  %v4681_v24 = vpop.f32.mrb[67].mxu1 }
 0x17a   : > { %4949 = vmatmul.mubr.msk.bf16.vlgmr.msra.gmra.mrb[172].mxu0 %vm483_vm3, %v6316_v45  ;;  %v2859_v14 = vshrl.u32 %v6343_v30, 16 }
 0x17b   : > { %4931 = vmatmul.mubr.msk.bf16.gmra.mrb[172].mxu1 %vm483_vm3, %v2604_v63  ;;  %4991 = vmatpush3.bf16.msra.mxu0 %v3024_v8 }
 0x17c   : > { %4934 = vmatprep.mubr.msk.bf16.mxu1 %vm5277_vm1, %v5276_v1  ;;  %4952 = vmatprep.mubr.msk.bf16.mxu0 %vm5277_vm1, %v5276_v1  ;;  %v3625_v13 = vrot.slane %v2859_v14, 2 }
 0x17d   : > { %v1282_v42 = vpop.f32.mrb[68].mxu0  ;;  %5034 = vmatprep.subr.bf16.mxu0 %v5276_v1 }
 0x17e   : > { %v6339_v48 = vadd.f32 %v1282_v42, %v1179_v53  ;;  %v1387_v11 = vpop.f32.mrb[68].mxu1  ;;  %v4702_v19 = vpop.f32.mrb[69].mxu0  ;;  %v2855_v53 = vshll.u32 %v6343_v30, 16 }
 0x17f   : > { %v1426_v41 = vadd.f32 %v1387_v11, %v6250_v34  ;;  %v4708_v59 = vpop.f32.mrb[69].mxu1  ;;  %v1285_v20 = vpop.f32.mrb[70].mxu0  ;;  %v6356_v34 = vld [vmem:[%s5982_s15 + $0x10] sm:$0xf]  ;;  %v2610_v19 = vsel %vm1438_vm8, %v2607_v35, %v2609_v4 }
 0x180   : > { %v6346_v46 = vadd.f32 %v1285_v20, %v1180_v23  ;;  %v1390_v36 = vpop.f32.mrb[70].mxu1  ;;  %v4703_v21 = vpop.f32.mrb[71].mxu0  ;;  %v6368_v27 = vcombine.low %v6356_v34, %v6359_v51  ;;  %v3626_v24 = vrot.slane %v2855_v53, 3 }
 0x181   : > { %v1427_v2 = vadd.f32 %v1390_v36, %v6254_v57  ;;  %v4709_v6 = vpop.f32.mrb[71].mxu1  ;;  %v2853_v21 = vrot.slane %v2851_v15, 1 }
 0x182   : > { %4953 = vmatmul.mubr.msk.bf16.gmra.mrb[176].mxu0 %vm483_vm3, %v6343_v30  ;;  %v2866_v56 = vshrl.u32 %v6368_v27, 16 }
 0x183   : > { %4935 = vmatmul.mubr.msk.bf16.gmra.mrb[176].mxu1 %vm483_vm3, %v2606_v54  ;;  %4956 = vmatprep.mubr.msk.bf16.mxu0 %vm5277_vm1, %v5276_v1  ;;  %v3627_v54 = vor.u32 %v3626_v24, %v3625_v13 }
 0x184   : > { %4938 = vmatprep.mubr.msk.bf16.mxu1 %vm5277_vm1, %v5276_v1  ;;  %v3628_v52 = vrot.slane %v2866_v56, 2 }
 0x185   : > { %v1502_v26 = vpop.f32.mrb[72].mxu0 }
 0x186   : > { %v1395_v57 = vpop.f32.mrb[72].mxu1  ;;  %v6364_v47 = vadd.f32 %v1502_v26, %v1426_v41  ;;  %v4730_v29 = vpop.f32.mrb[73].mxu0  ;;  %v2849_v41 = vshrl.u32 %v6316_v45, 16 }
 0x187   : > { %v1428_v10 = vadd.f32 %v1395_v57, %v6270_v37  ;;  %v4712_v25 = vpop.f32.mrb[73].mxu1  ;;  %v1505_v28 = vpop.f32.mrb[74].mxu0  ;;  %v2862_v37 = vshll.u32 %v6368_v27, 16  ;;  %v2857_v57 = vrot.slane %v2855_v53, 1 }
 0x188   : > { %v1398_v58 = vpop.f32.mrb[74].mxu1  ;;  %v6371_v7 = vadd.f32 %v1505_v28, %v1427_v2  ;;  %v4731_v40 = vpop.f32.mrb[75].mxu0  ;;  %v2854_v35 = vor.u32 %v2853_v21, %v2849_v41  ;;  %v4298_v28 = vld [vmem:[%s6905_s3 + $0x2a] sm:$0x3] }
 0x189   : > { %v1429_v33 = vadd.f32 %v1398_v58, %v6274_v44  ;;  %v4713_v5 = vpop.f32.mrb[75].mxu1  ;;  %v6388_v44 = vld [vmem:[%s5982_s15 + $0x1c] sm:$0xf]  ;;  %v3629_v17 = vrot.slane %v2862_v37, 3 }
 0x18a   : > { %4957 = vmatmul.mubr.msk.bf16.gmra.mrb[180].mxu0 %vm483_vm3, %v6368_v27  ;;  %v6400_v23 = vcombine.low %v6385_v32, %v6388_v44  ;;  %v2858_v15 = vsel %vm438_vm2, %v2854_v35, %v2857_v57  ;;  %v6456_v35 = vld [vmem:[%s5982_s15 + $0x28] sm:$0xf] }
 0x18b   : > { %4939 = vmatmul.mubr.msk.bf16.gmra.mrb[180].mxu1 %vm483_vm3, %v2608_v49  ;;  %4960 = vmatprep.mubr.msk.bf16.mxu0 %vm5277_vm1, %v5276_v1  ;;  %v6407_v2 = vor.u32 %v3629_v17, %v3628_v52  ;;  %v3150_v17 = vsel %vm499_vm0, %v4298_v28, 0  ;;  %v2998_v52 = vrot.slane %v6343_v30, 1 }
 0x18c   : > { %4942 = vmatprep.mubr.msk.bf16.mxu1 %vm5277_vm1, %v5276_v1 }
 0x18d   : > { %v1510_v0 = vpop.f32.mrb[76].mxu0 }
 0x18e   : > { %v1403_v63 = vpop.f32.mrb[76].mxu1  ;;  %v6396_v8 = vadd.f32 %v1510_v0, %v1428_v10  ;;  %v4734_v62 = vpop.f32.mrb[77].mxu0  ;;  %v2864_v0 = vrot.slane %v2862_v37, 1 }
 0x18f   : > { %v1430_v31 = vadd.f32 %v1403_v63, %v6286_v9  ;;  %v4716_v42 = vpop.f32.mrb[77].mxu1  ;;  %v1513_v11 = vpop.f32.mrb[78].mxu0  ;;  %v6414_v9 = vsel %vm1301_vm7, %v3627_v54, %v6407_v2  ;;  %v4304_v62 = vld [vmem:[%s6905_s3 + $0x2c] sm:$0x3]  ;;  %v2869_v54 = vshll.u32 %v6400_v23, 16 }
 0x190   : > { %v1406_v59 = vpop.f32.mrb[78].mxu1  ;;  %v6405_v20 = vadd.f32 %v1513_v11, %v1429_v33  ;;  %v4735_v36 = vpop.f32.mrb[79].mxu0  ;;  %v3306_v21 = vsel %vm499_vm0, %v4304_v62, 0  ;;  %v2873_v62 = vshrl.u32 %v6400_v23, 16 }
 0x191   : > { %v1431_v6 = vadd.f32 %v1406_v59, %v6293_v18  ;;  %v4717_v26 = vpop.f32.mrb[79].mxu1 }
 0x192   : > { %4961 = vmatmul.mubr.msk.bf16.gmra.mrb[184].mxu0 %vm483_vm3, %v6400_v23 }
 0x193   : > { %4943 = vmatmul.mubr.msk.bf16.gmra.mrb[184].mxu1 %vm483_vm3, %v2610_v19  ;;  %4964 = vmatprep.mubr.msk.bf16.mxu0 %vm5277_vm1, %v5276_v1 }
 0x194   : > { %4970 = vmatprep.mubr.msk.bf16.mxu1 %vm5277_vm1, %v5276_v1 }
 0x195   : > { %v1518_v29 = vpop.f32.mrb[80].mxu0 }
 0x196   : > { %v1411_v18 = vpop.f32.mrb[80].mxu1  ;;  %v6421_v10 = vadd.f32 %v1518_v29, %v1430_v31  ;;  %v4738_v25 = vpop.f32.mrb[81].mxu0  ;;  %v3000_v29 = vrot.slane %v6368_v27, 1 }
 0x197   : > { %v1432_v58 = vadd.f32 %v1411_v18, %v6313_v50  ;;  %v4720_v40 = vpop.f32.mrb[81].mxu1  ;;  %v1521_v49 = vpop.f32.mrb[82].mxu0  ;;  %v2997_v50 = vrot.slane %v6316_v45, 1  ;;  %v2871_v18 = vrot.slane %v2869_v54, 1 }
 0x198   : > { %v1414_v33 = vpop.f32.mrb[82].mxu1  ;;  %v6427_v5 = vadd.f32 %v1521_v49, %v1431_v6  ;;  %v4739_v4 = vpop.f32.mrb[83].mxu0 }
 0x199   : > { %v1433_v53 = vadd.f32 %v1414_v33, %v6319_v60  ;;  %v4721_v13 = vpop.f32.mrb[83].mxu1  ;;  %v2861_v60 = vor.u32 %v2859_v14, %v2857_v57  ;;  %v2999_v14 = vsel %vm670_vm4, %v2997_v50, %v2998_v52 }
 0x19a   : > { %4965 = vmatmul.mubr.msk.bf16.gmra.mrb[188].mxu0 %vm483_vm3, %v6142_v22 }
 0x19b   : > { %4971 = vmatmul.mubr.msk.bf16.vlgmr.msra.gmra.mrb[188].mxu1 %vm483_vm3, %v2858_v15  ;;  %4992 = vmatprep.mubr.msk.bf16.mxu0 %vm5277_vm1, %v5276_v1  ;;  %v2865_v36 = vsel %vm438_vm2, %v2861_v60, %v2864_v0 }
 0x19c   : > { %5013 = vmatpush3.bf16.msra.mxu1 %v3150_v17  ;;  %4974 = vmatprep.mubr.msk.bf16.mxu1 %vm5277_vm1, %v5276_v1  ;;  %v3001_v17 = vsel %vm670_vm4, %v2998_v52, %v3000_v29  ;;  %v3002_v52 = vrot.slane %v6400_v23, 1 }
 0x19d   : > { %v1526_v63 = vpop.f32.mrb[84].mxu0  ;;  %5056 = vmatprep.subr.bf16.mxu1 %v5276_v1 }
 0x19e   : > { %v1419_v24 = vpop.f32.mrb[84].mxu1  ;;  %v6445_v31 = vadd.f32 %v1526_v63, %v1432_v58  ;;  %v4742_v45 = vpop.f32.mrb[85].mxu0 }
 0x19f   : > { %v1434_v42 = vadd.f32 %v1419_v24, %v6339_v48  ;;  %v4724_v11 = vpop.f32.mrb[85].mxu1  ;;  %v1529_v19 = vpop.f32.mrb[86].mxu0  ;;  %v6459_v48 = vld [vmem:[%s5982_s15 + $0x2c] sm:$0xf] }
 0x1a0   : > { %v1422_v37 = vpop.f32.mrb[86].mxu1  ;;  %v6449_v41 = vadd.f32 %v1529_v19, %v1433_v53  ;;  %v4743_v59 = vpop.f32.mrb[87].mxu0  ;;  %v6464_v57 = vcombine.low %v6456_v35, %v6459_v48  ;;  %v2878_v11 = vrot.slane %v2876_v12, 1  ;;  %v4279_v19 = vcombine.low %v6456_v35, %v6456_v35 }
 0x1a1   : > { %v1435_v6 = vadd.f32 %v1422_v37, %v6346_v46  ;;  %v4725_v26 = vpop.f32.mrb[87].mxu1  ;;  %v2868_v46 = vor.u32 %v2866_v56, %v2864_v0 }
 0x1a2   : > { %4993 = vmatmul.mubr.msk.bf16.vlgmr.msra.gmra.mrb[192].mxu0 %vm483_vm3, %v2999_v14  ;;  %v3641_v25 = vshrl.u32 %v6464_v57, 16  ;;  %v3644_v28 = vshll.u32 %v6464_v57, 16 }
 0x1a3   : > { %4975 = vmatmul.mubr.msk.bf16.gmra.mrb[192].mxu1 %vm483_vm3, %v2865_v36  ;;  %5035 = vmatpush3.bf16.msra.mxu0 %v3306_v21  ;;  %v2872_v63 = vsel %vm438_vm2, %v2868_v46, %v2871_v18  ;;  %v3003_v46 = vsel %vm670_vm4, %v3000_v29, %v3002_v52  ;;  %v2882_v29 = vor.u32 %v2880_v39, %v2878_v11 }
 0x1a4   : > { %4978 = vmatprep.mubr.msk.bf16.mxu1 %vm5277_vm1, %v5276_v1  ;;  %4996 = vmatprep.mubr.msk.bf16.mxu0 %vm5277_vm1, %v5276_v1  ;;  %v3643_v4 = vrot.slane %v3641_v25, 2  ;;  %v3646_v15 = vrot.slane %v3644_v28, 3 }
 0x1a5   : > { %v1534_v58 = vpop.f32.mrb[88].mxu0  ;;  %5078 = vmatprep.subr.bf16.mxu0 %v5276_v1 }
 0x1a6   : > { %v6479_v40 = vadd.f32 %v1534_v58, %v1434_v42  ;;  %v1636_v49 = vpop.f32.mrb[88].mxu1  ;;  %v4746_v33 = vpop.f32.mrb[89].mxu0  ;;  %v6487_v24 = vor.u32 %v3646_v15, %v3643_v4  ;;  %v2884_v58 = vshll.u32 %v4279_v19, 16 }
 0x1a7   : > { %v1675_v53 = vadd.f32 %v1636_v49, %v6364_v47  ;;  %v4752_v13 = vpop.f32.mrb[89].mxu1  ;;  %v1537_v56 = vpop.f32.mrb[90].mxu0 }
 0x1a8   : > { %v6483_v50 = vadd.f32 %v1537_v56, %v1435_v6  ;;  %v1639_v60 = vpop.f32.mrb[90].mxu1  ;;  %v4747_v0 = vpop.f32.mrb[91].mxu0  ;;  %v6494_v47 = vsel %vm1301_vm7, %v6165_v61, %v6487_v24  ;;  %v2886_v4 = vrot.slane %v2884_v58, 1 }
 0x1a9   : > { %v1676_v45 = vadd.f32 %v1639_v60, %v6371_v7  ;;  %v4753_v42 = vpop.f32.mrb[91].mxu1  ;;  %v2875_v7 = vor.u32 %v2873_v62, %v2871_v18 }
 0x1aa   : > { %4997 = vmatmul.mubr.msk.bf16.gmra.mrb[196].mxu0 %vm483_vm3, %v3001_v17 }
 0x1ab   : > { %4979 = vmatmul.mubr.msk.bf16.gmra.mrb[196].mxu1 %vm483_vm3, %v2872_v63  ;;  %5000 = vmatprep.mubr.msk.bf16.mxu0 %vm5277_vm1, %v5276_v1  ;;  %v2879_v12 = vsel %vm438_vm2, %v2875_v7, %v2878_v11  ;;  %v6531_v63 = vcombine.low %v6304_v3, %v6328_v16  ;;  %v2887_v11 = vsel %vm438_vm2, %v2882_v29, %v2886_v4 }
 0x1ac   : > { %4982 = vmatprep.mubr.msk.bf16.mxu1 %vm5277_vm1, %v5276_v1 }
 0x1ad   : > { %v1779_v14 = vpop.f32.mrb[92].mxu0  ;;  %v3241_v3 = vshll.u32 %v6531_v63, 16 }
 0x1ae   : > { %v1644_v37 = vpop.f32.mrb[92].mxu1  ;;  %v6508_v59 = vadd.f32 %v1779_v14, %v1675_v53  ;;  %v4774_v36 = vpop.f32.mrb[93].mxu0 }
 0x1af   : > { %v1677_v21 = vadd.f32 %v1644_v37, %v6396_v8  ;;  %v4756_v6 = vpop.f32.mrb[93].mxu1  ;;  %v1782_v26 = vpop.f32.mrb[94].mxu0  ;;  %v3004_v8 = vrot.slane %v6142_v22, 1  ;;  %v3238_v37 = vshrl.u32 %v6531_v63, 16 }
 0x1b0   : > { %v1647_v25 = vpop.f32.mrb[94].mxu1  ;;  %v6512_v28 = vadd.f32 %v1782_v26, %v1676_v45  ;;  %v4775_v18 = vpop.f32.mrb[95].mxu0  ;;  %v6535_v45 = vcombine.low %v6331_v43, %v6356_v34  ;;  %v3123_v34 = vrot.slane %v6531_v63, 1 }
 0x1b1   : > { %v1678_v49 = vadd.f32 %v1647_v25, %v6405_v20  ;;  %v4757_v33 = vpop.f32.mrb[95].mxu1  ;;  %v3005_v0 = vsel %vm670_vm4, %v3002_v52, %v3004_v8  ;;  %v3006_v52 = vrot.slane %v4279_v19, 1  ;;  %v3240_v25 = vrot.slane %v3238_v37, 1 }
 0x1b2   : > { %5001 = vmatmul.mubr.msk.bf16.gmra.mrb[200].mxu0 %vm483_vm3, %v3003_v46  ;;  %v3246_v16 = vshrl.u32 %v6535_v45, 16  ;;  %v3249_v43 = vshll.u32 %v6535_v45, 16  ;;  %v4310_v46 = vld [vmem:[%s6905_s3 + $0x2e] sm:$0x3] }
 0x1b3   : > { %4983 = vmatmul.mubr.msk.bf16.gmra.mrb[200].mxu1 %vm483_vm3, %v2879_v12  ;;  %5004 = vmatprep.mubr.msk.bf16.mxu0 %vm5277_vm1, %v5276_v1  ;;  %v3007_v26 = vsel %vm670_vm4, %v3004_v8, %v3006_v52  ;;  %v6565_v8 = vcombine.low %v6359_v51, %v6385_v32 }
 0x1b4   : > { %4986 = vmatprep.mubr.msk.bf16.mxu1 %vm5277_vm1, %v5276_v1  ;;  %v3248_v33 = vrot.slane %v3246_v16, 1  ;;  %v3251_v29 = vrot.slane %v3249_v43, 2 }
 0x1b5   : > { %v1787_v15 = vpop.f32.mrb[96].mxu0  ;;  %v3126_v51 = vrot.slane %v6565_v8, 1 }
 0x1b6   : > { %v1652_v53 = vpop.f32.mrb[96].mxu1  ;;  %v6525_v20 = vadd.f32 %v1787_v15, %v1677_v21  ;;  %v4778_v13 = vpop.f32.mrb[97].mxu0 }
 0x1b7   : > { %v1679_v56 = vadd.f32 %v1652_v53, %v6421_v10  ;;  %v4760_v17 = vpop.f32.mrb[97].mxu1  ;;  %v1790_v60 = vpop.f32.mrb[98].mxu0 }
 0x1b8   : > { %v1655_v39 = vpop.f32.mrb[98].mxu1  ;;  %v6537_v42 = vadd.f32 %v1790_v60, %v1678_v49  ;;  %v4779_v7 = vpop.f32.mrb[99].mxu0  ;;  %v3243_v49 = vrot.slane %v3241_v3, 2 }
 0x1b9   : > { %v1680_v10 = vadd.f32 %v1655_v39, %v6427_v5  ;;  %v4761_v14 = vpop.f32.mrb[99].mxu1  ;;  %v3124_v5 = vrot.slane %v6535_v45, 1  ;;  %v3255_v39 = vshrl.u32 %v6565_v8, 16  ;;  %v3258_v7 = vshll.u32 %v6565_v8, 16 }
 0x1ba   : > { %5005 = vmatmul.mubr.msk.bf16.gmra.mrb[204].mxu0 %vm483_vm3, %v3005_v0  ;;  %v3244_v60 = vor.u32 %v3243_v49, %v3240_v25  ;;  %v3252_v0 = vor.u32 %v3251_v29, %v3248_v33  ;;  %v6592_v25 = vcombine.low %v6388_v44, %v6127_v38 }
 0x1bb   : > { %4987 = vmatmul.mubr.msk.bf16.gmra.mrb[204].mxu1 %vm483_vm3, %v2887_v11  ;;  %5008 = vmatprep.mubr.msk.bf16.mxu0 %vm5277_vm1, %v5276_v1  ;;  %v3125_v13 = vsel %vm670_vm4, %v3123_v34, %v3124_v5  ;;  %v3257_v43 = vrot.slane %v3255_v39, 1  ;;  %v3260_v34 = vrot.slane %v3258_v7, 2 }
 0x1bc   : > { %5014 = vmatprep.mubr.msk.bf16.mxu1 %vm5277_vm1, %v5276_v1  ;;  %v3253_v16 = vsel %vm911_vm5, %v3244_v60, %v3252_v0  ;;  %v3267_v49 = vshll.u32 %v6592_v25, 16  ;;  %v3128_v38 = vrot.slane %v6592_v25, 1 }
 0x1bd   : > { %v1795_v19 = vpop.f32.mrb[100].mxu0 }
 0x1be   : > { %v1660_v36 = vpop.f32.mrb[100].mxu1  ;;  %v6553_v21 = vadd.f32 %v1795_v19, %v1679_v56  ;;  %v4782_v6 = vpop.f32.mrb[101].mxu0 }
 0x1bf   : > { %v1681_v18 = vadd.f32 %v1660_v36, %v6445_v31  ;;  %v4764_v12 = vpop.f32.mrb[101].mxu1  ;;  %v1798_v58 = vpop.f32.mrb[102].mxu0  ;;  %v3420_v31 = vsel %vm499_vm0, %v4310_v46, 0 }
 0x1c0   : > { %v1663_v4 = vpop.f32.mrb[102].mxu1  ;;  %v6560_v15 = vadd.f32 %v1798_v58, %v1680_v10  ;;  %v4783_v53 = vpop.f32.mrb[103].mxu0  ;;  %v3261_v12 = vor.u32 %v3260_v34, %v3257_v43  ;;  %v3264_v58 = vshrl.u32 %v6592_v25, 16 }
 0x1c1   : > { %v1682_v56 = vadd.f32 %v1663_v4, %v6449_v41  ;;  %v4765_v17 = vpop.f32.mrb[103].mxu1  ;;  %v4318_v41 = vld [vmem:[%s6905_s3 + $0x30] sm:$0x3] }
 0x1c2   : > { %5009 = vmatmul.mubr.msk.bf16.gmra.mrb[208].mxu0 %vm483_vm3, %v3007_v26  ;;  %v3127_v26 = vsel %vm670_vm4, %v3124_v5, %v3126_v51  ;;  %v3538_v46 = vsel %vm499_vm0, %v4318_v41, 0  ;;  %v3269_v17 = vrot.slane %v3267_v49, 2 }
 0x1c3   : > { %5015 = vmatmul.mubr.msk.bf16.vlgmr.msra.gmra.mrb[208].mxu1 %vm483_vm3, %v3125_v13  ;;  %5036 = vmatprep.mubr.msk.bf16.mxu0 %vm5277_vm1, %v5276_v1  ;;  %v3262_v13 = vsel %vm911_vm5, %v3252_v0, %v3261_v12 }
 0x1c4   : > { %5057 = vmatpush3.bf16.msra.mxu1 %v3420_v31  ;;  %5018 = vmatprep.mubr.msk.bf16.mxu1 %vm5277_vm1, %v5276_v1  ;;  %v6611_v31 = vcombine.low %v6130_v55, %v6456_v35 }
 0x1c5   : > { %v1803_v32 = vpop.f32.mrb[104].mxu0  ;;  %5100 = vmatprep.subr.bf16.mxu1 %v5276_v1 }
 0x1c6   : > { %v1668_v11 = vpop.f32.mrb[104].mxu1  ;;  %v6582_v10 = vadd.f32 %v1803_v32, %v1681_v18  ;;  %v4786_v14 = vpop.f32.mrb[105].mxu0  ;;  %v3129_v32 = vsel %vm670_vm4, %v3126_v51, %v3128_v38  ;;  %v3273_v55 = vshrl.u32 %v6611_v31, 16  ;;  %v3276_v35 = vshll.u32 %v6611_v31, 16 }
 0x1c7   : > { %v1683_v52 = vadd.f32 %v1668_v11, %v6479_v40  ;;  %v4768_v37 = vpop.f32.mrb[105].mxu1  ;;  %v1806_v3 = vpop.f32.mrb[106].mxu0  ;;  %v3130_v0 = vrot.slane %v6611_v31, 1 }
 0x1c8   : > { %v1671_v19 = vpop.f32.mrb[106].mxu1  ;;  %v6586_v36 = vadd.f32 %v1806_v3, %v1682_v56  ;;  %v4787_v6 = vpop.f32.mrb[107].mxu0  ;;  %v3266_v56 = vrot.slane %v3264_v58, 1  ;;  %v3275_v34 = vrot.slane %v3273_v55, 1 }
 0x1c9   : > { %v1684_v40 = vadd.f32 %v1671_v19, %v6483_v50  ;;  %v4769_v18 = vpop.f32.mrb[107].mxu1  ;;  %v3278_v19 = vrot.slane %v3276_v35, 2  ;;  %v3394_v35 = vrot.slane %v6535_v45, 2 }
 0x1ca   : > { %5037 = vmatmul.mubr.msk.bf16.vlgmr.msra.gmra.mrb[212].mxu0 %vm483_vm3, %v3253_v16  ;;  %v6635_v18 = vcombine.low %v6459_v48, %v6459_v48 }
 0x1cb   : > { %5019 = vmatmul.mubr.msk.bf16.gmra.mrb[212].mxu1 %vm483_vm3, %v3127_v26  ;;  %5079 = vmatpush3.bf16.msra.mxu0 %v3538_v46 }
 0x1cc   : > { %5022 = vmatprep.mubr.msk.bf16.mxu1 %vm5277_vm1, %v5276_v1  ;;  %5040 = vmatprep.mubr.msk.bf16.mxu0 %vm5277_vm1, %v5276_v1  ;;  %v3132_v48 = vrot.slane %v6635_v18, 1 }
 0x1cd   : > { %v1811_v44 = vpop.f32.mrb[108].mxu0  ;;  %5122 = vmatprep.subr.bf16.mxu0 %v5276_v1 }
 0x1ce   : > { %v6605_v50 = vadd.f32 %v1811_v44, %v1683_v52  ;;  %v1899_v5 = vpop.f32.mrb[108].mxu1  ;;  %v4790_v33 = vpop.f32.mrb[109].mxu0  ;;  %v3285_v44 = vshll.u32 %v6635_v18, 16 }
 0x1cf   : > { %v1938_v29 = vadd.f32 %v1899_v5, %v6508_v59  ;;  %v4796_v4 = vpop.f32.mrb[109].mxu1  ;;  %v1814_v53 = vpop.f32.mrb[110].mxu0  ;;  %v3270_v59 = vor.u32 %v3269_v17, %v3266_v56 }
 0x1d0   : > { %v6613_v60 = vadd.f32 %v1814_v53, %v1684_v40  ;;  %v1902_v39 = vpop.f32.mrb[110].mxu1  ;;  %v4791_v7 = vpop.f32.mrb[111].mxu0  ;;  %v3131_v40 = vsel %vm670_vm4, %v3128_v38, %v3130_v0  ;;  %v3287_v17 = vrot.slane %v3285_v44, 2 }
 0x1d1   : > { %v1939_v41 = vadd.f32 %v1902_v39, %v6512_v28  ;;  %v4797_v11 = vpop.f32.mrb[111].mxu1  ;;  %v3271_v43 = vsel %vm911_vm5, %v3261_v12, %v3270_v59  ;;  %v3282_v12 = vshrl.u32 %v6635_v18, 16 }
 0x1d2   : > { %5041 = vmatmul.mubr.msk.bf16.gmra.mrb[216].mxu0 %vm483_vm3, %v3262_v13 }
 0x1d3   : > { %5023 = vmatmul.mubr.msk.bf16.gmra.mrb[216].mxu1 %vm483_vm3, %v3129_v32  ;;  %5044 = vmatprep.mubr.msk.bf16.mxu0 %vm5277_vm1, %v5276_v1  ;;  %v3284_v56 = vrot.slane %v3282_v12, 1 }
 0x1d4   : > { %5026 = vmatprep.mubr.msk.bf16.mxu1 %vm5277_vm1, %v5276_v1 }
 0x1d5   : > { %v2025_v51 = vpop.f32.mrb[112].mxu0 }
 0x1d6   : > { %v1907_v28 = vpop.f32.mrb[112].mxu1  ;;  %v6626_v14 = vadd.f32 %v2025_v51, %v1938_v29  ;;  %v4818_v52 = vpop.f32.mrb[113].mxu0 }
 0x1d7   : > { %v1940_v37 = vadd.f32 %v1907_v28, %v6525_v20  ;;  %v4800_v3 = vpop.f32.mrb[113].mxu1  ;;  %v2028_v16 = vpop.f32.mrb[114].mxu0  ;;  %v3279_v20 = vor.u32 %v3278_v19, %v3275_v34  ;;  %v4324_v52 = vld [vmem:[%s6905_s3 + $0x32] sm:$0x3] }
 0x1d8   : > { %v1910_v6 = vpop.f32.mrb[114].mxu1  ;;  %v6630_v26 = vadd.f32 %v2028_v16, %v1939_v41  ;;  %v4819_v46 = vpop.f32.mrb[115].mxu0  ;;  %v3133_v41 = vsel %vm670_vm4, %v3130_v0, %v3132_v48 }
 0x1d9   : > { %v1941_v58 = vadd.f32 %v1910_v6, %v6537_v42  ;;  %v4801_v49 = vpop.f32.mrb[115].mxu1  ;;  %v3280_v13 = vsel %vm911_vm5, %v3270_v59, %v3279_v20  ;;  %v3393_v59 = vrot.slane %v6531_v63, 2 }
 0x1da   : > { %5045 = vmatmul.mubr.msk.bf16.gmra.mrb[220].mxu0 %vm483_vm3, %v3271_v43 }
 0x1db   : > { %5027 = vmatmul.mubr.msk.bf16.gmra.mrb[220].mxu1 %vm483_vm3, %v3131_v40  ;;  %5048 = vmatprep.mubr.msk.bf16.mxu0 %vm5277_vm1, %v5276_v1  ;;  %v3395_v45 = vsel %vm1068_vm6, %v3393_v59, %v3394_v35  ;;  %v3674_v40 = vsel %vm499_vm0, %v4324_v52, 0 }
 0x1dc   : > { %5030 = vmatprep.mubr.msk.bf16.mxu1 %vm5277_vm1, %v5276_v1 }
 0x1dd   : > { %v2033_v38 = vpop.f32.mrb[116].mxu0 }
 0x1de   : > { %v1915_v42 = vpop.f32.mrb[116].mxu1  ;;  %v6647_v5 = vadd.f32 %v2033_v38, %v1940_v37  ;;  %v4822_v33 = vpop.f32.mrb[117].mxu0 }
 0x1df   : > { %v1942_v29 = vadd.f32 %v1915_v42, %v6553_v21  ;;  %v4804_v4 = vpop.f32.mrb[117].mxu1  ;;  %v2036_v53 = vpop.f32.mrb[118].mxu0  ;;  %v3288_v21 = vor.u32 %v3287_v17, %v3284_v56 }
 0x1e0   : > { %v1918_v39 = vpop.f32.mrb[118].mxu1  ;;  %v6651_v7 = vadd.f32 %v2036_v53, %v1941_v58  ;;  %v4823_v32 = vpop.f32.mrb[119].mxu0  ;;  %v3512_v58 = vrot.slane %v6368_v27, 2 }
 0x1e1   : > { %v1943_v11 = vadd.f32 %v1918_v39, %v6560_v15  ;;  %v4805_v55 = vpop.f32.mrb[119].mxu1  ;;  %v3289_v43 = vsel %vm911_vm5, %v3279_v20, %v3288_v21  ;;  %v4330_v20 = vld [vmem:[%s6905_s3 + $0x34] sm:$0x3]  ;;  %v3398_v32 = vrot.slane %v6592_v25, 2 }
 0x1e2   : > { %5049 = vmatmul.mubr.msk.bf16.gmra.mrb[224].mxu0 %vm483_vm3, %v3280_v13  ;;  %v3788_v56 = vsel %vm499_vm0, %v4330_v20, 0 }
 0x1e3   : > { %5031 = vmatmul.mubr.msk.bf16.gmra.mrb[224].mxu1 %vm483_vm3, %v3133_v41  ;;  %5052 = vmatprep.mubr.msk.bf16.mxu0 %vm5277_vm1, %v5276_v1 }
 0x1e4   : > { %5058 = vmatprep.mubr.msk.bf16.mxu1 %vm5277_vm1, %v5276_v1 }
 0x1e5   : > { %v2041_v51 = vpop.f32.mrb[120].mxu0 }
 0x1e6   : > { %v1923_v0 = vpop.f32.mrb[120].mxu1  ;;  %v6663_v28 = vadd.f32 %v2041_v51, %v1942_v29  ;;  %v4826_v15 = vpop.f32.mrb[121].mxu0 }
 0x1e7   : > { %v1944_v37 = vadd.f32 %v1923_v0, %v6582_v10  ;;  %v4808_v3 = vpop.f32.mrb[121].mxu1  ;;  %v2044_v16 = vpop.f32.mrb[122].mxu0  ;;  %v3511_v10 = vrot.slane %v6343_v30, 2 }
 0x1e8   : > { %v1926_v34 = vpop.f32.mrb[122].mxu1  ;;  %v6670_v19 = vadd.f32 %v2044_v16, %v1943_v11  ;;  %v4827_v63 = vpop.f32.mrb[123].mxu0  ;;  %v3400_v16 = vrot.slane %v6611_v31, 2 }
 0x1e9   : > { %v1945_v6 = vadd.f32 %v1926_v34, %v6586_v36  ;;  %v4809_v46 = vpop.f32.mrb[123].mxu1  ;;  %v3396_v36 = vrot.slane %v6565_v8, 2  ;;  %v3513_v29 = vsel %vm1068_vm6, %v3511_v10, %v3512_v58 }
 0x1ea   : > { %5053 = vmatmul.mubr.msk.bf16.gmra.mrb[228].mxu0 %vm483_vm3, %v3289_v43 }
 0x1eb   : > { %5059 = vmatmul.mubr.msk.bf16.vlgmr.msra.gmra.mrb[228].mxu1 %vm483_vm3, %v3395_v45  ;;  %5080 = vmatprep.mubr.msk.bf16.mxu0 %vm5277_vm1, %v5276_v1  ;;  %v3397_v8 = vsel %vm1068_vm6, %v3394_v35, %v3396_v36 }
 0x1ec   : > { %5101 = vmatpush3.bf16.msra.mxu1 %v3674_v40  ;;  %5062 = vmatprep.mubr.msk.bf16.mxu1 %vm5277_vm1, %v5276_v1 }
 0x1ed   : > { %v2049_v49 = vpop.f32.mrb[124].mxu0 }
 0x1ee   : > { %v1931_v12 = vpop.f32.mrb[124].mxu1  ;;  %v6687_v44 = vadd.f32 %v2049_v49, %v1944_v37  ;;  %v4830_v48 = vpop.f32.mrb[125].mxu0  ;;  %v3399_v37 = vsel %vm1068_vm6, %v3396_v36, %v3398_v32  ;;  %v3401_v49 = vsel %vm1068_vm6, %v3398_v32, %v3400_v16 }
 0x1ef   : > { %v1946_v38 = vadd.f32 %v1931_v12, %v6605_v50  ;;  %v4812_v42 = vpop.f32.mrb[125].mxu1  ;;  %v2052_v33 = vpop.f32.mrb[126].mxu0  ;;  %v3514_v50 = vrot.slane %v6400_v23, 2  ;;  %v3402_v12 = vrot.slane %v6635_v18, 2 }
 0x1f0   : > { %v1934_v4 = vpop.f32.mrb[126].mxu1  ;;  %v6691_v53 = vadd.f32 %v2052_v33, %v1945_v6  ;;  %v4831_v13 = vpop.f32.mrb[127].mxu0 }
 0x1f1   : > { %v1947_v17 = vadd.f32 %v1934_v4, %v6613_v60  ;;  %v4813_v39 = vpop.f32.mrb[127].mxu1  ;;  %v3515_v51 = vsel %vm1068_vm6, %v3512_v58, %v3514_v50 }
 0x1f2   : > { %5081 = vmatmul.mubr.msk.bf16.vlgmr.msra.gmra.mrb[232].mxu0 %vm483_vm3, %v3513_v29 }
 0x1f3   : > { %5063 = vmatmul.mubr.msk.bf16.gmra.mrb[232].mxu1 %vm483_vm3, %v3397_v8  ;;  %5123 = vmatpush3.bf16.msra.mxu0 %v3788_v56  ;;  %v6741_v8 = vld [vmem:[%s5982_s15 + $0x30] ss:$0 sps:$4 sm:$0xff]   ;;  %s5151_s15 = smul.u32 80, %s6919_s19 }
 0x1f4   : > { %5066 = vmatprep.mubr.msk.bf16.mxu1 %vm5277_vm1, %v5276_v1  ;;  %5084 = vmatprep.mubr.msk.bf16.mxu0 %vm5277_vm1, %v5276_v1 }
 0x1f5   : > { %v2057_v41 = vpop.f32.mrb[128].mxu0  ;;  %s399_s11 = sadd.s32 %s5151_s15, %s5150_s9 }
 0x1f6   : > { %v6704_v11 = vadd.f32 %v2057_v41, %v1946_v38  ;;  %v2181_v60 = vpop.f32.mrb[128].mxu1  ;;  %v4834_v55 = vpop.f32.mrb[129].mxu0  ;;  %s4132_s18 = sshll.u32 %s399_s11, 2 }
 0x1f7   : > { %v2220_v21 = vadd.f32 %v2181_v60, %v6626_v14  ;;  %v4840_v59 = vpop.f32.mrb[129].mxu1  ;;  %v2060_v35 = vpop.f32.mrb[130].mxu0  ;;  %v3516_v14 = vrot.slane %v6142_v22, 2  ;;  %s6866_s13 = scalar_lea.vmem %s6907_s5, %s4132_s18 }
 0x1f8   : > { %v6708_v0 = vadd.f32 %v2060_v35, %v1947_v17  ;;  %v2184_v15 = vpop.f32.mrb[130].mxu1  ;;  %v4835_v52 = vpop.f32.mrb[131].mxu0 }
 0x1f9   : > { %v2221_v3 = vadd.f32 %v2184_v15, %v6630_v26  ;;  %v4841_v25 = vpop.f32.mrb[131].mxu1  ;;  %v3517_v40 = vsel %vm1068_vm6, %v3514_v50, %v3516_v14  ;;  %v3403_v50 = vsel %vm1068_vm6, %v3400_v16, %v3402_v12 }
 0x1fa   : > { %5085 = vmatmul.mubr.msk.bf16.gmra.mrb[236].mxu0 %vm483_vm3, %v3515_v51  ;;  %v3633_v25 = vrot.slane %v2869_v54, 3 }
 0x1fb   : > { %5067 = vmatmul.mubr.msk.bf16.gmra.mrb[236].mxu1 %vm483_vm3, %v3399_v37  ;;  %5088 = vmatprep.mubr.msk.bf16.mxu0 %vm5277_vm1, %v5276_v1 }
 0x1fc   : > { %5070 = vmatprep.mubr.msk.bf16.mxu1 %vm5277_vm1, %v5276_v1 }
 0x1fd   : > { %v2295_v43 = vpop.f32.mrb[132].mxu0 }
 0x1fe   : > { %v2189_v34 = vpop.f32.mrb[132].mxu1  ;;  %v6720_v63 = vadd.f32 %v2295_v43, %v2220_v21  ;;  %v4862_v26 = vpop.f32.mrb[133].mxu0  ;;  %v3762_v43 = vrot.slane %v6368_v27, 3 }
 0x1ff   : > { %v2222_v45 = vadd.f32 %v2189_v34, %v6647_v5  ;;  %v4844_v6 = vpop.f32.mrb[133].mxu1  ;;  %v2298_v46 = vpop.f32.mrb[134].mxu0  ;;  %v3518_v5 = vrot.slane %v6464_v57, 2 }
 0x200   : > { %v2192_v10 = vpop.f32.mrb[134].mxu1  ;;  %v6724_v58 = vadd.f32 %v2298_v46, %v2221_v3  ;;  %v4863_v36 = vpop.f32.mrb[135].mxu0  ;;  %v3632_v3 = vrot.slane %v2873_v62, 2 }
 0x201   : > { %v2223_v20 = vadd.f32 %v2192_v10, %v6651_v7  ;;  %v4845_v31 = vpop.f32.mrb[135].mxu1  ;;  %v3519_v13 = vsel %vm1068_vm6, %v3516_v14, %v3518_v5 }
 0x202   : > { %5089 = vmatmul.mubr.msk.bf16.gmra.mrb[240].mxu0 %vm483_vm3, %v3517_v40  ;;  %v3634_v62 = vor.u32 %v3633_v25, %v3632_v3 }
 0x203   : > { %5071 = vmatmul.mubr.msk.bf16.gmra.mrb[240].mxu1 %vm483_vm3, %v3401_v49  ;;  %5092 = vmatprep.mubr.msk.bf16.mxu0 %vm5277_vm1, %v5276_v1 }
 0x204   : > { %5074 = vmatprep.mubr.msk.bf16.mxu1 %vm5277_vm1, %v5276_v1  ;;  %v3635_v27 = vsel %vm1301_vm7, %v6407_v2, %v3634_v62 }
 0x205   : > { %v2303_v48 = vpop.f32.mrb[136].mxu0 }
 0x206   : > { %v2197_v38 = vpop.f32.mrb[136].mxu1  ;;  %v6736_v42 = vadd.f32 %v2303_v48, %v2222_v45  ;;  %v4866_v7 = vpop.f32.mrb[137].mxu0 }
 0x207   : > { %v2224_v33 = vadd.f32 %v2197_v38, %v6663_v28  ;;  %v4848_v29 = vpop.f32.mrb[137].mxu1  ;;  %v2306_v4 = vpop.f32.mrb[138].mxu0  ;;  %v3520_v28 = vrot.slane %v6741_v8, 2  ;;  %v3639_v7 = vsel %vm1301_vm7, %v3634_v62, %v6165_v61  ;;  %v3650_v61 = vshrl.u32 %v6741_v8, 16 }
 0x208   : > { %v2200_v56 = vpop.f32.mrb[138].mxu1  ;;  %v6743_v17 = vadd.f32 %v2306_v4, %v2223_v20  ;;  %v4867_v39 = vpop.f32.mrb[139].mxu0 }
 0x209   : > { %v2225_v18 = vadd.f32 %v2200_v56, %v6670_v19  ;;  %v4849_v32 = vpop.f32.mrb[139].mxu1  ;;  %v3521_v51 = vsel %vm1068_vm6, %v3518_v5, %v3520_v28  ;;  %v3653_v56 = vshll.u32 %v6741_v8, 16 }
 0x20a   : > { %5093 = vmatmul.mubr.msk.bf16.gmra.mrb[244].mxu0 %vm483_vm3, %v3519_v13 }
 0x20b   : > { %5075 = vmatmul.mubr.msk.bf16.gmra.mrb[244].mxu1 %vm483_vm3, %v3403_v50  ;;  %5096 = vmatprep.mubr.msk.bf16.mxu0 %vm5277_vm1, %v5276_v1 }
 0x20c   : > { %5102 = vmatprep.mubr.msk.bf16.mxu1 %vm5277_vm1, %v5276_v1 }
 0x20d   : > { %v2311_v41 = vpop.f32.mrb[140].mxu0 }
 0x20e   : > { %v2205_v60 = vpop.f32.mrb[140].mxu1  ;;  %v6754_v55 = vadd.f32 %v2311_v41, %v2224_v33  ;;  %v4870_v21 = vpop.f32.mrb[141].mxu0 }
 0x20f   : > { %v2226_v19 = vadd.f32 %v2205_v60, %v6687_v44  ;;  %v4852_v59 = vpop.f32.mrb[141].mxu1  ;;  %v2314_v35 = vpop.f32.mrb[142].mxu0  ;;  %v3761_v44 = vrot.slane %v6343_v30, 3 }
 0x210   : > { %v2208_v15 = vpop.f32.mrb[142].mxu1  ;;  %v6758_v52 = vadd.f32 %v2314_v35, %v2225_v18  ;;  %v4871_v37 = vpop.f32.mrb[143].mxu0  ;;  %v3652_v59 = vrot.slane %v3650_v61, 2  ;;  %v3655_v35 = vrot.slane %v3653_v56, 3 }
 0x211   : > { %v2227_v14 = vadd.f32 %v2208_v15, %v6691_v53  ;;  %v4853_v16 = vpop.f32.mrb[143].mxu1  ;;  %v3763_v46 = vsel %vm1438_vm8, %v3761_v44, %v3762_v43 }
 0x212   : > { %5097 = vmatmul.mubr.msk.bf16.gmra.mrb[248].mxu0 %vm483_vm3, %v3521_v51  ;;  %v3656_v37 = vor.u32 %v3655_v35, %v3652_v59 }
 0x213   : > { %5103 = vmatmul.mubr.msk.bf16.vlgmr.msra.gmra.mrb[248].mxu1 %vm483_vm3, %v6414_v9  ;;  %5124 = vmatprep.mubr.msk.bf16.mxu0 %vm5277_vm1, %v5276_v1 }
 0x214   : > { %5106 = vmatprep.mubr.msk.bf16.mxu1 %vm5277_vm1, %v5276_v1 }
 0x215   : > { %v2319_v54 = vpop.f32.mrb[144].mxu0 }
 0x216   : > { %v2213_v34 = vpop.f32.mrb[144].mxu1  ;;  %v6774_v53 = vadd.f32 %v2319_v54, %v2226_v19  ;;  %v4874_v26 = vpop.f32.mrb[145].mxu0 }
 0x217   : > { %v2228_v45 = vadd.f32 %v2213_v34, %v6704_v11  ;;  %v4856_v6 = vpop.f32.mrb[145].mxu1  ;;  %v2322_v9 = vpop.f32.mrb[146].mxu0  ;;  %v3764_v11 = vrot.slane %v6400_v23, 3 }
 0x218   : > { %v2216_v40 = vpop.f32.mrb[146].mxu1  ;;  %v6778_v10 = vadd.f32 %v2322_v9, %v2227_v14  ;;  %v4875_v30 = vpop.f32.mrb[147].mxu0 }
 0x219   : > { %v2229_v36 = vadd.f32 %v2216_v40, %v6708_v0  ;;  %v4857_v49 = vpop.f32.mrb[147].mxu1  ;;  %v3765_v38 = vsel %vm1438_vm8, %v3762_v43, %v3764_v11 }
 0x21a   : > { %5125 = vmatmul.mubr.msk.bf16.vlgmr.msra.gmra.mrb[252].mxu0 %vm483_vm3, %v3763_v46 }
 0x21b   : > { %5107 = vmatmul.mubr.msk.bf16.gmra.mrb[252].mxu1 %vm483_vm3, %v3635_v27  ;;  %5128 = vmatprep.mubr.msk.bf16.mxu0 %vm5277_vm1, %v5276_v1 }
 0x21c   : > { %5110 = vmatprep.mubr.msk.bf16.mxu1 %vm5277_vm1, %v5276_v1 }
 0x21d   : > { %v2327_v20 = vpop.f32.mrb[148].mxu0 }
 0x21e   : > { %v6790_v31 = vadd.f32 %v2327_v20, %v2228_v45  ;;  %v2413_v5 = vpop.f32.mrb[148].mxu1  ;;  %v4878_v2 = vpop.f32.mrb[149].mxu0 }
 0x21f   : > { %v2452_v0 = vadd.f32 %v2413_v5, %v6720_v63  ;;  %v4884_v12 = vpop.f32.mrb[149].mxu1  ;;  %v2330_v48 = vpop.f32.mrb[150].mxu0  ;;  %v3766_v63 = vrot.slane %v6142_v22, 3 }
 0x220   : > { %v6796_v33 = vadd.f32 %v2330_v48, %v2229_v36  ;;  %v2416_v23 = vpop.f32.mrb[150].mxu1  ;;  %v4879_v29 = vpop.f32.mrb[151].mxu0 }
 0x221   : > { %v2453_v4 = vadd.f32 %v2416_v23, %v6724_v58  ;;  %v4885_v13 = vpop.f32.mrb[151].mxu1  ;;  %v3767_v60 = vsel %vm1438_vm8, %v3764_v11, %v3766_v63 }
 0x222   : > { %5129 = vmatmul.mubr.msk.bf16.gmra.mrb[0].mxu0 %vm483_vm3, %v3765_v38 }
 0x223   : > { %5111 = vmatmul.mubr.msk.bf16.gmra.mrb[0].mxu1 %vm483_vm3, %v3639_v7  ;;  %5132 = vmatprep.mubr.msk.bf16.mxu0 %vm5277_vm1, %v5276_v1 }
 0x224   : > { %5114 = vmatprep.mubr.msk.bf16.mxu1 %vm5277_vm1, %v5276_v1 }
 0x225   : > { %v2549_v39 = vpop.f32.mrb[152].mxu0 }
 0x226   : > { %v2421_v50 = vpop.f32.mrb[152].mxu1  ;;  %v6808_v58 = vadd.f32 %v2549_v39, %v2452_v0  ;;  %v4906_v18 = vpop.f32.mrb[153].mxu0 }
 0x227   : > { %v2454_v32 = vadd.f32 %v2421_v50, %v6736_v42  ;;  %v4888_v28 = vpop.f32.mrb[153].mxu1  ;;  %v2552_v41 = vpop.f32.mrb[154].mxu0  ;;  %v3768_v42 = vrot.slane %v6464_v57, 3  ;;  %v3657_v57 = vsel %vm1301_vm7, %v6487_v24, %v3656_v37 }
 0x228   : > { %v2424_v21 = vpop.f32.mrb[154].mxu1  ;;  %v6812_v22 = vadd.f32 %v2552_v41, %v2453_v4  ;;  %v4907_v19 = vpop.f32.mrb[155].mxu0 }
 0x229   : > { %v2455_v51 = vadd.f32 %v2424_v21, %v6743_v17  ;;  %v4889_v15 = vpop.f32.mrb[155].mxu1  ;;  %v3769_v62 = vsel %vm1438_vm8, %v3766_v63, %v3768_v42 }
 0x22a   : > { %5133 = vmatmul.mubr.msk.bf16.gmra.mrb[4].mxu0 %vm483_vm3, %v3767_v60 }
 0x22b   : > { %5115 = vmatmul.mubr.msk.bf16.gmra.mrb[4].mxu1 %vm483_vm3, %v6494_v47  ;;  %5136 = vmatprep.mubr.msk.bf16.mxu0 %vm5277_vm1, %v5276_v1 }
 0x22c   : > { %5118 = vmatprep.mubr.msk.bf16.mxu1 %vm5277_vm1, %v5276_v1 }
 0x22d   : > { %v2557_v3 = vpop.f32.mrb[156].mxu0 }
 0x22e   : > { %v2429_v25 = vpop.f32.mrb[156].mxu1  ;;  %v2590_v14 = vadd.f32 %v2557_v3, %v2454_v32  ;;  %v4910_v16 = vpop.f32.mrb[157].mxu0 }
 0x22f   : > { %v2456_v17 = vadd.f32 %v2429_v25, %v6754_v55  ;;  %v4892_v44 = vpop.f32.mrb[157].mxu1  ;;  %v2560_v43 = vpop.f32.mrb[158].mxu0  ;;  %v3770_v55 = vrot.slane %v6741_v8, 3 }
 0x230   : > { %v2432_v47 = vpop.f32.mrb[158].mxu1  ;;  %v2591_v54 = vadd.f32 %v2560_v43, %v2455_v51  ;;  %v4911_v34 = vpop.f32.mrb[159].mxu0 }
 0x231   : > { %v2457_v26 = vadd.f32 %v2432_v47, %v6758_v52  ;;  %v4893_v45 = vpop.f32.mrb[159].mxu1  ;;  %v3771_v52 = vsel %vm1438_vm8, %v3768_v42, %v3770_v55 }
 0x232   : > { %5137 = vmatmul.mubr.msk.bf16.gmra.mrb[8].mxu0 %vm483_vm3, %v3769_v62 }
 0x233   : > { %5119 = vmatmul.mubr.msk.bf16.gmra.mrb[8].mxu1 %vm483_vm3, %v3657_v57  ;;  %5140 = vmatprep.mubr.msk.bf16.mxu0 %vm5277_vm1, %v5276_v1 }
 0x235   : > { %v2565_v6 = vpop.f32.mrb[160].mxu0 }
 0x236   : > { %v2437_v9 = vpop.f32.mrb[160].mxu1  ;;  %v2592_v46 = vadd.f32 %v2565_v6, %v2456_v17  ;;  %v4914_v40 = vpop.f32.mrb[161].mxu0 }
 0x237   : > { %v2458_v30 = vadd.f32 %v2437_v9, %v6774_v53  ;;  %v4896_v27 = vpop.f32.mrb[161].mxu1  ;;  %v2568_v24 = vpop.f32.mrb[162].mxu0 }
 0x238   : > { %v2440_v36 = vpop.f32.mrb[162].mxu1  ;;  %v2593_v49 = vadd.f32 %v2568_v24, %v2457_v26  ;;  %v4915_v11 = vpop.f32.mrb[163].mxu0 }
 0x239   : > { %v2459_v20 = vadd.f32 %v2440_v36, %v6778_v10  ;;  %v4897_v5 = vpop.f32.mrb[163].mxu1 }
 0x23a   : > { %5141 = vmatmul.mubr.msk.bf16.gmra.mrb[12].mxu0 %vm483_vm3, %v3771_v52 }
 0x23d   : > { %v2573_v1 = vpop.f32.mrb[164].mxu0 }
 0x23e   : > { %v2445_v8 = vpop.f32.mrb[164].mxu1  ;;  %v2594_v2 = vadd.f32 %v2573_v1, %v2458_v30  ;;  %v4918_v0 = vpop.f32.mrb[165].mxu0 }
 0x23f   : > { %v2460_v12 = vadd.f32 %v2445_v8, %v6790_v31  ;;  %v4900_v48 = vpop.f32.mrb[165].mxu1  ;;  %v2576_v53 = vpop.f32.mrb[166].mxu0 }
 0x240   : > { %v2448_v38 = vpop.f32.mrb[166].mxu1  ;;  %v2595_v7 = vadd.f32 %v2576_v53, %v2459_v20  ;;  %v4919_v23 = vpop.f32.mrb[167].mxu0 }
 0x241   : > { %v2461_v29 = vadd.f32 %v2448_v38, %v6796_v33  ;;  %v4901_v4 = vpop.f32.mrb[167].mxu1 }
 0x245   : > { %v2581_v13 = vpop.f32.mrb[168].mxu0 }
 0x246   : > { %v2596_v63 = vadd.f32 %v2581_v13, %v2460_v12  ;;  %v2663_v10 = vpop.f32.mrb[168].mxu1  ;;  %v4922_v61 = vpop.f32.mrb[169].mxu0 }
 0x247   : > { %v2702_v56 = vadd.f32 %v2663_v10, %v6808_v58  ;;  %v4928_v39 = vpop.f32.mrb[169].mxu1  ;;  %v2584_v50 = vpop.f32.mrb[170].mxu0 }
 0x248   : > { %v2597_v18 = vadd.f32 %v2584_v50, %v2461_v29  ;;  %v2666_v32 = vpop.f32.mrb[170].mxu1  ;;  %v4923_v28 = vpop.f32.mrb[171].mxu0 }
 0x249   : > { %v2703_v31 = vadd.f32 %v2666_v32, %v6812_v22  ;;  %v4929_v41 = vpop.f32.mrb[171].mxu1 }
 0x24d   : > { %v2797_v60 = vpop.f32.mrb[172].mxu0 }
 0x24e   : > { %v2671_v21 = vpop.f32.mrb[172].mxu1  ;;  %v2836_v19 = vadd.f32 %v2797_v60, %v2702_v56  ;;  %v4950_v59 = vpop.f32.mrb[173].mxu0 }
 0x24f   : > { %v2704_v33 = vadd.f32 %v2671_v21, %v2590_v14  ;;  %v4932_v35 = vpop.f32.mrb[173].mxu1  ;;  %v2800_v51 = vpop.f32.mrb[174].mxu0 }
 0x250   : > { %v2674_v15 = vpop.f32.mrb[174].mxu1  ;;  %v2837_v42 = vadd.f32 %v2800_v51, %v2703_v31  ;;  %v4951_v37 = vpop.f32.mrb[175].mxu0 }
 0x251   : > { %v2705_v3 = vadd.f32 %v2674_v15, %v2591_v54  ;;  %v4933_v58 = vpop.f32.mrb[175].mxu1 }
 0x255   : > { %v2805_v25 = vpop.f32.mrb[176].mxu0 }
 0x256   : > { %v2679_v16 = vpop.f32.mrb[176].mxu1  ;;  %v2838_v17 = vadd.f32 %v2805_v25, %v2704_v33  ;;  %v4954_v44 = vpop.f32.mrb[177].mxu0 }
 0x257   : > { %v2706_v43 = vadd.f32 %v2679_v16, %v2592_v46  ;;  %v4936_v62 = vpop.f32.mrb[177].mxu1  ;;  %v2808_v22 = vpop.f32.mrb[178].mxu0 }
 0x258   : > { %v2682_v47 = vpop.f32.mrb[178].mxu1  ;;  %v2839_v34 = vadd.f32 %v2808_v22, %v2705_v3  ;;  %v4955_v57 = vpop.f32.mrb[179].mxu0 }
 0x259   : > { %v2707_v26 = vadd.f32 %v2682_v47, %v2593_v49  ;;  %v4937_v45 = vpop.f32.mrb[179].mxu1 }
 0x25d   : > { %v2813_v14 = vpop.f32.mrb[180].mxu0 }
 0x25e   : > { %v2687_v55 = vpop.f32.mrb[180].mxu1  ;;  %v2840_v6 = vadd.f32 %v2813_v14, %v2706_v43  ;;  %v4958_v9 = vpop.f32.mrb[181].mxu0 }
 0x25f   : > { %v2708_v40 = vadd.f32 %v2687_v55, %v2594_v2  ;;  %v4940_v30 = vpop.f32.mrb[181].mxu1  ;;  %v2816_v54 = vpop.f32.mrb[182].mxu0 }
 0x260   : > { %v2690_v27 = vpop.f32.mrb[182].mxu1  ;;  %v2841_v24 = vadd.f32 %v2816_v54, %v2707_v26  ;;  %v4959_v52 = vpop.f32.mrb[183].mxu0 }
 0x261   : > { %v2709_v36 = vadd.f32 %v2690_v27, %v2595_v7  ;;  %v4941_v11 = vpop.f32.mrb[183].mxu1 }
 0x265   : > { %v2821_v46 = vpop.f32.mrb[184].mxu0 }
 0x266   : > { %v2695_v20 = vpop.f32.mrb[184].mxu1  ;;  %v2842_v5 = vadd.f32 %v2821_v46, %v2708_v40  ;;  %v4962_v1 = vpop.f32.mrb[185].mxu0 }
 0x267   : > { %v2710_v8 = vadd.f32 %v2695_v20, %v2596_v63  ;;  %v4944_v0 = vpop.f32.mrb[185].mxu1  ;;  %v2824_v49 = vpop.f32.mrb[186].mxu0 }
 0x268   : > { %v2698_v12 = vpop.f32.mrb[186].mxu1  ;;  %v2843_v48 = vadd.f32 %v2824_v49, %v2709_v36  ;;  %v4963_v53 = vpop.f32.mrb[187].mxu0 }
 0x269   : > { %v2711_v38 = vadd.f32 %v2698_v12, %v2597_v18  ;;  %v4945_v23 = vpop.f32.mrb[187].mxu1 }
 0x26d   : > { %v2829_v2 = vpop.f32.mrb[188].mxu0 }
 0x26e   : > { %v2844_v29 = vadd.f32 %v2829_v2, %v2710_v8  ;;  %v2940_v4 = vpop.f32.mrb[188].mxu1  ;;  %v4966_v13 = vpop.f32.mrb[189].mxu0 }
 0x26f   : > { %v2979_v10 = vadd.f32 %v2940_v4, %v2836_v19  ;;  %v4972_v61 = vpop.f32.mrb[189].mxu1  ;;  %v2832_v7 = vpop.f32.mrb[190].mxu0 }
 0x270   : > { %v2845_v56 = vadd.f32 %v2832_v7, %v2711_v38  ;;  %v2943_v39 = vpop.f32.mrb[190].mxu1  ;;  %v4967_v50 = vpop.f32.mrb[191].mxu0 }
 0x271   : > { %v2980_v32 = vadd.f32 %v2943_v39, %v2837_v42  ;;  %v4973_v28 = vpop.f32.mrb[191].mxu1 }
 0x275   : > { %v3060_v63 = vpop.f32.mrb[192].mxu0 }
 0x276   : > { %v2948_v31 = vpop.f32.mrb[192].mxu1  ;;  %v3099_v41 = vadd.f32 %v3060_v63, %v2979_v10  ;;  %v4994_v60 = vpop.f32.mrb[193].mxu0 }
 0x277   : > { %v2981_v21 = vadd.f32 %v2948_v31, %v2838_v17  ;;  %v4976_v59 = vpop.f32.mrb[193].mxu1  ;;  %v3063_v18 = vpop.f32.mrb[194].mxu0 }
 0x278   : > { %v2951_v33 = vpop.f32.mrb[194].mxu1  ;;  %v3100_v35 = vadd.f32 %v3063_v18, %v2980_v32  ;;  %v4995_v51 = vpop.f32.mrb[195].mxu0 }
 0x279   : > { %v2982_v15 = vadd.f32 %v2951_v33, %v2839_v34  ;;  %v4977_v37 = vpop.f32.mrb[195].mxu1 }
 0x27d   : > { %v3068_v19 = vpop.f32.mrb[196].mxu0 }
 0x27e   : > { %v2956_v3 = vpop.f32.mrb[196].mxu1  ;;  %v3101_v58 = vadd.f32 %v3068_v19, %v2981_v21  ;;  %v4998_v25 = vpop.f32.mrb[197].mxu0 }
 0x27f   : > { %v2983_v16 = vadd.f32 %v2956_v3, %v2840_v6  ;;  %v4980_v44 = vpop.f32.mrb[197].mxu1  ;;  %v3071_v42 = vpop.f32.mrb[198].mxu0 }
 0x280   : > { %v2959_v43 = vpop.f32.mrb[198].mxu1  ;;  %v3102_v62 = vadd.f32 %v3071_v42, %v2982_v15  ;;  %v4999_v22 = vpop.f32.mrb[199].mxu0 }
 0x281   : > { %v2984_v47 = vadd.f32 %v2959_v43, %v2841_v24  ;;  %v4981_v57 = vpop.f32.mrb[199].mxu1 }
 0x285   : > { %v3076_v17 = vpop.f32.mrb[200].mxu0 }
 0x286   : > { %v2964_v26 = vpop.f32.mrb[200].mxu1  ;;  %v3103_v45 = vadd.f32 %v3076_v17, %v2983_v16  ;;  %v5002_v14 = vpop.f32.mrb[201].mxu0 }
 0x287   : > { %v2985_v55 = vadd.f32 %v2964_v26, %v2842_v5  ;;  %v4984_v9 = vpop.f32.mrb[201].mxu1  ;;  %v3079_v34 = vpop.f32.mrb[202].mxu0 }
 0x288   : > { %v2967_v40 = vpop.f32.mrb[202].mxu1  ;;  %v3104_v30 = vadd.f32 %v3079_v34, %v2984_v47  ;;  %v5003_v54 = vpop.f32.mrb[203].mxu0 }
 0x289   : > { %v2986_v27 = vadd.f32 %v2967_v40, %v2843_v48  ;;  %v4985_v52 = vpop.f32.mrb[203].mxu1 }
 0x28d   : > { %v3084_v6 = vpop.f32.mrb[204].mxu0 }
 0x28e   : > { %v2972_v36 = vpop.f32.mrb[204].mxu1  ;;  %v3105_v11 = vadd.f32 %v3084_v6, %v2985_v55  ;;  %v5006_v46 = vpop.f32.mrb[205].mxu0 }
 0x28f   : > { %v2987_v20 = vadd.f32 %v2972_v36, %v2844_v29  ;;  %v4988_v1 = vpop.f32.mrb[205].mxu1  ;;  %v3087_v24 = vpop.f32.mrb[206].mxu0 }
 0x290   : > { %v2975_v8 = vpop.f32.mrb[206].mxu1  ;;  %v3106_v0 = vadd.f32 %v3087_v24, %v2986_v27  ;;  %v5007_v49 = vpop.f32.mrb[207].mxu0 }
 0x291   : > { %v2988_v12 = vadd.f32 %v2975_v8, %v2845_v56  ;;  %v4989_v53 = vpop.f32.mrb[207].mxu1 }
 0x295   : > { %v3092_v5 = vpop.f32.mrb[208].mxu0 }
 0x296   : > { %v3107_v38 = vadd.f32 %v3092_v5, %v2987_v20  ;;  %v3186_v23 = vpop.f32.mrb[208].mxu1  ;;  %v5010_v2 = vpop.f32.mrb[209].mxu0 }
 0x297   : > { %v3225_v4 = vadd.f32 %v3186_v23, %v3099_v41  ;;  %v5016_v13 = vpop.f32.mrb[209].mxu1  ;;  %v3095_v48 = vpop.f32.mrb[210].mxu0 }
 0x298   : > { %v3108_v10 = vadd.f32 %v3095_v48, %v2988_v12  ;;  %v3189_v61 = vpop.f32.mrb[210].mxu1  ;;  %v5011_v7 = vpop.f32.mrb[211].mxu0 }
 0x299   : > { %v3226_v39 = vadd.f32 %v3189_v61, %v3100_v35  ;;  %v5017_v50 = vpop.f32.mrb[211].mxu1 }
 0x29d   : > { %v3342_v29 = vpop.f32.mrb[212].mxu0 }
 0x29e   : > { %v3194_v32 = vpop.f32.mrb[212].mxu1  ;;  %v3381_v28 = vadd.f32 %v3342_v29, %v3225_v4  ;;  %v5038_v63 = vpop.f32.mrb[213].mxu0 }
 0x29f   : > { %v3227_v31 = vadd.f32 %v3194_v32, %v3101_v58  ;;  %v5020_v60 = vpop.f32.mrb[213].mxu1  ;;  %v3345_v56 = vpop.f32.mrb[214].mxu0 }
 0x2a0   : > { %v3197_v21 = vpop.f32.mrb[214].mxu1  ;;  %v3382_v59 = vadd.f32 %v3345_v56, %v3226_v39  ;;  %v5039_v18 = vpop.f32.mrb[215].mxu0 }
 0x2a1   : > { %v3228_v33 = vadd.f32 %v3197_v21, %v3102_v62  ;;  %v5021_v51 = vpop.f32.mrb[215].mxu1 }
 0x2a5   : > { %v3350_v41 = vpop.f32.mrb[216].mxu0 }
 0x2a6   : > { %v3202_v15 = vpop.f32.mrb[216].mxu1  ;;  %v3383_v37 = vadd.f32 %v3350_v41, %v3227_v31  ;;  %v5042_v19 = vpop.f32.mrb[217].mxu0 }
 0x2a7   : > { %v3229_v3 = vadd.f32 %v3202_v15, %v3103_v45  ;;  %v5024_v25 = vpop.f32.mrb[217].mxu1  ;;  %v3353_v35 = vpop.f32.mrb[218].mxu0 }
 0x2a8   : > { %v3205_v16 = vpop.f32.mrb[218].mxu1  ;;  %v3384_v44 = vadd.f32 %v3353_v35, %v3228_v33  ;;  %v5043_v42 = vpop.f32.mrb[219].mxu0 }
 0x2a9   : > { %v3230_v43 = vadd.f32 %v3205_v16, %v3104_v30  ;;  %v5025_v22 = vpop.f32.mrb[219].mxu1 }
 0x2ad   : > { %v3358_v58 = vpop.f32.mrb[220].mxu0 }
 0x2ae   : > { %v3210_v47 = vpop.f32.mrb[220].mxu1  ;;  %v3385_v57 = vadd.f32 %v3358_v58, %v3229_v3  ;;  %v5046_v17 = vpop.f32.mrb[221].mxu0 }
 0x2af   : > { %v3231_v26 = vadd.f32 %v3210_v47, %v3105_v11  ;;  %v5028_v14 = vpop.f32.mrb[221].mxu1  ;;  %v3361_v62 = vpop.f32.mrb[222].mxu0 }
 0x2b0   : > { %v3213_v55 = vpop.f32.mrb[222].mxu1  ;;  %v3386_v9 = vadd.f32 %v3361_v62, %v3230_v43  ;;  %v5047_v34 = vpop.f32.mrb[223].mxu0 }
 0x2b1   : > { %v3232_v40 = vadd.f32 %v3213_v55, %v3106_v0  ;;  %v5029_v54 = vpop.f32.mrb[223].mxu1 }
 0x2b5   : > { %v3366_v45 = vpop.f32.mrb[224].mxu0 }
 0x2b6   : > { %v3218_v27 = vpop.f32.mrb[224].mxu1  ;;  %v3387_v52 = vadd.f32 %v3366_v45, %v3231_v26  ;;  %v5050_v6 = vpop.f32.mrb[225].mxu0 }
 0x2b7   : > { %v3233_v36 = vadd.f32 %v3218_v27, %v3107_v38  ;;  %v5032_v46 = vpop.f32.mrb[225].mxu1  ;;  %v3369_v30 = vpop.f32.mrb[226].mxu0 }
 0x2b8   : > { %v3221_v20 = vpop.f32.mrb[226].mxu1  ;;  %v3388_v1 = vadd.f32 %v3369_v30, %v3232_v40  ;;  %v5051_v24 = vpop.f32.mrb[227].mxu0 }
 0x2b9   : > { %v3234_v8 = vadd.f32 %v3221_v20, %v3108_v10  ;;  %v5033_v49 = vpop.f32.mrb[227].mxu1 }
 0x2bd   : > { %v3374_v11 = vpop.f32.mrb[228].mxu0 }
 0x2be   : > { %v3389_v12 = vadd.f32 %v3374_v11, %v3233_v36  ;;  %v3456_v53 = vpop.f32.mrb[228].mxu1  ;;  %v5054_v5 = vpop.f32.mrb[229].mxu0 }
 0x2bf   : > { %v3495_v23 = vadd.f32 %v3456_v53, %v3381_v28  ;;  %v5060_v2 = vpop.f32.mrb[229].mxu1  ;;  %v3377_v0 = vpop.f32.mrb[230].mxu0 }
 0x2c0   : > { %v3390_v4 = vadd.f32 %v3377_v0, %v3234_v8  ;;  %v3459_v13 = vpop.f32.mrb[230].mxu1  ;;  %v5055_v48 = vpop.f32.mrb[231].mxu0 }
 0x2c1   : > { %v3496_v61 = vadd.f32 %v3459_v13, %v3382_v59  ;;  %v5061_v7 = vpop.f32.mrb[231].mxu1  ;;  %v6859_v48 = vld [vmem:[%s6906_s4] ss:$0 sm:$0xff] }
 0x2c5   : > { %v3574_v38 = vpop.f32.mrb[232].mxu0 }
 0x2c6   : > { %v3464_v39 = vpop.f32.mrb[232].mxu1  ;;  %v3613_v50 = vadd.f32 %v3574_v38, %v3495_v23  ;;  %v5082_v29 = vpop.f32.mrb[233].mxu0 }
 0x2c7   : > { %v3497_v32 = vadd.f32 %v3464_v39, %v3383_v37  ;;  %v5064_v63 = vpop.f32.mrb[233].mxu1  ;;  %v3577_v10 = vpop.f32.mrb[234].mxu0 }
 0x2c8   : > { %v3467_v31 = vpop.f32.mrb[234].mxu1  ;;  %v3614_v60 = vadd.f32 %v3577_v10, %v3496_v61  ;;  %v5083_v56 = vpop.f32.mrb[235].mxu0 }
 0x2c9   : > { %v3498_v21 = vadd.f32 %v3467_v31, %v3384_v44  ;;  %v5065_v18 = vpop.f32.mrb[235].mxu1 }
 0x2cd   : > { %v3582_v28 = vpop.f32.mrb[236].mxu0 }
 0x2ce   : > { %v3472_v33 = vpop.f32.mrb[236].mxu1  ;;  %v3615_v51 = vadd.f32 %v3582_v28, %v3497_v32  ;;  %v5086_v41 = vpop.f32.mrb[237].mxu0 }
 0x2cf   : > { %v3499_v15 = vadd.f32 %v3472_v33, %v3385_v57  ;;  %v5068_v19 = vpop.f32.mrb[237].mxu1  ;;  %v3585_v59 = vpop.f32.mrb[238].mxu0 }
 0x2d0   : > { %v3475_v3 = vpop.f32.mrb[238].mxu1  ;;  %v3616_v25 = vadd.f32 %v3585_v59, %v3498_v21  ;;  %v5087_v35 = vpop.f32.mrb[239].mxu0 }
 0x2d1   : > { %v3500_v16 = vadd.f32 %v3475_v3, %v3386_v9  ;;  %v5069_v42 = vpop.f32.mrb[239].mxu1 }
 0x2d5   : > { %v3590_v37 = vpop.f32.mrb[240].mxu0 }
 0x2d6   : > { %v3480_v43 = vpop.f32.mrb[240].mxu1  ;;  %v6841_v22 = vadd.f32 %v3590_v37, %v3499_v15  ;;  %v5090_v58 = vpop.f32.mrb[241].mxu0 }
 0x2d7   : > { %v3501_v47 = vadd.f32 %v3480_v43, %v3387_v52  ;;  %v5072_v44 = vpop.f32.mrb[241].mxu1  ;;  %v3593_v17 = vpop.f32.mrb[242].mxu0 }
 0x2d8   : > { %v3483_v26 = vpop.f32.mrb[242].mxu1  ;;  %v6843_v14 = vadd.f32 %v3593_v17, %v3500_v16  ;;  %v5091_v57 = vpop.f32.mrb[243].mxu0 }
 0x2d9   : > { %v3502_v62 = vadd.f32 %v3483_v26, %v3388_v1  ;;  %v5073_v55 = vpop.f32.mrb[243].mxu1 }
 0x2dd   : > { %v3598_v34 = vpop.f32.mrb[244].mxu0 }
 0x2de   : > { %v3488_v40 = vpop.f32.mrb[244].mxu1  ;;  %v6845_v54 = vadd.f32 %v3598_v34, %v3501_v47  ;;  %v5094_v9 = vpop.f32.mrb[245].mxu0 }
 0x2df   : > { %v3503_v45 = vadd.f32 %v3488_v40, %v3389_v12  ;;  %v5076_v27 = vpop.f32.mrb[245].mxu1  ;;  %v3601_v6 = vpop.f32.mrb[246].mxu0 }
 0x2e0   : > { %v3491_v36 = vpop.f32.mrb[246].mxu1  ;;  %v6847_v52 = vadd.f32 %v3601_v6, %v3502_v62  ;;  %v5095_v46 = vpop.f32.mrb[247].mxu0 }
 0x2e1   : > { %v3504_v30 = vadd.f32 %v3491_v36, %v3390_v4  ;;  %v5077_v20 = vpop.f32.mrb[247].mxu1 }
 0x2e5   : > { %v3606_v24 = vpop.f32.mrb[248].mxu0 }
 0x2e6   : > { %v6850_v1 = vadd.f32 %v3606_v24, %v3503_v45  ;;  %v3710_v8 = vpop.f32.mrb[248].mxu1  ;;  %v5098_v49 = vpop.f32.mrb[249].mxu0 }
 0x2e7   : > { %v3749_v11 = vadd.f32 %v3710_v8, %v3613_v50  ;;  %v5104_v53 = vpop.f32.mrb[249].mxu1  ;;  %v3609_v5 = vpop.f32.mrb[250].mxu0 }
 0x2e8   : > { %v6853_v12 = vadd.f32 %v3609_v5, %v3504_v30  ;;  %v3713_v23 = vpop.f32.mrb[250].mxu1  ;;  %v5099_v2 = vpop.f32.mrb[251].mxu0 }
 0x2e9   : > { %v3750_v0 = vadd.f32 %v3713_v23, %v3614_v60  ;;  %v5105_v13 = vpop.f32.mrb[251].mxu1 }
 0x2ed   : > { %v3824_v4 = vpop.f32.mrb[252].mxu0 }
 0x2ee   : > { %v3718_v61 = vpop.f32.mrb[252].mxu1  ;;  %v3863_v7 = vadd.f32 %v3824_v4, %v3749_v11  ;;  %v5126_v38 = vpop.f32.mrb[253].mxu0 }
 0x2ef   : > { %v3751_v39 = vadd.f32 %v3718_v61, %v3615_v51  ;;  %v5108_v50 = vpop.f32.mrb[253].mxu1  ;;  %v3827_v29 = vpop.f32.mrb[254].mxu0 }
 0x2f0   : > { %v3880_v32 = vadd.f32 %v6859_v48, %v3863_v7  ;;  %v3721_v63 = vpop.f32.mrb[254].mxu1  ;;  %v3864_v10 = vadd.f32 %v3827_v29, %v3750_v0  ;;  %v5127_v31 = vpop.f32.mrb[255].mxu0 }
 0x2f1   : > { %v3752_v60 = vadd.f32 %v3721_v63, %v3616_v25  ;;  %v5109_v56 = vpop.f32.mrb[255].mxu1 }
 0x2f2   : > { %v3881_v21 = vadd.f32 %v6859_v48, %v3864_v10  ;;  %v3890_v18 = vmax.f32 %v3880_v32, 0.0 }
 0x2f4   : > { %v3891_v28 = vmax.f32 %v3881_v21, 0.0 }
 0x2f5   : > { %v3832_v33 = vpop.f32.mrb[0].mxu0 }
 0x2f6   : > { %v4362_v51 = vpack.c.bf16 %v3891_v28, %v3890_v18  ;;  %v3726_v41 = vpop.f32.mrb[0].mxu1  ;;  %v3865_v15 = vadd.f32 %v3832_v33, %v3751_v39  ;;  %v5130_v19 = vpop.f32.mrb[1].mxu0 }
 0x2f7   : > { %v3753_v59 = vadd.f32 %v3726_v41, %v6841_v22  ;;  %v5112_v3 = vpop.f32.mrb[1].mxu1  ;;  %v3835_v25 = vpop.f32.mrb[2].mxu0 }
 0x2f8   : > { %4363 = vst [vmem:[%s6866_s13] sm:$0xff] %v4362_v51   ;;  %v3882_v35 = vadd.f32 %v6859_v48, %v3865_v15  ;;  %v3729_v16 = vpop.f32.mrb[2].mxu1  ;;  %v3866_v42 = vadd.f32 %v3835_v25, %v3752_v60  ;;  %v5131_v37 = vpop.f32.mrb[3].mxu0 }
 0x2f9   : > { %v3754_v43 = vadd.f32 %v3729_v16, %v6843_v14  ;;  %v5113_v58 = vpop.f32.mrb[3].mxu1 }
 0x2fa   : > { %v3883_v47 = vadd.f32 %v6859_v48, %v3866_v42  ;;  %v3892_v44 = vmax.f32 %v3882_v35, 0.0 }
 0x2fc   : > { %v3893_v17 = vmax.f32 %v3883_v47, 0.0 }
 0x2fd   : > { %v3840_v26 = vpop.f32.mrb[4].mxu0 }
 0x2fe   : > { %v4367_v57 = vpack.c.bf16 %v3893_v17, %v3892_v44  ;;  %v3734_v62 = vpop.f32.mrb[4].mxu1  ;;  %v3867_v22 = vadd.f32 %v3840_v26, %v3753_v59  ;;  %v5134_v55 = vpop.f32.mrb[5].mxu0 }
 0x2ff   : > { %v3755_v34 = vadd.f32 %v3734_v62, %v6845_v54  ;;  %v5116_v40 = vpop.f32.mrb[5].mxu1  ;;  %v3843_v9 = vpop.f32.mrb[6].mxu0 }
 0x300   : > { %4384 = vst [vmem:[%s6866_s13 + $0x8] sm:$0xff] %v4367_v57   ;;  %v3884_v45 = vadd.f32 %v6859_v48, %v3867_v22  ;;  %v3737_v27 = vpop.f32.mrb[6].mxu1  ;;  %v3868_v14 = vadd.f32 %v3843_v9, %v3754_v43  ;;  %v5135_v6 = vpop.f32.mrb[7].mxu0 }
 0x301   : > { %v3756_v36 = vadd.f32 %v3737_v27, %v6847_v52  ;;  %v5117_v46 = vpop.f32.mrb[7].mxu1 }
 0x302   : > { %v3885_v30 = vadd.f32 %v6859_v48, %v3868_v14  ;;  %v3894_v20 = vmax.f32 %v3884_v45, 0.0 }
 0x304   : > { %v3895_v24 = vmax.f32 %v3885_v30, 0.0 }
 0x305   : > { %v3848_v8 = vpop.f32.mrb[8].mxu0 }
 0x306   : > { %v4372_v49 = vpack.c.bf16 %v3895_v24, %v3894_v20  ;;  %v3742_v11 = vpop.f32.mrb[8].mxu1  ;;  %v3869_v54 = vadd.f32 %v3848_v8, %v3755_v34  ;;  %v5138_v53 = vpop.f32.mrb[9].mxu0 }
 0x307   : > { %v3757_v5 = vadd.f32 %v3742_v11, %v6850_v1  ;;  %v5120_v23 = vpop.f32.mrb[9].mxu1  ;;  %v3851_v2 = vpop.f32.mrb[10].mxu0 }
 0x308   : > { %4385 = vst [vmem:[%s6866_s13 + $0x10] sm:$0xff] %v4372_v49   ;;  %v3886_v0 = vadd.f32 %v6859_v48, %v3869_v54  ;;  %v3745_v13 = vpop.f32.mrb[10].mxu1  ;;  %v3870_v52 = vadd.f32 %v3851_v2, %v3756_v36  ;;  %v5139_v4 = vpop.f32.mrb[11].mxu0 }
 0x309   : > { %v3758_v61 = vadd.f32 %v3745_v13, %v6853_v12  ;;  %v5121_v7 = vpop.f32.mrb[11].mxu1 }
 0x30a   : > { %v3887_v38 = vadd.f32 %v6859_v48, %v3870_v52  ;;  %v3896_v39 = vmax.f32 %v3886_v0, 0.0 }
 0x30c   : > { %v3897_v50 = vmax.f32 %v3887_v38, 0.0 }
 0x30d   : > { %v3856_v29 = vpop.f32.mrb[12].mxu0 }
 0x30e   : > { %v4377_v32 = vpack.c.bf16 %v3897_v50, %v3896_v39  ;;  %v3871_v1 = vadd.f32 %v3856_v29, %v3757_v5  ;;  %v5142_v63 = vpop.f32.mrb[13].mxu0 }
 0x30f   : > { %v3859_v10 = vpop.f32.mrb[14].mxu0 }
 0x310   : > { %4386 = vst [vmem:[%s6866_s13 + $0x18] sm:$0xff] %v4377_v32   ;;  %v3888_v31 = vadd.f32 %v6859_v48, %v3871_v1  ;;  %v3872_v60 = vadd.f32 %v3859_v10, %v3758_v61  ;;  %v5143_v56 = vpop.f32.mrb[15].mxu0 }
 0x312   : > { %v3889_v21 = vadd.f32 %v6859_v48, %v3872_v60  ;;  %v3898_v18 = vmax.f32 %v3888_v31, 0.0 }
 0x314   : > { %v3899_v12 = vmax.f32 %v3889_v21, 0.0 }
 0x316   : > { %v4382_v28 = vpack.c.bf16 %v3899_v12, %v3898_v18 }
 0x318   : > { %4387 = vst [vmem:[%s6866_s13 + $0x20] sm:$0xff] %v4382_v28  }
 0x319 PF: > { %s15_s22 = sadd.s32 1, %s5274_s22   ;;  %s6908_s18 = smov %s5266_s20 }
 0x31a   : > { %p12_p10 = scmp.ge.s32.totalorder %s15_s22, 18   ;;  %s6909_s19 = smov %s5270_s21 }
 0x31b   : > { %s6910_s20 = smov %s6913_s23  ;;  %s6911_s21 = smov %s6917_s24 }
 0x31c   :  { %14 = sbr.rel (!%p12_p10) target bundleno = 3 (0x3), region = 102 }

// kernel: conv3d_block_kendall_forward.4
= control target key start
LH: loop header
LB: loop body
LE: loop exit
PB: predicated region body
PF: predicated region fallthrough
CT: control target
= control target key end

     0   :  { %s5308_s18 = smov 0   ;;  %s5310_s19 = smov 0   ;;  %s6902_s0 = inlined_call_operand.vmem [shape: bf16[2,10,1,104,8], index: 0, kind: input, shape index: {}, may-alias: {0,1,2}]   ;;  %s6903_s1 = inlined_call_operand.vmem [shape: bf16[2,10,1,104,8], index: 1, kind: input, shape index: {}, may-alias: {0,1,2}]   ;;  %s6904_s2 = inlined_call_operand.vmem [shape: bf16[2,10,1,104,8], index: 2, kind: input, shape index: {}, may-alias: {0,1,2}]   ;;  %s6905_s3 = inlined_call_operand.vmem [shape: bf16[27,8,128], index: 3, kind: input, shape index: {}]   ;;  %s6906_s4 = inlined_call_operand.vmem [shape: f32[1,128], index: 4, kind: input, shape index: {}]   ;;  %s6907_s5 = inlined_call_operand.vmem [shape: bf16[2,8,1,80,128], index: 5, kind: output, shape index: {}]  }
   0x1   :  { %s5312_s20 = smov 0   ;;  %s5314_s21 = smov 0  }
   0x2   :  { %s5316_s22 = smov 0  }
   0x3 LB: > { %s30_s23 = sadd.s32 1, %s5266_s20  ;;  %s34_s24 = sadd.s32 1, %s5270_s21  ;;  %s5274_s22 = sphi %s5316_s22, %s15_s22   ;;  %s5270_s21 = sphi %s5314_s21, %s6911_s21   ;;  %s5266_s20 = sphi %s5312_s20, %s6910_s20   ;;  %s5262_s19 = sphi %s5310_s19, %s6909_s19   ;;  %s5258_s18 = sphi %s5308_s18, %s6908_s18  }
   0x4   : > { %p32_p0 = scmp.ge.s32.totalorder %s30_s23, 8  ;;  %p4128_p1 = scmp.ge.s32.totalorder %s5274_s22, 1 }
   0x5   : > { %p274_p2 = scmp.lt.s32.totalorder %s5274_s22, 17 }
   0x6   : > { %s6913_s23 = smov (%p32_p0, %s30_s23), 0  ;;  %s6915_s24 = smov (!%p32_p0, %s34_s24), %s5270_s21 }
   0x7   : > { %p275_p3 = pnand %p4128_p1, %p274_p2  ;;  %p36_p4 = scmp.ge.s32.totalorder %s6915_s24, 2 }
   0x8   : > { %v4139_v0 = vld [vmem:[%s6905_s3 + $0x4] sm:$0xf] (!%p275_p3)  ;;  %vm499_vm0 = vcmask (!%p275_p3), 1043456   ;;  %p346_p5 = scmp.lt.s32.totalorder (!%p275_p3), %s5262_s19, 1  ;;  %v5276_v1 = vmov (!%p275_p3), 0.0   ;;  %p348_p6 = scmp.lt.s32.totalorder (!%p275_p3), %s5258_s18, 9 }
   0x9   : > { %s6917_s24 = smov (%p36_p4, %s6915_s24), 0  ;;  %278 = sbr.rel (%p275_p3) target bundleno = 793 (0x319), region = 40 }
   0xa   : > { %4550 = vmatprep.subr.bf16.mxu0 (!%p275_p3), %v5276_v1  ;;  %5144 = vmatprep.subr.bf16.mxu1 (!%p275_p3), %v5276_v1  ;;  %v501_v2 = vsel (!%p275_p3), %vm499_vm0, %v4139_v0, 0  ;;  %vm5277_vm1 = vmmov (!%p275_p3), 0   ;;  %vm438_vm2 = vsmask.f32 (!%p275_p3), 7424  ;;  %v4150_v26 = vld [vmem:[%s6905_s3 + $0x8] sm:$0xf] (!%p275_p3) }
   0xb   : > { %4551 = vmatpush3.bf16.msra.mxu0 (!%p275_p3), %v501_v2  ;;  %5145 = vmatpush3.bf16.msra.mxu1 (!%p275_p3), %v501_v2  ;;  %vm483_vm3 = vcmask (!%p275_p3), 64512   ;;  %v434_v30 = vld [vmem:[%s6905_s3] sm:$0xf] (!%p275_p3)  ;;  %v698_v36 = vsel (!%p275_p3), %vm499_vm0, %v4150_v26, 0  ;;  %v4162_v49 = vld [vmem:[%s6905_s3 + $0xc] sm:$0xf] (!%p275_p3) }
   0xc   : > { %4552 = vmatprep.mubr.msk.bf16.mxu0 (!%p275_p3), %vm5277_vm1, %v5276_v1  ;;  %4564 = vmatprep.mubr.msk.bf16.mxu1 (!%p275_p3), %vm5277_vm1, %v5276_v1  ;;  %v587_v39 = vsel (!%p275_p3), %vm499_vm0, %v434_v30, 0  ;;  %v4168_v52 = vld [vmem:[%s6905_s3 + $0x10] sm:$0xf] (!%p275_p3)  ;;  %v824_v56 = vsel (!%p275_p3), %vm499_vm0, %v4162_v49, 0  ;;  %vm670_vm4 = vcmask (!%p275_p3), 1046528   ;;  %vm1068_vm6 = vcmask (!%p275_p3), 1045504  }
   0xd   : > { %4594 = vmatprep.subr.bf16.mxu0 (!%p275_p3), %v5276_v1  ;;  %4572 = vmatprep.subr.bf16.mxu1 (!%p275_p3), %v5276_v1  ;;  %v5463_v58 = vsel (!%p275_p3), %vm499_vm0, %v4168_v52, 0  ;;  %vm911_vm5 = vsmask.f32 (!%p275_p3), 6400  ;;  %vm1301_vm7 = vsmask.f32 (!%p275_p3), 5376  ;;  %vm1438_vm8 = vcmask (!%p275_p3), 1044480  }
   0xe   : > { %s359_s25 = sadd.s32 (!%p275_p3), 1, %s5258_s18  ;;  %s374_s8 = sadd.s32 (!%p275_p3), 2, %s5258_s18 }
   0xf   : > { %p362_p7 = scmp.lt.s32.totalorder (!%p275_p3), %s359_s25, 9  ;;  %p377_p8 = scmp.lt.s32.totalorder (!%p275_p3), %s374_s8, 9 }
  0x10   : > { %s6919_s19 = smov (!%p346_p5, %s5262_s19), 1  ;;  %p391_p9 = scmp.lt.s32.totalorder %s5258_s18, 7 }
  0x11   : > { %s349_s27 = scalar_select %p348_p6, %s5258_s18, 9 }
  0x12   : > { %s5356_s28 = smul.u32 130, %s6919_s19  ;;  %s6921_s25 = smov (!%p362_p7, %s359_s25), 9 }
  0x13   : > { %s5146_s29 = smul.u32 13, %s349_s27  ;;  %s6923_s8 = smov (!%p377_p8, %s374_s8), 9 }
  0x14   : > { %s5148_s26 = smul.u32 13, %s6921_s25  ;;  %s6925_s18 = smov (!%p391_p9, %s5258_s18), 7 }
  0x15   : > { %s356_s30 = sadd.s32 %s5356_s28, %s5146_s29 }
  0x16   : > { %s4129_s6 = sshll.u32 %s356_s30, 2  ;;  %s370_s27 = sadd.s32 %s5148_s26, %s5356_s28 }
  0x17   : > { %s5363_s9 = scalar_lea.vmem %s6902_s0, %s4129_s6  ;;  %s4130_s29 = sshll.u32 %s370_s27, 2 }
  0x18   : > { %v403_v3 = vld [vmem:[%s5363_s9] sm:$0xf]  ;;  %v5367_v4 = vld [vmem:[%s5363_s9 + $0x4] sm:$0xf]  ;;  %v5370_v5 = vld [vmem:[%s5363_s9 + $0x8] sm:$0xf]  ;;  %s5646_s7 = scalar_lea.vmem %s6903_s1, %s4130_s29 }
  0x19   : > { %v5373_v6 = vld [vmem:[%s5363_s9 + $0xc] sm:$0xf]  ;;  %v5376_v7 = vcombine.low %v403_v3, %v5367_v4  ;;  %v409_v8 = vld [vmem:[%s5363_s9 + $0x18] sm:$0xf]  ;;  %v410_v9 = vld [vmem:[%s5363_s9 + $0x1c] sm:$0xf] }
  0x1a   : > { %v5382_v10 = vcombine.low %v5370_v5, %v5373_v6  ;;  %v411_v11 = vld [vmem:[%s5363_s9 + $0x20] sm:$0xf]  ;;  %v412_v12 = vld [vmem:[%s5363_s9 + $0x24] sm:$0xf]  ;;  %v5386_v13 = vcombine.low %v409_v8, %v410_v9  ;;  %v5389_v14 = vld [vmem:[%s5363_s9 + $0x10] sm:$0xf] }
  0x1b   : > { %v440_v15 = vshrl.u32 %v5376_v7, 16  ;;  %v442_v16 = vshll.u32 %v5376_v7, 16  ;;  %v5393_v17 = vcombine.low %v411_v11, %v412_v12  ;;  %v408_v18 = vld [vmem:[%s5363_s9 + $0x14] sm:$0xf]  ;;  %v413_v19 = vld [vmem:[%s5363_s9 + $0x28] sm:$0xf]  ;;  %v5457_v55 = vcombine.low %v410_v9, %v411_v11 }
  0x1c   : > { %v447_v20 = vshll.u32 %v5382_v10, 16  ;;  %v463_v21 = vshll.u32 %v5386_v13, 16  ;;  %v467_v22 = vshrl.u32 %v5386_v13, 16  ;;  %v5401_v23 = vcombine.low %v5389_v14, %v408_v18  ;;  %v414_v40 = vld [vmem:[%s5363_s9 + $0x2c] sm:$0xf] }
  0x1d   : > { %v444_v24 = vrot.slane %v442_v16, 1  ;;  %v471_v25 = vshll.u32 %v5393_v17, 16  ;;  %v5407_v27 = vcombine.low %v413_v19, %v413_v19  ;;  %v451_v33 = vshrl.u32 %v5382_v10, 16 }
  0x1e   : > { %v449_v28 = vrot.slane %v447_v20, 1  ;;  %v5411_v29 = vrot.slane %v463_v21, 1  ;;  %v455_v34 = vshll.u32 %v5401_v23, 16  ;;  %v475_v37 = vshrl.u32 %v5393_v17, 16 }
  0x1f   : > { %v445_v31 = vor.u32 %v444_v24, %v440_v15  ;;  %v473_v32 = vrot.slane %v471_v25, 1  ;;  %v479_v41 = vshll.u32 %v5407_v27, 16  ;;  %v5429_v42 = vcombine.low %v412_v12, %v413_v19 }
  0x20   : > { %v469_v35 = vor.u32 %v467_v22, %v5411_v29  ;;  %v5433_v44 = vcombine.low %v413_v19, %v414_v40  ;;  %v453_v45 = vor.u32 %v451_v33, %v449_v28  ;;  %v457_v46 = vrot.slane %v455_v34, 1 }
  0x21   : > { %v450_v38 = vsel %vm438_vm2, %v445_v31, %v449_v28  ;;  %v477_v47 = vor.u32 %v475_v37, %v473_v32  ;;  %v481_v48 = vrot.slane %v479_v41, 1  ;;  %v459_v51 = vshrl.u32 %v5401_v23, 16 }
  0x22   : > { %4553 = vmatmul.mubr.msk.bf16.vlgmr.msra.gmra.mrb[0].mxu0 %vm483_vm3, %v450_v38  ;;  %v474_v43 = vsel %vm438_vm2, %v469_v35, %v473_v32  ;;  %v458_v50 = vsel %vm438_vm2, %v453_v45, %v457_v46  ;;  %v5454_v53 = vcombine.low %v408_v18, %v409_v8  ;;  %v802_v60 = vrot.slane %v5457_v55, 1 }
  0x23   : > { %4565 = vmatmul.mubr.msk.bf16.vlgmr.msra.gmra.mrb[0].mxu1 %vm483_vm3, %v474_v43  ;;  %4595 = vmatpush3.bf16.msra.mxu0 %v698_v36  ;;  %v482_v54 = vsel %vm438_vm2, %v477_v47, %v481_v48  ;;  %v5467_v61 = vrot.slane %v447_v20, 3  ;;  %v461_v62 = vor.u32 %v459_v51, %v457_v46  ;;  %v804_v0 = vrot.slane %v5429_v42, 1 }
  0x24   : > { %4573 = vmatpush3.bf16.msra.mxu1 %v587_v39  ;;  %4556 = vmatprep.mubr.msk.bf16.mxu0 %vm5277_vm1, %v5276_v1  ;;  %v930_v57 = vshrl.u32 %v5454_v53, 16  ;;  %v800_v59 = vrot.slane %v5454_v53, 1  ;;  %v933_v63 = vshll.u32 %v5454_v53, 16  ;;  %v5474_v2 = vrot.slane %v451_v33, 2 }
  0x25   : > { %4568 = vmatprep.mubr.msk.bf16.mxu1 %vm5277_vm1, %v5276_v1  ;;  %4616 = vmatprep.subr.bf16.mxu1 %v5276_v1  ;;  %v939_v9 = vshrl.u32 %v5457_v55, 16  ;;  %v5485_v12 = vsel %vm670_vm4, %v802_v60, %v804_v0  ;;  %v942_v15 = vshll.u32 %v5457_v55, 16  ;;  %v4161_v16 = vcombine.low %v414_v40, %v414_v40 }
  0x26   : > { %4638 = vmatprep.subr.bf16.mxu0 %v5276_v1  ;;  %v5481_v3 = vsel %vm670_vm4, %v800_v59, %v802_v60  ;;  %v932_v8 = vrot.slane %v930_v57, 1  ;;  %v935_v11 = vrot.slane %v933_v63, 2  ;;  %v671_v18 = vrot.slane %v5376_v7, 1 }
  0x27   : > { %v941_v19 = vrot.slane %v939_v9, 1  ;;  %v948_v20 = vshrl.u32 %v5429_v42, 16  ;;  %v951_v24 = vshll.u32 %v5429_v42, 16  ;;  %v466_v26 = vsel %vm438_vm2, %v461_v62, %v5411_v29 }
  0x28   : > { %v944_v28 = vrot.slane %v942_v15, 2  ;;  %v806_v30 = vrot.slane %v4161_v16, 1  ;;  %v957_v31 = vshrl.u32 %v4161_v16, 16  ;;  %v672_v32 = vrot.slane %v5382_v10, 1 }
  0x29   : > { %v950_v33 = vrot.slane %v948_v20, 1  ;;  %v953_v35 = vrot.slane %v951_v24, 2  ;;  %v960_v36 = vshll.u32 %v4161_v16, 16  ;;  %v5494_v38 = vor.u32 %v935_v11, %v932_v8 }
  0x2a   : > { %4557 = vmatmul.mubr.msk.bf16.gmra.mrb[4].mxu0 %vm483_vm3, %v458_v50  ;;  %v945_v39 = vor.u32 %v944_v28, %v941_v19  ;;  %v5497_v40 = vsel %vm670_vm4, %v804_v0, %v806_v30  ;;  %v959_v41 = vrot.slane %v957_v31, 1  ;;  %v1306_v43 = vrot.slane %v455_v34, 3  ;;  %v5515_v50 = vld [vmem:[%s5363_s9 + $0x30] ss:$0 sps:$4 sm:$0xff]   ;;  %s5149_s9 = smul.u32 13, %s6923_s8 }
  0x2b   : > { %4569 = vmatmul.mubr.msk.bf16.gmra.mrb[4].mxu1 %vm483_vm3, %v482_v54  ;;  %4560 = vmatprep.mubr.msk.bf16.mxu0 %vm5277_vm1, %v5276_v1  ;;  %v954_v29 = vor.u32 %v953_v35, %v950_v33  ;;  %v962_v45 = vrot.slane %v960_v36, 2  ;;  %v1072_v46 = vrot.slane %v5454_v53, 2  ;;  %v1187_v48 = vrot.slane %v5382_v10, 2  ;;  %v4205_v53 = vld [vmem:[%s6905_s3 + $0x24] sm:$0xf] }
  0x2c   : > { %4574 = vmatprep.mubr.msk.bf16.mxu1 %vm5277_vm1, %v5276_v1  ;;  %v5509_v47 = vsel %vm911_vm5, %v5494_v38, %v945_v39  ;;  %v1188_v34 = vrot.slane %v5401_v23, 2  ;;  %v1074_v49 = vrot.slane %v5457_v55, 2  ;;  %v1305_v52 = vrot.slane %v459_v51, 2  ;;  %s385_s10 = sadd.s32 %s5149_s9, %s5356_s28  ;;  %s5150_s9 = smul.u32 10, %s6925_s18 }
  0x2d   : > { %v963_v54 = vor.u32 %v962_v45, %v959_v41  ;;  %v1190_v57 = vrot.slane %v5386_v13, 2  ;;  %v673_v60 = vsel %vm670_vm4, %v671_v18, %v672_v32  ;;  %v1192_v0 = vrot.slane %v5393_v17, 2  ;;  %s4131_s13 = sshll.u32 %s385_s10, 2 }
  0x2e   : > { %v5528_v55 = vsel %vm1068_vm6, %v1187_v48, %v1188_v34  ;;  %v5533_v51 = vsel %vm1068_vm6, %v1072_v46, %v1074_v49  ;;  %v1078_v8 = vrot.slane %v4161_v16, 2  ;;  %v1194_v11 = vrot.slane %v5433_v44, 2  ;;  %s5982_s15 = scalar_lea.vmem %s6904_s2, %s4131_s13 }
  0x2f   : > { %v5537_v62 = vsel %vm911_vm5, %v954_v29, %v963_v54  ;;  %v5540_v63 = vsel %vm1068_vm6, %v1188_v34, %v1190_v57  ;;  %v1196_v15 = vrot.slane %v5515_v50, 2  ;;  %v5549_v18 = vsel %vm1068_vm6, %v1190_v57, %v1192_v0 }
  0x30   : > { %v1304_v19 = vor.u32 %v5467_v61, %v5474_v2  ;;  %v1307_v20 = vor.u32 %v1306_v43, %v1305_v52  ;;  %v5557_v16 = vsel %vm1068_vm6, %v1192_v0, %v1194_v11  ;;  %v1310_v30 = vrot.slane %v463_v21, 3 }
  0x31   : > { %v5560_v24 = vsel %vm1068_vm6, %v1194_v11, %v1196_v15  ;;  %v1439_v61 = vrot.slane %v5382_v10, 3  ;;  %v674_v2 = vrot.slane %v5401_v23, 1  ;;  %v1313_v31 = vrot.slane %v475_v37, 2 }
  0x32   : > { %4561 = vmatmul.mubr.msk.bf16.gmra.mrb[8].mxu0 %vm483_vm3, %v466_v26  ;;  %v1309_v26 = vrot.slane %v467_v22, 2  ;;  %v5566_v28 = vsel %vm1301_vm7, %v1304_v19, %v1307_v20  ;;  %v1440_v22 = vrot.slane %v5401_v23, 3  ;;  %v1314_v33 = vrot.slane %v471_v25, 3 }
  0x33   : > { %4575 = vmatmul.mubr.msk.bf16.vlgmr.msra.gmra.mrb[8].mxu1 %vm483_vm3, %v5376_v7  ;;  %4596 = vmatprep.mubr.msk.bf16.mxu0 %vm5277_vm1, %v5276_v1  ;;  %v5520_v7 = vsel %vm911_vm5, %v945_v39, %v954_v29  ;;  %v1442_v35 = vrot.slane %v5386_v13, 3  ;;  %v1321_v36 = vshll.u32 %v5433_v44, 16  ;;  %v675_v45 = vsel %vm670_vm4, %v672_v32, %v674_v2 }
  0x34   : > { %4617 = vmatpush3.bf16.msra.mxu1 %v824_v56  ;;  %4578 = vmatprep.mubr.msk.bf16.mxu1 %vm5277_vm1, %v5276_v1  ;;  %v1076_v56 = vrot.slane %v5429_v42, 2  ;;  %v1311_v21 = vor.u32 %v1310_v30, %v1309_v26  ;;  %v5589_v37 = vsel %vm1438_vm8, %v1439_v61, %v1440_v22  ;;  %v1315_v39 = vor.u32 %v1314_v33, %v1313_v31 }
  0x35   : > { %4660 = vmatprep.subr.bf16.mxu1 %v5276_v1  ;;  %v5595_v41 = vsel %vm1438_vm8, %v1440_v22, %v1442_v35  ;;  %v1323_v29 = vrot.slane %v1321_v36, 3  ;;  %v1327_v32 = vshrl.u32 %v5515_v50, 16  ;;  %v1330_v57 = vshll.u32 %v5515_v50, 16 }
  0x36   : > { %v5544_v9 = vsel %vm1068_vm6, %v1074_v49, %v1076_v56  ;;  %v5552_v42 = vsel %vm1068_vm6, %v1076_v56, %v1078_v8  ;;  %v5592_v25 = vsel %vm1301_vm7, %v1307_v20, %v1311_v21  ;;  %v5601_v48 = vsel %vm1301_vm7, %v1311_v21, %v1315_v39 }
  0x37   : > { %v1444_v49 = vrot.slane %v5393_v17, 3  ;;  %v1332_v56 = vrot.slane %v1330_v57, 3  ;;  %v1446_v8 = vrot.slane %v5433_v44, 3  ;;  %v678_v19 = vrot.slane %v5393_v17, 1 }
  0x38   : > { %v5652_v30 = vcombine.low %v5373_v6, %v5389_v14 }
  0x39   : > { %v5609_v54 = vsel %vm1438_vm8, %v1442_v35, %v1444_v49  ;;  %v5628_v15 = vsel %vm1438_vm8, %v1444_v49, %v1446_v8 }
  0x3a   : > { %4597 = vmatmul.mubr.msk.bf16.vlgmr.msra.gmra.mrb[12].mxu0 %vm483_vm3, %v673_v60  ;;  %v1329_v60 = vrot.slane %v1327_v32, 2  ;;  %v921_v22 = vshrl.u32 %v5652_v30, 16  ;;  %v798_v6 = vrot.slane %v5652_v30, 1 }
  0x3b   : > { %4579 = vmatmul.mubr.msk.bf16.gmra.mrb[12].mxu1 %vm483_vm3, %v5382_v10  ;;  %4639 = vmatpush3.bf16.msra.mxu0 %v5463_v58  ;;  %v1318_v58 = vshrl.u32 %v5433_v44, 16  ;;  %v676_v10 = vrot.slane %v5386_v13, 1  ;;  %v1448_v44 = vrot.slane %v5515_v50, 3  ;;  %v680_v50 = vrot.slane %v5407_v27, 1 }
  0x3c   : > { %4582 = vmatprep.mubr.msk.bf16.mxu1 %vm5277_vm1, %v5276_v1  ;;  %4600 = vmatprep.mubr.msk.bf16.mxu0 %vm5277_vm1, %v5276_v1  ;;  %v923_v33 = vrot.slane %v921_v22, 1 }
  0x3d   : > { %4682 = vmatprep.subr.bf16.mxu0 %v5276_v1  ;;  %v1320_v43 = vrot.slane %v1318_v58, 2  ;;  %v677_v0 = vsel %vm670_vm4, %v674_v2, %v676_v10  ;;  %v5640_v20 = vsel %vm1438_vm8, %v1446_v8, %v1448_v44  ;;  %v679_v26 = vsel %vm670_vm4, %v676_v10, %v678_v19  ;;  %v4218_v8 = vld [vmem:[%s6905_s3 + $0x2c] sm:$0xf] }
  0x3e   : > { %v681_v14 = vsel %vm670_vm4, %v678_v19, %v680_v50 }
  0x3f   : > { %v1324_v34 = vor.u32 %v1323_v29, %v1320_v43  ;;  %v4182_v43 = vld [vmem:[%s6905_s3 + $0x18] sm:$0xf] }
  0x41   : > { %v5606_v52 = vsel %vm1301_vm7, %v1315_v39, %v1324_v34 }
  0x42   : > { %4601 = vmatmul.mubr.msk.bf16.gmra.mrb[16].mxu0 %vm483_vm3, %v675_v45  ;;  %v801_v45 = vsel %vm670_vm4, %v798_v6, %v800_v59 }
  0x43   : > { %4583 = vmatmul.mubr.msk.bf16.gmra.mrb[16].mxu1 %vm483_vm3, %v5401_v23  ;;  %4604 = vmatprep.mubr.msk.bf16.mxu0 %vm5277_vm1, %v5276_v1  ;;  %v1333_v23 = vor.u32 %v1332_v56, %v1329_v60 }
  0x44   : > { %4586 = vmatprep.mubr.msk.bf16.mxu1 %vm5277_vm1, %v5276_v1 }
  0x45   : > { %v5625_v11 = vsel %vm1301_vm7, %v1324_v34, %v1333_v23  ;;  %v1214_v34 = vsel %vm499_vm0, %v4182_v43, 0 }
  0x4a   : > { %4605 = vmatmul.mubr.msk.bf16.gmra.mrb[20].mxu0 %vm483_vm3, %v677_v0 }
  0x4b   : > { %4587 = vmatmul.mubr.msk.bf16.gmra.mrb[20].mxu1 %vm483_vm3, %v5386_v13  ;;  %4608 = vmatprep.mubr.msk.bf16.mxu0 %vm5277_vm1, %v5276_v1  ;;  %v4156_v13 = vcombine.low %v5367_v4, %v5370_v5  ;;  %v924_v4 = vshll.u32 %v5652_v30, 16 }
  0x4c   : > { %4590 = vmatprep.mubr.msk.bf16.mxu1 %vm5277_vm1, %v5276_v1 }
  0x4d   : > { %v913_v61 = vshrl.u32 %v4156_v13, 16  ;;  %v916_v2 = vshll.u32 %v4156_v13, 16  ;;  %v797_v5 = vrot.slane %v4156_v13, 1  ;;  %v926_v21 = vrot.slane %v924_v4, 2  ;;  %v5889_v4 = vld [vmem:[%s5646_s7 + $0x18] sm:$0xf] }
  0x4f   : > { %v915_v27 = vrot.slane %v913_v61, 1  ;;  %v918_v31 = vrot.slane %v916_v2, 2  ;;  %v799_v35 = vsel %vm670_vm4, %v797_v5, %v798_v6  ;;  %v927_v39 = vor.u32 %v926_v21, %v923_v33  ;;  %v5892_v5 = vld [vmem:[%s5646_s7 + $0x1c] sm:$0xf]  ;;  %v5909_v33 = vld [vmem:[%s5646_s7 + $0x20] sm:$0xf] }
  0x50   : > { %v5912_v21 = vld [vmem:[%s5646_s7 + $0x24] sm:$0xf] }
  0x51   : > { %v919_v36 = vor.u32 %v918_v31, %v915_v27  ;;  %v937_v59 = vsel %vm911_vm5, %v927_v39, %v5494_v38  ;;  %v5711_v38 = vld [vmem:[%s5646_s7 + $0x28] sm:$0xf] }
  0x52   : > { %4609 = vmatmul.mubr.msk.bf16.gmra.mrb[24].mxu0 %vm483_vm3, %v679_v26 }
  0x53   : > { %4591 = vmatmul.mubr.msk.bf16.gmra.mrb[24].mxu1 %vm483_vm3, %v5393_v17  ;;  %4612 = vmatprep.mubr.msk.bf16.mxu0 %vm5277_vm1, %v5276_v1  ;;  %v4174_v17 = vld [vmem:[%s6905_s3 + $0x14] sm:$0xf]  ;;  %v928_v29 = vsel %vm911_vm5, %v919_v36, %v927_v39  ;;  %v5923_v36 = vcombine.low %v5909_v33, %v5912_v21 }
  0x54   : > { %4618 = vmatprep.mubr.msk.bf16.mxu1 %vm5277_vm1, %v5276_v1  ;;  %v1096_v58 = vsel %vm499_vm0, %v4174_v17, 0  ;;  %v5899_v17 = vcombine.low %v5889_v4, %v5892_v5 }
  0x56   : > { %v1708_v31 = vshll.u32 %v5899_v17, 16  ;;  %v1712_v43 = vshrl.u32 %v5899_v17, 16 }
  0x5a   : > { %4613 = vmatmul.mubr.msk.bf16.gmra.mrb[28].mxu0 %vm483_vm3, %v681_v14 }
  0x5b   : > { %4619 = vmatmul.mubr.msk.bf16.vlgmr.msra.gmra.mrb[28].mxu1 %vm483_vm3, %v799_v35  ;;  %4640 = vmatprep.mubr.msk.bf16.mxu0 %vm5277_vm1, %v5276_v1 }
  0x5c   : > { %4661 = vmatpush3.bf16.msra.mxu1 %v1096_v58  ;;  %4622 = vmatprep.mubr.msk.bf16.mxu1 %vm5277_vm1, %v5276_v1  ;;  %v1710_v58 = vrot.slane %v1708_v31, 1 }
  0x5d   : > { %4704 = vmatprep.subr.bf16.mxu1 %v5276_v1 }
  0x62   : > { %4641 = vmatmul.mubr.msk.bf16.vlgmr.msra.gmra.mrb[32].mxu0 %vm483_vm3, %v928_v29  ;;  %v1715_v29 = vshll.u32 %v5923_v36, 16 }
  0x63   : > { %4623 = vmatmul.mubr.msk.bf16.gmra.mrb[32].mxu1 %vm483_vm3, %v801_v45  ;;  %4683 = vmatpush3.bf16.msra.mxu0 %v1214_v34  ;;  %v1714_v45 = vor.u32 %v1712_v43, %v1710_v58 }
  0x64   : > { %4626 = vmatprep.mubr.msk.bf16.mxu1 %vm5277_vm1, %v5276_v1  ;;  %4644 = vmatprep.mubr.msk.bf16.mxu0 %vm5277_vm1, %v5276_v1  ;;  %v1717_v34 = vrot.slane %v1715_v29, 1 }
  0x65   : > { %4726 = vmatprep.subr.bf16.mxu0 %v5276_v1 }
  0x6a   : > { %4645 = vmatmul.mubr.msk.bf16.gmra.mrb[36].mxu0 %vm483_vm3, %v937_v59  ;;  %v5941_v59 = vcombine.low %v5711_v38, %v5711_v38 }
  0x6b   : > { %4627 = vmatmul.mubr.msk.bf16.gmra.mrb[36].mxu1 %vm483_vm3, %v5481_v3  ;;  %4648 = vmatprep.mubr.msk.bf16.mxu0 %vm5277_vm1, %v5276_v1  ;;  %v5714_v3 = vld [vmem:[%s5646_s7 + $0x2c] sm:$0xf] }
  0x6c   : > { %4630 = vmatprep.mubr.msk.bf16.mxu1 %vm5277_vm1, %v5276_v1  ;;  %v5720_v49 = vcombine.low %v5711_v38, %v5714_v3 }
  0x72   : > { %4649 = vmatmul.mubr.msk.bf16.gmra.mrb[40].mxu0 %vm483_vm3, %v5509_v47  ;;  %v1070_v47 = vrot.slane %v5652_v30, 2 }
  0x73   : > { %4631 = vmatmul.mubr.msk.bf16.gmra.mrb[40].mxu1 %vm483_vm3, %v5485_v12  ;;  %4652 = vmatprep.mubr.msk.bf16.mxu0 %vm5277_vm1, %v5276_v1  ;;  %v1069_v12 = vrot.slane %v4156_v13, 2  ;;  %v1863_v13 = vsel %vm499_vm0, %v4218_v8, 0 }
  0x74   : > { %4634 = vmatprep.mubr.msk.bf16.mxu1 %vm5277_vm1, %v5276_v1  ;;  %v1073_v57 = vsel %vm1068_vm6, %v1070_v47, %v1072_v46  ;;  %v1600_v46 = vsel %vm499_vm0, %v4205_v53, 0 }
  0x75   : > { %v1071_v10 = vsel %vm1068_vm6, %v1069_v12, %v1070_v47  ;;  %v1718_v12 = vsel %vm438_vm2, %v1714_v45, %v1717_v34  ;;  %v1719_v47 = vshrl.u32 %v5923_v36, 16 }
  0x7a   : > { %4653 = vmatmul.mubr.msk.bf16.gmra.mrb[44].mxu0 %vm483_vm3, %v5520_v7  ;;  %v4188_v7 = vld [vmem:[%s6905_s3 + $0x1c] sm:$0xf] }
  0x7b   : > { %4635 = vmatmul.mubr.msk.bf16.gmra.mrb[44].mxu1 %vm483_vm3, %v5497_v40  ;;  %4656 = vmatprep.mubr.msk.bf16.mxu0 %vm5277_vm1, %v5276_v1  ;;  %v1351_v32 = vsel %vm499_vm0, %v4188_v7, 0  ;;  %v4194_v40 = vld [vmem:[%s6905_s3 + $0x20] sm:$0xf]  ;;  %v1723_v7 = vshll.u32 %v5941_v59, 16 }
  0x7c   : > { %4662 = vmatprep.mubr.msk.bf16.mxu1 %vm5277_vm1, %v5276_v1 }
  0x82   : > { %4657 = vmatmul.mubr.msk.bf16.gmra.mrb[48].mxu0 %vm483_vm3, %v5537_v62  ;;  %v1466_v62 = vsel %vm499_vm0, %v4194_v40, 0 }
  0x83   : > { %4663 = vmatmul.mubr.msk.bf16.vlgmr.msra.gmra.mrb[48].mxu1 %vm483_vm3, %v1071_v10  ;;  %4684 = vmatprep.mubr.msk.bf16.mxu0 %vm5277_vm1, %v5276_v1  ;;  %v1721_v10 = vor.u32 %v1719_v47, %v1717_v34  ;;  %v6020_v34 = vcombine.low %v5892_v5, %v5909_v33  ;;  %v1843_v5 = vrot.slane %v5923_v36, 1 }
  0x84   : > { %4705 = vmatpush3.bf16.msra.mxu1 %v1351_v32  ;;  %4666 = vmatprep.mubr.msk.bf16.mxu1 %vm5277_vm1, %v5276_v1  ;;  %v1725_v32 = vrot.slane %v1723_v7, 1 }
  0x85   : > { %4748 = vmatprep.subr.bf16.mxu1 %v5276_v1 }
  0x8a   : > { %4685 = vmatmul.mubr.msk.bf16.vlgmr.msra.gmra.mrb[52].mxu0 %vm483_vm3, %v5528_v55  ;;  %v4212_v55 = vld [vmem:[%s6905_s3 + $0x28] sm:$0xf] }
  0x8b   : > { %4667 = vmatmul.mubr.msk.bf16.gmra.mrb[52].mxu1 %vm483_vm3, %v1073_v57  ;;  %4727 = vmatpush3.bf16.msra.mxu0 %v1466_v62 }
  0x8c   : > { %4670 = vmatprep.mubr.msk.bf16.mxu1 %vm5277_vm1, %v5276_v1  ;;  %4688 = vmatprep.mubr.msk.bf16.mxu0 %vm5277_vm1, %v5276_v1 }
  0x8d   : > { %4770 = vmatprep.subr.bf16.mxu0 %v5276_v1 }
  0x92   : > { %4689 = vmatmul.mubr.msk.bf16.gmra.mrb[56].mxu0 %vm483_vm3, %v5540_v63  ;;  %v5822_v63 = vld [vmem:[%s5646_s7 + $0x10] sm:$0xf] }
  0x93   : > { %4671 = vmatmul.mubr.msk.bf16.gmra.mrb[56].mxu1 %vm483_vm3, %v5533_v51  ;;  %4692 = vmatprep.mubr.msk.bf16.mxu0 %vm5277_vm1, %v5276_v1  ;;  %v1743_v51 = vsel %vm499_vm0, %v4212_v55, 0  ;;  %v4236_v55 = vld [vmem:[%s6905_s3 + $0x34] sm:$0xf] }
  0x94   : > { %4674 = vmatprep.mubr.msk.bf16.mxu1 %vm5277_vm1, %v5276_v1 }
  0x9a   : > { %4693 = vmatmul.mubr.msk.bf16.gmra.mrb[60].mxu0 %vm483_vm3, %v5549_v18  ;;  %v1551_v18 = vld [vmem:[%s5646_s7] sm:$0xf] }
  0x9b   : > { %4675 = vmatmul.mubr.msk.bf16.gmra.mrb[60].mxu1 %vm483_vm3, %v5544_v9  ;;  %4696 = vmatprep.mubr.msk.bf16.mxu0 %vm5277_vm1, %v5276_v1  ;;  %v5825_v9 = vld [vmem:[%s5646_s7 + $0x14] sm:$0xf] }
  0x9c   : > { %4678 = vmatprep.mubr.msk.bf16.mxu1 %vm5277_vm1, %v5276_v1 }
  0xa2   : > { %4697 = vmatmul.mubr.msk.bf16.gmra.mrb[64].mxu0 %vm483_vm3, %v5557_v16  ;;  %v5834_v16 = vld [vmem:[%s5646_s7 + $0x8] sm:$0xf] }
  0xa3   : > { %4679 = vmatmul.mubr.msk.bf16.gmra.mrb[64].mxu1 %vm483_vm3, %v5552_v42  ;;  %4700 = vmatprep.mubr.msk.bf16.mxu0 %vm5277_vm1, %v5276_v1  ;;  %v5831_v42 = vld [vmem:[%s5646_s7 + $0x4] sm:$0xf] }
  0xa4   : > { %4706 = vmatprep.mubr.msk.bf16.mxu1 %vm5277_vm1, %v5276_v1 }
  0xaa   : > { %4701 = vmatmul.mubr.msk.bf16.gmra.mrb[68].mxu0 %vm483_vm3, %v5560_v24  ;;  %v5837_v24 = vld [vmem:[%s5646_s7 + $0xc] sm:$0xf] }
  0xab   : > { %4707 = vmatmul.mubr.msk.bf16.vlgmr.msra.gmra.mrb[68].mxu1 %vm483_vm3, %v5566_v28  ;;  %4728 = vmatprep.mubr.msk.bf16.mxu0 %vm5277_vm1, %v5276_v1  ;;  %v5841_v28 = vcombine.low %v5822_v63, %v5825_v9 }
  0xac   : > { %4749 = vmatpush3.bf16.msra.mxu1 %v1600_v46  ;;  %4710 = vmatprep.mubr.msk.bf16.mxu1 %vm5277_vm1, %v5276_v1 }
  0xad   : > { %4792 = vmatprep.subr.bf16.mxu1 %v5276_v1 }
  0xb2   : > { %4729 = vmatmul.mubr.msk.bf16.vlgmr.msra.gmra.mrb[72].mxu0 %vm483_vm3, %v5589_v37  ;;  %v5844_v37 = vcombine.low %v1551_v18, %v5831_v42  ;;  %v5972_v18 = vcombine.low %v5837_v24, %v5822_v63 }
  0xb3   : > { %4711 = vmatmul.mubr.msk.bf16.gmra.mrb[72].mxu1 %vm483_vm3, %v5592_v25  ;;  %4771 = vmatpush3.bf16.msra.mxu0 %v1743_v51  ;;  %v5848_v25 = vcombine.low %v5834_v16, %v5837_v24  ;;  %v5968_v51 = vcombine.low %v5831_v42, %v5834_v16  ;;  %v1839_v16 = vrot.slane %v5841_v28, 1 }
  0xb4   : > { %4714 = vmatprep.mubr.msk.bf16.mxu1 %vm5277_vm1, %v5276_v1  ;;  %4732 = vmatprep.mubr.msk.bf16.mxu0 %vm5277_vm1, %v5276_v1  ;;  %v1836_v40 = vrot.slane %v5844_v37, 1  ;;  %v1963_v42 = vrot.slane %v5972_v18, 1 }
  0xb5   : > { %4814 = vmatprep.subr.bf16.mxu0 %v5276_v1  ;;  %v1694_v60 = vshll.u32 %v5848_v25, 16  ;;  %v1837_v57 = vrot.slane %v5848_v25, 1  ;;  %v1962_v63 = vrot.slane %v5968_v51, 1 }
  0xb7   : > { %v1696_v61 = vrot.slane %v1694_v60, 1 }
  0xba   : > { %4733 = vmatmul.mubr.msk.bf16.gmra.mrb[76].mxu0 %vm483_vm3, %v5595_v41  ;;  %v1698_v41 = vshrl.u32 %v5848_v25, 16 }
  0xbb   : > { %4715 = vmatmul.mubr.msk.bf16.gmra.mrb[76].mxu1 %vm483_vm3, %v5601_v48  ;;  %4736 = vmatprep.mubr.msk.bf16.mxu0 %vm5277_vm1, %v5276_v1  ;;  %v1701_v48 = vshll.u32 %v5841_v28, 16 }
  0xbc   : > { %4718 = vmatprep.mubr.msk.bf16.mxu1 %vm5277_vm1, %v5276_v1  ;;  %v2464_v56 = vrot.slane %v1698_v41, 2  ;;  %v1700_v6 = vor.u32 %v1698_v41, %v1696_v61 }
  0xbd   : > { %v2468_v0 = vrot.slane %v1701_v48, 3  ;;  %v1703_v14 = vrot.slane %v1701_v48, 1  ;;  %v1726_v48 = vsel %vm438_vm2, %v1721_v10, %v1725_v32 }
  0xbf   : > { %v1704_v27 = vsel %vm438_vm2, %v1700_v6, %v1703_v14 }
  0xc2   : > { %4737 = vmatmul.mubr.msk.bf16.gmra.mrb[80].mxu0 %vm483_vm3, %v5609_v54  ;;  %v1690_v54 = vshll.u32 %v5844_v37, 16 }
  0xc3   : > { %4719 = vmatmul.mubr.msk.bf16.gmra.mrb[80].mxu1 %vm483_vm3, %v5606_v52  ;;  %4740 = vmatprep.mubr.msk.bf16.mxu0 %vm5277_vm1, %v5276_v1  ;;  %v1705_v52 = vshrl.u32 %v5841_v28, 16 }
  0xc4   : > { %4722 = vmatprep.mubr.msk.bf16.mxu1 %vm5277_vm1, %v5276_v1  ;;  %v1692_v19 = vrot.slane %v1690_v54, 1 }
  0xc5   : > { %v2467_v23 = vrot.slane %v1705_v52, 2  ;;  %v1707_v35 = vor.u32 %v1705_v52, %v1703_v14 }
  0xc7   : > { %v5867_v26 = vor.u32 %v2468_v0, %v2467_v23  ;;  %v1711_v39 = vsel %vm438_vm2, %v1707_v35, %v1710_v58  ;;  %v2145_v0 = vsel %vm499_vm0, %v4236_v55, 0  ;;  %v4242_v23 = vld [vmem:[%s6905_s3 + $0x38] sm:$0xf] }
  0xca   : > { %4741 = vmatmul.mubr.msk.bf16.gmra.mrb[84].mxu0 %vm483_vm3, %v5628_v15  ;;  %v2465_v15 = vrot.slane %v1694_v60, 3  ;;  %v1838_v60 = vsel %vm670_vm4, %v1836_v40, %v1837_v57 }
  0xcb   : > { %4723 = vmatmul.mubr.msk.bf16.gmra.mrb[84].mxu1 %vm483_vm3, %v5625_v11  ;;  %4744 = vmatprep.mubr.msk.bf16.mxu0 %vm5277_vm1, %v5276_v1  ;;  %v1688_v11 = vshrl.u32 %v5844_v37, 16 }
  0xcc   : > { %4750 = vmatprep.mubr.msk.bf16.mxu1 %vm5277_vm1, %v5276_v1  ;;  %v2466_v44 = vor.u32 %v2465_v15, %v2464_v56 }
  0xcd   : > { %v1693_v50 = vor.u32 %v1692_v19, %v1688_v11 }
  0xce   : > { %v5874_v30 = vsel %vm1301_vm7, %v2466_v44, %v5867_v26  ;;  %v1964_v44 = vsel %vm670_vm4, %v1962_v63, %v1963_v42 }
  0xcf   : > { %v1697_v2 = vsel %vm438_vm2, %v1693_v50, %v1696_v61 }
  0xd2   : > { %4745 = vmatmul.mubr.msk.bf16.gmra.mrb[88].mxu0 %vm483_vm3, %v5640_v20  ;;  %v4230_v20 = vld [vmem:[%s6905_s3 + $0x30] sm:$0xf] }
  0xd3   : > { %4751 = vmatmul.mubr.msk.bf16.vlgmr.msra.gmra.mrb[88].mxu1 %vm483_vm3, %v5844_v37  ;;  %4772 = vmatprep.mubr.msk.bf16.mxu0 %vm5277_vm1, %v5276_v1  ;;  %v1989_v22 = vsel %vm499_vm0, %v4230_v20, 0  ;;  %v1840_v20 = vsel %vm670_vm4, %v1837_v57, %v1839_v16  ;;  %v1967_v57 = vrot.slane %v6020_v34, 1 }
  0xd4   : > { %4793 = vmatpush3.bf16.msra.mxu1 %v1863_v13  ;;  %4754 = vmatprep.mubr.msk.bf16.mxu1 %vm5277_vm1, %v5276_v1  ;;  %v6002_v13 = vcombine.low %v5825_v9, %v5889_v4  ;;  %v1841_v9 = vrot.slane %v5899_v17, 1 }
  0xd5   : > { %4836 = vmatprep.subr.bf16.mxu1 %v5276_v1 }
  0xd6   : > { %v1965_v6 = vrot.slane %v6002_v13, 1  ;;  %v1842_v10 = vsel %vm670_vm4, %v1839_v16, %v1841_v9  ;;  %v1844_v63 = vsel %vm670_vm4, %v1841_v9, %v1843_v5 }
  0xd8   : > { %v1966_v45 = vsel %vm670_vm4, %v1963_v42, %v1965_v6 }
  0xda   : > { %4773 = vmatmul.mubr.msk.bf16.vlgmr.msra.gmra.mrb[92].mxu0 %vm483_vm3, %v1697_v2  ;;  %v2259_v2 = vsel %vm499_vm0, %v4242_v23, 0 }
  0xdb   : > { %4755 = vmatmul.mubr.msk.bf16.gmra.mrb[92].mxu1 %vm483_vm3, %v5848_v25  ;;  %4815 = vmatpush3.bf16.msra.mxu0 %v1989_v22 }
  0xdc   : > { %4758 = vmatprep.mubr.msk.bf16.mxu1 %vm5277_vm1, %v5276_v1  ;;  %4776 = vmatprep.mubr.msk.bf16.mxu0 %vm5277_vm1, %v5276_v1 }
  0xdd   : > { %4858 = vmatprep.subr.bf16.mxu0 %v5276_v1 }
  0xe2   : > { %4777 = vmatmul.mubr.msk.bf16.gmra.mrb[96].mxu0 %vm483_vm3, %v1704_v27 }
  0xe3   : > { %4759 = vmatmul.mubr.msk.bf16.gmra.mrb[96].mxu1 %vm483_vm3, %v5841_v28  ;;  %4780 = vmatprep.mubr.msk.bf16.mxu0 %vm5277_vm1, %v5276_v1 }
  0xe4   : > { %4762 = vmatprep.mubr.msk.bf16.mxu1 %vm5277_vm1, %v5276_v1 }
  0xea   : > { %4781 = vmatmul.mubr.msk.bf16.gmra.mrb[100].mxu0 %vm483_vm3, %v1711_v39 }
  0xeb   : > { %4763 = vmatmul.mubr.msk.bf16.gmra.mrb[100].mxu1 %vm483_vm3, %v5899_v17  ;;  %4784 = vmatprep.mubr.msk.bf16.mxu0 %vm5277_vm1, %v5276_v1 }
  0xec   : > { %4766 = vmatprep.mubr.msk.bf16.mxu1 %vm5277_vm1, %v5276_v1 }
  0xf2   : > { %4785 = vmatmul.mubr.msk.bf16.gmra.mrb[104].mxu0 %vm483_vm3, %v1718_v12 }
  0xf3   : > { %4767 = vmatmul.mubr.msk.bf16.gmra.mrb[104].mxu1 %vm483_vm3, %v5923_v36  ;;  %4788 = vmatprep.mubr.msk.bf16.mxu0 %vm5277_vm1, %v5276_v1 }
  0xf4   : > { %4794 = vmatprep.mubr.msk.bf16.mxu1 %vm5277_vm1, %v5276_v1 }
  0xf5   : > { %v537_v62 = vpop.f32.mrb[0].mxu0 }
  0xf6   : > { %v4554_v53 = vpop.f32.mrb[1].mxu0  ;;  %v5961_v46 = vpop.f32.mrb[0].mxu1 }
  0xf7   : > { %v540_v37 = vpop.f32.mrb[2].mxu0  ;;  %v4566_v41 = vpop.f32.mrb[1].mxu1 }
  0xf8   : > { %v4555_v52 = vpop.f32.mrb[3].mxu0  ;;  %v5975_v54 = vpop.f32.mrb[2].mxu1 }
  0xf9   : > { %v4567_v56 = vpop.f32.mrb[3].mxu1 }
  0xfa   : > { %4789 = vmatmul.mubr.msk.bf16.gmra.mrb[108].mxu0 %vm483_vm3, %v1726_v48 }
  0xfb   : > { %4795 = vmatmul.mubr.msk.bf16.vlgmr.msra.gmra.mrb[108].mxu1 %vm483_vm3, %v1838_v60  ;;  %4816 = vmatprep.mubr.msk.bf16.mxu0 %vm5277_vm1, %v5276_v1  ;;  %v1968_v60 = vsel %vm670_vm4, %v1965_v6, %v1967_v57 }
  0xfc   : > { %4837 = vmatpush3.bf16.msra.mxu1 %v2145_v0  ;;  %4798 = vmatprep.mubr.msk.bf16.mxu1 %vm5277_vm1, %v5276_v1 }
  0xfd   : > { %v545_v24 = vpop.f32.mrb[4].mxu0  ;;  %4880 = vmatprep.subr.bf16.mxu1 %v5276_v1 }
  0xfe   : > { %v4558_v8 = vpop.f32.mrb[5].mxu0  ;;  %v5997_v15 = vpop.f32.mrb[4].mxu1 }
  0xff   : > { %v548_v11 = vpop.f32.mrb[6].mxu0  ;;  %v4570_v19 = vpop.f32.mrb[5].mxu1  ;;  %v1845_v8 = vrot.slane %v5941_v59, 1 }
 0x100   : > { %v4559_v50 = vpop.f32.mrb[7].mxu0  ;;  %v6004_v61 = vpop.f32.mrb[6].mxu1  ;;  %v2088_v19 = vshll.u32 %v5972_v18, 16 }
 0x101   : > { %v4571_v22 = vpop.f32.mrb[7].mxu1 }
 0x102   : > { %4817 = vmatmul.mubr.msk.bf16.vlgmr.msra.gmra.mrb[112].mxu0 %vm483_vm3, %v1964_v44 }
 0x103   : > { %4799 = vmatmul.mubr.msk.bf16.gmra.mrb[112].mxu1 %vm483_vm3, %v1840_v20  ;;  %4859 = vmatpush3.bf16.msra.mxu0 %v2259_v2  ;;  %v1846_v2 = vsel %vm670_vm4, %v1843_v5, %v1845_v8 }
 0x104   : > { %4802 = vmatprep.mubr.msk.bf16.mxu1 %vm5277_vm1, %v5276_v1  ;;  %4820 = vmatprep.mubr.msk.bf16.mxu0 %vm5277_vm1, %v5276_v1 }
 0x105   : > { %v553_v4 = vpop.f32.mrb[8].mxu0  ;;  %4902 = vmatprep.subr.bf16.mxu0 %v5276_v1 }
 0x106   : > { %v623_v14 = vpop.f32.mrb[8].mxu1  ;;  %v4562_v27 = vpop.f32.mrb[9].mxu0 }
 0x107   : > { %v624_v35 = vadd.f32 %v623_v14, %v537_v62  ;;  %v4576_v58 = vpop.f32.mrb[9].mxu1  ;;  %v556_v39 = vpop.f32.mrb[10].mxu0  ;;  %v6059_v27 = vcombine.low %v5714_v3, %v5714_v3 }
 0x108   : > { %v626_v12 = vpop.f32.mrb[10].mxu1  ;;  %v4563_v7 = vpop.f32.mrb[11].mxu0 }
 0x109   : > { %v627_v32 = vadd.f32 %v626_v12, %v540_v37  ;;  %v4577_v40 = vpop.f32.mrb[11].mxu1  ;;  %v6035_v37 = vcombine.low %v5912_v21, %v5711_v38  ;;  %v2077_v21 = vshrl.u32 %v5968_v51, 16  ;;  %v1971_v3 = vrot.slane %v6059_v27, 1 }
 0x10a   : > { %4821 = vmatmul.mubr.msk.bf16.gmra.mrb[116].mxu0 %vm483_vm3, %v1966_v45 }
 0x10b   : > { %4803 = vmatmul.mubr.msk.bf16.gmra.mrb[116].mxu1 %vm483_vm3, %v1842_v10  ;;  %4824 = vmatprep.mubr.msk.bf16.mxu0 %vm5277_vm1, %v5276_v1  ;;  %v1969_v38 = vrot.slane %v6035_v37, 1 }
 0x10c   : > { %4806 = vmatprep.mubr.msk.bf16.mxu1 %vm5277_vm1, %v5276_v1 }
 0x10d   : > { %v734_v33 = vpop.f32.mrb[12].mxu0  ;;  %v1970_v14 = vsel %vm670_vm4, %v1967_v57, %v1969_v38  ;;  %v2097_v57 = vshll.u32 %v6002_v13, 16 }
 0x10e   : > { %v631_v62 = vpop.f32.mrb[12].mxu1  ;;  %v4598_v53 = vpop.f32.mrb[13].mxu0  ;;  %v6031_v55 = vadd.f32 %v734_v33, %v624_v35  ;;  %v2079_v35 = vrot.slane %v2077_v21, 1 }
 0x10f   : > { %v632_v41 = vadd.f32 %v631_v62, %v545_v24  ;;  %v4580_v48 = vpop.f32.mrb[13].mxu1  ;;  %v737_v52 = vpop.f32.mrb[14].mxu0  ;;  %v2080_v24 = vshll.u32 %v5968_v51, 16 }
 0x110   : > { %v634_v56 = vpop.f32.mrb[14].mxu1  ;;  %v4599_v0 = vpop.f32.mrb[15].mxu0  ;;  %v6039_v42 = vadd.f32 %v737_v52, %v627_v32  ;;  %v2090_v32 = vrot.slane %v2088_v19, 2  ;;  %v4250_v52 = vld [vmem:[%s6905_s3 + $0x3c] sm:$0xf] }
 0x111   : > { %v635_v16 = vadd.f32 %v634_v56, %v548_v11  ;;  %v4581_v23 = vpop.f32.mrb[15].mxu1  ;;  %v2085_v11 = vshrl.u32 %v5972_v18, 16  ;;  %v2082_v7 = vrot.slane %v2080_v24, 2 }
 0x112   : > { %4825 = vmatmul.mubr.msk.bf16.gmra.mrb[120].mxu0 %vm483_vm3, %v1968_v60  ;;  %v2099_v23 = vrot.slane %v2097_v57, 2 }
 0x113   : > { %4807 = vmatmul.mubr.msk.bf16.gmra.mrb[120].mxu1 %vm483_vm3, %v1844_v63  ;;  %4828 = vmatprep.mubr.msk.bf16.mxu0 %vm5277_vm1, %v5276_v1  ;;  %v2087_v10 = vrot.slane %v2085_v11, 1  ;;  %v2083_v5 = vor.u32 %v2082_v7, %v2079_v35  ;;  %v1972_v63 = vsel %vm670_vm4, %v1969_v38, %v1971_v3  ;;  %v2232_v38 = vrot.slane %v5968_v51, 2 }
 0x114   : > { %4810 = vmatprep.mubr.msk.bf16.mxu1 %vm5277_vm1, %v5276_v1 }
 0x115   : > { %v742_v44 = vpop.f32.mrb[16].mxu0  ;;  %v2091_v62 = vor.u32 %v2090_v32, %v2087_v10 }
 0x116   : > { %v639_v59 = vpop.f32.mrb[16].mxu1  ;;  %v6053_v50 = vadd.f32 %v742_v44, %v632_v41  ;;  %v4602_v20 = vpop.f32.mrb[17].mxu0 }
 0x117   : > { %v640_v22 = vadd.f32 %v639_v59, %v553_v4  ;;  %v4584_v6 = vpop.f32.mrb[17].mxu1  ;;  %v745_v9 = vpop.f32.mrb[18].mxu0  ;;  %v2094_v4 = vshrl.u32 %v6002_v13, 16  ;;  %v2092_v11 = vsel %vm911_vm5, %v2083_v5, %v2091_v62  ;;  %v2377_v59 = vsel %vm499_vm0, %v4250_v52, 0 }
 0x118   : > { %v642_v58 = vpop.f32.mrb[18].mxu1  ;;  %v6061_v45 = vadd.f32 %v745_v9, %v635_v16  ;;  %v4603_v12 = vpop.f32.mrb[19].mxu0  ;;  %v2233_v20 = vrot.slane %v5972_v18, 2  ;;  %v4256_v6 = vld [vmem:[%s6905_s3 + $0x40] sm:$0xf] }
 0x119   : > { %v643_v40 = vadd.f32 %v642_v58, %v556_v39  ;;  %v4585_v33 = vpop.f32.mrb[19].mxu1  ;;  %v2096_v16 = vrot.slane %v2094_v4, 1 }
 0x11a   : > { %4829 = vmatmul.mubr.msk.bf16.gmra.mrb[124].mxu0 %vm483_vm3, %v1970_v14  ;;  %v2234_v7 = vsel %vm1068_vm6, %v2232_v38, %v2233_v20  ;;  %v2513_v33 = vsel %vm499_vm0, %v4256_v6, 0  ;;  %v6127_v38 = vld [vmem:[%s5982_s15 + $0x20] sm:$0xf] }
 0x11b   : > { %4811 = vmatmul.mubr.msk.bf16.gmra.mrb[124].mxu1 %vm483_vm3, %v1846_v2  ;;  %4832 = vmatprep.mubr.msk.bf16.mxu0 %vm5277_vm1, %v5276_v1  ;;  %v2106_v2 = vshll.u32 %v6020_v34, 16 }
 0x11c   : > { %4838 = vmatprep.mubr.msk.bf16.mxu1 %vm5277_vm1, %v5276_v1 }
 0x11d   : > { %v750_v39 = vpop.f32.mrb[20].mxu0  ;;  %v2108_v4 = vrot.slane %v2106_v2, 2 }
 0x11e   : > { %v647_v53 = vpop.f32.mrb[20].mxu1  ;;  %v6072_v41 = vadd.f32 %v750_v39, %v640_v22  ;;  %v4606_v48 = vpop.f32.mrb[21].mxu0  ;;  %v2112_v39 = vshrl.u32 %v6035_v37, 16 }
 0x11f   : > { %v648_v60 = vadd.f32 %v647_v53, %v5961_v46  ;;  %v4588_v56 = vpop.f32.mrb[21].mxu1  ;;  %v753_v0 = vpop.f32.mrb[22].mxu0  ;;  %v2100_v46 = vor.u32 %v2099_v23, %v2096_v16  ;;  %v2115_v53 = vshll.u32 %v6035_v37, 16 }
 0x120   : > { %v650_v8 = vpop.f32.mrb[22].mxu1  ;;  %v6079_v21 = vadd.f32 %v753_v0, %v643_v40  ;;  %v4607_v24 = vpop.f32.mrb[23].mxu0 }
 0x121   : > { %v651_v19 = vadd.f32 %v650_v8, %v5975_v54  ;;  %v4589_v44 = vpop.f32.mrb[23].mxu1  ;;  %v2103_v54 = vshrl.u32 %v6020_v34, 16  ;;  %v2101_v12 = vsel %vm911_vm5, %v2091_v62, %v2100_v46 }
 0x122   : > { %4833 = vmatmul.mubr.msk.bf16.gmra.mrb[128].mxu0 %vm483_vm3, %v1972_v63 }
 0x123   : > { %4839 = vmatmul.mubr.msk.bf16.vlgmr.msra.gmra.mrb[128].mxu1 %vm483_vm3, %v2092_v11  ;;  %4860 = vmatprep.mubr.msk.bf16.mxu0 %vm5277_vm1, %v5276_v1  ;;  %v2105_v3 = vrot.slane %v2103_v54, 1  ;;  %v2114_v11 = vrot.slane %v2112_v39, 1  ;;  %v2124_v54 = vshll.u32 %v6059_v27, 16 }
 0x124   : > { %4881 = vmatpush3.bf16.msra.mxu1 %v2377_v59  ;;  %4842 = vmatprep.mubr.msk.bf16.mxu1 %vm5277_vm1, %v5276_v1 }
 0x125   : > { %v758_v22 = vpop.f32.mrb[24].mxu0  ;;  %4924 = vmatprep.subr.bf16.mxu1 %v5276_v1  ;;  %v2109_v62 = vor.u32 %v2108_v4, %v2105_v3  ;;  %v2126_v4 = vrot.slane %v2124_v54, 2 }
 0x126   : > { %v655_v9 = vpop.f32.mrb[24].mxu1  ;;  %v6098_v14 = vadd.f32 %v758_v22, %v648_v60  ;;  %v4610_v51 = vpop.f32.mrb[25].mxu0 }
 0x127   : > { %v656_v18 = vadd.f32 %v655_v9, %v5997_v15  ;;  %v4592_v35 = vpop.f32.mrb[25].mxu1  ;;  %v761_v58 = vpop.f32.mrb[26].mxu0  ;;  %v2235_v15 = vrot.slane %v6002_v13, 2  ;;  %v2110_v24 = vsel %vm911_vm5, %v2100_v46, %v2109_v62 }
 0x128   : > { %v658_v10 = vpop.f32.mrb[26].mxu1  ;;  %v6103_v32 = vadd.f32 %v761_v58, %v651_v19  ;;  %v4611_v40 = vpop.f32.mrb[27].mxu0  ;;  %v2117_v19 = vrot.slane %v2115_v53, 2 }
 0x129   : > { %v659_v57 = vadd.f32 %v658_v10, %v6004_v61  ;;  %v4593_v5 = vpop.f32.mrb[27].mxu1  ;;  %v2236_v63 = vsel %vm1068_vm6, %v2233_v20, %v2235_v15  ;;  %v2237_v20 = vrot.slane %v6020_v34, 2 }
 0x12a   : > { %4861 = vmatmul.mubr.msk.bf16.vlgmr.msra.gmra.mrb[132].mxu0 %vm483_vm3, %v2234_v7  ;;  %v2118_v46 = vor.u32 %v2117_v19, %v2114_v11 }
 0x12b   : > { %4843 = vmatmul.mubr.msk.bf16.gmra.mrb[132].mxu1 %vm483_vm3, %v2101_v12  ;;  %4903 = vmatpush3.bf16.msra.mxu0 %v2513_v33  ;;  %v2238_v58 = vsel %vm1068_vm6, %v2235_v15, %v2237_v20  ;;  %v2239_v15 = vrot.slane %v6035_v37, 2 }
 0x12c   : > { %4846 = vmatprep.mubr.msk.bf16.mxu1 %vm5277_vm1, %v5276_v1  ;;  %4864 = vmatprep.mubr.msk.bf16.mxu0 %vm5277_vm1, %v5276_v1  ;;  %v2119_v33 = vsel %vm911_vm5, %v2109_v62, %v2118_v46 }
 0x12d   : > { %v766_v61 = vpop.f32.mrb[28].mxu0  ;;  %4946 = vmatprep.subr.bf16.mxu0 %v5276_v1  ;;  %v2240_v37 = vsel %vm1068_vm6, %v2237_v20, %v2239_v15  ;;  %v2351_v20 = vrot.slane %v5841_v28, 2 }
 0x12e   : > { %v6117_v48 = vadd.f32 %v766_v61, %v656_v18  ;;  %v860_v52 = vpop.f32.mrb[28].mxu1  ;;  %v4614_v13 = vpop.f32.mrb[29].mxu0 }
 0x12f   : > { %v899_v60 = vadd.f32 %v860_v52, %v6031_v55  ;;  %v4620_v56 = vpop.f32.mrb[29].mxu1  ;;  %v769_v0 = vpop.f32.mrb[30].mxu0  ;;  %v6130_v55 = vld [vmem:[%s5982_s15 + $0x24] sm:$0xf] }
 0x130   : > { %v6121_v16 = vadd.f32 %v769_v0, %v659_v57  ;;  %v863_v23 = vpop.f32.mrb[30].mxu1  ;;  %v4615_v8 = vpop.f32.mrb[31].mxu0  ;;  %v6142_v22 = vcombine.low %v6127_v38, %v6130_v55 }
 0x131   : > { %v900_v44 = vadd.f32 %v863_v23, %v6039_v42  ;;  %v4621_v59 = vpop.f32.mrb[31].mxu1  ;;  %v2121_v42 = vshrl.u32 %v6059_v27, 16 }
 0x132   : > { %4865 = vmatmul.mubr.msk.bf16.gmra.mrb[136].mxu0 %vm483_vm3, %v2236_v63  ;;  %v2876_v12 = vshll.u32 %v6142_v22, 16  ;;  %v2880_v39 = vshrl.u32 %v6142_v22, 16  ;;  %v2350_v59 = vrot.slane %v5848_v25, 2 }
 0x133   : > { %4847 = vmatmul.mubr.msk.bf16.gmra.mrb[136].mxu1 %vm483_vm3, %v2110_v24  ;;  %4868 = vmatprep.mubr.msk.bf16.mxu0 %vm5277_vm1, %v5276_v1  ;;  %v2123_v3 = vrot.slane %v2121_v42, 1 }
 0x134   : > { %4850 = vmatprep.mubr.msk.bf16.mxu1 %vm5277_vm1, %v5276_v1  ;;  %v3636_v62 = vrot.slane %v2880_v39, 2 }
 0x135   : > { %v1017_v2 = vpop.f32.mrb[32].mxu0 }
 0x136   : > { %v868_v6 = vpop.f32.mrb[32].mxu1  ;;  %v6144_v9 = vadd.f32 %v1017_v2, %v899_v60  ;;  %v4642_v51 = vpop.f32.mrb[33].mxu0  ;;  %v4262_v2 = vld [vmem:[%s6905_s3 + $0x44] sm:$0xf] }
 0x137   : > { %v901_v18 = vadd.f32 %v868_v6, %v6053_v50  ;;  %v4624_v34 = vpop.f32.mrb[33].mxu1  ;;  %v1020_v35 = vpop.f32.mrb[34].mxu0  ;;  %v3637_v50 = vrot.slane %v2876_v12, 3 }
 0x138   : > { %v871_v7 = vpop.f32.mrb[34].mxu1  ;;  %v6149_v10 = vadd.f32 %v1020_v35, %v900_v44  ;;  %v4643_v40 = vpop.f32.mrb[35].mxu0 }
 0x139   : > { %v902_v57 = vadd.f32 %v871_v7, %v6061_v45  ;;  %v4625_v5 = vpop.f32.mrb[35].mxu1  ;;  %v2127_v45 = vor.u32 %v2126_v4, %v2123_v3  ;;  %v6165_v61 = vor.u32 %v3637_v50, %v3636_v62  ;;  %v2352_v7 = vsel %vm1068_vm6, %v2350_v59, %v2351_v20 }
 0x13a   : > { %4869 = vmatmul.mubr.msk.bf16.gmra.mrb[140].mxu0 %vm483_vm3, %v2238_v58  ;;  %v2627_v3 = vsel %vm499_vm0, %v4262_v2, 0 }
 0x13b   : > { %4851 = vmatmul.mubr.msk.bf16.gmra.mrb[140].mxu1 %vm483_vm3, %v2119_v33  ;;  %4872 = vmatprep.mubr.msk.bf16.mxu0 %vm5277_vm1, %v5276_v1  ;;  %v2128_v11 = vsel %vm911_vm5, %v2118_v46, %v2127_v45 }
 0x13c   : > { %4854 = vmatprep.mubr.msk.bf16.mxu1 %vm5277_vm1, %v5276_v1 }
 0x13d   : > { %v1025_v53 = vpop.f32.mrb[36].mxu0 }
 0x13e   : > { %v876_v52 = vpop.f32.mrb[36].mxu1  ;;  %v6167_v13 = vadd.f32 %v1025_v53, %v901_v18  ;;  %v4646_v60 = vpop.f32.mrb[37].mxu0  ;;  %v2471_v53 = vrot.slane %v1712_v43, 2 }
 0x13f   : > { %v903_v56 = vadd.f32 %v876_v52, %v6072_v41  ;;  %v4628_v0 = vpop.f32.mrb[37].mxu1  ;;  %v1028_v63 = vpop.f32.mrb[38].mxu0  ;;  %v2241_v41 = vrot.slane %v6059_v27, 2  ;;  %v2472_v52 = vrot.slane %v1708_v31, 3  ;;  %v2355_v31 = vrot.slane %v5923_v36, 2 }
 0x140   : > { %v879_v23 = vpop.f32.mrb[38].mxu1  ;;  %v6171_v8 = vadd.f32 %v1028_v63, %v902_v57  ;;  %v4647_v24 = vpop.f32.mrb[39].mxu0 }
 0x141   : > { %v904_v19 = vadd.f32 %v879_v23, %v6079_v21  ;;  %v4629_v44 = vpop.f32.mrb[39].mxu1  ;;  %v2242_v18 = vsel %vm1068_vm6, %v2239_v15, %v2241_v41  ;;  %v2473_v43 = vor.u32 %v2472_v52, %v2471_v53 }
 0x142   : > { %4873 = vmatmul.mubr.msk.bf16.gmra.mrb[144].mxu0 %vm483_vm3, %v2240_v37 }
 0x143   : > { %4855 = vmatmul.mubr.msk.bf16.gmra.mrb[144].mxu1 %vm483_vm3, %v2128_v11  ;;  %4876 = vmatprep.mubr.msk.bf16.mxu0 %vm5277_vm1, %v5276_v1  ;;  %v2474_v59 = vsel %vm1301_vm7, %v5867_v26, %v2473_v43 }
 0x144   : > { %4882 = vmatprep.mubr.msk.bf16.mxu1 %vm5277_vm1, %v5276_v1 }
 0x145   : > { %v1033_v46 = vpop.f32.mrb[40].mxu0 }
 0x146   : > { %v884_v42 = vpop.f32.mrb[40].mxu1  ;;  %v6184_v21 = vadd.f32 %v1033_v46, %v903_v56  ;;  %v4650_v54 = vpop.f32.mrb[41].mxu0  ;;  %v2476_v46 = vrot.slane %v1715_v29, 3  ;;  %v2483_v29 = vshll.u32 %v5720_v49, 16 }
 0x147   : > { %v905_v6 = vadd.f32 %v884_v42, %v6098_v14  ;;  %v4632_v51 = vpop.f32.mrb[41].mxu1  ;;  %v1036_v27 = vpop.f32.mrb[42].mxu0  ;;  %v2353_v14 = vrot.slane %v5899_v17, 2 }
 0x148   : > { %v887_v34 = vpop.f32.mrb[42].mxu1  ;;  %v6191_v35 = vadd.f32 %v1036_v27, %v904_v19  ;;  %v4651_v58 = vpop.f32.mrb[43].mxu0  ;;  %v2357_v27 = vrot.slane %v5720_v49, 2 }
 0x149   : > { %v906_v40 = vadd.f32 %v887_v34, %v6103_v32  ;;  %v4633_v33 = vpop.f32.mrb[43].mxu1  ;;  %v4273_v32 = vld [vmem:[%s6905_s3 + $0x48] sm:$0xf]  ;;  %v2354_v63 = vsel %vm1068_vm6, %v2351_v20, %v2353_v14  ;;  %v2475_v20 = vrot.slane %v1719_v47, 2  ;;  %v2480_v47 = vshrl.u32 %v5720_v49, 16 }
 0x14a   : > { %4877 = vmatmul.mubr.msk.bf16.gmra.mrb[148].mxu0 %vm483_vm3, %v2242_v18  ;;  %v2761_v37 = vsel %vm499_vm0, %v4273_v32, 0 }
 0x14b   : > { %4883 = vmatmul.mubr.msk.bf16.vlgmr.msra.gmra.mrb[148].mxu1 %vm483_vm3, %v2352_v7  ;;  %4904 = vmatprep.mubr.msk.bf16.mxu0 %vm5277_vm1, %v5276_v1  ;;  %v2477_v26 = vor.u32 %v2476_v46, %v2475_v20 }
 0x14c   : > { %4925 = vmatpush3.bf16.msra.mxu1 %v2627_v3  ;;  %4886 = vmatprep.mubr.msk.bf16.mxu1 %vm5277_vm1, %v5276_v1 }
 0x14d   : > { %v1041_v4 = vpop.f32.mrb[44].mxu0  ;;  %4968 = vmatprep.subr.bf16.mxu1 %v5276_v1  ;;  %v2478_v3 = vsel %vm1301_vm7, %v2473_v43, %v2477_v26 }
 0x14e   : > { %v892_v57 = vpop.f32.mrb[44].mxu1  ;;  %v6207_v5 = vadd.f32 %v1041_v4, %v905_v6  ;;  %v4654_v50 = vpop.f32.mrb[45].mxu0  ;;  %v2356_v6 = vsel %vm1068_vm6, %v2353_v14, %v2355_v31  ;;  %v2482_v14 = vrot.slane %v2480_v47, 2  ;;  %v2485_v4 = vrot.slane %v2483_v29, 3 }
 0x14f   : > { %v907_v15 = vadd.f32 %v892_v57, %v6117_v48  ;;  %v4636_v62 = vpop.f32.mrb[45].mxu1  ;;  %v1044_v45 = vpop.f32.mrb[46].mxu0 }
 0x150   : > { %v895_v60 = vpop.f32.mrb[46].mxu1  ;;  %v6214_v56 = vadd.f32 %v1044_v45, %v906_v40  ;;  %v4655_v0 = vpop.f32.mrb[47].mxu0  ;;  %v6258_v62 = vld [vmem:[%s5646_s7 + $0x30] ss:$0 sps:$4 sm:$0xff]  }
 0x151   : > { %v908_v23 = vadd.f32 %v895_v60, %v6121_v16  ;;  %v4637_v24 = vpop.f32.mrb[47].mxu1  ;;  %v2489_v52 = vshrl.u32 %v6258_v62, 16  ;;  %v2492_v60 = vshll.u32 %v6258_v62, 16  ;;  %v2359_v0 = vrot.slane %v6258_v62, 2 }
 0x152   : > { %4905 = vmatmul.mubr.msk.bf16.vlgmr.msra.gmra.mrb[152].mxu0 %vm483_vm3, %v5874_v30 }
 0x153   : > { %4887 = vmatmul.mubr.msk.bf16.gmra.mrb[152].mxu1 %vm483_vm3, %v2354_v63  ;;  %4947 = vmatpush3.bf16.msra.mxu0 %v2761_v37 }
 0x154   : > { %4890 = vmatprep.mubr.msk.bf16.mxu1 %vm5277_vm1, %v5276_v1  ;;  %4908 = vmatprep.mubr.msk.bf16.mxu0 %vm5277_vm1, %v5276_v1 }
 0x155   : > { %v1049_v48 = vpop.f32.mrb[48].mxu0  ;;  %4990 = vmatprep.subr.bf16.mxu0 %v5276_v1 }
 0x156   : > { %v6228_v16 = vadd.f32 %v1049_v48, %v907_v15  ;;  %v1132_v11 = vpop.f32.mrb[48].mxu1  ;;  %v4658_v19 = vpop.f32.mrb[49].mxu0  ;;  %v2358_v15 = vsel %vm1068_vm6, %v2355_v31, %v2357_v27 }
 0x157   : > { %v1171_v30 = vadd.f32 %v1132_v11, %v6144_v9  ;;  %v4664_v44 = vpop.f32.mrb[49].mxu1  ;;  %v1052_v41 = vpop.f32.mrb[50].mxu0  ;;  %v2491_v11 = vrot.slane %v2489_v52, 2  ;;  %v2494_v19 = vrot.slane %v2492_v60, 3 }
 0x158   : > { %v6237_v42 = vadd.f32 %v1052_v41, %v908_v23  ;;  %v1135_v54 = vpop.f32.mrb[50].mxu1  ;;  %v4659_v2 = vpop.f32.mrb[51].mxu0 }
 0x159   : > { %v1172_v51 = vadd.f32 %v1135_v54, %v6149_v10  ;;  %v4665_v9 = vpop.f32.mrb[51].mxu1  ;;  %v2600_v54 = vrot.slane %v5848_v25, 3  ;;  %v2601_v2 = vrot.slane %v5841_v28, 3 }
 0x15a   : > { %4909 = vmatmul.mubr.msk.bf16.gmra.mrb[156].mxu0 %vm483_vm3, %v2474_v59  ;;  %v2360_v59 = vsel %vm1068_vm6, %v2357_v27, %v2359_v0 }
 0x15b   : > { %4891 = vmatmul.mubr.msk.bf16.gmra.mrb[156].mxu1 %vm483_vm3, %v2356_v6  ;;  %4912 = vmatprep.mubr.msk.bf16.mxu0 %vm5277_vm1, %v5276_v1 }
 0x15c   : > { %4894 = vmatprep.mubr.msk.bf16.mxu1 %vm5277_vm1, %v5276_v1 }
 0x15d   : > { %v1250_v10 = vpop.f32.mrb[52].mxu0 }
 0x15e   : > { %v1140_v18 = vpop.f32.mrb[52].mxu1  ;;  %v6250_v34 = vadd.f32 %v1250_v10, %v1171_v30  ;;  %v4686_v58 = vpop.f32.mrb[53].mxu0 }
 0x15f   : > { %v1173_v7 = vadd.f32 %v1140_v18, %v6167_v13  ;;  %v4668_v40 = vpop.f32.mrb[53].mxu1  ;;  %v1253_v33 = vpop.f32.mrb[54].mxu0  ;;  %v2486_v13 = vor.u32 %v2485_v4, %v2482_v14  ;;  %v2602_v58 = vsel %vm1438_vm8, %v2600_v54, %v2601_v2  ;;  %v2603_v14 = vrot.slane %v5899_v17, 3  ;;  %v4286_v4 = vld [vmem:[%s6905_s3 + $0x50] sm:$0xf] }
 0x160   : > { %v1143_v32 = vpop.f32.mrb[54].mxu1  ;;  %v6254_v57 = vadd.f32 %v1253_v33, %v1172_v51  ;;  %v4687_v50 = vpop.f32.mrb[55].mxu0 }
 0x161   : > { %v1174_v45 = vadd.f32 %v1143_v32, %v6171_v8  ;;  %v4669_v53 = vpop.f32.mrb[55].mxu1  ;;  %v2487_v48 = vsel %vm1301_vm7, %v2477_v26, %v2486_v13  ;;  %v4280_v26 = vld [vmem:[%s6905_s3 + $0x4c] sm:$0xf] }
 0x162   : > { %4913 = vmatmul.mubr.msk.bf16.gmra.mrb[160].mxu0 %vm483_vm3, %v2478_v3  ;;  %v2904_v33 = vsel %vm499_vm0, %v4280_v26, 0  ;;  %v6304_v3 = vld [vmem:[%s5982_s15 + $0x4] sm:$0xf] }
 0x163   : > { %4895 = vmatmul.mubr.msk.bf16.gmra.mrb[160].mxu1 %vm483_vm3, %v2358_v15  ;;  %4916 = vmatprep.mubr.msk.bf16.mxu0 %vm5277_vm1, %v5276_v1 }
 0x164   : > { %4898 = vmatprep.mubr.msk.bf16.mxu1 %vm5277_vm1, %v5276_v1 }
 0x165   : > { %v1258_v63 = vpop.f32.mrb[56].mxu0 }
 0x166   : > { %v1148_v8 = vpop.f32.mrb[56].mxu1  ;;  %v6270_v37 = vadd.f32 %v1258_v63, %v1173_v7  ;;  %v4690_v23 = vpop.f32.mrb[57].mxu0  ;;  %v2604_v63 = vsel %vm1438_vm8, %v2601_v2, %v2603_v14 }
 0x167   : > { %v1175_v24 = vadd.f32 %v1148_v8, %v6184_v21  ;;  %v4672_v43 = vpop.f32.mrb[57].mxu1  ;;  %v1261_v31 = vpop.f32.mrb[58].mxu0  ;;  %v2495_v21 = vor.u32 %v2494_v19, %v2491_v11  ;;  %v3024_v8 = vsel %vm499_vm0, %v4286_v4, 0  ;;  %v2609_v4 = vrot.slane %v6258_v62, 3 }
 0x168   : > { %v1151_v30 = vpop.f32.mrb[58].mxu1  ;;  %v6274_v44 = vadd.f32 %v1261_v31, %v1174_v45  ;;  %v4691_v41 = vpop.f32.mrb[59].mxu0  ;;  %v6331_v43 = vld [vmem:[%s5982_s15 + $0xc] sm:$0xf]  ;;  %v2605_v31 = vrot.slane %v5923_v36, 3 }
 0x169   : > { %v1176_v20 = vadd.f32 %v1151_v30, %v6191_v35  ;;  %v4673_v46 = vpop.f32.mrb[59].mxu1  ;;  %v2496_v10 = vsel %vm1301_vm7, %v2486_v13, %v2495_v21 }
 0x16a   : > { %4917 = vmatmul.mubr.msk.bf16.gmra.mrb[164].mxu0 %vm483_vm3, %v2487_v48  ;;  %v2606_v54 = vsel %vm1438_vm8, %v2603_v14, %v2605_v31 }
 0x16b   : > { %4899 = vmatmul.mubr.msk.bf16.gmra.mrb[164].mxu1 %vm483_vm3, %v2360_v59  ;;  %4920 = vmatprep.mubr.msk.bf16.mxu0 %vm5277_vm1, %v5276_v1 }
 0x16c   : > { %4926 = vmatprep.mubr.msk.bf16.mxu1 %vm5277_vm1, %v5276_v1 }
 0x16d   : > { %v1266_v6 = vpop.f32.mrb[60].mxu0 }
 0x16e   : > { %v1156_v51 = vpop.f32.mrb[60].mxu1  ;;  %v6286_v9 = vadd.f32 %v1266_v6, %v1175_v24  ;;  %v4694_v35 = vpop.f32.mrb[61].mxu0 }
 0x16f   : > { %v1177_v47 = vadd.f32 %v1156_v51, %v6207_v5  ;;  %v4676_v29 = vpop.f32.mrb[61].mxu1  ;;  %v1269_v27 = vpop.f32.mrb[62].mxu0  ;;  %v2712_v5 = vld [vmem:[%s5982_s15] sm:$0xf]  ;;  %v6359_v51 = vld [vmem:[%s5982_s15 + $0x14] sm:$0xf] }
 0x170   : > { %v1159_v25 = vpop.f32.mrb[62].mxu1  ;;  %v6293_v18 = vadd.f32 %v1269_v27, %v1176_v20  ;;  %v4695_v28 = vpop.f32.mrb[63].mxu0  ;;  %v6316_v45 = vcombine.low %v2712_v5, %v6304_v3  ;;  %v2607_v35 = vrot.slane %v5720_v49, 3 }
 0x171   : > { %v1178_v7 = vadd.f32 %v1159_v25, %v6214_v56  ;;  %v4677_v40 = vpop.f32.mrb[63].mxu1 }
 0x172   : > { %4921 = vmatmul.mubr.msk.bf16.gmra.mrb[168].mxu0 %vm483_vm3, %v2496_v10  ;;  %v2608_v49 = vsel %vm1438_vm8, %v2605_v31, %v2607_v35 }
 0x173   : > { %4927 = vmatmul.mubr.msk.bf16.vlgmr.msra.gmra.mrb[168].mxu1 %vm483_vm3, %v2602_v58  ;;  %4948 = vmatprep.mubr.msk.bf16.mxu0 %vm5277_vm1, %v5276_v1 }
 0x174   : > { %4969 = vmatpush3.bf16.msra.mxu1 %v2904_v33  ;;  %4930 = vmatprep.mubr.msk.bf16.mxu1 %vm5277_vm1, %v5276_v1 }
 0x175   : > { %v1274_v56 = vpop.f32.mrb[64].mxu0  ;;  %5012 = vmatprep.subr.bf16.mxu1 %v5276_v1 }
 0x176   : > { %v1164_v32 = vpop.f32.mrb[64].mxu1  ;;  %v6313_v50 = vadd.f32 %v1274_v56, %v1177_v47  ;;  %v4698_v15 = vpop.f32.mrb[65].mxu0 }
 0x177   : > { %v1179_v53 = vadd.f32 %v1164_v32, %v6228_v16  ;;  %v4680_v13 = vpop.f32.mrb[65].mxu1  ;;  %v1277_v17 = vpop.f32.mrb[66].mxu0  ;;  %v6328_v16 = vld [vmem:[%s5982_s15 + $0x8] sm:$0xf]  ;;  %v6385_v32 = vld [vmem:[%s5982_s15 + $0x18] sm:$0xf] }
 0x178   : > { %v1167_v52 = vpop.f32.mrb[66].mxu1  ;;  %v6319_v60 = vadd.f32 %v1277_v17, %v1178_v7  ;;  %v4699_v0 = vpop.f32.mrb[67].mxu0  ;;  %v6343_v30 = vcombine.low %v6328_v16, %v6331_v43  ;;  %v2851_v15 = vshll.u32 %v6316_v45, 16 }
 0x179   : > { %v1180_v23 = vadd.f32 %v1167_v52, %v6237_v42  ;;  %v4681_v24 = vpop.f32.mrb[67].mxu1 }
 0x17a   : > { %4949 = vmatmul.mubr.msk.bf16.vlgmr.msra.gmra.mrb[172].mxu0 %vm483_vm3, %v6316_v45  ;;  %v2859_v14 = vshrl.u32 %v6343_v30, 16 }
 0x17b   : > { %4931 = vmatmul.mubr.msk.bf16.gmra.mrb[172].mxu1 %vm483_vm3, %v2604_v63  ;;  %4991 = vmatpush3.bf16.msra.mxu0 %v3024_v8 }
 0x17c   : > { %4934 = vmatprep.mubr.msk.bf16.mxu1 %vm5277_vm1, %v5276_v1  ;;  %4952 = vmatprep.mubr.msk.bf16.mxu0 %vm5277_vm1, %v5276_v1  ;;  %v3625_v13 = vrot.slane %v2859_v14, 2 }
 0x17d   : > { %v1282_v42 = vpop.f32.mrb[68].mxu0  ;;  %5034 = vmatprep.subr.bf16.mxu0 %v5276_v1 }
 0x17e   : > { %v6339_v48 = vadd.f32 %v1282_v42, %v1179_v53  ;;  %v1387_v11 = vpop.f32.mrb[68].mxu1  ;;  %v4702_v19 = vpop.f32.mrb[69].mxu0  ;;  %v2855_v53 = vshll.u32 %v6343_v30, 16 }
 0x17f   : > { %v1426_v41 = vadd.f32 %v1387_v11, %v6250_v34  ;;  %v4708_v59 = vpop.f32.mrb[69].mxu1  ;;  %v1285_v20 = vpop.f32.mrb[70].mxu0  ;;  %v6356_v34 = vld [vmem:[%s5982_s15 + $0x10] sm:$0xf]  ;;  %v2610_v19 = vsel %vm1438_vm8, %v2607_v35, %v2609_v4 }
 0x180   : > { %v6346_v46 = vadd.f32 %v1285_v20, %v1180_v23  ;;  %v1390_v36 = vpop.f32.mrb[70].mxu1  ;;  %v4703_v21 = vpop.f32.mrb[71].mxu0  ;;  %v6368_v27 = vcombine.low %v6356_v34, %v6359_v51  ;;  %v3626_v24 = vrot.slane %v2855_v53, 3 }
 0x181   : > { %v1427_v2 = vadd.f32 %v1390_v36, %v6254_v57  ;;  %v4709_v6 = vpop.f32.mrb[71].mxu1  ;;  %v2853_v21 = vrot.slane %v2851_v15, 1 }
 0x182   : > { %4953 = vmatmul.mubr.msk.bf16.gmra.mrb[176].mxu0 %vm483_vm3, %v6343_v30  ;;  %v2866_v56 = vshrl.u32 %v6368_v27, 16 }
 0x183   : > { %4935 = vmatmul.mubr.msk.bf16.gmra.mrb[176].mxu1 %vm483_vm3, %v2606_v54  ;;  %4956 = vmatprep.mubr.msk.bf16.mxu0 %vm5277_vm1, %v5276_v1  ;;  %v3627_v54 = vor.u32 %v3626_v24, %v3625_v13 }
 0x184   : > { %4938 = vmatprep.mubr.msk.bf16.mxu1 %vm5277_vm1, %v5276_v1  ;;  %v3628_v52 = vrot.slane %v2866_v56, 2 }
 0x185   : > { %v1502_v26 = vpop.f32.mrb[72].mxu0 }
 0x186   : > { %v1395_v57 = vpop.f32.mrb[72].mxu1  ;;  %v6364_v47 = vadd.f32 %v1502_v26, %v1426_v41  ;;  %v4730_v29 = vpop.f32.mrb[73].mxu0  ;;  %v2849_v41 = vshrl.u32 %v6316_v45, 16 }
 0x187   : > { %v1428_v10 = vadd.f32 %v1395_v57, %v6270_v37  ;;  %v4712_v25 = vpop.f32.mrb[73].mxu1  ;;  %v1505_v28 = vpop.f32.mrb[74].mxu0  ;;  %v2862_v37 = vshll.u32 %v6368_v27, 16  ;;  %v2857_v57 = vrot.slane %v2855_v53, 1 }
 0x188   : > { %v1398_v58 = vpop.f32.mrb[74].mxu1  ;;  %v6371_v7 = vadd.f32 %v1505_v28, %v1427_v2  ;;  %v4731_v40 = vpop.f32.mrb[75].mxu0  ;;  %v2854_v35 = vor.u32 %v2853_v21, %v2849_v41  ;;  %v4298_v28 = vld [vmem:[%s6905_s3 + $0x54] sm:$0xf] }
 0x189   : > { %v1429_v33 = vadd.f32 %v1398_v58, %v6274_v44  ;;  %v4713_v5 = vpop.f32.mrb[75].mxu1  ;;  %v6388_v44 = vld [vmem:[%s5982_s15 + $0x1c] sm:$0xf]  ;;  %v3629_v17 = vrot.slane %v2862_v37, 3 }
 0x18a   : > { %4957 = vmatmul.mubr.msk.bf16.gmra.mrb[180].mxu0 %vm483_vm3, %v6368_v27  ;;  %v6400_v23 = vcombine.low %v6385_v32, %v6388_v44  ;;  %v2858_v15 = vsel %vm438_vm2, %v2854_v35, %v2857_v57  ;;  %v6456_v35 = vld [vmem:[%s5982_s15 + $0x28] sm:$0xf] }
 0x18b   : > { %4939 = vmatmul.mubr.msk.bf16.gmra.mrb[180].mxu1 %vm483_vm3, %v2608_v49  ;;  %4960 = vmatprep.mubr.msk.bf16.mxu0 %vm5277_vm1, %v5276_v1  ;;  %v6407_v2 = vor.u32 %v3629_v17, %v3628_v52  ;;  %v3150_v17 = vsel %vm499_vm0, %v4298_v28, 0  ;;  %v2998_v52 = vrot.slane %v6343_v30, 1 }
 0x18c   : > { %4942 = vmatprep.mubr.msk.bf16.mxu1 %vm5277_vm1, %v5276_v1 }
 0x18d   : > { %v1510_v0 = vpop.f32.mrb[76].mxu0 }
 0x18e   : > { %v1403_v63 = vpop.f32.mrb[76].mxu1  ;;  %v6396_v8 = vadd.f32 %v1510_v0, %v1428_v10  ;;  %v4734_v62 = vpop.f32.mrb[77].mxu0  ;;  %v2864_v0 = vrot.slane %v2862_v37, 1 }
 0x18f   : > { %v1430_v31 = vadd.f32 %v1403_v63, %v6286_v9  ;;  %v4716_v42 = vpop.f32.mrb[77].mxu1  ;;  %v1513_v11 = vpop.f32.mrb[78].mxu0  ;;  %v6414_v9 = vsel %vm1301_vm7, %v3627_v54, %v6407_v2  ;;  %v4304_v62 = vld [vmem:[%s6905_s3 + $0x58] sm:$0xf]  ;;  %v2869_v54 = vshll.u32 %v6400_v23, 16 }
 0x190   : > { %v1406_v59 = vpop.f32.mrb[78].mxu1  ;;  %v6405_v20 = vadd.f32 %v1513_v11, %v1429_v33  ;;  %v4735_v36 = vpop.f32.mrb[79].mxu0  ;;  %v3306_v21 = vsel %vm499_vm0, %v4304_v62, 0  ;;  %v2873_v62 = vshrl.u32 %v6400_v23, 16 }
 0x191   : > { %v1431_v6 = vadd.f32 %v1406_v59, %v6293_v18  ;;  %v4717_v26 = vpop.f32.mrb[79].mxu1 }
 0x192   : > { %4961 = vmatmul.mubr.msk.bf16.gmra.mrb[184].mxu0 %vm483_vm3, %v6400_v23 }
 0x193   : > { %4943 = vmatmul.mubr.msk.bf16.gmra.mrb[184].mxu1 %vm483_vm3, %v2610_v19  ;;  %4964 = vmatprep.mubr.msk.bf16.mxu0 %vm5277_vm1, %v5276_v1 }
 0x194   : > { %4970 = vmatprep.mubr.msk.bf16.mxu1 %vm5277_vm1, %v5276_v1 }
 0x195   : > { %v1518_v29 = vpop.f32.mrb[80].mxu0 }
 0x196   : > { %v1411_v18 = vpop.f32.mrb[80].mxu1  ;;  %v6421_v10 = vadd.f32 %v1518_v29, %v1430_v31  ;;  %v4738_v25 = vpop.f32.mrb[81].mxu0  ;;  %v3000_v29 = vrot.slane %v6368_v27, 1 }
 0x197   : > { %v1432_v58 = vadd.f32 %v1411_v18, %v6313_v50  ;;  %v4720_v40 = vpop.f32.mrb[81].mxu1  ;;  %v1521_v49 = vpop.f32.mrb[82].mxu0  ;;  %v2997_v50 = vrot.slane %v6316_v45, 1  ;;  %v2871_v18 = vrot.slane %v2869_v54, 1 }
 0x198   : > { %v1414_v33 = vpop.f32.mrb[82].mxu1  ;;  %v6427_v5 = vadd.f32 %v1521_v49, %v1431_v6  ;;  %v4739_v4 = vpop.f32.mrb[83].mxu0 }
 0x199   : > { %v1433_v53 = vadd.f32 %v1414_v33, %v6319_v60  ;;  %v4721_v13 = vpop.f32.mrb[83].mxu1  ;;  %v2861_v60 = vor.u32 %v2859_v14, %v2857_v57  ;;  %v2999_v14 = vsel %vm670_vm4, %v2997_v50, %v2998_v52 }
 0x19a   : > { %4965 = vmatmul.mubr.msk.bf16.gmra.mrb[188].mxu0 %vm483_vm3, %v6142_v22 }
 0x19b   : > { %4971 = vmatmul.mubr.msk.bf16.vlgmr.msra.gmra.mrb[188].mxu1 %vm483_vm3, %v2858_v15  ;;  %4992 = vmatprep.mubr.msk.bf16.mxu0 %vm5277_vm1, %v5276_v1  ;;  %v2865_v36 = vsel %vm438_vm2, %v2861_v60, %v2864_v0 }
 0x19c   : > { %5013 = vmatpush3.bf16.msra.mxu1 %v3150_v17  ;;  %4974 = vmatprep.mubr.msk.bf16.mxu1 %vm5277_vm1, %v5276_v1  ;;  %v3001_v17 = vsel %vm670_vm4, %v2998_v52, %v3000_v29  ;;  %v3002_v52 = vrot.slane %v6400_v23, 1 }
 0x19d   : > { %v1526_v63 = vpop.f32.mrb[84].mxu0  ;;  %5056 = vmatprep.subr.bf16.mxu1 %v5276_v1 }
 0x19e   : > { %v1419_v24 = vpop.f32.mrb[84].mxu1  ;;  %v6445_v31 = vadd.f32 %v1526_v63, %v1432_v58  ;;  %v4742_v45 = vpop.f32.mrb[85].mxu0 }
 0x19f   : > { %v1434_v42 = vadd.f32 %v1419_v24, %v6339_v48  ;;  %v4724_v11 = vpop.f32.mrb[85].mxu1  ;;  %v1529_v19 = vpop.f32.mrb[86].mxu0  ;;  %v6459_v48 = vld [vmem:[%s5982_s15 + $0x2c] sm:$0xf] }
 0x1a0   : > { %v1422_v37 = vpop.f32.mrb[86].mxu1  ;;  %v6449_v41 = vadd.f32 %v1529_v19, %v1433_v53  ;;  %v4743_v59 = vpop.f32.mrb[87].mxu0  ;;  %v6464_v57 = vcombine.low %v6456_v35, %v6459_v48  ;;  %v2878_v11 = vrot.slane %v2876_v12, 1  ;;  %v4279_v19 = vcombine.low %v6456_v35, %v6456_v35 }
 0x1a1   : > { %v1435_v6 = vadd.f32 %v1422_v37, %v6346_v46  ;;  %v4725_v26 = vpop.f32.mrb[87].mxu1  ;;  %v2868_v46 = vor.u32 %v2866_v56, %v2864_v0 }
 0x1a2   : > { %4993 = vmatmul.mubr.msk.bf16.vlgmr.msra.gmra.mrb[192].mxu0 %vm483_vm3, %v2999_v14  ;;  %v3641_v25 = vshrl.u32 %v6464_v57, 16  ;;  %v3644_v28 = vshll.u32 %v6464_v57, 16 }
 0x1a3   : > { %4975 = vmatmul.mubr.msk.bf16.gmra.mrb[192].mxu1 %vm483_vm3, %v2865_v36  ;;  %5035 = vmatpush3.bf16.msra.mxu0 %v3306_v21  ;;  %v2872_v63 = vsel %vm438_vm2, %v2868_v46, %v2871_v18  ;;  %v3003_v46 = vsel %vm670_vm4, %v3000_v29, %v3002_v52  ;;  %v2882_v29 = vor.u32 %v2880_v39, %v2878_v11 }
 0x1a4   : > { %4978 = vmatprep.mubr.msk.bf16.mxu1 %vm5277_vm1, %v5276_v1  ;;  %4996 = vmatprep.mubr.msk.bf16.mxu0 %vm5277_vm1, %v5276_v1  ;;  %v3643_v4 = vrot.slane %v3641_v25, 2  ;;  %v3646_v15 = vrot.slane %v3644_v28, 3 }
 0x1a5   : > { %v1534_v58 = vpop.f32.mrb[88].mxu0  ;;  %5078 = vmatprep.subr.bf16.mxu0 %v5276_v1 }
 0x1a6   : > { %v6479_v40 = vadd.f32 %v1534_v58, %v1434_v42  ;;  %v1636_v49 = vpop.f32.mrb[88].mxu1  ;;  %v4746_v33 = vpop.f32.mrb[89].mxu0  ;;  %v6487_v24 = vor.u32 %v3646_v15, %v3643_v4  ;;  %v2884_v58 = vshll.u32 %v4279_v19, 16 }
 0x1a7   : > { %v1675_v53 = vadd.f32 %v1636_v49, %v6364_v47  ;;  %v4752_v13 = vpop.f32.mrb[89].mxu1  ;;  %v1537_v56 = vpop.f32.mrb[90].mxu0 }
 0x1a8   : > { %v6483_v50 = vadd.f32 %v1537_v56, %v1435_v6  ;;  %v1639_v60 = vpop.f32.mrb[90].mxu1  ;;  %v4747_v0 = vpop.f32.mrb[91].mxu0  ;;  %v6494_v47 = vsel %vm1301_vm7, %v6165_v61, %v6487_v24  ;;  %v2886_v4 = vrot.slane %v2884_v58, 1 }
 0x1a9   : > { %v1676_v45 = vadd.f32 %v1639_v60, %v6371_v7  ;;  %v4753_v42 = vpop.f32.mrb[91].mxu1  ;;  %v2875_v7 = vor.u32 %v2873_v62, %v2871_v18 }
 0x1aa   : > { %4997 = vmatmul.mubr.msk.bf16.gmra.mrb[196].mxu0 %vm483_vm3, %v3001_v17 }
 0x1ab   : > { %4979 = vmatmul.mubr.msk.bf16.gmra.mrb[196].mxu1 %vm483_vm3, %v2872_v63  ;;  %5000 = vmatprep.mubr.msk.bf16.mxu0 %vm5277_vm1, %v5276_v1  ;;  %v2879_v12 = vsel %vm438_vm2, %v2875_v7, %v2878_v11  ;;  %v6531_v63 = vcombine.low %v6304_v3, %v6328_v16  ;;  %v2887_v11 = vsel %vm438_vm2, %v2882_v29, %v2886_v4 }
 0x1ac   : > { %4982 = vmatprep.mubr.msk.bf16.mxu1 %vm5277_vm1, %v5276_v1 }
 0x1ad   : > { %v1779_v14 = vpop.f32.mrb[92].mxu0  ;;  %v3241_v3 = vshll.u32 %v6531_v63, 16 }
 0x1ae   : > { %v1644_v37 = vpop.f32.mrb[92].mxu1  ;;  %v6508_v59 = vadd.f32 %v1779_v14, %v1675_v53  ;;  %v4774_v36 = vpop.f32.mrb[93].mxu0 }
 0x1af   : > { %v1677_v21 = vadd.f32 %v1644_v37, %v6396_v8  ;;  %v4756_v6 = vpop.f32.mrb[93].mxu1  ;;  %v1782_v26 = vpop.f32.mrb[94].mxu0  ;;  %v3004_v8 = vrot.slane %v6142_v22, 1  ;;  %v3238_v37 = vshrl.u32 %v6531_v63, 16 }
 0x1b0   : > { %v1647_v25 = vpop.f32.mrb[94].mxu1  ;;  %v6512_v28 = vadd.f32 %v1782_v26, %v1676_v45  ;;  %v4775_v18 = vpop.f32.mrb[95].mxu0  ;;  %v6535_v45 = vcombine.low %v6331_v43, %v6356_v34  ;;  %v3123_v34 = vrot.slane %v6531_v63, 1 }
 0x1b1   : > { %v1678_v49 = vadd.f32 %v1647_v25, %v6405_v20  ;;  %v4757_v33 = vpop.f32.mrb[95].mxu1  ;;  %v3005_v0 = vsel %vm670_vm4, %v3002_v52, %v3004_v8  ;;  %v3006_v52 = vrot.slane %v4279_v19, 1  ;;  %v3240_v25 = vrot.slane %v3238_v37, 1 }
 0x1b2   : > { %5001 = vmatmul.mubr.msk.bf16.gmra.mrb[200].mxu0 %vm483_vm3, %v3003_v46  ;;  %v3246_v16 = vshrl.u32 %v6535_v45, 16  ;;  %v3249_v43 = vshll.u32 %v6535_v45, 16  ;;  %v4310_v46 = vld [vmem:[%s6905_s3 + $0x5c] sm:$0xf] }
 0x1b3   : > { %4983 = vmatmul.mubr.msk.bf16.gmra.mrb[200].mxu1 %vm483_vm3, %v2879_v12  ;;  %5004 = vmatprep.mubr.msk.bf16.mxu0 %vm5277_vm1, %v5276_v1  ;;  %v3007_v26 = vsel %vm670_vm4, %v3004_v8, %v3006_v52  ;;  %v6565_v8 = vcombine.low %v6359_v51, %v6385_v32 }
 0x1b4   : > { %4986 = vmatprep.mubr.msk.bf16.mxu1 %vm5277_vm1, %v5276_v1  ;;  %v3248_v33 = vrot.slane %v3246_v16, 1  ;;  %v3251_v29 = vrot.slane %v3249_v43, 2 }
 0x1b5   : > { %v1787_v15 = vpop.f32.mrb[96].mxu0  ;;  %v3126_v51 = vrot.slane %v6565_v8, 1 }
 0x1b6   : > { %v1652_v53 = vpop.f32.mrb[96].mxu1  ;;  %v6525_v20 = vadd.f32 %v1787_v15, %v1677_v21  ;;  %v4778_v13 = vpop.f32.mrb[97].mxu0 }
 0x1b7   : > { %v1679_v56 = vadd.f32 %v1652_v53, %v6421_v10  ;;  %v4760_v17 = vpop.f32.mrb[97].mxu1  ;;  %v1790_v60 = vpop.f32.mrb[98].mxu0 }
 0x1b8   : > { %v1655_v39 = vpop.f32.mrb[98].mxu1  ;;  %v6537_v42 = vadd.f32 %v1790_v60, %v1678_v49  ;;  %v4779_v7 = vpop.f32.mrb[99].mxu0  ;;  %v3243_v49 = vrot.slane %v3241_v3, 2 }
 0x1b9   : > { %v1680_v10 = vadd.f32 %v1655_v39, %v6427_v5  ;;  %v4761_v14 = vpop.f32.mrb[99].mxu1  ;;  %v3124_v5 = vrot.slane %v6535_v45, 1  ;;  %v3255_v39 = vshrl.u32 %v6565_v8, 16  ;;  %v3258_v7 = vshll.u32 %v6565_v8, 16 }
 0x1ba   : > { %5005 = vmatmul.mubr.msk.bf16.gmra.mrb[204].mxu0 %vm483_vm3, %v3005_v0  ;;  %v3244_v60 = vor.u32 %v3243_v49, %v3240_v25  ;;  %v3252_v0 = vor.u32 %v3251_v29, %v3248_v33  ;;  %v6592_v25 = vcombine.low %v6388_v44, %v6127_v38 }
 0x1bb   : > { %4987 = vmatmul.mubr.msk.bf16.gmra.mrb[204].mxu1 %vm483_vm3, %v2887_v11  ;;  %5008 = vmatprep.mubr.msk.bf16.mxu0 %vm5277_vm1, %v5276_v1  ;;  %v3125_v13 = vsel %vm670_vm4, %v3123_v34, %v3124_v5  ;;  %v3257_v43 = vrot.slane %v3255_v39, 1  ;;  %v3260_v34 = vrot.slane %v3258_v7, 2 }
 0x1bc   : > { %5014 = vmatprep.mubr.msk.bf16.mxu1 %vm5277_vm1, %v5276_v1  ;;  %v3253_v16 = vsel %vm911_vm5, %v3244_v60, %v3252_v0  ;;  %v3267_v49 = vshll.u32 %v6592_v25, 16  ;;  %v3128_v38 = vrot.slane %v6592_v25, 1 }
 0x1bd   : > { %v1795_v19 = vpop.f32.mrb[100].mxu0 }
 0x1be   : > { %v1660_v36 = vpop.f32.mrb[100].mxu1  ;;  %v6553_v21 = vadd.f32 %v1795_v19, %v1679_v56  ;;  %v4782_v6 = vpop.f32.mrb[101].mxu0 }
 0x1bf   : > { %v1681_v18 = vadd.f32 %v1660_v36, %v6445_v31  ;;  %v4764_v12 = vpop.f32.mrb[101].mxu1  ;;  %v1798_v58 = vpop.f32.mrb[102].mxu0  ;;  %v3420_v31 = vsel %vm499_vm0, %v4310_v46, 0 }
 0x1c0   : > { %v1663_v4 = vpop.f32.mrb[102].mxu1  ;;  %v6560_v15 = vadd.f32 %v1798_v58, %v1680_v10  ;;  %v4783_v53 = vpop.f32.mrb[103].mxu0  ;;  %v3261_v12 = vor.u32 %v3260_v34, %v3257_v43  ;;  %v3264_v58 = vshrl.u32 %v6592_v25, 16 }
 0x1c1   : > { %v1682_v56 = vadd.f32 %v1663_v4, %v6449_v41  ;;  %v4765_v17 = vpop.f32.mrb[103].mxu1  ;;  %v4318_v41 = vld [vmem:[%s6905_s3 + $0x60] sm:$0xf] }
 0x1c2   : > { %5009 = vmatmul.mubr.msk.bf16.gmra.mrb[208].mxu0 %vm483_vm3, %v3007_v26  ;;  %v3127_v26 = vsel %vm670_vm4, %v3124_v5, %v3126_v51  ;;  %v3538_v46 = vsel %vm499_vm0, %v4318_v41, 0  ;;  %v3269_v17 = vrot.slane %v3267_v49, 2 }
 0x1c3   : > { %5015 = vmatmul.mubr.msk.bf16.vlgmr.msra.gmra.mrb[208].mxu1 %vm483_vm3, %v3125_v13  ;;  %5036 = vmatprep.mubr.msk.bf16.mxu0 %vm5277_vm1, %v5276_v1  ;;  %v3262_v13 = vsel %vm911_vm5, %v3252_v0, %v3261_v12 }
 0x1c4   : > { %5057 = vmatpush3.bf16.msra.mxu1 %v3420_v31  ;;  %5018 = vmatprep.mubr.msk.bf16.mxu1 %vm5277_vm1, %v5276_v1  ;;  %v6611_v31 = vcombine.low %v6130_v55, %v6456_v35 }
 0x1c5   : > { %v1803_v32 = vpop.f32.mrb[104].mxu0  ;;  %5100 = vmatprep.subr.bf16.mxu1 %v5276_v1 }
 0x1c6   : > { %v1668_v11 = vpop.f32.mrb[104].mxu1  ;;  %v6582_v10 = vadd.f32 %v1803_v32, %v1681_v18  ;;  %v4786_v14 = vpop.f32.mrb[105].mxu0  ;;  %v3129_v32 = vsel %vm670_vm4, %v3126_v51, %v3128_v38  ;;  %v3273_v55 = vshrl.u32 %v6611_v31, 16  ;;  %v3276_v35 = vshll.u32 %v6611_v31, 16 }
 0x1c7   : > { %v1683_v52 = vadd.f32 %v1668_v11, %v6479_v40  ;;  %v4768_v37 = vpop.f32.mrb[105].mxu1  ;;  %v1806_v3 = vpop.f32.mrb[106].mxu0  ;;  %v3130_v0 = vrot.slane %v6611_v31, 1 }
 0x1c8   : > { %v1671_v19 = vpop.f32.mrb[106].mxu1  ;;  %v6586_v36 = vadd.f32 %v1806_v3, %v1682_v56  ;;  %v4787_v6 = vpop.f32.mrb[107].mxu0  ;;  %v3266_v56 = vrot.slane %v3264_v58, 1  ;;  %v3275_v34 = vrot.slane %v3273_v55, 1 }
 0x1c9   : > { %v1684_v40 = vadd.f32 %v1671_v19, %v6483_v50  ;;  %v4769_v18 = vpop.f32.mrb[107].mxu1  ;;  %v3278_v19 = vrot.slane %v3276_v35, 2  ;;  %v3394_v35 = vrot.slane %v6535_v45, 2 }
 0x1ca   : > { %5037 = vmatmul.mubr.msk.bf16.vlgmr.msra.gmra.mrb[212].mxu0 %vm483_vm3, %v3253_v16  ;;  %v6635_v18 = vcombine.low %v6459_v48, %v6459_v48 }
 0x1cb   : > { %5019 = vmatmul.mubr.msk.bf16.gmra.mrb[212].mxu1 %vm483_vm3, %v3127_v26  ;;  %5079 = vmatpush3.bf16.msra.mxu0 %v3538_v46 }
 0x1cc   : > { %5022 = vmatprep.mubr.msk.bf16.mxu1 %vm5277_vm1, %v5276_v1  ;;  %5040 = vmatprep.mubr.msk.bf16.mxu0 %vm5277_vm1, %v5276_v1  ;;  %v3132_v48 = vrot.slane %v6635_v18, 1 }
 0x1cd   : > { %v1811_v44 = vpop.f32.mrb[108].mxu0  ;;  %5122 = vmatprep.subr.bf16.mxu0 %v5276_v1 }
 0x1ce   : > { %v6605_v50 = vadd.f32 %v1811_v44, %v1683_v52  ;;  %v1899_v5 = vpop.f32.mrb[108].mxu1  ;;  %v4790_v33 = vpop.f32.mrb[109].mxu0  ;;  %v3285_v44 = vshll.u32 %v6635_v18, 16 }
 0x1cf   : > { %v1938_v29 = vadd.f32 %v1899_v5, %v6508_v59  ;;  %v4796_v4 = vpop.f32.mrb[109].mxu1  ;;  %v1814_v53 = vpop.f32.mrb[110].mxu0  ;;  %v3270_v59 = vor.u32 %v3269_v17, %v3266_v56 }
 0x1d0   : > { %v6613_v60 = vadd.f32 %v1814_v53, %v1684_v40  ;;  %v1902_v39 = vpop.f32.mrb[110].mxu1  ;;  %v4791_v7 = vpop.f32.mrb[111].mxu0  ;;  %v3131_v40 = vsel %vm670_vm4, %v3128_v38, %v3130_v0  ;;  %v3287_v17 = vrot.slane %v3285_v44, 2 }
 0x1d1   : > { %v1939_v41 = vadd.f32 %v1902_v39, %v6512_v28  ;;  %v4797_v11 = vpop.f32.mrb[111].mxu1  ;;  %v3271_v43 = vsel %vm911_vm5, %v3261_v12, %v3270_v59  ;;  %v3282_v12 = vshrl.u32 %v6635_v18, 16 }
 0x1d2   : > { %5041 = vmatmul.mubr.msk.bf16.gmra.mrb[216].mxu0 %vm483_vm3, %v3262_v13 }
 0x1d3   : > { %5023 = vmatmul.mubr.msk.bf16.gmra.mrb[216].mxu1 %vm483_vm3, %v3129_v32  ;;  %5044 = vmatprep.mubr.msk.bf16.mxu0 %vm5277_vm1, %v5276_v1  ;;  %v3284_v56 = vrot.slane %v3282_v12, 1 }
 0x1d4   : > { %5026 = vmatprep.mubr.msk.bf16.mxu1 %vm5277_vm1, %v5276_v1 }
 0x1d5   : > { %v2025_v51 = vpop.f32.mrb[112].mxu0 }
 0x1d6   : > { %v1907_v28 = vpop.f32.mrb[112].mxu1  ;;  %v6626_v14 = vadd.f32 %v2025_v51, %v1938_v29  ;;  %v4818_v52 = vpop.f32.mrb[113].mxu0 }
 0x1d7   : > { %v1940_v37 = vadd.f32 %v1907_v28, %v6525_v20  ;;  %v4800_v3 = vpop.f32.mrb[113].mxu1  ;;  %v2028_v16 = vpop.f32.mrb[114].mxu0  ;;  %v3279_v20 = vor.u32 %v3278_v19, %v3275_v34  ;;  %v4324_v52 = vld [vmem:[%s6905_s3 + $0x64] sm:$0xf] }
 0x1d8   : > { %v1910_v6 = vpop.f32.mrb[114].mxu1  ;;  %v6630_v26 = vadd.f32 %v2028_v16, %v1939_v41  ;;  %v4819_v46 = vpop.f32.mrb[115].mxu0  ;;  %v3133_v41 = vsel %vm670_vm4, %v3130_v0, %v3132_v48 }
 0x1d9   : > { %v1941_v58 = vadd.f32 %v1910_v6, %v6537_v42  ;;  %v4801_v49 = vpop.f32.mrb[115].mxu1  ;;  %v3280_v13 = vsel %vm911_vm5, %v3270_v59, %v3279_v20  ;;  %v3393_v59 = vrot.slane %v6531_v63, 2 }
 0x1da   : > { %5045 = vmatmul.mubr.msk.bf16.gmra.mrb[220].mxu0 %vm483_vm3, %v3271_v43 }
 0x1db   : > { %5027 = vmatmul.mubr.msk.bf16.gmra.mrb[220].mxu1 %vm483_vm3, %v3131_v40  ;;  %5048 = vmatprep.mubr.msk.bf16.mxu0 %vm5277_vm1, %v5276_v1  ;;  %v3395_v45 = vsel %vm1068_vm6, %v3393_v59, %v3394_v35  ;;  %v3674_v40 = vsel %vm499_vm0, %v4324_v52, 0 }
 0x1dc   : > { %5030 = vmatprep.mubr.msk.bf16.mxu1 %vm5277_vm1, %v5276_v1 }
 0x1dd   : > { %v2033_v38 = vpop.f32.mrb[116].mxu0 }
 0x1de   : > { %v1915_v42 = vpop.f32.mrb[116].mxu1  ;;  %v6647_v5 = vadd.f32 %v2033_v38, %v1940_v37  ;;  %v4822_v33 = vpop.f32.mrb[117].mxu0 }
 0x1df   : > { %v1942_v29 = vadd.f32 %v1915_v42, %v6553_v21  ;;  %v4804_v4 = vpop.f32.mrb[117].mxu1  ;;  %v2036_v53 = vpop.f32.mrb[118].mxu0  ;;  %v3288_v21 = vor.u32 %v3287_v17, %v3284_v56 }
 0x1e0   : > { %v1918_v39 = vpop.f32.mrb[118].mxu1  ;;  %v6651_v7 = vadd.f32 %v2036_v53, %v1941_v58  ;;  %v4823_v32 = vpop.f32.mrb[119].mxu0  ;;  %v3512_v58 = vrot.slane %v6368_v27, 2 }
 0x1e1   : > { %v1943_v11 = vadd.f32 %v1918_v39, %v6560_v15  ;;  %v4805_v55 = vpop.f32.mrb[119].mxu1  ;;  %v3289_v43 = vsel %vm911_vm5, %v3279_v20, %v3288_v21  ;;  %v4330_v20 = vld [vmem:[%s6905_s3 + $0x68] sm:$0xf]  ;;  %v3398_v32 = vrot.slane %v6592_v25, 2 }
 0x1e2   : > { %5049 = vmatmul.mubr.msk.bf16.gmra.mrb[224].mxu0 %vm483_vm3, %v3280_v13  ;;  %v3788_v56 = vsel %vm499_vm0, %v4330_v20, 0 }
 0x1e3   : > { %5031 = vmatmul.mubr.msk.bf16.gmra.mrb[224].mxu1 %vm483_vm3, %v3133_v41  ;;  %5052 = vmatprep.mubr.msk.bf16.mxu0 %vm5277_vm1, %v5276_v1 }
 0x1e4   : > { %5058 = vmatprep.mubr.msk.bf16.mxu1 %vm5277_vm1, %v5276_v1 }
 0x1e5   : > { %v2041_v51 = vpop.f32.mrb[120].mxu0 }
 0x1e6   : > { %v1923_v0 = vpop.f32.mrb[120].mxu1  ;;  %v6663_v28 = vadd.f32 %v2041_v51, %v1942_v29  ;;  %v4826_v15 = vpop.f32.mrb[121].mxu0 }
 0x1e7   : > { %v1944_v37 = vadd.f32 %v1923_v0, %v6582_v10  ;;  %v4808_v3 = vpop.f32.mrb[121].mxu1  ;;  %v2044_v16 = vpop.f32.mrb[122].mxu0  ;;  %v3511_v10 = vrot.slane %v6343_v30, 2 }
 0x1e8   : > { %v1926_v34 = vpop.f32.mrb[122].mxu1  ;;  %v6670_v19 = vadd.f32 %v2044_v16, %v1943_v11  ;;  %v4827_v63 = vpop.f32.mrb[123].mxu0  ;;  %v3400_v16 = vrot.slane %v6611_v31, 2 }
 0x1e9   : > { %v1945_v6 = vadd.f32 %v1926_v34, %v6586_v36  ;;  %v4809_v46 = vpop.f32.mrb[123].mxu1  ;;  %v3396_v36 = vrot.slane %v6565_v8, 2  ;;  %v3513_v29 = vsel %vm1068_vm6, %v3511_v10, %v3512_v58 }
 0x1ea   : > { %5053 = vmatmul.mubr.msk.bf16.gmra.mrb[228].mxu0 %vm483_vm3, %v3289_v43 }
 0x1eb   : > { %5059 = vmatmul.mubr.msk.bf16.vlgmr.msra.gmra.mrb[228].mxu1 %vm483_vm3, %v3395_v45  ;;  %5080 = vmatprep.mubr.msk.bf16.mxu0 %vm5277_vm1, %v5276_v1  ;;  %v3397_v8 = vsel %vm1068_vm6, %v3394_v35, %v3396_v36 }
 0x1ec   : > { %5101 = vmatpush3.bf16.msra.mxu1 %v3674_v40  ;;  %5062 = vmatprep.mubr.msk.bf16.mxu1 %vm5277_vm1, %v5276_v1 }
 0x1ed   : > { %v2049_v49 = vpop.f32.mrb[124].mxu0 }
 0x1ee   : > { %v1931_v12 = vpop.f32.mrb[124].mxu1  ;;  %v6687_v44 = vadd.f32 %v2049_v49, %v1944_v37  ;;  %v4830_v48 = vpop.f32.mrb[125].mxu0  ;;  %v3399_v37 = vsel %vm1068_vm6, %v3396_v36, %v3398_v32  ;;  %v3401_v49 = vsel %vm1068_vm6, %v3398_v32, %v3400_v16 }
 0x1ef   : > { %v1946_v38 = vadd.f32 %v1931_v12, %v6605_v50  ;;  %v4812_v42 = vpop.f32.mrb[125].mxu1  ;;  %v2052_v33 = vpop.f32.mrb[126].mxu0  ;;  %v3514_v50 = vrot.slane %v6400_v23, 2  ;;  %v3402_v12 = vrot.slane %v6635_v18, 2 }
 0x1f0   : > { %v1934_v4 = vpop.f32.mrb[126].mxu1  ;;  %v6691_v53 = vadd.f32 %v2052_v33, %v1945_v6  ;;  %v4831_v13 = vpop.f32.mrb[127].mxu0 }
 0x1f1   : > { %v1947_v17 = vadd.f32 %v1934_v4, %v6613_v60  ;;  %v4813_v39 = vpop.f32.mrb[127].mxu1  ;;  %v3515_v51 = vsel %vm1068_vm6, %v3512_v58, %v3514_v50 }
 0x1f2   : > { %5081 = vmatmul.mubr.msk.bf16.vlgmr.msra.gmra.mrb[232].mxu0 %vm483_vm3, %v3513_v29 }
 0x1f3   : > { %5063 = vmatmul.mubr.msk.bf16.gmra.mrb[232].mxu1 %vm483_vm3, %v3397_v8  ;;  %5123 = vmatpush3.bf16.msra.mxu0 %v3788_v56  ;;  %v6741_v8 = vld [vmem:[%s5982_s15 + $0x30] ss:$0 sps:$4 sm:$0xff]   ;;  %s5151_s15 = smul.u32 80, %s6919_s19 }
 0x1f4   : > { %5066 = vmatprep.mubr.msk.bf16.mxu1 %vm5277_vm1, %v5276_v1  ;;  %5084 = vmatprep.mubr.msk.bf16.mxu0 %vm5277_vm1, %v5276_v1 }
 0x1f5   : > { %v2057_v41 = vpop.f32.mrb[128].mxu0  ;;  %s399_s11 = sadd.s32 %s5151_s15, %s5150_s9 }
 0x1f6   : > { %v6704_v11 = vadd.f32 %v2057_v41, %v1946_v38  ;;  %v2181_v60 = vpop.f32.mrb[128].mxu1  ;;  %v4834_v55 = vpop.f32.mrb[129].mxu0  ;;  %s4132_s18 = sshll.u32 %s399_s11, 2 }
 0x1f7   : > { %v2220_v21 = vadd.f32 %v2181_v60, %v6626_v14  ;;  %v4840_v59 = vpop.f32.mrb[129].mxu1  ;;  %v2060_v35 = vpop.f32.mrb[130].mxu0  ;;  %v3516_v14 = vrot.slane %v6142_v22, 2  ;;  %s6866_s13 = scalar_lea.vmem %s6907_s5, %s4132_s18 }
 0x1f8   : > { %v6708_v0 = vadd.f32 %v2060_v35, %v1947_v17  ;;  %v2184_v15 = vpop.f32.mrb[130].mxu1  ;;  %v4835_v52 = vpop.f32.mrb[131].mxu0 }
 0x1f9   : > { %v2221_v3 = vadd.f32 %v2184_v15, %v6630_v26  ;;  %v4841_v25 = vpop.f32.mrb[131].mxu1  ;;  %v3517_v40 = vsel %vm1068_vm6, %v3514_v50, %v3516_v14  ;;  %v3403_v50 = vsel %vm1068_vm6, %v3400_v16, %v3402_v12 }
 0x1fa   : > { %5085 = vmatmul.mubr.msk.bf16.gmra.mrb[236].mxu0 %vm483_vm3, %v3515_v51  ;;  %v3633_v25 = vrot.slane %v2869_v54, 3 }
 0x1fb   : > { %5067 = vmatmul.mubr.msk.bf16.gmra.mrb[236].mxu1 %vm483_vm3, %v3399_v37  ;;  %5088 = vmatprep.mubr.msk.bf16.mxu0 %vm5277_vm1, %v5276_v1 }
 0x1fc   : > { %5070 = vmatprep.mubr.msk.bf16.mxu1 %vm5277_vm1, %v5276_v1 }
 0x1fd   : > { %v2295_v43 = vpop.f32.mrb[132].mxu0 }
 0x1fe   : > { %v2189_v34 = vpop.f32.mrb[132].mxu1  ;;  %v6720_v63 = vadd.f32 %v2295_v43, %v2220_v21  ;;  %v4862_v26 = vpop.f32.mrb[133].mxu0  ;;  %v3762_v43 = vrot.slane %v6368_v27, 3 }
 0x1ff   : > { %v2222_v45 = vadd.f32 %v2189_v34, %v6647_v5  ;;  %v4844_v6 = vpop.f32.mrb[133].mxu1  ;;  %v2298_v46 = vpop.f32.mrb[134].mxu0  ;;  %v3518_v5 = vrot.slane %v6464_v57, 2 }
 0x200   : > { %v2192_v10 = vpop.f32.mrb[134].mxu1  ;;  %v6724_v58 = vadd.f32 %v2298_v46, %v2221_v3  ;;  %v4863_v36 = vpop.f32.mrb[135].mxu0  ;;  %v3632_v3 = vrot.slane %v2873_v62, 2 }
 0x201   : > { %v2223_v20 = vadd.f32 %v2192_v10, %v6651_v7  ;;  %v4845_v31 = vpop.f32.mrb[135].mxu1  ;;  %v3519_v13 = vsel %vm1068_vm6, %v3516_v14, %v3518_v5 }
 0x202   : > { %5089 = vmatmul.mubr.msk.bf16.gmra.mrb[240].mxu0 %vm483_vm3, %v3517_v40  ;;  %v3634_v62 = vor.u32 %v3633_v25, %v3632_v3 }
 0x203   : > { %5071 = vmatmul.mubr.msk.bf16.gmra.mrb[240].mxu1 %vm483_vm3, %v3401_v49  ;;  %5092 = vmatprep.mubr.msk.bf16.mxu0 %vm5277_vm1, %v5276_v1 }
 0x204   : > { %5074 = vmatprep.mubr.msk.bf16.mxu1 %vm5277_vm1, %v5276_v1  ;;  %v3635_v27 = vsel %vm1301_vm7, %v6407_v2, %v3634_v62 }
 0x205   : > { %v2303_v48 = vpop.f32.mrb[136].mxu0 }
 0x206   : > { %v2197_v38 = vpop.f32.mrb[136].mxu1  ;;  %v6736_v42 = vadd.f32 %v2303_v48, %v2222_v45  ;;  %v4866_v7 = vpop.f32.mrb[137].mxu0 }
 0x207   : > { %v2224_v33 = vadd.f32 %v2197_v38, %v6663_v28  ;;  %v4848_v29 = vpop.f32.mrb[137].mxu1  ;;  %v2306_v4 = vpop.f32.mrb[138].mxu0  ;;  %v3520_v28 = vrot.slane %v6741_v8, 2  ;;  %v3639_v7 = vsel %vm1301_vm7, %v3634_v62, %v6165_v61  ;;  %v3650_v61 = vshrl.u32 %v6741_v8, 16 }
 0x208   : > { %v2200_v56 = vpop.f32.mrb[138].mxu1  ;;  %v6743_v17 = vadd.f32 %v2306_v4, %v2223_v20  ;;  %v4867_v39 = vpop.f32.mrb[139].mxu0 }
 0x209   : > { %v2225_v18 = vadd.f32 %v2200_v56, %v6670_v19  ;;  %v4849_v32 = vpop.f32.mrb[139].mxu1  ;;  %v3521_v51 = vsel %vm1068_vm6, %v3518_v5, %v3520_v28  ;;  %v3653_v56 = vshll.u32 %v6741_v8, 16 }
 0x20a   : > { %5093 = vmatmul.mubr.msk.bf16.gmra.mrb[244].mxu0 %vm483_vm3, %v3519_v13 }
 0x20b   : > { %5075 = vmatmul.mubr.msk.bf16.gmra.mrb[244].mxu1 %vm483_vm3, %v3403_v50  ;;  %5096 = vmatprep.mubr.msk.bf16.mxu0 %vm5277_vm1, %v5276_v1 }
 0x20c   : > { %5102 = vmatprep.mubr.msk.bf16.mxu1 %vm5277_vm1, %v5276_v1 }
 0x20d   : > { %v2311_v41 = vpop.f32.mrb[140].mxu0 }
 0x20e   : > { %v2205_v60 = vpop.f32.mrb[140].mxu1  ;;  %v6754_v55 = vadd.f32 %v2311_v41, %v2224_v33  ;;  %v4870_v21 = vpop.f32.mrb[141].mxu0 }
 0x20f   : > { %v2226_v19 = vadd.f32 %v2205_v60, %v6687_v44  ;;  %v4852_v59 = vpop.f32.mrb[141].mxu1  ;;  %v2314_v35 = vpop.f32.mrb[142].mxu0  ;;  %v3761_v44 = vrot.slane %v6343_v30, 3 }
 0x210   : > { %v2208_v15 = vpop.f32.mrb[142].mxu1  ;;  %v6758_v52 = vadd.f32 %v2314_v35, %v2225_v18  ;;  %v4871_v37 = vpop.f32.mrb[143].mxu0  ;;  %v3652_v59 = vrot.slane %v3650_v61, 2  ;;  %v3655_v35 = vrot.slane %v3653_v56, 3 }
 0x211   : > { %v2227_v14 = vadd.f32 %v2208_v15, %v6691_v53  ;;  %v4853_v16 = vpop.f32.mrb[143].mxu1  ;;  %v3763_v46 = vsel %vm1438_vm8, %v3761_v44, %v3762_v43 }
 0x212   : > { %5097 = vmatmul.mubr.msk.bf16.gmra.mrb[248].mxu0 %vm483_vm3, %v3521_v51  ;;  %v3656_v37 = vor.u32 %v3655_v35, %v3652_v59 }
 0x213   : > { %5103 = vmatmul.mubr.msk.bf16.vlgmr.msra.gmra.mrb[248].mxu1 %vm483_vm3, %v6414_v9  ;;  %5124 = vmatprep.mubr.msk.bf16.mxu0 %vm5277_vm1, %v5276_v1 }
 0x214   : > { %5106 = vmatprep.mubr.msk.bf16.mxu1 %vm5277_vm1, %v5276_v1 }
 0x215   : > { %v2319_v54 = vpop.f32.mrb[144].mxu0 }
 0x216   : > { %v2213_v34 = vpop.f32.mrb[144].mxu1  ;;  %v6774_v53 = vadd.f32 %v2319_v54, %v2226_v19  ;;  %v4874_v26 = vpop.f32.mrb[145].mxu0 }
 0x217   : > { %v2228_v45 = vadd.f32 %v2213_v34, %v6704_v11  ;;  %v4856_v6 = vpop.f32.mrb[145].mxu1  ;;  %v2322_v9 = vpop.f32.mrb[146].mxu0  ;;  %v3764_v11 = vrot.slane %v6400_v23, 3 }
 0x218   : > { %v2216_v40 = vpop.f32.mrb[146].mxu1  ;;  %v6778_v10 = vadd.f32 %v2322_v9, %v2227_v14  ;;  %v4875_v30 = vpop.f32.mrb[147].mxu0 }
 0x219   : > { %v2229_v36 = vadd.f32 %v2216_v40, %v6708_v0  ;;  %v4857_v49 = vpop.f32.mrb[147].mxu1  ;;  %v3765_v38 = vsel %vm1438_vm8, %v3762_v43, %v3764_v11 }
 0x21a   : > { %5125 = vmatmul.mubr.msk.bf16.vlgmr.msra.gmra.mrb[252].mxu0 %vm483_vm3, %v3763_v46 }
 0x21b   : > { %5107 = vmatmul.mubr.msk.bf16.gmra.mrb[252].mxu1 %vm483_vm3, %v3635_v27  ;;  %5128 = vmatprep.mubr.msk.bf16.mxu0 %vm5277_vm1, %v5276_v1 }
 0x21c   : > { %5110 = vmatprep.mubr.msk.bf16.mxu1 %vm5277_vm1, %v5276_v1 }
 0x21d   : > { %v2327_v20 = vpop.f32.mrb[148].mxu0 }
 0x21e   : > { %v6790_v31 = vadd.f32 %v2327_v20, %v2228_v45  ;;  %v2413_v5 = vpop.f32.mrb[148].mxu1  ;;  %v4878_v2 = vpop.f32.mrb[149].mxu0 }
 0x21f   : > { %v2452_v0 = vadd.f32 %v2413_v5, %v6720_v63  ;;  %v4884_v12 = vpop.f32.mrb[149].mxu1  ;;  %v2330_v48 = vpop.f32.mrb[150].mxu0  ;;  %v3766_v63 = vrot.slane %v6142_v22, 3 }
 0x220   : > { %v6796_v33 = vadd.f32 %v2330_v48, %v2229_v36  ;;  %v2416_v23 = vpop.f32.mrb[150].mxu1  ;;  %v4879_v29 = vpop.f32.mrb[151].mxu0 }
 0x221   : > { %v2453_v4 = vadd.f32 %v2416_v23, %v6724_v58  ;;  %v4885_v13 = vpop.f32.mrb[151].mxu1  ;;  %v3767_v60 = vsel %vm1438_vm8, %v3764_v11, %v3766_v63 }
 0x222   : > { %5129 = vmatmul.mubr.msk.bf16.gmra.mrb[0].mxu0 %vm483_vm3, %v3765_v38 }
 0x223   : > { %5111 = vmatmul.mubr.msk.bf16.gmra.mrb[0].mxu1 %vm483_vm3, %v3639_v7  ;;  %5132 = vmatprep.mubr.msk.bf16.mxu0 %vm5277_vm1, %v5276_v1 }
 0x224   : > { %5114 = vmatprep.mubr.msk.bf16.mxu1 %vm5277_vm1, %v5276_v1 }
 0x225   : > { %v2549_v39 = vpop.f32.mrb[152].mxu0 }
 0x226   : > { %v2421_v50 = vpop.f32.mrb[152].mxu1  ;;  %v6808_v58 = vadd.f32 %v2549_v39, %v2452_v0  ;;  %v4906_v18 = vpop.f32.mrb[153].mxu0 }
 0x227   : > { %v2454_v32 = vadd.f32 %v2421_v50, %v6736_v42  ;;  %v4888_v28 = vpop.f32.mrb[153].mxu1  ;;  %v2552_v41 = vpop.f32.mrb[154].mxu0  ;;  %v3768_v42 = vrot.slane %v6464_v57, 3  ;;  %v3657_v57 = vsel %vm1301_vm7, %v6487_v24, %v3656_v37 }
 0x228   : > { %v2424_v21 = vpop.f32.mrb[154].mxu1  ;;  %v6812_v22 = vadd.f32 %v2552_v41, %v2453_v4  ;;  %v4907_v19 = vpop.f32.mrb[155].mxu0 }
 0x229   : > { %v2455_v51 = vadd.f32 %v2424_v21, %v6743_v17  ;;  %v4889_v15 = vpop.f32.mrb[155].mxu1  ;;  %v3769_v62 = vsel %vm1438_vm8, %v3766_v63, %v3768_v42 }
 0x22a   : > { %5133 = vmatmul.mubr.msk.bf16.gmra.mrb[4].mxu0 %vm483_vm3, %v3767_v60 }
 0x22b   : > { %5115 = vmatmul.mubr.msk.bf16.gmra.mrb[4].mxu1 %vm483_vm3, %v6494_v47  ;;  %5136 = vmatprep.mubr.msk.bf16.mxu0 %vm5277_vm1, %v5276_v1 }
 0x22c   : > { %5118 = vmatprep.mubr.msk.bf16.mxu1 %vm5277_vm1, %v5276_v1 }
 0x22d   : > { %v2557_v3 = vpop.f32.mrb[156].mxu0 }
 0x22e   : > { %v2429_v25 = vpop.f32.mrb[156].mxu1  ;;  %v2590_v14 = vadd.f32 %v2557_v3, %v2454_v32  ;;  %v4910_v16 = vpop.f32.mrb[157].mxu0 }
 0x22f   : > { %v2456_v17 = vadd.f32 %v2429_v25, %v6754_v55  ;;  %v4892_v44 = vpop.f32.mrb[157].mxu1  ;;  %v2560_v43 = vpop.f32.mrb[158].mxu0  ;;  %v3770_v55 = vrot.slane %v6741_v8, 3 }
 0x230   : > { %v2432_v47 = vpop.f32.mrb[158].mxu1  ;;  %v2591_v54 = vadd.f32 %v2560_v43, %v2455_v51  ;;  %v4911_v34 = vpop.f32.mrb[159].mxu0 }
 0x231   : > { %v2457_v26 = vadd.f32 %v2432_v47, %v6758_v52  ;;  %v4893_v45 = vpop.f32.mrb[159].mxu1  ;;  %v3771_v52 = vsel %vm1438_vm8, %v3768_v42, %v3770_v55 }
 0x232   : > { %5137 = vmatmul.mubr.msk.bf16.gmra.mrb[8].mxu0 %vm483_vm3, %v3769_v62 }
 0x233   : > { %5119 = vmatmul.mubr.msk.bf16.gmra.mrb[8].mxu1 %vm483_vm3, %v3657_v57  ;;  %5140 = vmatprep.mubr.msk.bf16.mxu0 %vm5277_vm1, %v5276_v1 }
 0x235   : > { %v2565_v6 = vpop.f32.mrb[160].mxu0 }
 0x236   : > { %v2437_v9 = vpop.f32.mrb[160].mxu1  ;;  %v2592_v46 = vadd.f32 %v2565_v6, %v2456_v17  ;;  %v4914_v40 = vpop.f32.mrb[161].mxu0 }
 0x237   : > { %v2458_v30 = vadd.f32 %v2437_v9, %v6774_v53  ;;  %v4896_v27 = vpop.f32.mrb[161].mxu1  ;;  %v2568_v24 = vpop.f32.mrb[162].mxu0 }
 0x238   : > { %v2440_v36 = vpop.f32.mrb[162].mxu1  ;;  %v2593_v49 = vadd.f32 %v2568_v24, %v2457_v26  ;;  %v4915_v11 = vpop.f32.mrb[163].mxu0 }
 0x239   : > { %v2459_v20 = vadd.f32 %v2440_v36, %v6778_v10  ;;  %v4897_v5 = vpop.f32.mrb[163].mxu1 }
 0x23a   : > { %5141 = vmatmul.mubr.msk.bf16.gmra.mrb[12].mxu0 %vm483_vm3, %v3771_v52 }
 0x23d   : > { %v2573_v1 = vpop.f32.mrb[164].mxu0 }
 0x23e   : > { %v2445_v8 = vpop.f32.mrb[164].mxu1  ;;  %v2594_v2 = vadd.f32 %v2573_v1, %v2458_v30  ;;  %v4918_v0 = vpop.f32.mrb[165].mxu0 }
 0x23f   : > { %v2460_v12 = vadd.f32 %v2445_v8, %v6790_v31  ;;  %v4900_v48 = vpop.f32.mrb[165].mxu1  ;;  %v2576_v53 = vpop.f32.mrb[166].mxu0 }
 0x240   : > { %v2448_v38 = vpop.f32.mrb[166].mxu1  ;;  %v2595_v7 = vadd.f32 %v2576_v53, %v2459_v20  ;;  %v4919_v23 = vpop.f32.mrb[167].mxu0 }
 0x241   : > { %v2461_v29 = vadd.f32 %v2448_v38, %v6796_v33  ;;  %v4901_v4 = vpop.f32.mrb[167].mxu1 }
 0x245   : > { %v2581_v13 = vpop.f32.mrb[168].mxu0 }
 0x246   : > { %v2596_v63 = vadd.f32 %v2581_v13, %v2460_v12  ;;  %v2663_v10 = vpop.f32.mrb[168].mxu1  ;;  %v4922_v61 = vpop.f32.mrb[169].mxu0 }
 0x247   : > { %v2702_v56 = vadd.f32 %v2663_v10, %v6808_v58  ;;  %v4928_v39 = vpop.f32.mrb[169].mxu1  ;;  %v2584_v50 = vpop.f32.mrb[170].mxu0 }
 0x248   : > { %v2597_v18 = vadd.f32 %v2584_v50, %v2461_v29  ;;  %v2666_v32 = vpop.f32.mrb[170].mxu1  ;;  %v4923_v28 = vpop.f32.mrb[171].mxu0 }
 0x249   : > { %v2703_v31 = vadd.f32 %v2666_v32, %v6812_v22  ;;  %v4929_v41 = vpop.f32.mrb[171].mxu1 }
 0x24d   : > { %v2797_v60 = vpop.f32.mrb[172].mxu0 }
 0x24e   : > { %v2671_v21 = vpop.f32.mrb[172].mxu1  ;;  %v2836_v19 = vadd.f32 %v2797_v60, %v2702_v56  ;;  %v4950_v59 = vpop.f32.mrb[173].mxu0 }
 0x24f   : > { %v2704_v33 = vadd.f32 %v2671_v21, %v2590_v14  ;;  %v4932_v35 = vpop.f32.mrb[173].mxu1  ;;  %v2800_v51 = vpop.f32.mrb[174].mxu0 }
 0x250   : > { %v2674_v15 = vpop.f32.mrb[174].mxu1  ;;  %v2837_v42 = vadd.f32 %v2800_v51, %v2703_v31  ;;  %v4951_v37 = vpop.f32.mrb[175].mxu0 }
 0x251   : > { %v2705_v3 = vadd.f32 %v2674_v15, %v2591_v54  ;;  %v4933_v58 = vpop.f32.mrb[175].mxu1 }
 0x255   : > { %v2805_v25 = vpop.f32.mrb[176].mxu0 }
 0x256   : > { %v2679_v16 = vpop.f32.mrb[176].mxu1  ;;  %v2838_v17 = vadd.f32 %v2805_v25, %v2704_v33  ;;  %v4954_v44 = vpop.f32.mrb[177].mxu0 }
 0x257   : > { %v2706_v43 = vadd.f32 %v2679_v16, %v2592_v46  ;;  %v4936_v62 = vpop.f32.mrb[177].mxu1  ;;  %v2808_v22 = vpop.f32.mrb[178].mxu0 }
 0x258   : > { %v2682_v47 = vpop.f32.mrb[178].mxu1  ;;  %v2839_v34 = vadd.f32 %v2808_v22, %v2705_v3  ;;  %v4955_v57 = vpop.f32.mrb[179].mxu0 }
 0x259   : > { %v2707_v26 = vadd.f32 %v2682_v47, %v2593_v49  ;;  %v4937_v45 = vpop.f32.mrb[179].mxu1 }
 0x25d   : > { %v2813_v14 = vpop.f32.mrb[180].mxu0 }
 0x25e   : > { %v2687_v55 = vpop.f32.mrb[180].mxu1  ;;  %v2840_v6 = vadd.f32 %v2813_v14, %v2706_v43  ;;  %v4958_v9 = vpop.f32.mrb[181].mxu0 }
 0x25f   : > { %v2708_v40 = vadd.f32 %v2687_v55, %v2594_v2  ;;  %v4940_v30 = vpop.f32.mrb[181].mxu1  ;;  %v2816_v54 = vpop.f32.mrb[182].mxu0 }
 0x260   : > { %v2690_v27 = vpop.f32.mrb[182].mxu1  ;;  %v2841_v24 = vadd.f32 %v2816_v54, %v2707_v26  ;;  %v4959_v52 = vpop.f32.mrb[183].mxu0 }
 0x261   : > { %v2709_v36 = vadd.f32 %v2690_v27, %v2595_v7  ;;  %v4941_v11 = vpop.f32.mrb[183].mxu1 }
 0x265   : > { %v2821_v46 = vpop.f32.mrb[184].mxu0 }
 0x266   : > { %v2695_v20 = vpop.f32.mrb[184].mxu1  ;;  %v2842_v5 = vadd.f32 %v2821_v46, %v2708_v40  ;;  %v4962_v1 = vpop.f32.mrb[185].mxu0 }
 0x267   : > { %v2710_v8 = vadd.f32 %v2695_v20, %v2596_v63  ;;  %v4944_v0 = vpop.f32.mrb[185].mxu1  ;;  %v2824_v49 = vpop.f32.mrb[186].mxu0 }
 0x268   : > { %v2698_v12 = vpop.f32.mrb[186].mxu1  ;;  %v2843_v48 = vadd.f32 %v2824_v49, %v2709_v36  ;;  %v4963_v53 = vpop.f32.mrb[187].mxu0 }
 0x269   : > { %v2711_v38 = vadd.f32 %v2698_v12, %v2597_v18  ;;  %v4945_v23 = vpop.f32.mrb[187].mxu1 }
 0x26d   : > { %v2829_v2 = vpop.f32.mrb[188].mxu0 }
 0x26e   : > { %v2844_v29 = vadd.f32 %v2829_v2, %v2710_v8  ;;  %v2940_v4 = vpop.f32.mrb[188].mxu1  ;;  %v4966_v13 = vpop.f32.mrb[189].mxu0 }
 0x26f   : > { %v2979_v10 = vadd.f32 %v2940_v4, %v2836_v19  ;;  %v4972_v61 = vpop.f32.mrb[189].mxu1  ;;  %v2832_v7 = vpop.f32.mrb[190].mxu0 }
 0x270   : > { %v2845_v56 = vadd.f32 %v2832_v7, %v2711_v38  ;;  %v2943_v39 = vpop.f32.mrb[190].mxu1  ;;  %v4967_v50 = vpop.f32.mrb[191].mxu0 }
 0x271   : > { %v2980_v32 = vadd.f32 %v2943_v39, %v2837_v42  ;;  %v4973_v28 = vpop.f32.mrb[191].mxu1 }
 0x275   : > { %v3060_v63 = vpop.f32.mrb[192].mxu0 }
 0x276   : > { %v2948_v31 = vpop.f32.mrb[192].mxu1  ;;  %v3099_v41 = vadd.f32 %v3060_v63, %v2979_v10  ;;  %v4994_v60 = vpop.f32.mrb[193].mxu0 }
 0x277   : > { %v2981_v21 = vadd.f32 %v2948_v31, %v2838_v17  ;;  %v4976_v59 = vpop.f32.mrb[193].mxu1  ;;  %v3063_v18 = vpop.f32.mrb[194].mxu0 }
 0x278   : > { %v2951_v33 = vpop.f32.mrb[194].mxu1  ;;  %v3100_v35 = vadd.f32 %v3063_v18, %v2980_v32  ;;  %v4995_v51 = vpop.f32.mrb[195].mxu0 }
 0x279   : > { %v2982_v15 = vadd.f32 %v2951_v33, %v2839_v34  ;;  %v4977_v37 = vpop.f32.mrb[195].mxu1 }
 0x27d   : > { %v3068_v19 = vpop.f32.mrb[196].mxu0 }
 0x27e   : > { %v2956_v3 = vpop.f32.mrb[196].mxu1  ;;  %v3101_v58 = vadd.f32 %v3068_v19, %v2981_v21  ;;  %v4998_v25 = vpop.f32.mrb[197].mxu0 }
 0x27f   : > { %v2983_v16 = vadd.f32 %v2956_v3, %v2840_v6  ;;  %v4980_v44 = vpop.f32.mrb[197].mxu1  ;;  %v3071_v42 = vpop.f32.mrb[198].mxu0 }
 0x280   : > { %v2959_v43 = vpop.f32.mrb[198].mxu1  ;;  %v3102_v62 = vadd.f32 %v3071_v42, %v2982_v15  ;;  %v4999_v22 = vpop.f32.mrb[199].mxu0 }
 0x281   : > { %v2984_v47 = vadd.f32 %v2959_v43, %v2841_v24  ;;  %v4981_v57 = vpop.f32.mrb[199].mxu1 }
 0x285   : > { %v3076_v17 = vpop.f32.mrb[200].mxu0 }
 0x286   : > { %v2964_v26 = vpop.f32.mrb[200].mxu1  ;;  %v3103_v45 = vadd.f32 %v3076_v17, %v2983_v16  ;;  %v5002_v14 = vpop.f32.mrb[201].mxu0 }
 0x287   : > { %v2985_v55 = vadd.f32 %v2964_v26, %v2842_v5  ;;  %v4984_v9 = vpop.f32.mrb[201].mxu1  ;;  %v3079_v34 = vpop.f32.mrb[202].mxu0 }
 0x288   : > { %v2967_v40 = vpop.f32.mrb[202].mxu1  ;;  %v3104_v30 = vadd.f32 %v3079_v34, %v2984_v47  ;;  %v5003_v54 = vpop.f32.mrb[203].mxu0 }
 0x289   : > { %v2986_v27 = vadd.f32 %v2967_v40, %v2843_v48  ;;  %v4985_v52 = vpop.f32.mrb[203].mxu1 }
 0x28d   : > { %v3084_v6 = vpop.f32.mrb[204].mxu0 }
 0x28e   : > { %v2972_v36 = vpop.f32.mrb[204].mxu1  ;;  %v3105_v11 = vadd.f32 %v3084_v6, %v2985_v55  ;;  %v5006_v46 = vpop.f32.mrb[205].mxu0 }
 0x28f   : > { %v2987_v20 = vadd.f32 %v2972_v36, %v2844_v29  ;;  %v4988_v1 = vpop.f32.mrb[205].mxu1  ;;  %v3087_v24 = vpop.f32.mrb[206].mxu0 }
 0x290   : > { %v2975_v8 = vpop.f32.mrb[206].mxu1  ;;  %v3106_v0 = vadd.f32 %v3087_v24, %v2986_v27  ;;  %v5007_v49 = vpop.f32.mrb[207].mxu0 }
 0x291   : > { %v2988_v12 = vadd.f32 %v2975_v8, %v2845_v56  ;;  %v4989_v53 = vpop.f32.mrb[207].mxu1 }
 0x295   : > { %v3092_v5 = vpop.f32.mrb[208].mxu0 }
 0x296   : > { %v3107_v38 = vadd.f32 %v3092_v5, %v2987_v20  ;;  %v3186_v23 = vpop.f32.mrb[208].mxu1  ;;  %v5010_v2 = vpop.f32.mrb[209].mxu0 }
 0x297   : > { %v3225_v4 = vadd.f32 %v3186_v23, %v3099_v41  ;;  %v5016_v13 = vpop.f32.mrb[209].mxu1  ;;  %v3095_v48 = vpop.f32.mrb[210].mxu0 }
 0x298   : > { %v3108_v10 = vadd.f32 %v3095_v48, %v2988_v12  ;;  %v3189_v61 = vpop.f32.mrb[210].mxu1  ;;  %v5011_v7 = vpop.f32.mrb[211].mxu0 }
 0x299   : > { %v3226_v39 = vadd.f32 %v3189_v61, %v3100_v35  ;;  %v5017_v50 = vpop.f32.mrb[211].mxu1 }
 0x29d   : > { %v3342_v29 = vpop.f32.mrb[212].mxu0 }
 0x29e   : > { %v3194_v32 = vpop.f32.mrb[212].mxu1  ;;  %v3381_v28 = vadd.f32 %v3342_v29, %v3225_v4  ;;  %v5038_v63 = vpop.f32.mrb[213].mxu0 }
 0x29f   : > { %v3227_v31 = vadd.f32 %v3194_v32, %v3101_v58  ;;  %v5020_v60 = vpop.f32.mrb[213].mxu1  ;;  %v3345_v56 = vpop.f32.mrb[214].mxu0 }
 0x2a0   : > { %v3197_v21 = vpop.f32.mrb[214].mxu1  ;;  %v3382_v59 = vadd.f32 %v3345_v56, %v3226_v39  ;;  %v5039_v18 = vpop.f32.mrb[215].mxu0 }
 0x2a1   : > { %v3228_v33 = vadd.f32 %v3197_v21, %v3102_v62  ;;  %v5021_v51 = vpop.f32.mrb[215].mxu1 }
 0x2a5   : > { %v3350_v41 = vpop.f32.mrb[216].mxu0 }
 0x2a6   : > { %v3202_v15 = vpop.f32.mrb[216].mxu1  ;;  %v3383_v37 = vadd.f32 %v3350_v41, %v3227_v31  ;;  %v5042_v19 = vpop.f32.mrb[217].mxu0 }
 0x2a7   : > { %v3229_v3 = vadd.f32 %v3202_v15, %v3103_v45  ;;  %v5024_v25 = vpop.f32.mrb[217].mxu1  ;;  %v3353_v35 = vpop.f32.mrb[218].mxu0 }
 0x2a8   : > { %v3205_v16 = vpop.f32.mrb[218].mxu1  ;;  %v3384_v44 = vadd.f32 %v3353_v35, %v3228_v33  ;;  %v5043_v42 = vpop.f32.mrb[219].mxu0 }
 0x2a9   : > { %v3230_v43 = vadd.f32 %v3205_v16, %v3104_v30  ;;  %v5025_v22 = vpop.f32.mrb[219].mxu1 }
 0x2ad   : > { %v3358_v58 = vpop.f32.mrb[220].mxu0 }
 0x2ae   : > { %v3210_v47 = vpop.f32.mrb[220].mxu1  ;;  %v3385_v57 = vadd.f32 %v3358_v58, %v3229_v3  ;;  %v5046_v17 = vpop.f32.mrb[221].mxu0 }
 0x2af   : > { %v3231_v26 = vadd.f32 %v3210_v47, %v3105_v11  ;;  %v5028_v14 = vpop.f32.mrb[221].mxu1  ;;  %v3361_v62 = vpop.f32.mrb[222].mxu0 }
 0x2b0   : > { %v3213_v55 = vpop.f32.mrb[222].mxu1  ;;  %v3386_v9 = vadd.f32 %v3361_v62, %v3230_v43  ;;  %v5047_v34 = vpop.f32.mrb[223].mxu0 }
 0x2b1   : > { %v3232_v40 = vadd.f32 %v3213_v55, %v3106_v0  ;;  %v5029_v54 = vpop.f32.mrb[223].mxu1 }
 0x2b5   : > { %v3366_v45 = vpop.f32.mrb[224].mxu0 }
 0x2b6   : > { %v3218_v27 = vpop.f32.mrb[224].mxu1  ;;  %v3387_v52 = vadd.f32 %v3366_v45, %v3231_v26  ;;  %v5050_v6 = vpop.f32.mrb[225].mxu0 }
 0x2b7   : > { %v3233_v36 = vadd.f32 %v3218_v27, %v3107_v38  ;;  %v5032_v46 = vpop.f32.mrb[225].mxu1  ;;  %v3369_v30 = vpop.f32.mrb[226].mxu0 }
 0x2b8   : > { %v3221_v20 = vpop.f32.mrb[226].mxu1  ;;  %v3388_v1 = vadd.f32 %v3369_v30, %v3232_v40  ;;  %v5051_v24 = vpop.f32.mrb[227].mxu0 }
 0x2b9   : > { %v3234_v8 = vadd.f32 %v3221_v20, %v3108_v10  ;;  %v5033_v49 = vpop.f32.mrb[227].mxu1 }
 0x2bd   : > { %v3374_v11 = vpop.f32.mrb[228].mxu0 }
 0x2be   : > { %v3389_v12 = vadd.f32 %v3374_v11, %v3233_v36  ;;  %v3456_v53 = vpop.f32.mrb[228].mxu1  ;;  %v5054_v5 = vpop.f32.mrb[229].mxu0 }
 0x2bf   : > { %v3495_v23 = vadd.f32 %v3456_v53, %v3381_v28  ;;  %v5060_v2 = vpop.f32.mrb[229].mxu1  ;;  %v3377_v0 = vpop.f32.mrb[230].mxu0 }
 0x2c0   : > { %v3390_v4 = vadd.f32 %v3377_v0, %v3234_v8  ;;  %v3459_v13 = vpop.f32.mrb[230].mxu1  ;;  %v5055_v48 = vpop.f32.mrb[231].mxu0 }
 0x2c1   : > { %v3496_v61 = vadd.f32 %v3459_v13, %v3382_v59  ;;  %v5061_v7 = vpop.f32.mrb[231].mxu1  ;;  %v6859_v48 = vld [vmem:[%s6906_s4] ss:$0 sm:$0xff] }
 0x2c5   : > { %v3574_v38 = vpop.f32.mrb[232].mxu0 }
 0x2c6   : > { %v3464_v39 = vpop.f32.mrb[232].mxu1  ;;  %v3613_v50 = vadd.f32 %v3574_v38, %v3495_v23  ;;  %v5082_v29 = vpop.f32.mrb[233].mxu0 }
 0x2c7   : > { %v3497_v32 = vadd.f32 %v3464_v39, %v3383_v37  ;;  %v5064_v63 = vpop.f32.mrb[233].mxu1  ;;  %v3577_v10 = vpop.f32.mrb[234].mxu0 }
 0x2c8   : > { %v3467_v31 = vpop.f32.mrb[234].mxu1  ;;  %v3614_v60 = vadd.f32 %v3577_v10, %v3496_v61  ;;  %v5083_v56 = vpop.f32.mrb[235].mxu0 }
 0x2c9   : > { %v3498_v21 = vadd.f32 %v3467_v31, %v3384_v44  ;;  %v5065_v18 = vpop.f32.mrb[235].mxu1 }
 0x2cd   : > { %v3582_v28 = vpop.f32.mrb[236].mxu0 }
 0x2ce   : > { %v3472_v33 = vpop.f32.mrb[236].mxu1  ;;  %v3615_v51 = vadd.f32 %v3582_v28, %v3497_v32  ;;  %v5086_v41 = vpop.f32.mrb[237].mxu0 }
 0x2cf   : > { %v3499_v15 = vadd.f32 %v3472_v33, %v3385_v57  ;;  %v5068_v19 = vpop.f32.mrb[237].mxu1  ;;  %v3585_v59 = vpop.f32.mrb[238].mxu0 }
 0x2d0   : > { %v3475_v3 = vpop.f32.mrb[238].mxu1  ;;  %v3616_v25 = vadd.f32 %v3585_v59, %v3498_v21  ;;  %v5087_v35 = vpop.f32.mrb[239].mxu0 }
 0x2d1   : > { %v3500_v16 = vadd.f32 %v3475_v3, %v3386_v9  ;;  %v5069_v42 = vpop.f32.mrb[239].mxu1 }
 0x2d5   : > { %v3590_v37 = vpop.f32.mrb[240].mxu0 }
 0x2d6   : > { %v3480_v43 = vpop.f32.mrb[240].mxu1  ;;  %v6841_v22 = vadd.f32 %v3590_v37, %v3499_v15  ;;  %v5090_v58 = vpop.f32.mrb[241].mxu0 }
 0x2d7   : > { %v3501_v47 = vadd.f32 %v3480_v43, %v3387_v52  ;;  %v5072_v44 = vpop.f32.mrb[241].mxu1  ;;  %v3593_v17 = vpop.f32.mrb[242].mxu0 }
 0x2d8   : > { %v3483_v26 = vpop.f32.mrb[242].mxu1  ;;  %v6843_v14 = vadd.f32 %v3593_v17, %v3500_v16  ;;  %v5091_v57 = vpop.f32.mrb[243].mxu0 }
 0x2d9   : > { %v3502_v62 = vadd.f32 %v3483_v26, %v3388_v1  ;;  %v5073_v55 = vpop.f32.mrb[243].mxu1 }
 0x2dd   : > { %v3598_v34 = vpop.f32.mrb[244].mxu0 }
 0x2de   : > { %v3488_v40 = vpop.f32.mrb[244].mxu1  ;;  %v6845_v54 = vadd.f32 %v3598_v34, %v3501_v47  ;;  %v5094_v9 = vpop.f32.mrb[245].mxu0 }
 0x2df   : > { %v3503_v45 = vadd.f32 %v3488_v40, %v3389_v12  ;;  %v5076_v27 = vpop.f32.mrb[245].mxu1  ;;  %v3601_v6 = vpop.f32.mrb[246].mxu0 }
 0x2e0   : > { %v3491_v36 = vpop.f32.mrb[246].mxu1  ;;  %v6847_v52 = vadd.f32 %v3601_v6, %v3502_v62  ;;  %v5095_v46 = vpop.f32.mrb[247].mxu0 }
 0x2e1   : > { %v3504_v30 = vadd.f32 %v3491_v36, %v3390_v4  ;;  %v5077_v20 = vpop.f32.mrb[247].mxu1 }
 0x2e5   : > { %v3606_v24 = vpop.f32.mrb[248].mxu0 }
 0x2e6   : > { %v6850_v1 = vadd.f32 %v3606_v24, %v3503_v45  ;;  %v3710_v8 = vpop.f32.mrb[248].mxu1  ;;  %v5098_v49 = vpop.f32.mrb[249].mxu0 }
 0x2e7   : > { %v3749_v11 = vadd.f32 %v3710_v8, %v3613_v50  ;;  %v5104_v53 = vpop.f32.mrb[249].mxu1  ;;  %v3609_v5 = vpop.f32.mrb[250].mxu0 }
 0x2e8   : > { %v6853_v12 = vadd.f32 %v3609_v5, %v3504_v30  ;;  %v3713_v23 = vpop.f32.mrb[250].mxu1  ;;  %v5099_v2 = vpop.f32.mrb[251].mxu0 }
 0x2e9   : > { %v3750_v0 = vadd.f32 %v3713_v23, %v3614_v60  ;;  %v5105_v13 = vpop.f32.mrb[251].mxu1 }
 0x2ed   : > { %v3824_v4 = vpop.f32.mrb[252].mxu0 }
 0x2ee   : > { %v3718_v61 = vpop.f32.mrb[252].mxu1  ;;  %v3863_v7 = vadd.f32 %v3824_v4, %v3749_v11  ;;  %v5126_v38 = vpop.f32.mrb[253].mxu0 }
 0x2ef   : > { %v3751_v39 = vadd.f32 %v3718_v61, %v3615_v51  ;;  %v5108_v50 = vpop.f32.mrb[253].mxu1  ;;  %v3827_v29 = vpop.f32.mrb[254].mxu0 }
 0x2f0   : > { %v3880_v32 = vadd.f32 %v6859_v48, %v3863_v7  ;;  %v3721_v63 = vpop.f32.mrb[254].mxu1  ;;  %v3864_v10 = vadd.f32 %v3827_v29, %v3750_v0  ;;  %v5127_v31 = vpop.f32.mrb[255].mxu0 }
 0x2f1   : > { %v3752_v60 = vadd.f32 %v3721_v63, %v3616_v25  ;;  %v5109_v56 = vpop.f32.mrb[255].mxu1 }
 0x2f2   : > { %v3881_v21 = vadd.f32 %v6859_v48, %v3864_v10  ;;  %v3890_v18 = vmax.f32 %v3880_v32, 0.0 }
 0x2f4   : > { %v3891_v28 = vmax.f32 %v3881_v21, 0.0 }
 0x2f5   : > { %v3832_v33 = vpop.f32.mrb[0].mxu0 }
 0x2f6   : > { %v4362_v51 = vpack.c.bf16 %v3891_v28, %v3890_v18  ;;  %v3726_v41 = vpop.f32.mrb[0].mxu1  ;;  %v3865_v15 = vadd.f32 %v3832_v33, %v3751_v39  ;;  %v5130_v19 = vpop.f32.mrb[1].mxu0 }
 0x2f7   : > { %v3753_v59 = vadd.f32 %v3726_v41, %v6841_v22  ;;  %v5112_v3 = vpop.f32.mrb[1].mxu1  ;;  %v3835_v25 = vpop.f32.mrb[2].mxu0 }
 0x2f8   : > { %4363 = vst [vmem:[%s6866_s13] sm:$0xff] %v4362_v51   ;;  %v3882_v35 = vadd.f32 %v6859_v48, %v3865_v15  ;;  %v3729_v16 = vpop.f32.mrb[2].mxu1  ;;  %v3866_v42 = vadd.f32 %v3835_v25, %v3752_v60  ;;  %v5131_v37 = vpop.f32.mrb[3].mxu0 }
 0x2f9   : > { %v3754_v43 = vadd.f32 %v3729_v16, %v6843_v14  ;;  %v5113_v58 = vpop.f32.mrb[3].mxu1 }
 0x2fa   : > { %v3883_v47 = vadd.f32 %v6859_v48, %v3866_v42  ;;  %v3892_v44 = vmax.f32 %v3882_v35, 0.0 }
 0x2fc   : > { %v3893_v17 = vmax.f32 %v3883_v47, 0.0 }
 0x2fd   : > { %v3840_v26 = vpop.f32.mrb[4].mxu0 }
 0x2fe   : > { %v4367_v57 = vpack.c.bf16 %v3893_v17, %v3892_v44  ;;  %v3734_v62 = vpop.f32.mrb[4].mxu1  ;;  %v3867_v22 = vadd.f32 %v3840_v26, %v3753_v59  ;;  %v5134_v55 = vpop.f32.mrb[5].mxu0 }
 0x2ff   : > { %v3755_v34 = vadd.f32 %v3734_v62, %v6845_v54  ;;  %v5116_v40 = vpop.f32.mrb[5].mxu1  ;;  %v3843_v9 = vpop.f32.mrb[6].mxu0 }
 0x300   : > { %4384 = vst [vmem:[%s6866_s13 + $0x8] sm:$0xff] %v4367_v57   ;;  %v3884_v45 = vadd.f32 %v6859_v48, %v3867_v22  ;;  %v3737_v27 = vpop.f32.mrb[6].mxu1  ;;  %v3868_v14 = vadd.f32 %v3843_v9, %v3754_v43  ;;  %v5135_v6 = vpop.f32.mrb[7].mxu0 }
 0x301   : > { %v3756_v36 = vadd.f32 %v3737_v27, %v6847_v52  ;;  %v5117_v46 = vpop.f32.mrb[7].mxu1 }
 0x302   : > { %v3885_v30 = vadd.f32 %v6859_v48, %v3868_v14  ;;  %v3894_v20 = vmax.f32 %v3884_v45, 0.0 }
 0x304   : > { %v3895_v24 = vmax.f32 %v3885_v30, 0.0 }
 0x305   : > { %v3848_v8 = vpop.f32.mrb[8].mxu0 }
 0x306   : > { %v4372_v49 = vpack.c.bf16 %v3895_v24, %v3894_v20  ;;  %v3742_v11 = vpop.f32.mrb[8].mxu1  ;;  %v3869_v54 = vadd.f32 %v3848_v8, %v3755_v34  ;;  %v5138_v53 = vpop.f32.mrb[9].mxu0 }
 0x307   : > { %v3757_v5 = vadd.f32 %v3742_v11, %v6850_v1  ;;  %v5120_v23 = vpop.f32.mrb[9].mxu1  ;;  %v3851_v2 = vpop.f32.mrb[10].mxu0 }
 0x308   : > { %4385 = vst [vmem:[%s6866_s13 + $0x10] sm:$0xff] %v4372_v49   ;;  %v3886_v0 = vadd.f32 %v6859_v48, %v3869_v54  ;;  %v3745_v13 = vpop.f32.mrb[10].mxu1  ;;  %v3870_v52 = vadd.f32 %v3851_v2, %v3756_v36  ;;  %v5139_v4 = vpop.f32.mrb[11].mxu0 }
 0x309   : > { %v3758_v61 = vadd.f32 %v3745_v13, %v6853_v12  ;;  %v5121_v7 = vpop.f32.mrb[11].mxu1 }
 0x30a   : > { %v3887_v38 = vadd.f32 %v6859_v48, %v3870_v52  ;;  %v3896_v39 = vmax.f32 %v3886_v0, 0.0 }
 0x30c   : > { %v3897_v50 = vmax.f32 %v3887_v38, 0.0 }
 0x30d   : > { %v3856_v29 = vpop.f32.mrb[12].mxu0 }
 0x30e   : > { %v4377_v32 = vpack.c.bf16 %v3897_v50, %v3896_v39  ;;  %v3871_v1 = vadd.f32 %v3856_v29, %v3757_v5  ;;  %v5142_v63 = vpop.f32.mrb[13].mxu0 }
 0x30f   : > { %v3859_v10 = vpop.f32.mrb[14].mxu0 }
 0x310   : > { %4386 = vst [vmem:[%s6866_s13 + $0x18] sm:$0xff] %v4377_v32   ;;  %v3888_v31 = vadd.f32 %v6859_v48, %v3871_v1  ;;  %v3872_v60 = vadd.f32 %v3859_v10, %v3758_v61  ;;  %v5143_v56 = vpop.f32.mrb[15].mxu0 }
 0x312   : > { %v3889_v21 = vadd.f32 %v6859_v48, %v3872_v60  ;;  %v3898_v18 = vmax.f32 %v3888_v31, 0.0 }
 0x314   : > { %v3899_v12 = vmax.f32 %v3889_v21, 0.0 }
 0x316   : > { %v4382_v28 = vpack.c.bf16 %v3899_v12, %v3898_v18 }
 0x318   : > { %4387 = vst [vmem:[%s6866_s13 + $0x20] sm:$0xff] %v4382_v28  }
 0x319 PF: > { %s15_s22 = sadd.s32 1, %s5274_s22   ;;  %s6908_s18 = smov %s5266_s20 }
 0x31a   : > { %p12_p10 = scmp.ge.s32.totalorder %s15_s22, 18   ;;  %s6909_s19 = smov %s5270_s21 }
 0x31b   : > { %s6910_s20 = smov %s6913_s23  ;;  %s6911_s21 = smov %s6917_s24 }
 0x31c   :  { %14 = sbr.rel (!%p12_p10) target bundleno = 3 (0x3), region = 102 }

</bundles_post_ra>
